<compile_context>
chip_gen: v5e
topology: v5e:2x2
jax: 0.10.0
libtpu: 0.0.40
codegen_flags: <defaults>
</compile_context>

<pallas_src>
import jax
import jax.numpy as jnp
from jax.experimental import pallas as pl
from jax.experimental.pallas import tpu as pltpu

EPS = 1e-5      # nn.BatchNorm2d default eps
LANE = 128      # lane / MXU alignment


def _round_up(x, m):
    return (x + m - 1) // m * m


def _pick_th(Ho, cap=32):
    """Largest divisor of Ho that is <= cap (output-row tile height)."""
    th = min(Ho, cap)
    while Ho % th:
        th -= 1
    return th


def _cparams(grid_rank):
    # v7x has only 64 MiB VMEM per TensorCore: keep the scoped budget well below
    # that to leave headroom for Mosaic-internal scratch.  v5e/v6e (128 MiB)
    # could go higher, but the blocks used here fit comfortably either way.
    return pltpu.CompilerParams(
        dimension_semantics=("parallel",) * grid_rank,
        vmem_limit_bytes=48 * 1024 * 1024,
    )


# ------------------------------------------------------------------ kernels --
def _make_conv3x3_kernel(*, TH, Ho, Wo, Cp, do_affine, do_proj, pad_out_w):
    """3x3 stride-1 conv as 9 accumulating MXU dots over shifted slices of a
    VMEM-resident NHWC slab (no im2col patches in HBM).  Optionally fuses a
    per-channel affine (folded BatchNorm) + ReLU on the *input* tile -- this is
    how bn1+relu is folded into the conv2 pass -- and a 1x1 projection-shortcut
    matmul.  Emits per-row-tile BN partial statistics (sum, sumsq) in f32."""

    def kernel(*refs):
        it = iter(refs)
        x_ref = next(it)                                   # (1, Ho, Wo+2, Cin_p)
        sc_ref = next(it) if do_affine else None           # (1, Cp)
        sh_ref = next(it) if do_affine else None           # (1, Cp)
        w_ref = next(it)                                   # (9, Cin_p, Cp)
        xs_ref = next(it) if do_proj else None             # (1, TH, Wo, Ks)
        ws_ref = next(it) if do_proj else None             # (Ks, Cp)
        y_ref = next(it)
        ssum_ref = next(it)
        ssq_ref = next(it)
        if do_proj:
            ysc_ref = next(it)
            psum_ref = next(it)
            psq_ref = next(it)

        r0 = pl.program_id(1) * TH
        # Output rows [r0, r0+TH) need input rows [r0-1, r0+TH]; load the three
        # pieces with clamped starts, the halo mask below zeroes out-of-range
        # (duplicated) rows.  The W halo is pre-padded in the stored layout.
        top = x_ref[0, pl.ds(jnp.maximum(r0 - 1, 0), 1), :, :]
        body = x_ref[0, pl.ds(r0, TH), :, :]
        bot = x_ref[0, pl.ds(jnp.minimum(r0 + TH, Ho - 1), 1), :, :]
        rows = jnp.concatenate([top, body, bot], axis=0)   # (TH+2, Wo+2, Cin_p)

        if do_affine:
            # fused bn1-apply + ReLU on the conv2 input (out1 never hits HBM)
            rows = jnp.maximum(
                rows.astype(jnp.float32) * sc_ref[...] + sh_ref[...], 0.0)

        # Zero the SAME-padding halo ring *after* the (optional) affine+ReLU so
        # it matches zero padding of the activation.
        ri = jax.lax.broadcasted_iota(jnp.int32, rows.shape, 0) + (r0 - 1)
        ci = jax.lax.broadcasted_iota(jnp.int32, rows.shape, 1)
        valid = (ri >= 0) & (ri < Ho) & (ci >= 1) & (ci <= Wo)
        win = jnp.where(valid, rows, 0).astype(jnp.bfloat16)

        cin = win.shape[-1]
        acc = jnp.zeros((TH * Wo, Cp), jnp.float32)
        for t in range(9):                                 # 9 taps = 9 MXU dots
            dy, dx = divmod(t, 3)
            lhs = win[dy:dy + TH, dx:dx + Wo, :].reshape(TH * Wo, cin)
            acc = acc + jnp.dot(lhs, w_ref[t], preferred_element_type=jnp.float32)

        y_tile = acc.reshape(TH, Wo, Cp).astype(y_ref.dtype)
        if pad_out_w:
            # This output feeds the next conv: keep it W-padded so the consumer
            # needs no column-halo handling beyond a mask.
            y_ref[...] = jnp.zeros(y_ref.shape, y_ref.dtype)
            y_ref[0, :, 1:Wo + 1, :] = y_tile
        else:
            y_ref[...] = y_tile.reshape(1, TH, Wo, Cp)

        # BN partials: cheap VPU/XLU work riding under the MXU; two separate
        # lane-dense stores (no sublane concatenate).
        ssum_ref[...] = jnp.sum(acc, axis=0, keepdims=True).reshape(1, 1, 1, Cp)
        ssq_ref[...] = jnp.sum(acc * acc, axis=0, keepdims=True).reshape(1, 1, 1, Cp)

        if do_proj:
            ks = xs_ref.shape[-1]
            accs = jnp.dot(xs_ref[0].reshape(TH * Wo, ks), ws_ref[...],
                           preferred_element_type=jnp.float32)
            ysc_ref[...] = accs.reshape(1, TH, Wo, Cp).astype(ysc_ref.dtype)
            psum_ref[...] = jnp.sum(accs, axis=0, keepdims=True).reshape(1, 1, 1, Cp)
            psq_ref[...] = jnp.sum(accs * accs, axis=0, keepdims=True).reshape(1, 1, 1, Cp)

    return kernel


def _im2col_conv_kernel(p_ref, w_ref, y_ref, ssum_ref, ssq_ref):
    # Fallback for the strided conv1 only: single MXU dot over pre-built patches.
    _, TH, Wo, K = p_ref.shape
    Cp = w_ref.shape[-1]
    acc = jnp.dot(p_ref[0].reshape(TH * Wo, K), w_ref[...],
                  preferred_element_type=jnp.float32)
    y_ref[...] = jnp.zeros(y_ref.shape, y_ref.dtype)
    y_ref[0, :, 1:Wo + 1, :] = acc.reshape(TH, Wo, Cp).astype(y_ref.dtype)
    ssum_ref[...] = jnp.sum(acc, axis=0, keepdims=True).reshape(1, 1, 1, Cp)
    ssq_ref[...] = jnp.sum(acc * acc, axis=0, keepdims=True).reshape(1, 1, 1, Cp)


def _epilogue_proj_kernel(y2_ref, ysc_ref, s2_ref, h2_ref, ss_ref, hs_ref, o_ref):
    main = y2_ref[...].astype(jnp.float32) * s2_ref[...] + h2_ref[...]
    sc = ysc_ref[...].astype(jnp.float32) * ss_ref[...] + hs_ref[...]
    o_ref[...] = jnp.maximum(main + sc, 0.0).astype(o_ref.dtype)


def _epilogue_id_kernel(y2_ref, res_ref, s2_ref, h2_ref, o_ref):
    main = y2_ref[...].astype(jnp.float32) * s2_ref[...] + h2_ref[...]
    o_ref[...] = jnp.maximum(main + res_ref[...].astype(jnp.float32), 0.0).astype(o_ref.dtype)


# --------------------------------------------------------- pallas wrappers ---
def conv3x3_bn_stats(x_img, w_taps, TH, *, affine=None, proj=None, pad_out_w=False):
    """x_img: (N, Ho, Wo+2, Cin_p) bf16, W pre-padded by one column on each side."""
    N, Ho, Wp2, Cin_p = x_img.shape
    Wo = Wp2 - 2
    Cp = w_taps.shape[-1]
    HT = Ho // TH
    do_affine = affine is not None
    do_proj = proj is not None

    kernel = _make_conv3x3_kernel(TH=TH, Ho=Ho, Wo=Wo, Cp=Cp, do_affine=do_affine,
                                  do_proj=do_proj, pad_out_w=pad_out_w)

    # NOTE: grid-invariant blocks (weights, scale/shift) could additionally use
    # pipeline_mode=pl.Buffered(1) to drop their second pipeline buffer; omitted
    # for portability -- at these sizes the VMEM headroom is ample anyway.
    img_spec = pl.BlockSpec((1, Ho, Wp2, Cin_p), lambda n, h: (n, 0, 0, 0))
    vec_spec = pl.BlockSpec((1, Cp), lambda n, h: (0, 0))
    in_specs = [img_spec]
    args = [x_img]
    if do_affine:
        in_specs += [vec_spec, vec_spec]
        args += list(affine)
    in_specs.append(pl.BlockSpec(w_taps.shape, lambda n, h: (0, 0, 0)))
    args.append(w_taps)
    if do_proj:
        xs, ws = proj
        in_specs += [pl.BlockSpec((1, TH, Wo, xs.shape[-1]), lambda n, h: (n, h, 0, 0)),
                     pl.BlockSpec(ws.shape, lambda n, h: (0, 0))]
        args += [xs, ws]

    w_out = Wo + 2 if pad_out_w else Wo
    stat_sds = jax.ShapeDtypeStruct((N, HT, 1, Cp), jnp.float32)
    stat_spec = pl.BlockSpec((1, 1, 1, Cp), lambda n, h: (n, h, 0, 0))
    out_shape = [jax.ShapeDtypeStruct((N, Ho, w_out, Cp), jnp.bfloat16), stat_sds, stat_sds]
    out_specs = [pl.BlockSpec((1, TH, w_out, Cp), lambda n, h: (n, h, 0, 0)),
                 stat_spec, stat_spec]
    if do_proj:
        out_shape += [jax.ShapeDtypeStruct((N, Ho, Wo, Cp), jnp.bfloat16), stat_sds, stat_sds]
        out_specs += [pl.BlockSpec((1, TH, Wo, Cp), lambda n, h: (n, h, 0, 0)),
                      stat_spec, stat_spec]

    k_proj = proj[0].shape[-1] if do_proj else 0
    flops = 2 * N * Ho * Wo * Cp * (9 * Cin_p + k_proj)
    bytes_acc = (x_img.size + w_taps.size) * 2 + N * Ho * w_out * Cp * 2 + 2 * N * HT * Cp * 4
    if do_proj:
        bytes_acc += (proj[0].size + proj[1].size) * 2 + N * Ho * Wo * Cp * 2 + 2 * N * HT * Cp * 4

    return pl.pallas_call(
        kernel,
        out_shape=tuple(out_shape),
        grid=(N, HT),
        in_specs=in_specs,
        out_specs=tuple(out_specs),
        compiler_params=_cparams(2),
        cost_estimate=pl.CostEstimate(flops=int(flops), transcendentals=0,
                                      bytes_accessed=int(bytes_acc)),
    )(*args)


def im2col_conv_stats(p, w, TH):
    """Strided-conv1 fallback: patches (N, Ho, Wo, K) bf16 -> W-padded bf16 output."""
    N, Ho, Wo, K = p.shape
    Cp = w.shape[-1]
    HT = Ho // TH
    stat_sds = jax.ShapeDtypeStruct((N, HT, 1, Cp), jnp.float32)
    stat_spec = pl.BlockSpec((1, 1, 1, Cp), lambda n, h: (n, h, 0, 0))
    return pl.pallas_call(
        _im2col_conv_kernel,
        out_shape=(jax.ShapeDtypeStruct((N, Ho, Wo + 2, Cp), jnp.bfloat16), stat_sds, stat_sds),
        grid=(N, HT),
        in_specs=[pl.BlockSpec((1, TH, Wo, K), lambda n, h: (n, h, 0, 0)),
                  pl.BlockSpec((K, Cp), lambda n, h: (0, 0))],
        out_specs=(pl.BlockSpec((1, TH, Wo + 2, Cp), lambda n, h: (n, h, 0, 0)),
                   stat_spec, stat_spec),
        compiler_params=_cparams(2),
        cost_estimate=pl.CostEstimate(
            flops=int(2 * N * Ho * Wo * K * Cp), transcendentals=0,
            bytes_accessed=int((p.size + w.size) * 2 + N * Ho * (Wo + 2) * Cp * 2
                               + 2 * N * HT * Cp * 4)),
    )(p, w)


def fused_bn_add_relu(y2, scale2, shift2, TH, *, ysc=None, proj_affine=None, residual=None):
    N, Ho, Wo, Cp = y2.shape
    HT = Ho // TH
    tile_spec = pl.BlockSpec((1, TH, Wo, Cp), lambda n, h: (n, h, 0, 0))
    vec_spec = pl.BlockSpec((1, Cp), lambda n, h: (0, 0))
    if ysc is not None:
        scs, shs = proj_affine
        kernel = _epilogue_proj_kernel
        in_specs = [tile_spec, tile_spec, vec_spec, vec_spec, vec_spec, vec_spec]
        args = (y2, ysc, scale2, shift2, scs, shs)
    else:
        kernel = _epilogue_id_kernel
        in_specs = [tile_spec, tile_spec, vec_spec, vec_spec]
        args = (y2, residual, scale2, shift2)
    return pl.pallas_call(
        kernel,
        out_shape=jax.ShapeDtypeStruct((N, Ho, Wo, Cp), jnp.float32),
        grid=(N, HT),
        in_specs=in_specs,
        out_specs=tile_spec,
        compiler_params=_cparams(2),
    )(*args)


# ----------------------------------------------------------------- helpers ---
def _pad_last(a, n):
    if a.shape[-1] == n:
        return a
    return jnp.pad(a, [(0, 0)] * (a.ndim - 1) + [(0, n - a.shape[-1])])


def _pad1(v, n):
    return jnp.pad(v, (0, n - v.shape[0]))


def _pad2(a, r, c):
    return jnp.pad(a, ((0, r - a.shape[0]), (0, c - a.shape[1])))


def _conv_taps(w_hwio, cin_p, cout_p):
    """(3,3,Cin,Cout) HWIO weights -> (9, Cin_p, Cout_p) bf16 per-tap slabs."""
    k = w_hwio.reshape(9, w_hwio.shape[2], w_hwio.shape[3])
    k = jnp.pad(k, ((0, 0), (0, cin_p - k.shape[1]), (0, cout_p - k.shape[2])))
    return k.astype(jnp.bfloat16)


def _im2col_3x3(x, stride):
    """3x3 conv, padding=1 -> (N, Ho, Wo, 9*C) patches; channels fastest."""
    N, H, W, C = x.shape
    Ho = (H - 1) // stride + 1
    Wo = (W - 1) // stride + 1
    xp = jnp.pad(x, ((0, 0), (1, 1), (1, 1), (0, 0)))
    cols = []
    for dy in range(3):
        for dx in range(3):
            cols.append(xp[:, dy:dy + (Ho - 1) * stride + 1:stride,
                           dx:dx + (Wo - 1) * stride + 1:stride, :])
    return jnp.concatenate(cols, axis=-1)


def _bn_fold(ssum, ssq, count, gamma, beta, Cp):
    """Reduce per-tile (sum, sumsq) partials into folded BN scale/shift (1, Cp)."""
    s = jnp.sum(ssum, axis=(0, 1, 2))
    q = jnp.sum(ssq, axis=(0, 1, 2))
    mean = s / count
    var = jnp.maximum(q / count - mean * mean, 0.0)
    scale = _pad1(gamma, Cp) * jax.lax.rsqrt(var + EPS)
    shift = _pad1(beta, Cp) - mean * scale
    return scale.reshape(1, Cp), shift.reshape(1, Cp)


# ------------------------------------------------------------------ forward --
def _basic_block_forward(x_nchw, params, stride=1):
    x = jnp.transpose(x_nchw, (0, 2, 3, 1)).astype(jnp.float32)   # NHWC
    N, H, W, Cin = x.shape
    planes = params['w1'].shape[-1]
    has_proj = 'ws' in params
    if not has_proj:
        assert stride == 1 and Cin == planes, \
            "identity shortcut requires stride==1 and in_planes==planes"

    Cp = _round_up(planes, LANE)
    Cin_p = _round_up(Cin, LANE)
    Ho = (H - 1) // stride + 1
    Wo = (W - 1) // stride + 1
    TH = _pick_th(Ho)
    count = float(N * Ho * Wo)

    # ---- conv1 -> raw y1 (bf16, W-padded for the conv2 halo) + BN1 partials --
    if stride == 1:
        # TODO(synk): for images too large to keep one padded batch element
        # resident in VMEM, switch to a manual halo DMA (pl.ANY + make_async_copy).
        x_in = jnp.pad(x, ((0, 0), (0, 0), (1, 1), (0, Cin_p - Cin))).astype(jnp.bfloat16)
        w1t = _conv_taps(params['w1'], Cin_p, Cp)
        y1, s1, q1 = conv3x3_bn_stats(x_in, w1t, TH, pad_out_w=True)
    else:
        # TODO(synk): strided conv1 still uses an XLA im2col (9x Cin blow-up);
        # replace with a parity-split halo kernel if this layer ever dominates.
        K1p = _round_up(9 * Cin, LANE)
        p1 = _pad_last(_im2col_3x3(x, stride), K1p).astype(jnp.bfloat16)
        w1m = _pad2(params['w1'].reshape(9 * Cin, planes), K1p, Cp).astype(jnp.bfloat16)
        y1, s1, q1 = im2col_conv_stats(p1, w1m, TH)
    scale1, shift1 = _bn_fold(s1, q1, count, params['g1'], params['b1'], Cp)

    # ---- bn1-apply + relu fused into conv2 (+ optional 1x1 shortcut) ---------
    w2t = _conv_taps(params['w2'], Cp, Cp)
    if has_proj:
        xs = _pad_last(x[:, ::stride, ::stride, :], Cin_p).astype(jnp.bfloat16)
        ws = _pad2(params['ws'].reshape(Cin, planes), Cin_p, Cp).astype(jnp.bfloat16)
        y2, s2, q2, ysc, ps, pq = conv3x3_bn_stats(
            y1, w2t, TH, affine=(scale1, shift1), proj=(xs, ws), pad_out_w=False)
        scale2, shift2 = _bn_fold(s2, q2, count, params['g2'], params['b2'], Cp)
        scs, shs = _bn_fold(ps, pq, count, params['gs'], params['bs'], Cp)
        out = fused_bn_add_relu(y2, scale2, shift2, TH, ysc=ysc, proj_affine=(scs, shs))
    else:
        y2, s2, q2 = conv3x3_bn_stats(y1, w2t, TH, affine=(scale1, shift1), pad_out_w=False)
        scale2, shift2 = _bn_fold(s2, q2, count, params['g2'], params['b2'], Cp)
        res = _pad_last(x, Cp).astype(jnp.bfloat16)      # bf16 residual (halved read)
        out = fused_bn_add_relu(y2, scale2, shift2, TH, residual=res)

    return jnp.transpose(out[..., :planes], (0, 3, 1, 2))           # back to NCHW


basic_block_forward = jax.jit(_basic_block_forward, static_argnums=(2,))


# --------------------------------------------------------- pure-JAX reference
def _ref_bn(x, gamma, beta):  # NHWC, training-mode batch stats
    mean = jnp.mean(x, axis=(0, 1, 2), keepdims=True)
    var = jnp.mean((x - mean) ** 2, axis=(0, 1, 2), keepdims=True)
    return (x - mean) * jax.lax.rsqrt(var + EPS) * gamma + beta


def _ref_conv(x, w_hwio, stride, pad):
    return jax.lax.conv_general_dilated(
        x, w_hwio, (stride, stride), ((pad, pad), (pad, pad)),
        dimension_numbers=('NHWC', 'HWIO', 'NHWC'))


def reference_forward(x_nchw, params, stride=1):
    x = jnp.transpose(x_nchw, (0, 2, 3, 1)).astype(jnp.float32)
    out = jnp.maximum(_ref_bn(_ref_conv(x, params['w1'], stride, 1),
                              params['g1'], params['b1']), 0.0)
    out = _ref_bn(_ref_conv(out, params['w2'], 1, 1), params['g2'], params['b2'])
    if 'ws' in params:
        sc = _ref_bn(_ref_conv(x, params['ws'], stride, 0), params['gs'], params['bs'])
    else:
        sc = x
    out = jnp.maximum(out + sc, 0.0)
    return jnp.transpose(out, (0, 3, 1, 2))


# ------------------------------------------------------------------- main ----
def _make_params(key, cin, planes, with_proj):
    ks = jax.random.split(key, 10)
    p = {
        'w1': 0.1 * jax.random.normal(ks[1], (3, 3, cin, planes), jnp.float32),
        'g1': 1.0 + 0.1 * jax.random.normal(ks[2], (planes,), jnp.float32),
        'b1': 0.1 * jax.random.normal(ks[3], (planes,), jnp.float32),
        'w2': 0.1 * jax.random.normal(ks[4], (3, 3, planes, planes), jnp.float32),
        'g2': 1.0 + 0.1 * jax.random.normal(ks[5], (planes,), jnp.float32),
        'b2': 0.1 * jax.random.normal(ks[6], (planes,), jnp.float32),
    }
    if with_proj:
        p['ws'] = 0.1 * jax.random.normal(ks[7], (1, 1, cin, planes), jnp.float32)
        p['gs'] = 1.0 + 0.1 * jax.random.normal(ks[8], (planes,), jnp.float32)
        p['bs'] = 0.1 * jax.random.normal(ks[9], (planes,), jnp.float32)
    return p


if __name__ == "__main__":
    key = jax.random.PRNGKey(0)
    configs = [
        # (N, Cin, H, W, planes, stride)
        (2, 4, 16, 16, 8, 1),   # projection shortcut (Cin != planes)
        (2, 8, 16, 16, 8, 1),   # identity shortcut
        (2, 4, 16, 16, 8, 2),   # strided projection shortcut
    ]
    for idx, (N, Cin, H, W, planes, stride) in enumerate(configs):
        kx, kp = jax.random.split(jax.random.fold_in(key, idx))
        x = jax.random.normal(kx, (N, Cin, H, W), jnp.float32)
        with_proj = (stride != 1) or (Cin != planes)
        params = _make_params(kp, Cin, planes, with_proj)

        out = jax.block_until_ready(basic_block_forward(x, params, stride))
        ref = jax.block_until_ready(reference_forward(x, params, stride))
        assert out.shape == ref.shape, f"shape mismatch in config {idx}"
        # bf16 MXU inputs and bf16 inter-kernel activations -> relaxed tolerance
        # vs the all-f32 reference.
        assert jnp.allclose(out, ref, atol=5e-2, rtol=5e-2), \
            f"mismatch vs reference in config {idx}"
    print("KERNEL_OK")
</pallas_src>

<mosaic_0001>
module attributes {stable_mosaic.version = 11 : i64} {
  func.func @kernel(%arg0: i32, %arg1: i32, %arg2: memref<1x16x18x128xbf16, #tpu.memory_space<vmem>>, %arg3: memref<9x128x128xbf16, #tpu.memory_space<vmem>>, %arg4: memref<1x16x18x128xbf16, #tpu.memory_space<vmem>>, %arg5: memref<1x1x1x128xf32, #tpu.memory_space<vmem>>, %arg6: memref<1x1x1x128xf32, #tpu.memory_space<vmem>>) attributes {dimension_semantics = [#tpu.dimension_semantics<parallel>, #tpu.dimension_semantics<parallel>], iteration_bounds = array<i64: 2, 1>, scalar_prefetch = 0 : i64, scratch_operands = 0 : i64, tpu.core_type = #tpu.core_type<tc>, window_params = [{transform_indices = @transform_0, window_bounds = array<i64: 1, 16, 18, 128>}, {pipeline_mode = #tpu.pipeline_mode<synchronous>, transform_indices = @transform_1, window_bounds = array<i64: 9, 128, 128>}, {transform_indices = @transform_2, window_bounds = array<i64: 1, 16, 18, 128>}, {transform_indices = @transform_3, window_bounds = array<i64: 1, 1, 1, 128>}, {transform_indices = @transform_4, window_bounds = array<i64: 1, 1, 1, 128>}]} {
    %c16_i32 = arith.constant 16 : i32
    %0 = arith.muli %arg1, %c16_i32 : i32
    %c1_i32 = arith.constant 1 : i32
    %1 = arith.subi %0, %c1_i32 : i32
    %c0_i32 = arith.constant 0 : i32
    %2 = arith.maxsi %1, %c0_i32 : i32
    %c0 = arith.constant 0 : index
    %3 = arith.index_cast %2 : i32 to index
    %c0_0 = arith.constant 0 : index
    %c0_1 = arith.constant 0 : index
    %4 = vector.load %arg2[%c0, %3, %c0_0, %c0_1] : memref<1x16x18x128xbf16, #tpu.memory_space<vmem>>, vector<1x1x18x128xbf16>
    %5 = vector.shape_cast %4 : vector<1x1x18x128xbf16> to vector<1x18x128xbf16>
    %c0_2 = arith.constant 0 : index
    %6 = arith.index_cast %0 : i32 to index
    %c0_3 = arith.constant 0 : index
    %c0_4 = arith.constant 0 : index
    %7 = vector.load %arg2[%c0_2, %6, %c0_3, %c0_4] : memref<1x16x18x128xbf16, #tpu.memory_space<vmem>>, vector<1x16x18x128xbf16>
    %8 = vector.shape_cast %7 : vector<1x16x18x128xbf16> to vector<16x18x128xbf16>
    %c16_i32_5 = arith.constant 16 : i32
    %9 = arith.addi %0, %c16_i32_5 : i32
    %c15_i32 = arith.constant 15 : i32
    %10 = arith.minsi %9, %c15_i32 : i32
    %c0_6 = arith.constant 0 : index
    %11 = arith.index_cast %10 : i32 to index
    %c0_7 = arith.constant 0 : index
    %c0_8 = arith.constant 0 : index
    %12 = vector.load %arg2[%c0_6, %11, %c0_7, %c0_8] : memref<1x16x18x128xbf16, #tpu.memory_space<vmem>>, vector<1x1x18x128xbf16>
    %13 = vector.shape_cast %12 : vector<1x1x18x128xbf16> to vector<1x18x128xbf16>
    %14 = tpu.concatenate %5, %8, %13 in 0 : vector<1x18x128xbf16>, vector<16x18x128xbf16>, vector<1x18x128xbf16> -> vector<18x18x128xbf16>
    %15 = tpu.iota {dimensions = array<i32: 0>} : vector<18x18x128xi32>
    %c1_i32_9 = arith.constant 1 : i32
    %16 = arith.subi %0, %c1_i32_9 : i32
    %17 = vector.broadcast %16 : i32 to vector<18x18x128xi32>
    %18 = arith.addi %15, %17 : vector<18x18x128xi32>
    %19 = tpu.iota {dimensions = array<i32: 1>} : vector<18x18x128xi32>
    %c0_i32_10 = arith.constant 0 : i32
    %20 = vector.broadcast %c0_i32_10 : i32 to vector<18x18x128xi32>
    %21 = arith.cmpi sge, %18, %20 : vector<18x18x128xi32>
    %c16_i32_11 = arith.constant 16 : i32
    %22 = vector.broadcast %c16_i32_11 : i32 to vector<18x18x128xi32>
    %23 = arith.cmpi slt, %18, %22 : vector<18x18x128xi32>
    %24 = arith.andi %21, %23 : vector<18x18x128xi1>
    %c1_i32_12 = arith.constant 1 : i32
    %25 = vector.broadcast %c1_i32_12 : i32 to vector<18x18x128xi32>
    %26 = arith.cmpi sge, %19, %25 : vector<18x18x128xi32>
    %27 = arith.andi %24, %26 : vector<18x18x128xi1>
    %c16_i32_13 = arith.constant 16 : i32
    %28 = vector.broadcast %c16_i32_13 : i32 to vector<18x18x128xi32>
    %29 = arith.cmpi sle, %19, %28 : vector<18x18x128xi32>
    %30 = arith.andi %27, %29 : vector<18x18x128xi1>
    %c0_i32_14 = arith.constant 0 : i32
    %31 = arith.sitofp %c0_i32_14 : i32 to bf16
    %32 = vector.broadcast %31 : bf16 to vector<18x18x128xbf16>
    %33 = arith.select %30, %14, %32 : vector<18x18x128xi1>, vector<18x18x128xbf16>
    %cst = arith.constant 0.000000e+00 : f32
    %34 = vector.broadcast %cst : f32 to vector<256x128xf32>
    %35 = vector.extract_strided_slice %33 {offsets = [0, 0, 0], sizes = [16, 16, 128], strides = [1, 1, 1]} : vector<18x18x128xbf16> to vector<16x16x128xbf16>
    %36 = vector.shape_cast %35 : vector<16x16x128xbf16> to vector<256x128xbf16>
    %c0_15 = arith.constant 0 : index
    %c0_16 = arith.constant 0 : index
    %c0_17 = arith.constant 0 : index
    %37 = vector.load %arg3[%c0_15, %c0_16, %c0_17] : memref<9x128x128xbf16, #tpu.memory_space<vmem>>, vector<1x128x128xbf16>
    %38 = vector.shape_cast %37 : vector<1x128x128xbf16> to vector<128x128xbf16>
    %cst_18 = arith.constant dense<0.000000e+00> : vector<256x128xf32>
    %39 = tpu.matmul %36, %38, %cst_18 {dimension_numbers = #tpu.dot_dimension_numbers<[1], [0], [0], [1], [0, 0, 1, 1], [], []>} : vector<256x128xbf16>, vector<128x128xbf16>, vector<256x128xf32> -> vector<256x128xf32>
    %40 = arith.addf %34, %39 : vector<256x128xf32>
    %41 = vector.extract_strided_slice %33 {offsets = [0, 1, 0], sizes = [16, 16, 128], strides = [1, 1, 1]} : vector<18x18x128xbf16> to vector<16x16x128xbf16>
    %42 = vector.shape_cast %41 : vector<16x16x128xbf16> to vector<256x128xbf16>
    %c1 = arith.constant 1 : index
    %c0_19 = arith.constant 0 : index
    %c0_20 = arith.constant 0 : index
    %43 = vector.load %arg3[%c1, %c0_19, %c0_20] : memref<9x128x128xbf16, #tpu.memory_space<vmem>>, vector<1x128x128xbf16>
    %44 = vector.shape_cast %43 : vector<1x128x128xbf16> to vector<128x128xbf16>
    %cst_21 = arith.constant dense<0.000000e+00> : vector<256x128xf32>
    %45 = tpu.matmul %42, %44, %cst_21 {dimension_numbers = #tpu.dot_dimension_numbers<[1], [0], [0], [1], [0, 0, 1, 1], [], []>} : vector<256x128xbf16>, vector<128x128xbf16>, vector<256x128xf32> -> vector<256x128xf32>
    %46 = arith.addf %40, %45 : vector<256x128xf32>
    %47 = vector.extract_strided_slice %33 {offsets = [0, 2, 0], sizes = [16, 16, 128], strides = [1, 1, 1]} : vector<18x18x128xbf16> to vector<16x16x128xbf16>
    %48 = vector.shape_cast %47 : vector<16x16x128xbf16> to vector<256x128xbf16>
    %c2 = arith.constant 2 : index
    %c0_22 = arith.constant 0 : index
    %c0_23 = arith.constant 0 : index
    %49 = vector.load %arg3[%c2, %c0_22, %c0_23] : memref<9x128x128xbf16, #tpu.memory_space<vmem>>, vector<1x128x128xbf16>
    %50 = vector.shape_cast %49 : vector<1x128x128xbf16> to vector<128x128xbf16>
    %cst_24 = arith.constant dense<0.000000e+00> : vector<256x128xf32>
    %51 = tpu.matmul %48, %50, %cst_24 {dimension_numbers = #tpu.dot_dimension_numbers<[1], [0], [0], [1], [0, 0, 1, 1], [], []>} : vector<256x128xbf16>, vector<128x128xbf16>, vector<256x128xf32> -> vector<256x128xf32>
    %52 = arith.addf %46, %51 : vector<256x128xf32>
    %53 = vector.extract_strided_slice %33 {offsets = [1, 0, 0], sizes = [16, 16, 128], strides = [1, 1, 1]} : vector<18x18x128xbf16> to vector<16x16x128xbf16>
    %54 = vector.shape_cast %53 : vector<16x16x128xbf16> to vector<256x128xbf16>
    %c3 = arith.constant 3 : index
    %c0_25 = arith.constant 0 : index
    %c0_26 = arith.constant 0 : index
    %55 = vector.load %arg3[%c3, %c0_25, %c0_26] : memref<9x128x128xbf16, #tpu.memory_space<vmem>>, vector<1x128x128xbf16>
    %56 = vector.shape_cast %55 : vector<1x128x128xbf16> to vector<128x128xbf16>
    %cst_27 = arith.constant dense<0.000000e+00> : vector<256x128xf32>
    %57 = tpu.matmul %54, %56, %cst_27 {dimension_numbers = #tpu.dot_dimension_numbers<[1], [0], [0], [1], [0, 0, 1, 1], [], []>} : vector<256x128xbf16>, vector<128x128xbf16>, vector<256x128xf32> -> vector<256x128xf32>
    %58 = arith.addf %52, %57 : vector<256x128xf32>
    %59 = vector.extract_strided_slice %33 {offsets = [1, 1, 0], sizes = [16, 16, 128], strides = [1, 1, 1]} : vector<18x18x128xbf16> to vector<16x16x128xbf16>
    %60 = vector.shape_cast %59 : vector<16x16x128xbf16> to vector<256x128xbf16>
    %c4 = arith.constant 4 : index
    %c0_28 = arith.constant 0 : index
    %c0_29 = arith.constant 0 : index
    %61 = vector.load %arg3[%c4, %c0_28, %c0_29] : memref<9x128x128xbf16, #tpu.memory_space<vmem>>, vector<1x128x128xbf16>
    %62 = vector.shape_cast %61 : vector<1x128x128xbf16> to vector<128x128xbf16>
    %cst_30 = arith.constant dense<0.000000e+00> : vector<256x128xf32>
    %63 = tpu.matmul %60, %62, %cst_30 {dimension_numbers = #tpu.dot_dimension_numbers<[1], [0], [0], [1], [0, 0, 1, 1], [], []>} : vector<256x128xbf16>, vector<128x128xbf16>, vector<256x128xf32> -> vector<256x128xf32>
    %64 = arith.addf %58, %63 : vector<256x128xf32>
    %65 = vector.extract_strided_slice %33 {offsets = [1, 2, 0], sizes = [16, 16, 128], strides = [1, 1, 1]} : vector<18x18x128xbf16> to vector<16x16x128xbf16>
    %66 = vector.shape_cast %65 : vector<16x16x128xbf16> to vector<256x128xbf16>
    %c5 = arith.constant 5 : index
    %c0_31 = arith.constant 0 : index
    %c0_32 = arith.constant 0 : index
    %67 = vector.load %arg3[%c5, %c0_31, %c0_32] : memref<9x128x128xbf16, #tpu.memory_space<vmem>>, vector<1x128x128xbf16>
    %68 = vector.shape_cast %67 : vector<1x128x128xbf16> to vector<128x128xbf16>
    %cst_33 = arith.constant dense<0.000000e+00> : vector<256x128xf32>
    %69 = tpu.matmul %66, %68, %cst_33 {dimension_numbers = #tpu.dot_dimension_numbers<[1], [0], [0], [1], [0, 0, 1, 1], [], []>} : vector<256x128xbf16>, vector<128x128xbf16>, vector<256x128xf32> -> vector<256x128xf32>
    %70 = arith.addf %64, %69 : vector<256x128xf32>
    %71 = vector.extract_strided_slice %33 {offsets = [2, 0, 0], sizes = [16, 16, 128], strides = [1, 1, 1]} : vector<18x18x128xbf16> to vector<16x16x128xbf16>
    %72 = vector.shape_cast %71 : vector<16x16x128xbf16> to vector<256x128xbf16>
    %c6 = arith.constant 6 : index
    %c0_34 = arith.constant 0 : index
    %c0_35 = arith.constant 0 : index
    %73 = vector.load %arg3[%c6, %c0_34, %c0_35] : memref<9x128x128xbf16, #tpu.memory_space<vmem>>, vector<1x128x128xbf16>
    %74 = vector.shape_cast %73 : vector<1x128x128xbf16> to vector<128x128xbf16>
    %cst_36 = arith.constant dense<0.000000e+00> : vector<256x128xf32>
    %75 = tpu.matmul %72, %74, %cst_36 {dimension_numbers = #tpu.dot_dimension_numbers<[1], [0], [0], [1], [0, 0, 1, 1], [], []>} : vector<256x128xbf16>, vector<128x128xbf16>, vector<256x128xf32> -> vector<256x128xf32>
    %76 = arith.addf %70, %75 : vector<256x128xf32>
    %77 = vector.extract_strided_slice %33 {offsets = [2, 1, 0], sizes = [16, 16, 128], strides = [1, 1, 1]} : vector<18x18x128xbf16> to vector<16x16x128xbf16>
    %78 = vector.shape_cast %77 : vector<16x16x128xbf16> to vector<256x128xbf16>
    %c7 = arith.constant 7 : index
    %c0_37 = arith.constant 0 : index
    %c0_38 = arith.constant 0 : index
    %79 = vector.load %arg3[%c7, %c0_37, %c0_38] : memref<9x128x128xbf16, #tpu.memory_space<vmem>>, vector<1x128x128xbf16>
    %80 = vector.shape_cast %79 : vector<1x128x128xbf16> to vector<128x128xbf16>
    %cst_39 = arith.constant dense<0.000000e+00> : vector<256x128xf32>
    %81 = tpu.matmul %78, %80, %cst_39 {dimension_numbers = #tpu.dot_dimension_numbers<[1], [0], [0], [1], [0, 0, 1, 1], [], []>} : vector<256x128xbf16>, vector<128x128xbf16>, vector<256x128xf32> -> vector<256x128xf32>
    %82 = arith.addf %76, %81 : vector<256x128xf32>
    %83 = vector.extract_strided_slice %33 {offsets = [2, 2, 0], sizes = [16, 16, 128], strides = [1, 1, 1]} : vector<18x18x128xbf16> to vector<16x16x128xbf16>
    %84 = vector.shape_cast %83 : vector<16x16x128xbf16> to vector<256x128xbf16>
    %c8 = arith.constant 8 : index
    %c0_40 = arith.constant 0 : index
    %c0_41 = arith.constant 0 : index
    %85 = vector.load %arg3[%c8, %c0_40, %c0_41] : memref<9x128x128xbf16, #tpu.memory_space<vmem>>, vector<1x128x128xbf16>
    %86 = vector.shape_cast %85 : vector<1x128x128xbf16> to vector<128x128xbf16>
    %cst_42 = arith.constant dense<0.000000e+00> : vector<256x128xf32>
    %87 = tpu.matmul %84, %86, %cst_42 {dimension_numbers = #tpu.dot_dimension_numbers<[1], [0], [0], [1], [0, 0, 1, 1], [], []>} : vector<256x128xbf16>, vector<128x128xbf16>, vector<256x128xf32> -> vector<256x128xf32>
    %88 = arith.addf %82, %87 : vector<256x128xf32>
    %89 = vector.shape_cast %88 : vector<256x128xf32> to vector<16x16x128xf32>
    %90 = arith.truncf %89 : vector<16x16x128xf32> to vector<16x16x128xbf16>
    %cst_43 = arith.constant 0.000000e+00 : bf16
    %91 = vector.broadcast %cst_43 : bf16 to vector<1x16x18x128xbf16>
    %c0_44 = arith.constant 0 : index
    %c0_45 = arith.constant 0 : index
    %c0_46 = arith.constant 0 : index
    %c0_47 = arith.constant 0 : index
    %92 = vector.load %arg4[%c0_44, %c0_45, %c0_46, %c0_47] : memref<1x16x18x128xbf16, #tpu.memory_space<vmem>>, vector<1x16x18x128xbf16>
    tpu.vector_store %arg4[%c0_44, %c0_45, %c0_46, %c0_47], %91 {strides = array<i32>} : memref<1x16x18x128xbf16, #tpu.memory_space<vmem>>, vector<1x16x18x128xbf16>,
    %c0_48 = arith.constant 0 : index
    %c0_49 = arith.constant 0 : index
    %c1_50 = arith.constant 1 : index
    %c0_51 = arith.constant 0 : index
    %93 = vector.load %arg4[%c0_48, %c0_49, %c1_50, %c0_51] : memref<1x16x18x128xbf16, #tpu.memory_space<vmem>>, vector<1x16x16x128xbf16>
    %94 = vector.shape_cast %93 : vector<1x16x16x128xbf16> to vector<16x16x128xbf16>
    %95 = vector.shape_cast %90 : vector<16x16x128xbf16> to vector<1x16x16x128xbf16>
    tpu.vector_store %arg4[%c0_48, %c0_49, %c1_50, %c0_51], %95 {strides = array<i32>} : memref<1x16x18x128xbf16, #tpu.memory_space<vmem>>, vector<1x16x16x128xbf16>,
    %cst_52 = arith.constant dense<0.000000e+00> : vector<128xf32>
    %96 = vector.multi_reduction <add>, %88, %cst_52 [0] : vector<256x128xf32> to vector<128xf32>
    %97 = vector.shape_cast %96 : vector<128xf32> to vector<1x128xf32>
    %98 = vector.shape_cast %97 : vector<1x128xf32> to vector<1x1x1x128xf32>
    %c0_53 = arith.constant 0 : index
    %c0_54 = arith.constant 0 : index
    %c0_55 = arith.constant 0 : index
    %c0_56 = arith.constant 0 : index
    %99 = vector.load %arg5[%c0_53, %c0_54, %c0_55, %c0_56] : memref<1x1x1x128xf32, #tpu.memory_space<vmem>>, vector<1x1x1x128xf32>
    tpu.vector_store %arg5[%c0_53, %c0_54, %c0_55, %c0_56], %98 {strides = array<i32>} : memref<1x1x1x128xf32, #tpu.memory_space<vmem>>, vector<1x1x1x128xf32>,
    %100 = arith.mulf %88, %88 : vector<256x128xf32>
    %cst_57 = arith.constant dense<0.000000e+00> : vector<128xf32>
    %101 = vector.multi_reduction <add>, %100, %cst_57 [0] : vector<256x128xf32> to vector<128xf32>
    %102 = vector.shape_cast %101 : vector<128xf32> to vector<1x128xf32>
    %103 = vector.shape_cast %102 : vector<1x128xf32> to vector<1x1x1x128xf32>
    %c0_58 = arith.constant 0 : index
    %c0_59 = arith.constant 0 : index
    %c0_60 = arith.constant 0 : index
    %c0_61 = arith.constant 0 : index
    %104 = vector.load %arg6[%c0_58, %c0_59, %c0_60, %c0_61] : memref<1x1x1x128xf32, #tpu.memory_space<vmem>>, vector<1x1x1x128xf32>
    tpu.vector_store %arg6[%c0_58, %c0_59, %c0_60, %c0_61], %103 {strides = array<i32>} : memref<1x1x1x128xf32, #tpu.memory_space<vmem>>, vector<1x1x1x128xf32>,
    return
  }
  func.func @transform_0(%arg0: i32, %arg1: i32) -> (i32, i32, i32, i32) {
    %c0_i32 = arith.constant 0 : i32
    %c0_i32_0 = arith.constant 0 : i32
    %c0_i32_1 = arith.constant 0 : i32
    %c0_i32_2 = arith.constant 0 : i32
    return %arg0, %c0_i32, %c0_i32_0, %c0_i32_1 : i32, i32, i32, i32
  }
  func.func @transform_1(%arg0: i32, %arg1: i32) -> (i32, i32, i32) {
    %c0_i32 = arith.constant 0 : i32
    %c0_i32_0 = arith.constant 0 : i32
    %c0_i32_1 = arith.constant 0 : i32
    %c0_i32_2 = arith.constant 0 : i32
    return %c0_i32, %c0_i32_0, %c0_i32_1 : i32, i32, i32
  }
  func.func @transform_2(%arg0: i32, %arg1: i32) -> (i32, i32, i32, i32) {
    %c0_i32 = arith.constant 0 : i32
    %c0_i32_0 = arith.constant 0 : i32
    %c0_i32_1 = arith.constant 0 : i32
    return %arg0, %arg1, %c0_i32, %c0_i32_0 : i32, i32, i32, i32
  }
  func.func @transform_3(%arg0: i32, %arg1: i32) -> (i32, i32, i32, i32) {
    %c0_i32 = arith.constant 0 : i32
    %c0_i32_0 = arith.constant 0 : i32
    %c0_i32_1 = arith.constant 0 : i32
    return %arg0, %arg1, %c0_i32, %c0_i32_0 : i32, i32, i32, i32
  }
  func.func @transform_4(%arg0: i32, %arg1: i32) -> (i32, i32, i32, i32) {
    %c0_i32 = arith.constant 0 : i32
    %c0_i32_0 = arith.constant 0 : i32
    %c0_i32_1 = arith.constant 0 : i32
    return %arg0, %arg1, %c0_i32, %c0_i32_0 : i32, i32, i32, i32
  }
}

module attributes {stable_mosaic.version = 11 : i64} {
  func.func @kernel(%arg0: i32, %arg1: i32, %arg2: memref<1x16x18x128xbf16, #tpu.memory_space<vmem>>, %arg3: memref<1x128xf32, #tpu.memory_space<vmem>>, %arg4: memref<1x128xf32, #tpu.memory_space<vmem>>, %arg5: memref<9x128x128xbf16, #tpu.memory_space<vmem>>, %arg6: memref<1x16x16x128xbf16, #tpu.memory_space<vmem>>, %arg7: memref<128x128xbf16, #tpu.memory_space<vmem>>, %arg8: memref<1x16x16x128xbf16, #tpu.memory_space<vmem>>, %arg9: memref<1x1x1x128xf32, #tpu.memory_space<vmem>>, %arg10: memref<1x1x1x128xf32, #tpu.memory_space<vmem>>, %arg11: memref<1x16x16x128xbf16, #tpu.memory_space<vmem>>, %arg12: memref<1x1x1x128xf32, #tpu.memory_space<vmem>>, %arg13: memref<1x1x1x128xf32, #tpu.memory_space<vmem>>) attributes {dimension_semantics = [#tpu.dimension_semantics<parallel>, #tpu.dimension_semantics<parallel>], iteration_bounds = array<i64: 2, 1>, scalar_prefetch = 0 : i64, scratch_operands = 0 : i64, tpu.core_type = #tpu.core_type<tc>, window_params = [{transform_indices = @transform_0, window_bounds = array<i64: 1, 16, 18, 128>}, {pipeline_mode = #tpu.pipeline_mode<synchronous>, transform_indices = @transform_1, window_bounds = array<i64: 1, 128>}, {pipeline_mode = #tpu.pipeline_mode<synchronous>, transform_indices = @transform_2, window_bounds = array<i64: 1, 128>}, {pipeline_mode = #tpu.pipeline_mode<synchronous>, transform_indices = @transform_3, window_bounds = array<i64: 9, 128, 128>}, {transform_indices = @transform_4, window_bounds = array<i64: 1, 16, 16, 128>}, {pipeline_mode = #tpu.pipeline_mode<synchronous>, transform_indices = @transform_5, window_bounds = array<i64: 128, 128>}, {transform_indices = @transform_6, window_bounds = array<i64: 1, 16, 16, 128>}, {transform_indices = @transform_7, window_bounds = array<i64: 1, 1, 1, 128>}, {transform_indices = @transform_8, window_bounds = array<i64: 1, 1, 1, 128>}, {transform_indices = @transform_9, window_bounds = array<i64: 1, 16, 16, 128>}, {transform_indices = @transform_10, window_bounds = array<i64: 1, 1, 1, 128>}, {transform_indices = @transform_11, window_bounds = array<i64: 1, 1, 1, 128>}]} {
    %c16_i32 = arith.constant 16 : i32
    %0 = arith.muli %arg1, %c16_i32 : i32
    %c1_i32 = arith.constant 1 : i32
    %1 = arith.subi %0, %c1_i32 : i32
    %c0_i32 = arith.constant 0 : i32
    %2 = arith.maxsi %1, %c0_i32 : i32
    %c0 = arith.constant 0 : index
    %3 = arith.index_cast %2 : i32 to index
    %c0_0 = arith.constant 0 : index
    %c0_1 = arith.constant 0 : index
    %4 = vector.load %arg2[%c0, %3, %c0_0, %c0_1] : memref<1x16x18x128xbf16, #tpu.memory_space<vmem>>, vector<1x1x18x128xbf16>
    %5 = vector.shape_cast %4 : vector<1x1x18x128xbf16> to vector<1x18x128xbf16>
    %c0_2 = arith.constant 0 : index
    %6 = arith.index_cast %0 : i32 to index
    %c0_3 = arith.constant 0 : index
    %c0_4 = arith.constant 0 : index
    %7 = vector.load %arg2[%c0_2, %6, %c0_3, %c0_4] : memref<1x16x18x128xbf16, #tpu.memory_space<vmem>>, vector<1x16x18x128xbf16>
    %8 = vector.shape_cast %7 : vector<1x16x18x128xbf16> to vector<16x18x128xbf16>
    %c16_i32_5 = arith.constant 16 : i32
    %9 = arith.addi %0, %c16_i32_5 : i32
    %c15_i32 = arith.constant 15 : i32
    %10 = arith.minsi %9, %c15_i32 : i32
    %c0_6 = arith.constant 0 : index
    %11 = arith.index_cast %10 : i32 to index
    %c0_7 = arith.constant 0 : index
    %c0_8 = arith.constant 0 : index
    %12 = vector.load %arg2[%c0_6, %11, %c0_7, %c0_8] : memref<1x16x18x128xbf16, #tpu.memory_space<vmem>>, vector<1x1x18x128xbf16>
    %13 = vector.shape_cast %12 : vector<1x1x18x128xbf16> to vector<1x18x128xbf16>
    %14 = tpu.concatenate %5, %8, %13 in 0 : vector<1x18x128xbf16>, vector<16x18x128xbf16>, vector<1x18x128xbf16> -> vector<18x18x128xbf16>
    %15 = arith.extf %14 : vector<18x18x128xbf16> to vector<18x18x128xf32>
    %c0_9 = arith.constant 0 : index
    %c0_10 = arith.constant 0 : index
    %16 = vector.load %arg3[%c0_9, %c0_10] : memref<1x128xf32, #tpu.memory_space<vmem>>, vector<1x128xf32>
    %17 = vector.shape_cast %16 : vector<1x128xf32> to vector<1x1x128xf32>
    %18 = vector.broadcast %17 : vector<1x1x128xf32> to vector<18x18x128xf32>
    %19 = arith.mulf %15, %18 : vector<18x18x128xf32>
    %c0_11 = arith.constant 0 : index
    %c0_12 = arith.constant 0 : index
    %20 = vector.load %arg4[%c0_11, %c0_12] : memref<1x128xf32, #tpu.memory_space<vmem>>, vector<1x128xf32>
    %21 = vector.shape_cast %20 : vector<1x128xf32> to vector<1x1x128xf32>
    %22 = vector.broadcast %21 : vector<1x1x128xf32> to vector<18x18x128xf32>
    %23 = arith.addf %19, %22 : vector<18x18x128xf32>
    %cst = arith.constant 0.000000e+00 : f32
    %24 = vector.broadcast %cst : f32 to vector<18x18x128xf32>
    %25 = arith.maximumf %23, %24 : vector<18x18x128xf32>
    %26 = tpu.iota {dimensions = array<i32: 0>} : vector<18x18x128xi32>
    %c1_i32_13 = arith.constant 1 : i32
    %27 = arith.subi %0, %c1_i32_13 : i32
    %28 = vector.broadcast %27 : i32 to vector<18x18x128xi32>
    %29 = arith.addi %26, %28 : vector<18x18x128xi32>
    %30 = tpu.iota {dimensions = array<i32: 1>} : vector<18x18x128xi32>
    %c0_i32_14 = arith.constant 0 : i32
    %31 = vector.broadcast %c0_i32_14 : i32 to vector<18x18x128xi32>
    %32 = arith.cmpi sge, %29, %31 : vector<18x18x128xi32>
    %c16_i32_15 = arith.constant 16 : i32
    %33 = vector.broadcast %c16_i32_15 : i32 to vector<18x18x128xi32>
    %34 = arith.cmpi slt, %29, %33 : vector<18x18x128xi32>
    %35 = arith.andi %32, %34 : vector<18x18x128xi1>
    %c1_i32_16 = arith.constant 1 : i32
    %36 = vector.broadcast %c1_i32_16 : i32 to vector<18x18x128xi32>
    %37 = arith.cmpi sge, %30, %36 : vector<18x18x128xi32>
    %38 = arith.andi %35, %37 : vector<18x18x128xi1>
    %c16_i32_17 = arith.constant 16 : i32
    %39 = vector.broadcast %c16_i32_17 : i32 to vector<18x18x128xi32>
    %40 = arith.cmpi sle, %30, %39 : vector<18x18x128xi32>
    %41 = arith.andi %38, %40 : vector<18x18x128xi1>
    %c0_i32_18 = arith.constant 0 : i32
    %42 = arith.sitofp %c0_i32_18 : i32 to f32
    %43 = vector.broadcast %42 : f32 to vector<18x18x128xf32>
    %44 = arith.select %41, %25, %43 : vector<18x18x128xi1>, vector<18x18x128xf32>
    %45 = arith.truncf %44 : vector<18x18x128xf32> to vector<18x18x128xbf16>
    %cst_19 = arith.constant 0.000000e+00 : f32
    %46 = vector.broadcast %cst_19 : f32 to vector<256x128xf32>
    %47 = vector.extract_strided_slice %45 {offsets = [0, 0, 0], sizes = [16, 16, 128], strides = [1, 1, 1]} : vector<18x18x128xbf16> to vector<16x16x128xbf16>
    %48 = vector.shape_cast %47 : vector<16x16x128xbf16> to vector<256x128xbf16>
    %c0_20 = arith.constant 0 : index
    %c0_21 = arith.constant 0 : index
    %c0_22 = arith.constant 0 : index
    %49 = vector.load %arg5[%c0_20, %c0_21, %c0_22] : memref<9x128x128xbf16, #tpu.memory_space<vmem>>, vector<1x128x128xbf16>
    %50 = vector.shape_cast %49 : vector<1x128x128xbf16> to vector<128x128xbf16>
    %cst_23 = arith.constant dense<0.000000e+00> : vector<256x128xf32>
    %51 = tpu.matmul %48, %50, %cst_23 {dimension_numbers = #tpu.dot_dimension_numbers<[1], [0], [0], [1], [0, 0, 1, 1], [], []>} : vector<256x128xbf16>, vector<128x128xbf16>, vector<256x128xf32> -> vector<256x128xf32>
    %52 = arith.addf %46, %51 : vector<256x128xf32>
    %53 = vector.extract_strided_slice %45 {offsets = [0, 1, 0], sizes = [16, 16, 128], strides = [1, 1, 1]} : vector<18x18x128xbf16> to vector<16x16x128xbf16>
    %54 = vector.shape_cast %53 : vector<16x16x128xbf16> to vector<256x128xbf16>
    %c1 = arith.constant 1 : index
    %c0_24 = arith.constant 0 : index
    %c0_25 = arith.constant 0 : index
    %55 = vector.load %arg5[%c1, %c0_24, %c0_25] : memref<9x128x128xbf16, #tpu.memory_space<vmem>>, vector<1x128x128xbf16>
    %56 = vector.shape_cast %55 : vector<1x128x128xbf16> to vector<128x128xbf16>
    %cst_26 = arith.constant dense<0.000000e+00> : vector<256x128xf32>
    %57 = tpu.matmul %54, %56, %cst_26 {dimension_numbers = #tpu.dot_dimension_numbers<[1], [0], [0], [1], [0, 0, 1, 1], [], []>} : vector<256x128xbf16>, vector<128x128xbf16>, vector<256x128xf32> -> vector<256x128xf32>
    %58 = arith.addf %52, %57 : vector<256x128xf32>
    %59 = vector.extract_strided_slice %45 {offsets = [0, 2, 0], sizes = [16, 16, 128], strides = [1, 1, 1]} : vector<18x18x128xbf16> to vector<16x16x128xbf16>
    %60 = vector.shape_cast %59 : vector<16x16x128xbf16> to vector<256x128xbf16>
    %c2 = arith.constant 2 : index
    %c0_27 = arith.constant 0 : index
    %c0_28 = arith.constant 0 : index
    %61 = vector.load %arg5[%c2, %c0_27, %c0_28] : memref<9x128x128xbf16, #tpu.memory_space<vmem>>, vector<1x128x128xbf16>
    %62 = vector.shape_cast %61 : vector<1x128x128xbf16> to vector<128x128xbf16>
    %cst_29 = arith.constant dense<0.000000e+00> : vector<256x128xf32>
    %63 = tpu.matmul %60, %62, %cst_29 {dimension_numbers = #tpu.dot_dimension_numbers<[1], [0], [0], [1], [0, 0, 1, 1], [], []>} : vector<256x128xbf16>, vector<128x128xbf16>, vector<256x128xf32> -> vector<256x128xf32>
    %64 = arith.addf %58, %63 : vector<256x128xf32>
    %65 = vector.extract_strided_slice %45 {offsets = [1, 0, 0], sizes = [16, 16, 128], strides = [1, 1, 1]} : vector<18x18x128xbf16> to vector<16x16x128xbf16>
    %66 = vector.shape_cast %65 : vector<16x16x128xbf16> to vector<256x128xbf16>
    %c3 = arith.constant 3 : index
    %c0_30 = arith.constant 0 : index
    %c0_31 = arith.constant 0 : index
    %67 = vector.load %arg5[%c3, %c0_30, %c0_31] : memref<9x128x128xbf16, #tpu.memory_space<vmem>>, vector<1x128x128xbf16>
    %68 = vector.shape_cast %67 : vector<1x128x128xbf16> to vector<128x128xbf16>
    %cst_32 = arith.constant dense<0.000000e+00> : vector<256x128xf32>
    %69 = tpu.matmul %66, %68, %cst_32 {dimension_numbers = #tpu.dot_dimension_numbers<[1], [0], [0], [1], [0, 0, 1, 1], [], []>} : vector<256x128xbf16>, vector<128x128xbf16>, vector<256x128xf32> -> vector<256x128xf32>
    %70 = arith.addf %64, %69 : vector<256x128xf32>
    %71 = vector.extract_strided_slice %45 {offsets = [1, 1, 0], sizes = [16, 16, 128], strides = [1, 1, 1]} : vector<18x18x128xbf16> to vector<16x16x128xbf16>
    %72 = vector.shape_cast %71 : vector<16x16x128xbf16> to vector<256x128xbf16>
    %c4 = arith.constant 4 : index
    %c0_33 = arith.constant 0 : index
    %c0_34 = arith.constant 0 : index
    %73 = vector.load %arg5[%c4, %c0_33, %c0_34] : memref<9x128x128xbf16, #tpu.memory_space<vmem>>, vector<1x128x128xbf16>
    %74 = vector.shape_cast %73 : vector<1x128x128xbf16> to vector<128x128xbf16>
    %cst_35 = arith.constant dense<0.000000e+00> : vector<256x128xf32>
    %75 = tpu.matmul %72, %74, %cst_35 {dimension_numbers = #tpu.dot_dimension_numbers<[1], [0], [0], [1], [0, 0, 1, 1], [], []>} : vector<256x128xbf16>, vector<128x128xbf16>, vector<256x128xf32> -> vector<256x128xf32>
    %76 = arith.addf %70, %75 : vector<256x128xf32>
    %77 = vector.extract_strided_slice %45 {offsets = [1, 2, 0], sizes = [16, 16, 128], strides = [1, 1, 1]} : vector<18x18x128xbf16> to vector<16x16x128xbf16>
    %78 = vector.shape_cast %77 : vector<16x16x128xbf16> to vector<256x128xbf16>
    %c5 = arith.constant 5 : index
    %c0_36 = arith.constant 0 : index
    %c0_37 = arith.constant 0 : index
    %79 = vector.load %arg5[%c5, %c0_36, %c0_37] : memref<9x128x128xbf16, #tpu.memory_space<vmem>>, vector<1x128x128xbf16>
    %80 = vector.shape_cast %79 : vector<1x128x128xbf16> to vector<128x128xbf16>
    %cst_38 = arith.constant dense<0.000000e+00> : vector<256x128xf32>
    %81 = tpu.matmul %78, %80, %cst_38 {dimension_numbers = #tpu.dot_dimension_numbers<[1], [0], [0], [1], [0, 0, 1, 1], [], []>} : vector<256x128xbf16>, vector<128x128xbf16>, vector<256x128xf32> -> vector<256x128xf32>
    %82 = arith.addf %76, %81 : vector<256x128xf32>
    %83 = vector.extract_strided_slice %45 {offsets = [2, 0, 0], sizes = [16, 16, 128], strides = [1, 1, 1]} : vector<18x18x128xbf16> to vector<16x16x128xbf16>
    %84 = vector.shape_cast %83 : vector<16x16x128xbf16> to vector<256x128xbf16>
    %c6 = arith.constant 6 : index
    %c0_39 = arith.constant 0 : index
    %c0_40 = arith.constant 0 : index
    %85 = vector.load %arg5[%c6, %c0_39, %c0_40] : memref<9x128x128xbf16, #tpu.memory_space<vmem>>, vector<1x128x128xbf16>
    %86 = vector.shape_cast %85 : vector<1x128x128xbf16> to vector<128x128xbf16>
    %cst_41 = arith.constant dense<0.000000e+00> : vector<256x128xf32>
    %87 = tpu.matmul %84, %86, %cst_41 {dimension_numbers = #tpu.dot_dimension_numbers<[1], [0], [0], [1], [0, 0, 1, 1], [], []>} : vector<256x128xbf16>, vector<128x128xbf16>, vector<256x128xf32> -> vector<256x128xf32>
    %88 = arith.addf %82, %87 : vector<256x128xf32>
    %89 = vector.extract_strided_slice %45 {offsets = [2, 1, 0], sizes = [16, 16, 128], strides = [1, 1, 1]} : vector<18x18x128xbf16> to vector<16x16x128xbf16>
    %90 = vector.shape_cast %89 : vector<16x16x128xbf16> to vector<256x128xbf16>
    %c7 = arith.constant 7 : index
    %c0_42 = arith.constant 0 : index
    %c0_43 = arith.constant 0 : index
    %91 = vector.load %arg5[%c7, %c0_42, %c0_43] : memref<9x128x128xbf16, #tpu.memory_space<vmem>>, vector<1x128x128xbf16>
    %92 = vector.shape_cast %91 : vector<1x128x128xbf16> to vector<128x128xbf16>
    %cst_44 = arith.constant dense<0.000000e+00> : vector<256x128xf32>
    %93 = tpu.matmul %90, %92, %cst_44 {dimension_numbers = #tpu.dot_dimension_numbers<[1], [0], [0], [1], [0, 0, 1, 1], [], []>} : vector<256x128xbf16>, vector<128x128xbf16>, vector<256x128xf32> -> vector<256x128xf32>
    %94 = arith.addf %88, %93 : vector<256x128xf32>
    %95 = vector.extract_strided_slice %45 {offsets = [2, 2, 0], sizes = [16, 16, 128], strides = [1, 1, 1]} : vector<18x18x128xbf16> to vector<16x16x128xbf16>
    %96 = vector.shape_cast %95 : vector<16x16x128xbf16> to vector<256x128xbf16>
    %c8 = arith.constant 8 : index
    %c0_45 = arith.constant 0 : index
    %c0_46 = arith.constant 0 : index
    %97 = vector.load %arg5[%c8, %c0_45, %c0_46] : memref<9x128x128xbf16, #tpu.memory_space<vmem>>, vector<1x128x128xbf16>
    %98 = vector.shape_cast %97 : vector<1x128x128xbf16> to vector<128x128xbf16>
    %cst_47 = arith.constant dense<0.000000e+00> : vector<256x128xf32>
    %99 = tpu.matmul %96, %98, %cst_47 {dimension_numbers = #tpu.dot_dimension_numbers<[1], [0], [0], [1], [0, 0, 1, 1], [], []>} : vector<256x128xbf16>, vector<128x128xbf16>, vector<256x128xf32> -> vector<256x128xf32>
    %100 = arith.addf %94, %99 : vector<256x128xf32>
    %101 = vector.shape_cast %100 : vector<256x128xf32> to vector<16x16x128xf32>
    %102 = arith.truncf %101 : vector<16x16x128xf32> to vector<16x16x128xbf16>
    %103 = vector.shape_cast %102 : vector<16x16x128xbf16> to vector<1x16x16x128xbf16>
    %c0_48 = arith.constant 0 : index
    %c0_49 = arith.constant 0 : index
    %c0_50 = arith.constant 0 : index
    %c0_51 = arith.constant 0 : index
    %104 = vector.load %arg8[%c0_48, %c0_49, %c0_50, %c0_51] : memref<1x16x16x128xbf16, #tpu.memory_space<vmem>>, vector<1x16x16x128xbf16>
    tpu.vector_store %arg8[%c0_48, %c0_49, %c0_50, %c0_51], %103 {strides = array<i32>} : memref<1x16x16x128xbf16, #tpu.memory_space<vmem>>, vector<1x16x16x128xbf16>,
    %cst_52 = arith.constant dense<0.000000e+00> : vector<128xf32>
    %105 = vector.multi_reduction <add>, %100, %cst_52 [0] : vector<256x128xf32> to vector<128xf32>
    %106 = vector.shape_cast %105 : vector<128xf32> to vector<1x128xf32>
    %107 = vector.shape_cast %106 : vector<1x128xf32> to vector<1x1x1x128xf32>
    %c0_53 = arith.constant 0 : index
    %c0_54 = arith.constant 0 : index
    %c0_55 = arith.constant 0 : index
    %c0_56 = arith.constant 0 : index
    %108 = vector.load %arg9[%c0_53, %c0_54, %c0_55, %c0_56] : memref<1x1x1x128xf32, #tpu.memory_space<vmem>>, vector<1x1x1x128xf32>
    tpu.vector_store %arg9[%c0_53, %c0_54, %c0_55, %c0_56], %107 {strides = array<i32>} : memref<1x1x1x128xf32, #tpu.memory_space<vmem>>, vector<1x1x1x128xf32>,
    %109 = arith.mulf %100, %100 : vector<256x128xf32>
    %cst_57 = arith.constant dense<0.000000e+00> : vector<128xf32>
    %110 = vector.multi_reduction <add>, %109, %cst_57 [0] : vector<256x128xf32> to vector<128xf32>
    %111 = vector.shape_cast %110 : vector<128xf32> to vector<1x128xf32>
    %112 = vector.shape_cast %111 : vector<1x128xf32> to vector<1x1x1x128xf32>
    %c0_58 = arith.constant 0 : index
    %c0_59 = arith.constant 0 : index
    %c0_60 = arith.constant 0 : index
    %c0_61 = arith.constant 0 : index
    %113 = vector.load %arg10[%c0_58, %c0_59, %c0_60, %c0_61] : memref<1x1x1x128xf32, #tpu.memory_space<vmem>>, vector<1x1x1x128xf32>
    tpu.vector_store %arg10[%c0_58, %c0_59, %c0_60, %c0_61], %112 {strides = array<i32>} : memref<1x1x1x128xf32, #tpu.memory_space<vmem>>, vector<1x1x1x128xf32>,
    %c0_62 = arith.constant 0 : index
    %c0_63 = arith.constant 0 : index
    %c0_64 = arith.constant 0 : index
    %c0_65 = arith.constant 0 : index
    %114 = vector.load %arg6[%c0_62, %c0_63, %c0_64, %c0_65] : memref<1x16x16x128xbf16, #tpu.memory_space<vmem>>, vector<1x16x16x128xbf16>
    %115 = vector.shape_cast %114 : vector<1x16x16x128xbf16> to vector<16x16x128xbf16>
    %116 = vector.shape_cast %115 : vector<16x16x128xbf16> to vector<256x128xbf16>
    %c0_66 = arith.constant 0 : index
    %c0_67 = arith.constant 0 : index
    %117 = vector.load %arg7[%c0_66, %c0_67] : memref<128x128xbf16, #tpu.memory_space<vmem>>, vector<128x128xbf16>
    %cst_68 = arith.constant dense<0.000000e+00> : vector<256x128xf32>
    %118 = tpu.matmul %116, %117, %cst_68 {dimension_numbers = #tpu.dot_dimension_numbers<[1], [0], [0], [1], [0, 0, 1, 1], [], []>} : vector<256x128xbf16>, vector<128x128xbf16>, vector<256x128xf32> -> vector<256x128xf32>
    %119 = vector.shape_cast %118 : vector<256x128xf32> to vector<1x16x16x128xf32>
    %120 = arith.truncf %119 : vector<1x16x16x128xf32> to vector<1x16x16x128xbf16>
    %c0_69 = arith.constant 0 : index
    %c0_70 = arith.constant 0 : index
    %c0_71 = arith.constant 0 : index
    %c0_72 = arith.constant 0 : index
    %121 = vector.load %arg11[%c0_69, %c0_70, %c0_71, %c0_72] : memref<1x16x16x128xbf16, #tpu.memory_space<vmem>>, vector<1x16x16x128xbf16>
    tpu.vector_store %arg11[%c0_69, %c0_70, %c0_71, %c0_72], %120 {strides = array<i32>} : memref<1x16x16x128xbf16, #tpu.memory_space<vmem>>, vector<1x16x16x128xbf16>,
    %cst_73 = arith.constant dense<0.000000e+00> : vector<128xf32>
    %122 = vector.multi_reduction <add>, %118, %cst_73 [0] : vector<256x128xf32> to vector<128xf32>
    %123 = vector.shape_cast %122 : vector<128xf32> to vector<1x128xf32>
    %124 = vector.shape_cast %123 : vector<1x128xf32> to vector<1x1x1x128xf32>
    %c0_74 = arith.constant 0 : index
    %c0_75 = arith.constant 0 : index
    %c0_76 = arith.constant 0 : index
    %c0_77 = arith.constant 0 : index
    %125 = vector.load %arg12[%c0_74, %c0_75, %c0_76, %c0_77] : memref<1x1x1x128xf32, #tpu.memory_space<vmem>>, vector<1x1x1x128xf32>
    tpu.vector_store %arg12[%c0_74, %c0_75, %c0_76, %c0_77], %124 {strides = array<i32>} : memref<1x1x1x128xf32, #tpu.memory_space<vmem>>, vector<1x1x1x128xf32>,
    %126 = arith.mulf %118, %118 : vector<256x128xf32>
    %cst_78 = arith.constant dense<0.000000e+00> : vector<128xf32>
    %127 = vector.multi_reduction <add>, %126, %cst_78 [0] : vector<256x128xf32> to vector<128xf32>
    %128 = vector.shape_cast %127 : vector<128xf32> to vector<1x128xf32>
    %129 = vector.shape_cast %128 : vector<1x128xf32> to vector<1x1x1x128xf32>
    %c0_79 = arith.constant 0 : index
    %c0_80 = arith.constant 0 : index
    %c0_81 = arith.constant 0 : index
    %c0_82 = arith.constant 0 : index
    %130 = vector.load %arg13[%c0_79, %c0_80, %c0_81, %c0_82] : memref<1x1x1x128xf32, #tpu.memory_space<vmem>>, vector<1x1x1x128xf32>
    tpu.vector_store %arg13[%c0_79, %c0_80, %c0_81, %c0_82], %129 {strides = array<i32>} : memref<1x1x1x128xf32, #tpu.memory_space<vmem>>, vector<1x1x1x128xf32>,
    return
  }
  func.func @transform_0(%arg0: i32, %arg1: i32) -> (i32, i32, i32, i32) {
    %c0_i32 = arith.constant 0 : i32
    %c0_i32_0 = arith.constant 0 : i32
    %c0_i32_1 = arith.constant 0 : i32
    %c0_i32_2 = arith.constant 0 : i32
    return %arg0, %c0_i32, %c0_i32_0, %c0_i32_1 : i32, i32, i32, i32
  }
  func.func @transform_1(%arg0: i32, %arg1: i32) -> (i32, i32) {
    %c0_i32 = arith.constant 0 : i32
    %c0_i32_0 = arith.constant 0 : i32
    %c0_i32_1 = arith.constant 0 : i32
    return %c0_i32, %c0_i32_0 : i32, i32
  }
  func.func @transform_2(%arg0: i32, %arg1: i32) -> (i32, i32) {
    %c0_i32 = arith.constant 0 : i32
    %c0_i32_0 = arith.constant 0 : i32
    %c0_i32_1 = arith.constant 0 : i32
    return %c0_i32, %c0_i32_0 : i32, i32
  }
  func.func @transform_3(%arg0: i32, %arg1: i32) -> (i32, i32, i32) {
    %c0_i32 = arith.constant 0 : i32
    %c0_i32_0 = arith.constant 0 : i32
    %c0_i32_1 = arith.constant 0 : i32
    %c0_i32_2 = arith.constant 0 : i32
    return %c0_i32, %c0_i32_0, %c0_i32_1 : i32, i32, i32
  }
  func.func @transform_4(%arg0: i32, %arg1: i32) -> (i32, i32, i32, i32) {
    %c0_i32 = arith.constant 0 : i32
    %c0_i32_0 = arith.constant 0 : i32
    %c0_i32_1 = arith.constant 0 : i32
    return %arg0, %arg1, %c0_i32, %c0_i32_0 : i32, i32, i32, i32
  }
  func.func @transform_5(%arg0: i32, %arg1: i32) -> (i32, i32) {
    %c0_i32 = arith.constant 0 : i32
    %c0_i32_0 = arith.constant 0 : i32
    %c0_i32_1 = arith.constant 0 : i32
    return %c0_i32, %c0_i32_0 : i32, i32
  }
  func.func @transform_6(%arg0: i32, %arg1: i32) -> (i32, i32, i32, i32) {
    %c0_i32 = arith.constant 0 : i32
    %c0_i32_0 = arith.constant 0 : i32
    %c0_i32_1 = arith.constant 0 : i32
    return %arg0, %arg1, %c0_i32, %c0_i32_0 : i32, i32, i32, i32
  }
  func.func @transform_7(%arg0: i32, %arg1: i32) -> (i32, i32, i32, i32) {
    %c0_i32 = arith.constant 0 : i32
    %c0_i32_0 = arith.constant 0 : i32
    %c0_i32_1 = arith.constant 0 : i32
    return %arg0, %arg1, %c0_i32, %c0_i32_0 : i32, i32, i32, i32
  }
  func.func @transform_8(%arg0: i32, %arg1: i32) -> (i32, i32, i32, i32) {
    %c0_i32 = arith.constant 0 : i32
    %c0_i32_0 = arith.constant 0 : i32
    %c0_i32_1 = arith.constant 0 : i32
    return %arg0, %arg1, %c0_i32, %c0_i32_0 : i32, i32, i32, i32
  }
  func.func @transform_9(%arg0: i32, %arg1: i32) -> (i32, i32, i32, i32) {
    %c0_i32 = arith.constant 0 : i32
    %c0_i32_0 = arith.constant 0 : i32
    %c0_i32_1 = arith.constant 0 : i32
    return %arg0, %arg1, %c0_i32, %c0_i32_0 : i32, i32, i32, i32
  }
  func.func @transform_10(%arg0: i32, %arg1: i32) -> (i32, i32, i32, i32) {
    %c0_i32 = arith.constant 0 : i32
    %c0_i32_0 = arith.constant 0 : i32
    %c0_i32_1 = arith.constant 0 : i32
    return %arg0, %arg1, %c0_i32, %c0_i32_0 : i32, i32, i32, i32
  }
  func.func @transform_11(%arg0: i32, %arg1: i32) -> (i32, i32, i32, i32) {
    %c0_i32 = arith.constant 0 : i32
    %c0_i32_0 = arith.constant 0 : i32
    %c0_i32_1 = arith.constant 0 : i32
    return %arg0, %arg1, %c0_i32, %c0_i32_0 : i32, i32, i32, i32
  }
}

module attributes {stable_mosaic.version = 11 : i64} {
  func.func @_epilogue_proj_kernel(%arg0: i32, %arg1: i32, %arg2: memref<1x16x16x128xbf16, #tpu.memory_space<vmem>>, %arg3: memref<1x16x16x128xbf16, #tpu.memory_space<vmem>>, %arg4: memref<1x128xf32, #tpu.memory_space<vmem>>, %arg5: memref<1x128xf32, #tpu.memory_space<vmem>>, %arg6: memref<1x128xf32, #tpu.memory_space<vmem>>, %arg7: memref<1x128xf32, #tpu.memory_space<vmem>>, %arg8: memref<1x16x16x128xf32, #tpu.memory_space<vmem>>) attributes {dimension_semantics = [#tpu.dimension_semantics<parallel>, #tpu.dimension_semantics<parallel>], iteration_bounds = array<i64: 2, 1>, scalar_prefetch = 0 : i64, scratch_operands = 0 : i64, tpu.core_type = #tpu.core_type<tc>, window_params = [{transform_indices = @transform_0, window_bounds = array<i64: 1, 16, 16, 128>}, {transform_indices = @transform_1, window_bounds = array<i64: 1, 16, 16, 128>}, {pipeline_mode = #tpu.pipeline_mode<synchronous>, transform_indices = @transform_2, window_bounds = array<i64: 1, 128>}, {pipeline_mode = #tpu.pipeline_mode<synchronous>, transform_indices = @transform_3, window_bounds = array<i64: 1, 128>}, {pipeline_mode = #tpu.pipeline_mode<synchronous>, transform_indices = @transform_4, window_bounds = array<i64: 1, 128>}, {pipeline_mode = #tpu.pipeline_mode<synchronous>, transform_indices = @transform_5, window_bounds = array<i64: 1, 128>}, {transform_indices = @transform_6, window_bounds = array<i64: 1, 16, 16, 128>}]} {
    %c0 = arith.constant 0 : index
    %c0_0 = arith.constant 0 : index
    %c0_1 = arith.constant 0 : index
    %c0_2 = arith.constant 0 : index
    %0 = vector.load %arg2[%c0, %c0_0, %c0_1, %c0_2] : memref<1x16x16x128xbf16, #tpu.memory_space<vmem>>, vector<1x16x16x128xbf16>
    %1 = arith.extf %0 : vector<1x16x16x128xbf16> to vector<1x16x16x128xf32>
    %c0_3 = arith.constant 0 : index
    %c0_4 = arith.constant 0 : index
    %2 = vector.load %arg4[%c0_3, %c0_4] : memref<1x128xf32, #tpu.memory_space<vmem>>, vector<1x128xf32>
    %3 = vector.shape_cast %2 : vector<1x128xf32> to vector<1x1x1x128xf32>
    %4 = vector.broadcast %3 : vector<1x1x1x128xf32> to vector<1x16x16x128xf32>
    %5 = arith.mulf %1, %4 : vector<1x16x16x128xf32>
    %c0_5 = arith.constant 0 : index
    %c0_6 = arith.constant 0 : index
    %6 = vector.load %arg5[%c0_5, %c0_6] : memref<1x128xf32, #tpu.memory_space<vmem>>, vector<1x128xf32>
    %7 = vector.shape_cast %6 : vector<1x128xf32> to vector<1x1x1x128xf32>
    %8 = vector.broadcast %7 : vector<1x1x1x128xf32> to vector<1x16x16x128xf32>
    %9 = arith.addf %5, %8 : vector<1x16x16x128xf32>
    %c0_7 = arith.constant 0 : index
    %c0_8 = arith.constant 0 : index
    %c0_9 = arith.constant 0 : index
    %c0_10 = arith.constant 0 : index
    %10 = vector.load %arg3[%c0_7, %c0_8, %c0_9, %c0_10] : memref<1x16x16x128xbf16, #tpu.memory_space<vmem>>, vector<1x16x16x128xbf16>
    %11 = arith.extf %10 : vector<1x16x16x128xbf16> to vector<1x16x16x128xf32>
    %c0_11 = arith.constant 0 : index
    %c0_12 = arith.constant 0 : index
    %12 = vector.load %arg6[%c0_11, %c0_12] : memref<1x128xf32, #tpu.memory_space<vmem>>, vector<1x128xf32>
    %13 = vector.shape_cast %12 : vector<1x128xf32> to vector<1x1x1x128xf32>
    %14 = vector.broadcast %13 : vector<1x1x1x128xf32> to vector<1x16x16x128xf32>
    %15 = arith.mulf %11, %14 : vector<1x16x16x128xf32>
    %c0_13 = arith.constant 0 : index
    %c0_14 = arith.constant 0 : index
    %16 = vector.load %arg7[%c0_13, %c0_14] : memref<1x128xf32, #tpu.memory_space<vmem>>, vector<1x128xf32>
    %17 = vector.shape_cast %16 : vector<1x128xf32> to vector<1x1x1x128xf32>
    %18 = vector.broadcast %17 : vector<1x1x1x128xf32> to vector<1x16x16x128xf32>
    %19 = arith.addf %15, %18 : vector<1x16x16x128xf32>
    %20 = arith.addf %9, %19 : vector<1x16x16x128xf32>
    %cst = arith.constant 0.000000e+00 : f32
    %21 = vector.broadcast %cst : f32 to vector<1x16x16x128xf32>
    %22 = arith.maximumf %20, %21 : vector<1x16x16x128xf32>
    %c0_15 = arith.constant 0 : index
    %c0_16 = arith.constant 0 : index
    %c0_17 = arith.constant 0 : index
    %c0_18 = arith.constant 0 : index
    %23 = vector.load %arg8[%c0_15, %c0_16, %c0_17, %c0_18] : memref<1x16x16x128xf32, #tpu.memory_space<vmem>>, vector<1x16x16x128xf32>
    tpu.vector_store %arg8[%c0_15, %c0_16, %c0_17, %c0_18], %22 {strides = array<i32>} : memref<1x16x16x128xf32, #tpu.memory_space<vmem>>, vector<1x16x16x128xf32>,
    return
  }
  func.func @transform_0(%arg0: i32, %arg1: i32) -> (i32, i32, i32, i32) {
    %c0_i32 = arith.constant 0 : i32
    %c0_i32_0 = arith.constant 0 : i32
    %c0_i32_1 = arith.constant 0 : i32
    return %arg0, %arg1, %c0_i32, %c0_i32_0 : i32, i32, i32, i32
  }
  func.func @transform_1(%arg0: i32, %arg1: i32) -> (i32, i32, i32, i32) {
    %c0_i32 = arith.constant 0 : i32
    %c0_i32_0 = arith.constant 0 : i32
    %c0_i32_1 = arith.constant 0 : i32
    return %arg0, %arg1, %c0_i32, %c0_i32_0 : i32, i32, i32, i32
  }
  func.func @transform_2(%arg0: i32, %arg1: i32) -> (i32, i32) {
    %c0_i32 = arith.constant 0 : i32
    %c0_i32_0 = arith.constant 0 : i32
    %c0_i32_1 = arith.constant 0 : i32
    return %c0_i32, %c0_i32_0 : i32, i32
  }
  func.func @transform_3(%arg0: i32, %arg1: i32) -> (i32, i32) {
    %c0_i32 = arith.constant 0 : i32
    %c0_i32_0 = arith.constant 0 : i32
    %c0_i32_1 = arith.constant 0 : i32
    return %c0_i32, %c0_i32_0 : i32, i32
  }
  func.func @transform_4(%arg0: i32, %arg1: i32) -> (i32, i32) {
    %c0_i32 = arith.constant 0 : i32
    %c0_i32_0 = arith.constant 0 : i32
    %c0_i32_1 = arith.constant 0 : i32
    return %c0_i32, %c0_i32_0 : i32, i32
  }
  func.func @transform_5(%arg0: i32, %arg1: i32) -> (i32, i32) {
    %c0_i32 = arith.constant 0 : i32
    %c0_i32_0 = arith.constant 0 : i32
    %c0_i32_1 = arith.constant 0 : i32
    return %c0_i32, %c0_i32_0 : i32, i32
  }
  func.func @transform_6(%arg0: i32, %arg1: i32) -> (i32, i32, i32, i32) {
    %c0_i32 = arith.constant 0 : i32
    %c0_i32_0 = arith.constant 0 : i32
    %c0_i32_1 = arith.constant 0 : i32
    return %arg0, %arg1, %c0_i32, %c0_i32_0 : i32, i32, i32, i32
  }
}

</mosaic_0001>

<bundles_post_ra>
// kernel: _basic_block_forward.5
= control target key start
LH: loop header
LB: loop body
LE: loop exit
PB: predicated region body
PF: predicated region fallthrough
CT: control target
= control target key end

     0   :  { %s1081_s21 = smov 0   ;;  %s1083_s22 = smov 0   ;;  %s1339_s0 = inlined_call_operand.vmem [shape: bf16[2,16,16,128], index: 0, kind: input, shape index: {}]   ;;  %s1340_s1 = inlined_call_operand.vmem [shape: bf16[2,16,16,128], index: 1, kind: input, shape index: {}]   ;;  %s1341_s2 = inlined_call_operand.vmem [shape: f32[1,128], index: 2, kind: input, shape index: {}]   ;;  %s1342_s3 = inlined_call_operand.vmem [shape: f32[1,128], index: 3, kind: input, shape index: {}]   ;;  %s1343_s4 = inlined_call_operand.vmem [shape: f32[1,128], index: 4, kind: input, shape index: {}]   ;;  %s1344_s5 = inlined_call_operand.vmem [shape: f32[1,128], index: 5, kind: input, shape index: {}]   ;;  %s1345_s6 = inlined_call_operand.vmem [shape: f32[2,16,16,128], index: 6, kind: output, shape index: {}]  }
   0x1   :  { %s1085_s23 = smov 0  }
   0x2 LB: > { %s28_s24 = sadd.s32 1, %s1040_s22  ;;  %p824_p0 = scmp.ge.s32.totalorder %s1044_s23, 1  ;;  %s1044_s23 = sphi %s1085_s23, %s16_s23   ;;  %s1040_s22 = sphi %s1083_s22, %s1347_s22   ;;  %s1036_s21 = sphi %s1081_s21, %s1346_s21  }
   0x3   : > { %p30_p1 = scmp.ge.s32.totalorder %s28_s24, 2  ;;  %p252_p2 = scmp.lt.s32.totalorder %s1044_s23, 3 }
   0x5   : > { %s1349_s24 = smov (%p30_p1, %s28_s24), 0  ;;  %p253_p3 = pnand %p824_p0, %p252_p2 }
   0x6   : > { %p303_p4 = scmp.lt.s32.totalorder (!%p253_p3), %s1036_s21, 1 }
   0x7   : > { %256 = sbr.rel (%p253_p3) target bundleno = 87 (0x57), region = 44 }
   0xc   : > { %s1351_s21 = smov (!%p303_p4, %s1036_s21), 1  ;;  %v1115_v0 = vld [vmem:[%s1341_s2] ss:$0 sm:$0xff] }
   0xd   : > { %s833_s25 = sshll.u32 %s1351_s21, 7  ;;  %v1120_v1 = vld [vmem:[%s1343_s4] ss:$0 sm:$0xff]  ;;  %s835_s16 = sshll.u32 %s1351_s21, 8 }
   0xe   : > { %s1105_s28 = scalar_lea.vmem %s1339_s0, %s833_s25  ;;  %s1110_s7 = scalar_lea.vmem %s1340_s1, %s833_s25  ;;  %v1128_v6 = vld [vmem:[%s1342_s3] ss:$0 sm:$0xff] }
   0xf   : > { %v837_v2 = vld [vmem:[%s1105_s28] sm:$0xff]   ;;  %v964_v4 = vld [vmem:[%s1105_s28 + $0x8] sm:$0xff]   ;;  %v965_v24 = vld [vmem:[%s1105_s28 + $0x10] sm:$0xff]   ;;  %s1158_s19 = scalar_lea.vmem %s1345_s6, %s835_s16 }
  0x10   : > { %v901_v3 = vld [vmem:[%s1110_s7] sm:$0xff]   ;;  %v838_v5 = vunpack.c.l.bf16 %v837_v2  ;;  %v839_v9 = vunpack.c.h.bf16 %v837_v2  ;;  %v979_v11 = vld [vmem:[%s1110_s7 + $0x8] sm:$0xff]   ;;  %v842_v12 = vunpack.c.l.bf16 %v964_v4  ;;  %v843_v14 = vunpack.c.h.bf16 %v964_v4  ;;  %v980_v25 = vld [vmem:[%s1110_s7 + $0x10] sm:$0xff]  }
  0x11   : > { %v902_v7 = vunpack.c.l.bf16 %v901_v3  ;;  %v1133_v8 = vld [vmem:[%s1344_s5] ss:$0 sm:$0xff]  ;;  %v903_v10 = vunpack.c.h.bf16 %v901_v3  ;;  %v906_v13 = vunpack.c.l.bf16 %v979_v11  ;;  %v907_v15 = vunpack.c.h.bf16 %v979_v11  ;;  %v966_v42 = vld [vmem:[%s1105_s28 + $0x18] sm:$0xff]  }
  0x12   : > { %v403_v16 = vmul.f32 %v1115_v0, %v838_v5  ;;  %v404_v18 = vmul.f32 %v1115_v0, %v839_v9  ;;  %v405_v20 = vmul.f32 %v1115_v0, %v842_v12  ;;  %v406_v22 = vmul.f32 %v1115_v0, %v843_v14  ;;  %v981_v43 = vld [vmem:[%s1110_s7 + $0x18] sm:$0xff]   ;;  %v967_v52 = vld [vmem:[%s1105_s28 + $0x20] sm:$0xff]   ;;  %v968_v14 = vld [vmem:[%s1105_s28 + $0x28] sm:$0xff]  }
  0x13   : > { %v539_v17 = vmul.f32 %v1120_v1, %v902_v7  ;;  %v540_v19 = vmul.f32 %v1120_v1, %v903_v10  ;;  %v541_v21 = vmul.f32 %v1120_v1, %v906_v13  ;;  %v542_v23 = vmul.f32 %v1120_v1, %v907_v15  ;;  %v982_v57 = vld [vmem:[%s1110_s7 + $0x20] sm:$0xff]   ;;  %v983_v15 = vld [vmem:[%s1110_s7 + $0x28] sm:$0xff]  }
  0x14   : > { %v439_v26 = vadd.f32 %v1128_v6, %v403_v16  ;;  %v440_v28 = vadd.f32 %v1128_v6, %v404_v18  ;;  %v441_v30 = vadd.f32 %v1128_v6, %v405_v20  ;;  %v442_v32 = vadd.f32 %v1128_v6, %v406_v22 }
  0x15   : > { %v575_v27 = vadd.f32 %v1133_v8, %v539_v17  ;;  %v576_v29 = vadd.f32 %v1133_v8, %v540_v19  ;;  %v577_v31 = vadd.f32 %v1133_v8, %v541_v21  ;;  %v578_v33 = vadd.f32 %v1133_v8, %v542_v23 }
  0x16   : > { %v846_v36 = vunpack.c.l.bf16 %v965_v24  ;;  %v910_v37 = vunpack.c.l.bf16 %v980_v25  ;;  %v847_v40 = vunpack.c.h.bf16 %v965_v24  ;;  %v911_v41 = vunpack.c.h.bf16 %v980_v25 }
  0x17   : > { %v607_v34 = vadd.f32 %v575_v27, %v439_v26  ;;  %v608_v35 = vadd.f32 %v576_v29, %v440_v28  ;;  %v609_v38 = vadd.f32 %v577_v31, %v441_v30  ;;  %v610_v39 = vadd.f32 %v578_v33, %v442_v32  ;;  %v969_v32 = vld [vmem:[%s1105_s28 + $0x30] sm:$0xff]  }
  0x18   : > { %v407_v46 = vmul.f32 %v1115_v0, %v846_v36  ;;  %v543_v47 = vmul.f32 %v1120_v1, %v910_v37  ;;  %v408_v50 = vmul.f32 %v1115_v0, %v847_v40  ;;  %v544_v51 = vmul.f32 %v1120_v1, %v911_v41  ;;  %v984_v37 = vld [vmem:[%s1110_s7 + $0x30] sm:$0xff]  }
  0x19   : > { %v639_v44 = vmax.f32 %v607_v34, 0.0  ;;  %v640_v45 = vmax.f32 %v608_v35, 0.0  ;;  %v641_v48 = vmax.f32 %v609_v38, 0.0  ;;  %v642_v49 = vmax.f32 %v610_v39, 0.0 }
  0x1a   : > { %v443_v53 = vadd.f32 %v1128_v6, %v407_v46  ;;  %v579_v54 = vadd.f32 %v1133_v8, %v543_v47  ;;  %v850_v55 = vunpack.c.l.bf16 %v966_v42  ;;  %v914_v56 = vunpack.c.l.bf16 %v981_v43  ;;  %v970_v46 = vld [vmem:[%s1105_s28 + $0x38] sm:$0xff]  }
  0x1b   : > { %671 = vst [vmem:[%s1158_s19] sm:$0xff] %v639_v44  ;;  %v444_v58 = vadd.f32 %v1128_v6, %v408_v50  ;;  %v580_v59 = vadd.f32 %v1133_v8, %v544_v51  ;;  %v851_v60 = vunpack.c.h.bf16 %v966_v42  ;;  %v915_v61 = vunpack.c.h.bf16 %v981_v43 }
  0x1c   : > { %672 = vst [vmem:[%s1158_s19 + $0x8] sm:$0xff] %v640_v45  ;;  %v611_v62 = vadd.f32 %v579_v54, %v443_v53  ;;  %v409_v63 = vmul.f32 %v1115_v0, %v850_v55  ;;  %v545_v2 = vmul.f32 %v1120_v1, %v914_v56  ;;  %v854_v3 = vunpack.c.l.bf16 %v967_v52  ;;  %v985_v55 = vld [vmem:[%s1110_s7 + $0x38] sm:$0xff]  }
  0x1d   : > { %673 = vst [vmem:[%s1158_s19 + $0x10] sm:$0xff] %v641_v48  ;;  %v612_v4 = vadd.f32 %v580_v59, %v444_v58  ;;  %v410_v5 = vmul.f32 %v1115_v0, %v851_v60  ;;  %v546_v7 = vmul.f32 %v1120_v1, %v915_v61  ;;  %v918_v9 = vunpack.c.l.bf16 %v982_v57 }
  0x1e   : > { %674 = vst [vmem:[%s1158_s19 + $0x18] sm:$0xff] %v642_v49  ;;  %v643_v10 = vmax.f32 %v611_v62, 0.0  ;;  %v445_v11 = vadd.f32 %v1128_v6, %v409_v63  ;;  %v581_v12 = vadd.f32 %v1133_v8, %v545_v2  ;;  %v411_v13 = vmul.f32 %v1115_v0, %v854_v3 }
  0x1f   : > { %v644_v16 = vmax.f32 %v612_v4, 0.0  ;;  %v446_v17 = vadd.f32 %v1128_v6, %v410_v5  ;;  %v582_v18 = vadd.f32 %v1133_v8, %v546_v7  ;;  %v547_v19 = vmul.f32 %v1120_v1, %v918_v9  ;;  %v971_v7 = vld [vmem:[%s1105_s28 + $0x40] sm:$0xff]  }
  0x20   : > { %675 = vst [vmem:[%s1158_s19 + $0x20] sm:$0xff] %v643_v10  ;;  %v613_v20 = vadd.f32 %v581_v12, %v445_v11  ;;  %v447_v21 = vadd.f32 %v1128_v6, %v411_v13  ;;  %v855_v22 = vunpack.c.h.bf16 %v967_v52  ;;  %v919_v23 = vunpack.c.h.bf16 %v982_v57  ;;  %v986_v13 = vld [vmem:[%s1110_s7 + $0x40] sm:$0xff]  }
  0x21   : > { %676 = vst [vmem:[%s1158_s19 + $0x28] sm:$0xff] %v644_v16  ;;  %v614_v24 = vadd.f32 %v582_v18, %v446_v17  ;;  %v583_v25 = vadd.f32 %v1133_v8, %v547_v19  ;;  %v858_v26 = vunpack.c.l.bf16 %v968_v14  ;;  %v922_v27 = vunpack.c.l.bf16 %v983_v15 }
  0x22   : > { %v645_v28 = vmax.f32 %v613_v20, 0.0  ;;  %v412_v29 = vmul.f32 %v1115_v0, %v855_v22  ;;  %v548_v30 = vmul.f32 %v1120_v1, %v919_v23  ;;  %v859_v31 = vunpack.c.h.bf16 %v968_v14 }
  0x23   : > { %v646_v33 = vmax.f32 %v614_v24, 0.0  ;;  %v615_v34 = vadd.f32 %v583_v25, %v447_v21  ;;  %v413_v35 = vmul.f32 %v1115_v0, %v858_v26  ;;  %v549_v36 = vmul.f32 %v1120_v1, %v922_v27  ;;  %v972_v26 = vld [vmem:[%s1105_s28 + $0x48] sm:$0xff]  }
  0x24   : > { %677 = vst [vmem:[%s1158_s19 + $0x30] sm:$0xff] %v645_v28  ;;  %v448_v38 = vadd.f32 %v1128_v6, %v412_v29  ;;  %v584_v39 = vadd.f32 %v1133_v8, %v548_v30  ;;  %v414_v40 = vmul.f32 %v1115_v0, %v859_v31  ;;  %v923_v41 = vunpack.c.h.bf16 %v983_v15  ;;  %v987_v27 = vld [vmem:[%s1110_s7 + $0x48] sm:$0xff]  }
  0x25   : > { %678 = vst [vmem:[%s1158_s19 + $0x38] sm:$0xff] %v646_v33  ;;  %v647_v42 = vmax.f32 %v615_v34, 0.0  ;;  %v449_v43 = vadd.f32 %v1128_v6, %v413_v35  ;;  %v585_v44 = vadd.f32 %v1133_v8, %v549_v36  ;;  %v862_v45 = vunpack.c.l.bf16 %v969_v32 }
  0x26   : > { %v616_v47 = vadd.f32 %v584_v39, %v448_v38  ;;  %v450_v48 = vadd.f32 %v1128_v6, %v414_v40  ;;  %v550_v49 = vmul.f32 %v1120_v1, %v923_v41  ;;  %v926_v50 = vunpack.c.l.bf16 %v984_v37  ;;  %v973_v40 = vld [vmem:[%s1105_s28 + $0x50] sm:$0xff]  }
  0x27   : > { %679 = vst [vmem:[%s1158_s19 + $0x40] sm:$0xff] %v647_v42  ;;  %v617_v51 = vadd.f32 %v585_v44, %v449_v43  ;;  %v415_v52 = vmul.f32 %v1115_v0, %v862_v45  ;;  %v863_v53 = vunpack.c.h.bf16 %v969_v32  ;;  %v927_v54 = vunpack.c.h.bf16 %v984_v37  ;;  %v988_v45 = vld [vmem:[%s1110_s7 + $0x50] sm:$0xff]  }
  0x28   : > { %v648_v56 = vmax.f32 %v616_v47, 0.0  ;;  %v586_v57 = vadd.f32 %v1133_v8, %v550_v49  ;;  %v551_v58 = vmul.f32 %v1120_v1, %v926_v50  ;;  %v866_v59 = vunpack.c.l.bf16 %v970_v46 }
  0x29   : > { %v649_v60 = vmax.f32 %v617_v51, 0.0  ;;  %v451_v61 = vadd.f32 %v1128_v6, %v415_v52  ;;  %v416_v62 = vmul.f32 %v1115_v0, %v863_v53  ;;  %v552_v63 = vmul.f32 %v1120_v1, %v927_v54 }
  0x2a   : > { %680 = vst [vmem:[%s1158_s19 + $0x48] sm:$0xff] %v648_v56  ;;  %v618_v2 = vadd.f32 %v586_v57, %v450_v48  ;;  %v587_v3 = vadd.f32 %v1133_v8, %v551_v58  ;;  %v417_v4 = vmul.f32 %v1115_v0, %v866_v59  ;;  %v930_v5 = vunpack.c.l.bf16 %v985_v55 }
  0x2b   : > { %681 = vst [vmem:[%s1158_s19 + $0x50] sm:$0xff] %v649_v60  ;;  %v452_v9 = vadd.f32 %v1128_v6, %v416_v62  ;;  %v588_v10 = vadd.f32 %v1133_v8, %v552_v63  ;;  %v867_v11 = vunpack.c.h.bf16 %v970_v46  ;;  %v931_v12 = vunpack.c.h.bf16 %v985_v55  ;;  %v974_v62 = vld [vmem:[%s1105_s28 + $0x58] sm:$0xff]  }
  0x2c   : > { %v650_v14 = vmax.f32 %v618_v2, 0.0  ;;  %v619_v15 = vadd.f32 %v587_v3, %v451_v61  ;;  %v453_v16 = vadd.f32 %v1128_v6, %v417_v4  ;;  %v553_v17 = vmul.f32 %v1120_v1, %v930_v5  ;;  %v989_v5 = vld [vmem:[%s1110_s7 + $0x58] sm:$0xff]  }
  0x2d   : > { %v620_v18 = vadd.f32 %v588_v10, %v452_v9  ;;  %v418_v19 = vmul.f32 %v1115_v0, %v867_v11  ;;  %v554_v20 = vmul.f32 %v1120_v1, %v931_v12  ;;  %v870_v21 = vunpack.c.l.bf16 %v971_v7 }
  0x2e   : > { %682 = vst [vmem:[%s1158_s19 + $0x58] sm:$0xff] %v650_v14  ;;  %v651_v22 = vmax.f32 %v619_v15, 0.0  ;;  %v589_v23 = vadd.f32 %v1133_v8, %v553_v17  ;;  %v934_v24 = vunpack.c.l.bf16 %v986_v13  ;;  %v871_v25 = vunpack.c.h.bf16 %v971_v7 }
  0x2f   : > { %v652_v28 = vmax.f32 %v620_v18, 0.0  ;;  %v454_v29 = vadd.f32 %v1128_v6, %v418_v19  ;;  %v590_v30 = vadd.f32 %v1133_v8, %v554_v20  ;;  %v419_v31 = vmul.f32 %v1115_v0, %v870_v21  ;;  %v975_v20 = vld [vmem:[%s1105_s28 + $0x60] sm:$0xff]  }
  0x30   : > { %683 = vst [vmem:[%s1158_s19 + $0x60] sm:$0xff] %v651_v22  ;;  %v621_v32 = vadd.f32 %v589_v23, %v453_v16  ;;  %v555_v33 = vmul.f32 %v1120_v1, %v934_v24  ;;  %v420_v34 = vmul.f32 %v1115_v0, %v871_v25  ;;  %v935_v35 = vunpack.c.h.bf16 %v986_v13  ;;  %v990_v25 = vld [vmem:[%s1110_s7 + $0x60] sm:$0xff]  }
  0x31   : > { %684 = vst [vmem:[%s1158_s19 + $0x68] sm:$0xff] %v652_v28  ;;  %v622_v36 = vadd.f32 %v590_v30, %v454_v29  ;;  %v455_v37 = vadd.f32 %v1128_v6, %v419_v31  ;;  %v874_v38 = vunpack.c.l.bf16 %v972_v26  ;;  %v938_v39 = vunpack.c.l.bf16 %v987_v27 }
  0x32   : > { %v653_v41 = vmax.f32 %v621_v32, 0.0  ;;  %v591_v42 = vadd.f32 %v1133_v8, %v555_v33  ;;  %v456_v43 = vadd.f32 %v1128_v6, %v420_v34  ;;  %v556_v44 = vmul.f32 %v1120_v1, %v935_v35  ;;  %v976_v34 = vld [vmem:[%s1105_s28 + $0x68] sm:$0xff]  }
  0x33   : > { %v654_v46 = vmax.f32 %v622_v36, 0.0  ;;  %v421_v47 = vmul.f32 %v1115_v0, %v874_v38  ;;  %v557_v48 = vmul.f32 %v1120_v1, %v938_v39  ;;  %v875_v49 = vunpack.c.h.bf16 %v972_v26 }
  0x34   : > { %685 = vst [vmem:[%s1158_s19 + $0x70] sm:$0xff] %v653_v41  ;;  %v623_v50 = vadd.f32 %v591_v42, %v455_v37  ;;  %v592_v51 = vadd.f32 %v1133_v8, %v556_v44  ;;  %v939_v52 = vunpack.c.h.bf16 %v987_v27  ;;  %v878_v53 = vunpack.c.l.bf16 %v973_v40 }
  0x35   : > { %686 = vst [vmem:[%s1158_s19 + $0x78] sm:$0xff] %v654_v46  ;;  %v457_v54 = vadd.f32 %v1128_v6, %v421_v47  ;;  %v593_v55 = vadd.f32 %v1133_v8, %v557_v48  ;;  %v422_v56 = vmul.f32 %v1115_v0, %v875_v49  ;;  %v942_v57 = vunpack.c.l.bf16 %v988_v45 }
  0x36   : > { %v655_v58 = vmax.f32 %v623_v50, 0.0  ;;  %v624_v59 = vadd.f32 %v592_v51, %v456_v43  ;;  %v558_v60 = vmul.f32 %v1120_v1, %v939_v52  ;;  %v423_v61 = vmul.f32 %v1115_v0, %v878_v53  ;;  %v991_v43 = vld [vmem:[%s1110_s7 + $0x68] sm:$0xff]  }
  0x37   : > { %v625_v63 = vadd.f32 %v593_v55, %v457_v54  ;;  %v458_v2 = vadd.f32 %v1128_v6, %v422_v56  ;;  %v559_v3 = vmul.f32 %v1120_v1, %v942_v57  ;;  %v879_v4 = vunpack.c.h.bf16 %v973_v40  ;;  %v977_v56 = vld [vmem:[%s1105_s28 + $0x70] sm:$0xff]  }
  0x38   : > { %687 = vst [vmem:[%s1158_s19 + $0x80] sm:$0xff] %v655_v58  ;;  %v656_v7 = vmax.f32 %v624_v59, 0.0  ;;  %v594_v9 = vadd.f32 %v1133_v8, %v558_v60  ;;  %v459_v10 = vadd.f32 %v1128_v6, %v423_v61  ;;  %v943_v11 = vunpack.c.h.bf16 %v988_v45  ;;  %v992_v57 = vld [vmem:[%s1110_s7 + $0x70] sm:$0xff]  }
  0x39   : > { %v657_v12 = vmax.f32 %v625_v63, 0.0  ;;  %v595_v13 = vadd.f32 %v1133_v8, %v559_v3  ;;  %v424_v14 = vmul.f32 %v1115_v0, %v879_v4  ;;  %v882_v15 = vunpack.c.l.bf16 %v974_v62 }
  0x3a   : > { %688 = vst [vmem:[%s1158_s19 + $0x88] sm:$0xff] %v656_v7  ;;  %v626_v16 = vadd.f32 %v594_v9, %v458_v2  ;;  %v560_v17 = vmul.f32 %v1120_v1, %v943_v11  ;;  %v946_v18 = vunpack.c.l.bf16 %v989_v5  ;;  %v883_v19 = vunpack.c.h.bf16 %v974_v62 }
  0x3b   : > { %689 = vst [vmem:[%s1158_s19 + $0x90] sm:$0xff] %v657_v12  ;;  %v627_v21 = vadd.f32 %v595_v13, %v459_v10  ;;  %v460_v22 = vadd.f32 %v1128_v6, %v424_v14  ;;  %v425_v23 = vmul.f32 %v1115_v0, %v882_v15  ;;  %v947_v24 = vunpack.c.h.bf16 %v989_v5  ;;  %v978_v14 = vld [vmem:[%s1105_s28 + $0x78] sm:$0xff]  }
  0x3c   : > { %v658_v26 = vmax.f32 %v626_v16, 0.0  ;;  %v596_v27 = vadd.f32 %v1133_v8, %v560_v17  ;;  %v561_v28 = vmul.f32 %v1120_v1, %v946_v18  ;;  %v426_v29 = vmul.f32 %v1115_v0, %v883_v19  ;;  %v993_v15 = vld [vmem:[%s1110_s7 + $0x78] sm:$0xff]  }
  0x3d   : > { %v659_v30 = vmax.f32 %v627_v21, 0.0  ;;  %v461_v31 = vadd.f32 %v1128_v6, %v425_v23  ;;  %v562_v32 = vmul.f32 %v1120_v1, %v947_v24  ;;  %v886_v33 = vunpack.c.l.bf16 %v975_v20 }
  0x3e   : > { %690 = vst [vmem:[%s1158_s19 + $0x98] sm:$0xff] %v658_v26  ;;  %v628_v35 = vadd.f32 %v596_v27, %v460_v22  ;;  %v597_v36 = vadd.f32 %v1133_v8, %v561_v28  ;;  %v462_v37 = vadd.f32 %v1128_v6, %v426_v29  ;;  %v950_v38 = vunpack.c.l.bf16 %v990_v25 }
  0x3f   : > { %691 = vst [vmem:[%s1158_s19 + $0xa0] sm:$0xff] %v659_v30  ;;  %v598_v39 = vadd.f32 %v1133_v8, %v562_v32  ;;  %v427_v40 = vmul.f32 %v1115_v0, %v886_v33  ;;  %v887_v41 = vunpack.c.h.bf16 %v975_v20  ;;  %v951_v42 = vunpack.c.h.bf16 %v990_v25 }
  0x40   : > { %v660_v44 = vmax.f32 %v628_v35, 0.0  ;;  %v629_v45 = vadd.f32 %v597_v36, %v461_v31  ;;  %v563_v46 = vmul.f32 %v1120_v1, %v950_v38  ;;  %v890_v47 = vunpack.c.l.bf16 %v976_v34 }
  0x41   : > { %v630_v48 = vadd.f32 %v598_v39, %v462_v37  ;;  %v463_v49 = vadd.f32 %v1128_v6, %v427_v40  ;;  %v428_v50 = vmul.f32 %v1115_v0, %v887_v41  ;;  %v564_v51 = vmul.f32 %v1120_v1, %v951_v42 }
  0x42   : > { %692 = vst [vmem:[%s1158_s19 + $0xa8] sm:$0xff] %v660_v44  ;;  %v661_v52 = vmax.f32 %v629_v45, 0.0  ;;  %v599_v53 = vadd.f32 %v1133_v8, %v563_v46  ;;  %v429_v54 = vmul.f32 %v1115_v0, %v890_v47  ;;  %v954_v55 = vunpack.c.l.bf16 %v991_v43 }
  0x43   : > { %v662_v58 = vmax.f32 %v630_v48, 0.0  ;;  %v464_v59 = vadd.f32 %v1128_v6, %v428_v50  ;;  %v600_v60 = vadd.f32 %v1133_v8, %v564_v51  ;;  %v891_v61 = vunpack.c.h.bf16 %v976_v34 }
  0x44   : > { %693 = vst [vmem:[%s1158_s19 + $0xb0] sm:$0xff] %v661_v52  ;;  %v631_v62 = vadd.f32 %v599_v53, %v463_v49  ;;  %v465_v63 = vadd.f32 %v1128_v6, %v429_v54  ;;  %v565_v2 = vmul.f32 %v1120_v1, %v954_v55  ;;  %v955_v3 = vunpack.c.h.bf16 %v991_v43 }
  0x45   : > { %694 = vst [vmem:[%s1158_s19 + $0xb8] sm:$0xff] %v662_v58  ;;  %v632_v4 = vadd.f32 %v600_v60, %v464_v59  ;;  %v430_v5 = vmul.f32 %v1115_v0, %v891_v61  ;;  %v894_v7 = vunpack.c.l.bf16 %v977_v56  ;;  %v958_v9 = vunpack.c.l.bf16 %v992_v57 }
  0x46   : > { %v663_v10 = vmax.f32 %v631_v62, 0.0  ;;  %v601_v11 = vadd.f32 %v1133_v8, %v565_v2  ;;  %v566_v12 = vmul.f32 %v1120_v1, %v955_v3  ;;  %v895_v13 = vunpack.c.h.bf16 %v977_v56 }
  0x47   : > { %v664_v16 = vmax.f32 %v632_v4, 0.0  ;;  %v466_v17 = vadd.f32 %v1128_v6, %v430_v5  ;;  %v431_v18 = vmul.f32 %v1115_v0, %v894_v7  ;;  %v567_v19 = vmul.f32 %v1120_v1, %v958_v9 }
  0x48   : > { %695 = vst [vmem:[%s1158_s19 + $0xc0] sm:$0xff] %v663_v10  ;;  %v633_v20 = vadd.f32 %v601_v11, %v465_v63  ;;  %v602_v21 = vadd.f32 %v1133_v8, %v566_v12  ;;  %v432_v22 = vmul.f32 %v1115_v0, %v895_v13  ;;  %v959_v23 = vunpack.c.h.bf16 %v992_v57 }
  0x49   : > { %696 = vst [vmem:[%s1158_s19 + $0xc8] sm:$0xff] %v664_v16  ;;  %v467_v24 = vadd.f32 %v1128_v6, %v431_v18  ;;  %v603_v25 = vadd.f32 %v1133_v8, %v567_v19  ;;  %v898_v26 = vunpack.c.l.bf16 %v978_v14  ;;  %v962_v27 = vunpack.c.l.bf16 %v993_v15 }
  0x4a   : > { %v665_v28 = vmax.f32 %v633_v20, 0.0  ;;  %v634_v29 = vadd.f32 %v602_v21, %v466_v17  ;;  %v468_v30 = vadd.f32 %v1128_v6, %v432_v22  ;;  %v568_v31 = vmul.f32 %v1120_v1, %v959_v23 }
  0x4b   : > { %v635_v32 = vadd.f32 %v603_v25, %v467_v24  ;;  %v433_v33 = vmul.f32 %v1115_v0, %v898_v26  ;;  %v569_v34 = vmul.f32 %v1120_v1, %v962_v27  ;;  %v899_v35 = vunpack.c.h.bf16 %v978_v14 }
  0x4c   : > { %697 = vst [vmem:[%s1158_s19 + $0xd0] sm:$0xff] %v665_v28  ;;  %v666_v36 = vmax.f32 %v634_v29, 0.0  ;;  %v604_v37 = vadd.f32 %v1133_v8, %v568_v31  ;;  %v963_v38 = vunpack.c.h.bf16 %v993_v15 }
  0x4d   : > { %v667_v39 = vmax.f32 %v635_v32, 0.0  ;;  %v469_v40 = vadd.f32 %v1128_v6, %v433_v33  ;;  %v605_v41 = vadd.f32 %v1133_v8, %v569_v34  ;;  %v434_v42 = vmul.f32 %v1115_v0, %v899_v35 }
  0x4e   : > { %698 = vst [vmem:[%s1158_s19 + $0xd8] sm:$0xff] %v666_v36  ;;  %v636_v43 = vadd.f32 %v604_v37, %v468_v30  ;;  %v570_v44 = vmul.f32 %v1120_v1, %v963_v38 }
  0x4f   : > { %699 = vst [vmem:[%s1158_s19 + $0xe0] sm:$0xff] %v667_v39  ;;  %v637_v45 = vadd.f32 %v605_v41, %v469_v40  ;;  %v470_v46 = vadd.f32 %v1128_v6, %v434_v42 }
  0x50   : > { %v668_v47 = vmax.f32 %v636_v43, 0.0  ;;  %v606_v48 = vadd.f32 %v1133_v8, %v570_v44 }
  0x51   : > { %v669_v49 = vmax.f32 %v637_v45, 0.0 }
  0x52   : > { %700 = vst [vmem:[%s1158_s19 + $0xe8] sm:$0xff] %v668_v47  ;;  %v638_v50 = vadd.f32 %v606_v48, %v470_v46 }
  0x53   : > { %701 = vst [vmem:[%s1158_s19 + $0xf0] sm:$0xff] %v669_v49 }
  0x54   : > { %v670_v51 = vmax.f32 %v638_v50, 0.0 }
  0x56   : > { %702 = vst [vmem:[%s1158_s19 + $0xf8] sm:$0xff] %v670_v51 }
  0x57 PF: > { %s16_s23 = sadd.s32 1, %s1044_s23   ;;  %s1346_s21 = smov %s1040_s22 }
  0x58   : > { %p13_p5 = scmp.ge.s32.totalorder %s16_s23, 4   ;;  %s1347_s22 = smov %s1349_s24 }
  0x5a   :  { %15 = sbr.rel (!%p13_p5) target bundleno = 2 (0x2), region = 77 }

// kernel: _basic_block_forward.3
= control target key start
LH: loop header
LB: loop body
LE: loop exit
PB: predicated region body
PF: predicated region fallthrough
CT: control target
= control target key end

     0   :  { %s4481_s15 = smov 0   ;;  %s4483_s16 = smov 0   ;;  %s6077_s0 = inlined_call_operand.vmem [shape: bf16[2,16,18,128], index: 0, kind: input, shape index: {}]   ;;  %s6078_s1 = inlined_call_operand.vmem [shape: bf16[9,128,128], index: 1, kind: input, shape index: {}]   ;;  %s6079_s2 = inlined_call_operand.vmem [shape: bf16[2,16,18,128], index: 2, kind: output, shape index: {0}]   ;;  %s6080_s3 = inlined_call_operand.vmem [shape: f32[2,1,1,128], index: 3, kind: output, shape index: {1}]   ;;  %s6081_s4 = inlined_call_operand.vmem [shape: f32[2,1,1,128], index: 4, kind: output, shape index: {2}]  }
   0x1   :  { %s4485_s17 = smov 0  }
   0x2 LB: > { %s27_s18 = sadd.s32 1, %s4447_s16  ;;  %p3863_p0 = scmp.ge.s32.totalorder %s4451_s17, 1  ;;  %s4451_s17 = sphi %s4485_s17, %s15_s17   ;;  %s4447_s16 = sphi %s4483_s16, %s6293_s16   ;;  %s4443_s15 = sphi %s4481_s15, %s6292_s15  }
   0x3   : > { %p29_p1 = scmp.ge.s32.totalorder %s27_s18, 2  ;;  %p185_p2 = scmp.lt.s32.totalorder %s4451_s17, 3 }
   0x5   : > { %s6295_s18 = smov (%p29_p1, %s27_s18), 0  ;;  %p186_p3 = pnand %p3863_p0, %p185_p2 }
   0x7   : > { %189 = sbr.rel (%p186_p3) target bundleno = 783 (0x30f), region = 28 }
   0xc   : > { %v4320_v0 = vld [vmem:[%s6078_s1 + $0x78] sm:$0xff]  ;;  %p228_p4 = scmp.lt.s32.totalorder %s4443_s15, 1  ;;  %v345_v1 = vlaneseq  ;;  %v4319_v2 = vld [vmem:[%s6078_s1 + $0x70] sm:$0xff]  ;;  %vm4453_vm1 = vmmov 1   ;;  %v6149_v5 = vmov 0  ;;  %v6152_v6 = vmov 0 }
   0xd   : > { %4377 = vmatpush.bf16.msra.mxu1 %v4320_v0  ;;  %4378 = vmatpush.bf16.msra.mxu2 %v4320_v0  ;;  %vm4508_vm2 = vmpackc.low %vm4453_vm1, %vm4453_vm1  ;;  %v4318_v7 = vld [vmem:[%s6078_s1 + $0x68] sm:$0xff]  ;;  %vm641_vm5 = vsmask.f32 3328  ;;  %vm642_vm6 = vsmask.f32 7440  ;;  %v6155_v11 = vmov 0 }
   0xe   : > { %s6297_s15 = smov (!%p228_p4, %s4443_s15), 1  ;;  %v346_v3 = vshrl.u32 %v345_v1, 7  ;;  %4379 = vmatpush.bf16.msra.mxu3 %v4320_v0  ;;  %1157 = vmatpush.bf16.msra.mxu0 %v4320_v0  ;;  %v6150_v5 = vsel %vm4508_vm2, 4294967295, %v6149_v5  ;;  %v4317_v21 = vld [vmem:[%s6078_s1 + $0x60] sm:$0xff]  ;;  %v4316_v41 = vld [vmem:[%s6078_s1 + $0x58] sm:$0xff]  ;;  %vm4581_vm8 = vmor %vm641_vm5, %vm642_vm6  ;;  %vm4454_vm9 = vmmov 0  }
   0xf   : > { %s4401_s23 = smul.u32 192, %s6297_s15  ;;  %6151 = vst [vmem:[#allocation2_spill] sm:$0xff] %v6150_v5  ;;  %v4315_v59 = vld [vmem:[%s6078_s1 + $0x50] sm:$0xff]  ;;  %vm4609_vm10 = vmpackc.low %vm4454_vm9, %vm4454_vm9  ;;  %vm1495_vm11 = vcmask 1042432   ;;  %vm1496_vm12 = vcmask 1046532   ;;  %vm3471_vm14 = vcmask 1043456   ;;  %s249_s30 = scalar_lea.vmem %s6080_s3, %s6297_s15 }
  0x10   : > { %v348_v4 = vadd.s32 16, %v346_v3  ;;  %vm403_vm0 = vcmp.ge.s32.totalorder %v346_v3, 1  ;;  %vm5088_vm13 = vmor %vm1495_vm11, %vm1496_vm12  ;;  %vm3472_vm15 = vsmask.f32 7938  ;;  %vm3148_vm1 = vsmask.f32 256  ;;  %s255_s7 = scalar_lea.vmem %s6081_s4, %s6297_s15 }
  0x11   : > { %vm4512_vm3 = vmpackc.low %vm403_vm0, %vm403_vm0  ;;  %4380 = vmatpush.bf16.msra.mxu1 %v4319_v2  ;;  %4381 = vmatpush.bf16.msra.mxu2 %v4319_v2  ;;  %s4524_s28 = scalar_lea.vmem %s6077_s0, %s4401_s23  ;;  %s5655_s29 = scalar_lea.vmem %s6079_s2, %s4401_s23 }
  0x12   : > { %v6153_v6 = vsel %vm4512_vm3, 4294967295, %v6152_v6  ;;  %vm462_vm4 = vcmp.le.s32.totalorder %v348_v4, 16  ;;  %4382 = vmatpush.bf16.msra.mxu3 %v4319_v2  ;;  %1158 = vmatpush.bf16.msra.mxu0 %v4319_v2  ;;  %v279_v8 = vld [vmem:[%s4524_s28 + $0x24] sm:$0xf]  ;;  %v280_v9 = vld [vmem:[%s4524_s28 + $0x28] sm:$0xf]  ;;  %vm5751_vm0 = vmand %vm3471_vm14, %vm3472_vm15 }
  0x13   : > { %6154 = vst [vmem:[#allocation3_spill] sm:$0xff] %v6153_v6  ;;  %v281_v10 = vld [vmem:[%s4524_s28 + $0x2c] sm:$0x1]  ;;  %vm4529_vm7 = vmpackc.low %vm462_vm4, %vm462_vm4  ;;  %v4535_v12 = vsel %vm4512_vm3, %v279_v8, 0  ;;  %v4539_v13 = vsel %vm4508_vm2, %v280_v9, 0  ;;  %v6163_v8 = vmov 0 }
  0x14   : > { %v6156_v11 = vsel %vm4529_vm7, 4294967295, %v6155_v11  ;;  %v291_v14 = vld [vmem:[%s4524_s28 + $0x54] sm:$0xf]  ;;  %v292_v15 = vld [vmem:[%s4524_s28 + $0x58] sm:$0xf]  ;;  %v4545_v16 = vsel %vm4529_vm7, %v281_v10, 0 }
  0x15   : > { %6157 = vst [vmem:[#allocation4_spill] sm:$0xff] %v6156_v11  ;;  %v741_v17 = vshrl.u32 %v4535_v12, 16  ;;  %v744_v18 = vshll.u32 %v4535_v12, 16  ;;  %v750_v19 = vshll.u32 %v4539_v13, 16  ;;  %v293_v20 = vld [vmem:[%s4524_s28 + $0x5c] sm:$0x1]  ;;  %4383 = vmatpush.bf16.msra.mxu1 %v4318_v7  ;;  %4384 = vmatpush.bf16.msra.mxu2 %v4318_v7 }
  0x16   : > { %v754_v22 = vshrl.u32 %v4539_v13, 16  ;;  %v760_v23 = vshll.u32 %v4545_v16, 16  ;;  %v4558_v24 = vsel %vm4512_vm3, %v291_v14, 0  ;;  %v4562_v25 = vsel %vm4508_vm2, %v292_v15, 0  ;;  %4385 = vmatpush.bf16.msra.mxu3 %v4318_v7  ;;  %1159 = vmatpush.bf16.msra.mxu0 %v4318_v7  ;;  %v303_v30 = vld [vmem:[%s4524_s28 + $0x84] sm:$0xf] }
  0x17   : > { %v743_v26 = vrot.slane %v741_v17, 4  ;;  %v746_v27 = vrot.slane %v744_v18, 5  ;;  %v752_v28 = vrot.slane %v750_v19, 5  ;;  %v4566_v29 = vsel %vm4529_vm7, %v293_v20, 0  ;;  %v304_v35 = vld [vmem:[%s4524_s28 + $0x88] sm:$0xf] }
  0x18   : > { %v756_v31 = vrot.slane %v754_v22, 4  ;;  %v762_v32 = vrot.slane %v760_v23, 5  ;;  %v837_v33 = vshrl.u32 %v4558_v24, 16  ;;  %v840_v34 = vshll.u32 %v4558_v24, 16  ;;  %v305_v40 = vld [vmem:[%s4524_s28 + $0x8c] sm:$0x1] }
  0x19   : > { %v747_v36 = vor.u32 %v746_v27, %v743_v26  ;;  %v846_v37 = vshll.u32 %v4562_v25, 16  ;;  %v850_v38 = vshrl.u32 %v4562_v25, 16  ;;  %v856_v39 = vshll.u32 %v4566_v29, 16  ;;  %4386 = vmatpush.bf16.msra.mxu1 %v4317_v21  ;;  %4387 = vmatpush.bf16.msra.mxu2 %v4317_v21  ;;  %v264_v0 = vld [vmem:[%s4524_s28] sm:$0xf]  ;;  %v4314_v22 = vld [vmem:[%s6078_s1 + $0x48] sm:$0xff] }
  0x1a   : > { %v757_v43 = vor.u32 %v756_v31, %v752_v28  ;;  %v839_v44 = vrot.slane %v837_v33, 4  ;;  %v842_v45 = vrot.slane %v840_v34, 5  ;;  %v4587_v46 = vsel %vm4512_vm3, %v303_v30, 0  ;;  %4388 = vmatpush.bf16.msra.mxu3 %v4317_v21  ;;  %1160 = vmatpush.bf16.msra.mxu0 %v4317_v21  ;;  %v265_v7 = vld [vmem:[%s4524_s28 + $0x4] sm:$0xf] }
  0x1b   : > { %6160 = vst [vmem:[#allocation5_spill] sm:$0xff] %v4587_v46  ;;  %v748_v47 = vrot.slane %v747_v36, 4  ;;  %v848_v48 = vrot.slane %v846_v37, 5  ;;  %v852_v49 = vrot.slane %v850_v38, 4  ;;  %v858_v50 = vrot.slane %v856_v39, 5 }
  0x1c   : > { %v758_v51 = vrot.slane %v757_v43, 4  ;;  %v843_v52 = vor.u32 %v842_v45, %v839_v44  ;;  %v4591_v53 = vsel %vm4508_vm2, %v304_v35, 0  ;;  %v4595_v54 = vsel %vm4529_vm7, %v305_v40, 0  ;;  %v266_v17 = vld [vmem:[%s4524_s28 + $0x8] sm:$0x1] }
  0x1d   : > { %6161 = vst [vmem:[#allocation6_spill] sm:$0xff] %v4591_v53  ;;  %v753_v55 = vsel %vm4581_vm8, %v748_v47, %v752_v28  ;;  %v853_v56 = vor.u32 %v852_v49, %v848_v48  ;;  %v933_v57 = vshrl.u32 %v4587_v46, 16  ;;  %v936_v58 = vshll.u32 %v4587_v46, 16  ;;  %4389 = vmatpush.bf16.msra.mxu1 %v4316_v41  ;;  %4390 = vmatpush.bf16.msra.mxu2 %v4316_v41  ;;  %v282_v38 = vld [vmem:[%s4524_s28 + $0x30] sm:$0xf]  ;;  %v4313_v47 = vld [vmem:[%s6078_s1 + $0x40] sm:$0xff] }
  0x1e   : > { %6162 = vst [vmem:[#allocation7_spill] sm:$0xff] %v4595_v54  ;;  %v763_v60 = vsel %vm4581_vm8, %v758_v51, %v762_v32  ;;  %v1053_v61 = vunpack.c.l.b16 %v753_v55  ;;  %v844_v62 = vrot.slane %v843_v52, 4  ;;  %v942_v63 = vshll.u32 %v4591_v53, 16  ;;  %4391 = vmatpush.bf16.msra.mxu3 %v4316_v41  ;;  %1161 = vmatpush.bf16.msra.mxu0 %v4316_v41  ;;  %v283_v39 = vld [vmem:[%s4524_s28 + $0x34] sm:$0xf]  ;;  %v4338_v46 = vld [vmem:[%s6078_s1 + $0x108] sm:$0xff] }
  0x1f   : > { %v1054_v1 = vunpack.c.l.b16 %v763_v60  ;;  %v854_v2 = vrot.slane %v853_v56, 4  ;;  %v935_v3 = vrot.slane %v933_v57, 4  ;;  %v938_v4 = vrot.slane %v936_v58, 5  ;;  %v284_v45 = vld [vmem:[%s4524_s28 + $0x38] sm:$0x1] }
  0x20   : > { %v6164_v8 = vsel %vm4609_vm10, 4294967295, %v6163_v8  ;;  %v849_v9 = vsel %vm4581_vm8, %v844_v62, %v848_v48  ;;  %v944_v10 = vrot.slane %v942_v63, 5  ;;  %v946_v14 = vshrl.u32 %v4591_v53, 16 }
  0x21   : > { %6165 = vst [vmem:[#allocation8_spill] sm:$0xff] %v6164_v8  ;;  %v952_v15 = vshll.u32 %v4595_v54, 16  ;;  %v4618_v18 = vpack.c.b16 %v1054_v1, %v1053_v61  ;;  %v859_v19 = vsel %vm4581_vm8, %v854_v2, %v858_v50  ;;  %v1061_v20 = vunpack.c.l.b16 %v849_v9  ;;  %4392 = vmatpush.bf16.msra.mxu1 %v4315_v59  ;;  %4393 = vmatpush.bf16.msra.mxu2 %v4315_v59  ;;  %v4336_v61 = vld [vmem:[%s6078_s1 + $0xf8] sm:$0xff]  ;;  %v275_v8 = vld [vmem:[%s4524_s28 + $0x14] sm:$0x1] }
  0x22   : > { %v939_v21 = vor.u32 %v938_v4, %v935_v3  ;;  %v1062_v23 = vunpack.c.l.b16 %v859_v19  ;;  %v948_v26 = vrot.slane %v946_v14, 4  ;;  %v4627_v28 = vsel %vm4609_vm10, %v264_v0, 0  ;;  %4394 = vmatpush.bf16.msra.mxu3 %v4315_v59  ;;  %1162 = vmatpush.bf16.msra.mxu0 %v4315_v59  ;;  %v4328_v59 = vld [vmem:[%s6078_s1 + $0xb8] sm:$0xff] }
  0x23   : > { %v954_v27 = vrot.slane %v952_v15, 5  ;;  %v4631_v31 = vsel %vm4609_vm10, %v265_v7, 0  ;;  %v4635_v32 = vsel %vm4609_vm10, %v266_v17, 0  ;;  %v645_v33 = vshrl.u32 %v4627_v28, 16  ;;  %v4312_v2 = vld [vmem:[%s6078_s1 + $0x38] sm:$0xff] }
  0x24   : > { %v940_v30 = vrot.slane %v939_v21, 4  ;;  %v4638_v34 = vpack.c.b16 %v1062_v23, %v1061_v20  ;;  %v949_v35 = vor.u32 %v948_v26, %v944_v10  ;;  %v648_v36 = vshll.u32 %v4627_v28, 16  ;;  %v294_v7 = vld [vmem:[%s4524_s28 + $0x60] sm:$0xf]  ;;  %v295_v17 = vld [vmem:[%s4524_s28 + $0x64] sm:$0xf] }
  0x25   : > { %v654_v37 = vshll.u32 %v4631_v31, 16  ;;  %v647_v41 = vrot.slane %v645_v33, 4  ;;  %v658_v43 = vshrl.u32 %v4631_v31, 16  ;;  %v664_v44 = vshll.u32 %v4635_v32, 16  ;;  %4395 = vmatpush.bf16.msra.mxu1 %v4314_v22  ;;  %4396 = vmatpush.bf16.msra.mxu2 %v4314_v22  ;;  %v4344_v21 = vld [vmem:[%s6078_s1 + $0x138] sm:$0xff]  ;;  %v4335_v33 = vld [vmem:[%s6078_s1 + $0xf0] sm:$0xff] }
  0x26   : > { %6166 = vst [vmem:[#allocation9_spill] sm:$0xff] %v4638_v34  ;;  %v945_v40 = vsel %vm4581_vm8, %v940_v30, %v944_v10  ;;  %v950_v48 = vrot.slane %v949_v35, 4  ;;  %v650_v50 = vrot.slane %v648_v36, 5  ;;  %4397 = vmatpush.bf16.msra.mxu3 %v4314_v22  ;;  %1163 = vmatpush.bf16.msra.mxu0 %v4314_v22  ;;  %v4654_v56 = vsel %vm4512_vm3, %v282_v38, 0  ;;  %v296_v26 = vld [vmem:[%s4524_s28 + $0x68] sm:$0x1] }
  0x27   : > { %v1069_v49 = vunpack.c.l.b16 %v945_v40  ;;  %v656_v51 = vrot.slane %v654_v37, 5  ;;  %v660_v52 = vrot.slane %v658_v43, 4  ;;  %v666_v55 = vrot.slane %v664_v44, 5  ;;  %v4327_v30 = vld [vmem:[%s6078_s1 + $0xb0] sm:$0xff] }
  0x28   : > { %v4658_v57 = vsel %vm4508_vm2, %v283_v39, 0  ;;  %v955_v58 = vsel %vm4581_vm8, %v950_v48, %v954_v27  ;;  %v651_v60 = vor.u32 %v650_v50, %v647_v41  ;;  %v4670_v62 = vsel %vm4529_vm7, %v284_v45, 0  ;;  %v4311_v40 = vld [vmem:[%s6078_s1 + $0x30] sm:$0xff] }
  0x29   : > { %v765_v63 = vshrl.u32 %v4654_v56, 16  ;;  %v1070_v0 = vunpack.c.l.b16 %v955_v58  ;;  %v661_v1 = vor.u32 %v660_v52, %v656_v51  ;;  %v768_v3 = vshll.u32 %v4654_v56, 16  ;;  %4398 = vmatpush.bf16.msra.mxu1 %v4313_v47  ;;  %4399 = vmatpush.bf16.msra.mxu2 %v4313_v47  ;;  %v307_v50 = vld [vmem:[%s4524_s28 + $0x94] sm:$0xf] }
  0x2a   : > { %v774_v4 = vshll.u32 %v4658_v57, 16  ;;  %v652_v9 = vrot.slane %v651_v60, 4  ;;  %v778_v14 = vshrl.u32 %v4658_v57, 16  ;;  %v784_v15 = vshll.u32 %v4670_v62, 16  ;;  %4400 = vmatpush.bf16.msra.mxu3 %v4313_v47  ;;  %1164 = vmatpush.bf16.msra.mxu0 %v4313_v47 }
  0x2b   : > { %v767_v10 = vrot.slane %v765_v63, 4  ;;  %v4682_v19 = vpack.c.b16 %v1070_v0, %v1069_v49  ;;  %v662_v20 = vrot.slane %v661_v1, 4  ;;  %v770_v22 = vrot.slane %v768_v3, 5  ;;  %v306_v49 = vld [vmem:[%s4524_s28 + $0x90] sm:$0xf]  ;;  %v4326_v1 = vld [vmem:[%s6078_s1 + $0xa8] sm:$0xff] }
  0x2c   : > { %v776_v23 = vrot.slane %v774_v4, 5  ;;  %v657_v27 = vsel %vm4581_vm8, %v652_v9, %v656_v51  ;;  %v780_v35 = vrot.slane %v778_v14, 4  ;;  %v786_v36 = vrot.slane %v784_v15, 5  ;;  %1185 = vmatmul.bf16.vlgmr.msra.gmra.mxu1 %v4618_v18  ;;  %1205 = vmatmul.bf16.vlgmr.msra.gmra.mxu2 %v4638_v34 }
  0x2d   : > { %6167 = vst [vmem:[#allocation10_spill] sm:$0xff] %v4682_v19  ;;  %1739 = vmatpush.bf16.msrb.mxu2 %v4328_v59  ;;  %v4698_v37 = vsel %vm4512_vm3, %v294_v7, 0  ;;  %v667_v38 = vsel %vm4581_vm8, %v662_v20, %v666_v55  ;;  %v1045_v39 = vunpack.c.l.b16 %v657_v27  ;;  %v771_v41 = vor.u32 %v770_v22, %v767_v10  ;;  %1225 = vmatmul.bf16.vlgmr.msra.gmra.mxu3 %v4682_v19  ;;  %v4343_v59 = vld [vmem:[%s6078_s1 + $0x130] sm:$0xff]  ;;  %v308_v10 = vld [vmem:[%s4524_s28 + $0x98] sm:$0x1] }
  0x2e   : > { %1931 = vmatpush.bf16.msrb.mxu3 %v4336_v61  ;;  %v4709_v43 = vsel %vm4508_vm2, %v295_v17, 0  ;;  %v1046_v44 = vunpack.c.l.b16 %v667_v38  ;;  %1390 = vmatpush.bf16.msrb.mxu1 %v4312_v2  ;;  %v781_v45 = vor.u32 %v780_v35, %v776_v23  ;;  %v4714_v47 = vsel %vm4529_vm7, %v296_v26, 0  ;;  %v4334_v2 = vld [vmem:[%s6078_s1 + $0xe8] sm:$0xff] }
  0x2f   : > { %v861_v48 = vshrl.u32 %v4698_v37, 16  ;;  %2145 = vmatpush.bf16.msrb.mxu0 %v4344_v21  ;;  %v772_v51 = vrot.slane %v771_v41, 4  ;;  %v864_v52 = vshll.u32 %v4698_v37, 16  ;;  %v870_v55 = vshll.u32 %v4709_v43, 16  ;;  %v4310_v21 = vld [vmem:[%s6078_s1 + $0x28] sm:$0xff]  ;;  %v4325_v41 = vld [vmem:[%s6078_s1 + $0xa0] sm:$0xff] }
  0x30   : > { %v874_v58 = vshrl.u32 %v4709_v43, 16  ;;  %v1077_v60 = vpack.c.b16 %v1046_v44, %v1045_v39  ;;  %v782_v61 = vrot.slane %v781_v45, 4  ;;  %v880_v0 = vshll.u32 %v4714_v47, 16  ;;  %v4333_v44 = vld [vmem:[%s6078_s1 + $0xe0] sm:$0xff] }
  0x31   : > { %1740 = vmatpush.bf16.msrb.mxu2 %v4327_v30  ;;  %v863_v63 = vrot.slane %v861_v48, 4  ;;  %v777_v3 = vsel %vm4581_vm8, %v772_v51, %v776_v23  ;;  %v866_v4 = vrot.slane %v864_v52, 5  ;;  %v872_v7 = vrot.slane %v870_v55, 5  ;;  %v270_v30 = vld [vmem:[%s4524_s28] sm:$0xf] }
  0x32   : > { %1932 = vmatpush.bf16.msrb.mxu3 %v4335_v33  ;;  %v876_v9 = vrot.slane %v874_v58, 4  ;;  %1165 = vmatmul.bf16.vlgmr.msra.gmra.mxu0 %v1077_v60  ;;  %v787_v14 = vsel %vm4581_vm8, %v782_v61, %v786_v36  ;;  %v1055_v15 = vunpack.c.l.b16 %v777_v3  ;;  %v882_v17 = vrot.slane %v880_v0, 5  ;;  %v4342_v33 = vld [vmem:[%s6078_s1 + $0x128] sm:$0xff]  ;;  %v4309_v60 = vld [vmem:[%s6078_s1 + $0x20] sm:$0xff] }
  0x33   : > { %1391 = vmatpush.bf16.msrb.mxu1 %v4311_v40  ;;  %v4739_v20 = vsel %vm4512_vm3, %v306_v49, 0  ;;  %v1056_v22 = vunpack.c.l.b16 %v787_v14  ;;  %v867_v23 = vor.u32 %v866_v4, %v863_v63  ;;  %v4746_v27 = vsel %vm4508_vm2, %v307_v50, 0  ;;  %2146 = vmatpush.bf16.msrb.mxu0 %v4343_v59  ;;  %v271_v40 = vld [vmem:[%s4524_s28 + $0x4] sm:$0xf]  ;;  %v272_v51 = vld [vmem:[%s4524_s28 + $0x8] sm:$0x1] }
  0x34   : > { %6168 = vst [vmem:[#allocation11_spill] sm:$0xff] %v4739_v20  ;;  %v877_v26 = vor.u32 %v876_v9, %v872_v7  ;;  %v4754_v35 = vsel %vm4529_vm7, %v308_v10, 0  ;;  %v957_v36 = vshrl.u32 %v4739_v20, 16  ;;  %v960_v38 = vshll.u32 %v4739_v20, 16  ;;  %v300_v20 = vld [vmem:[%s4524_s28 + $0x78] sm:$0xf] }
  0x35   : > { %6169 = vst [vmem:[#allocation12_spill] sm:$0xff] %v4746_v27  ;;  %v966_v39 = vshll.u32 %v4746_v27, 16  ;;  %1741 = vmatpush.bf16.msrb.mxu2 %v4326_v1  ;;  %v4766_v45 = vpack.c.b16 %v1056_v22, %v1055_v15  ;;  %v868_v48 = vrot.slane %v867_v23, 4  ;;  %v970_v50 = vshrl.u32 %v4746_v27, 16 }
  0x36   : > { %6170 = vst [vmem:[#allocation13_spill] sm:$0xff] %v4754_v35  ;;  %1933 = vmatpush.bf16.msrb.mxu3 %v4334_v2  ;;  %v878_v49 = vrot.slane %v877_v26, 4  ;;  %v959_v52 = vrot.slane %v957_v36, 4  ;;  %v962_v55 = vrot.slane %v960_v38, 5  ;;  %v976_v59 = vshll.u32 %v4754_v35, 16 }
  0x37   : > { %v968_v58 = vrot.slane %v966_v39, 5  ;;  %1392 = vmatpush.bf16.msrb.mxu1 %v4310_v21  ;;  %v873_v61 = vsel %vm4581_vm8, %v868_v48, %v872_v7  ;;  %v972_v0 = vrot.slane %v970_v50, 4  ;;  %v4780_v1 = vsel %vm4512_vm3, %v270_v30, 0  ;;  %2147 = vmatpush.bf16.msrb.mxu0 %v4342_v33  ;;  %v4324_v7 = vld [vmem:[%s6078_s1 + $0x98] sm:$0xff]  ;;  %v286_v33 = vld [vmem:[%s4524_s28 + $0x40] sm:$0xf] }
  0x38   : > { %v883_v63 = vsel %vm4581_vm8, %v878_v49, %v882_v17  ;;  %v1063_v2 = vunpack.c.l.b16 %v873_v61  ;;  %v963_v4 = vor.u32 %v962_v55, %v959_v52  ;;  %v978_v9 = vrot.slane %v976_v59, 5  ;;  %v285_v21 = vld [vmem:[%s4524_s28 + $0x3c] sm:$0xf] }
  0x39   : > { %v1064_v3 = vunpack.c.l.b16 %v883_v63  ;;  %1742 = vmatpush.bf16.msrb.mxu2 %v4325_v41  ;;  %v973_v10 = vor.u32 %v972_v0, %v968_v58  ;;  %v4787_v14 = vsel %vm4508_vm2, %v271_v40, 0  ;;  %v4791_v15 = vsel %vm4529_vm7, %v272_v51, 0  ;;  %v287_v41 = vld [vmem:[%s4524_s28 + $0x44] sm:$0x1] }
  0x3a   : > { %1934 = vmatpush.bf16.msrb.mxu3 %v4333_v44  ;;  %v669_v17 = vshrl.u32 %v4780_v1, 16  ;;  %v964_v23 = vrot.slane %v963_v4, 4  ;;  %v672_v26 = vshll.u32 %v4780_v1, 16  ;;  %v678_v30 = vshll.u32 %v4787_v14, 16  ;;  %v4341_v4 = vld [vmem:[%s6078_s1 + $0x120] sm:$0xff] }
  0x3b   : > { %v4795_v22 = vpack.c.b16 %v1064_v3, %v1063_v2  ;;  %1393 = vmatpush.bf16.msrb.mxu1 %v4309_v60  ;;  %v974_v36 = vrot.slane %v973_v10, 4  ;;  %v682_v39 = vshrl.u32 %v4787_v14, 16  ;;  %v688_v40 = vshll.u32 %v4791_v15, 16  ;;  %v298_v2 = vld [vmem:[%s4524_s28 + $0x70] sm:$0xf]  ;;  %v4332_v3 = vld [vmem:[%s6078_s1 + $0xd8] sm:$0xff]  ;;  %2148 = vmatpush.bf16.msrb.mxu0 %v4341_v4 }
  0x3c   : > { %v671_v38 = vrot.slane %v669_v17, 4  ;;  %v969_v44 = vsel %vm4581_vm8, %v964_v23, %v968_v58  ;;  %v674_v48 = vrot.slane %v672_v26, 5  ;;  %v680_v49 = vrot.slane %v678_v30, 5  ;;  %1190 = vmatmul.bf16.gmra.mxu1 %v4766_v45  ;;  %v297_v58 = vld [vmem:[%s4524_s28 + $0x6c] sm:$0xf]  ;;  %v4323_v26 = vld [vmem:[%s6078_s1 + $0x90] sm:$0xff] }
  0x3d   : > { %v4807_v50 = vsel %vm4512_vm3, %v285_v21, 0  ;;  %1743 = vmatpush.bf16.msrb.mxu2 %v4324_v7  ;;  %v979_v51 = vsel %vm4581_vm8, %v974_v36, %v978_v9  ;;  %v1071_v52 = vunpack.c.l.b16 %v969_v44  ;;  %v684_v55 = vrot.slane %v682_v39, 4  ;;  %v4308_v9 = vld [vmem:[%s6078_s1 + $0x18] sm:$0xff]  ;;  %v299_v23 = vld [vmem:[%s4524_s28 + $0x74] sm:$0x1] }
  0x3e   : > { %1210 = vmatmul.bf16.gmra.mxu2 %v4795_v22  ;;  %v690_v59 = vrot.slane %v688_v40, 5  ;;  %v1072_v60 = vunpack.c.l.b16 %v979_v51  ;;  %v675_v61 = vor.u32 %v674_v48, %v671_v38  ;;  %v4816_v63 = vsel %vm4508_vm2, %v286_v33, 0  ;;  %1935 = vmatpush.bf16.msrb.mxu3 %v4332_v3  ;;  %v4331_v39 = vld [vmem:[%s6078_s1 + $0xd0] sm:$0xff]  ;;  %v4340_v40 = vld [vmem:[%s6078_s1 + $0x118] sm:$0xff] }
  0x3f   : > { %v4820_v0 = vsel %vm4529_vm7, %v287_v41, 0  ;;  %v685_v7 = vor.u32 %v684_v55, %v680_v49  ;;  %v789_v10 = vshrl.u32 %v4807_v50, 16  ;;  %v792_v17 = vshll.u32 %v4807_v50, 16  ;;  %1394 = vmatpush.bf16.msrb.mxu1 %v4308_v9  ;;  %2149 = vmatpush.bf16.msrb.mxu0 %v4340_v40 }
  0x40   : > { %v798_v21 = vshll.u32 %v4816_v63, 16  ;;  %v4839_v30 = vpack.c.b16 %v1072_v60, %v1071_v52  ;;  %v676_v33 = vrot.slane %v675_v61, 4  ;;  %v802_v36 = vshrl.u32 %v4816_v63, 16  ;;  %v4307_v52 = vld [vmem:[%s6078_s1 + $0x10] sm:$0xff] }
  0x41   : > { %v808_v38 = vshll.u32 %v4820_v0, 16  ;;  %v686_v41 = vrot.slane %v685_v7, 4  ;;  %v791_v44 = vrot.slane %v789_v10, 4  ;;  %v794_v48 = vrot.slane %v792_v17, 5  ;;  %1744 = vmatpush.bf16.msrb.mxu2 %v4323_v26 }
  0x42   : > { %6171 = vst [vmem:[#allocation14_spill] sm:$0xff] %v4839_v30  ;;  %v800_v51 = vrot.slane %v798_v21, 5  ;;  %1230 = vmatmul.bf16.gmra.mxu3 %v4839_v30  ;;  %v681_v55 = vsel %vm4581_vm8, %v676_v33, %v680_v49  ;;  %v804_v60 = vrot.slane %v802_v36, 4  ;;  %v4857_v3 = vsel %vm4512_vm3, %v297_v58, 0  ;;  %v309_v36 = vld [vmem:[%s4524_s28 + $0x9c] sm:$0xf] }
  0x43   : > { %v810_v61 = vrot.slane %v808_v38, 5  ;;  %v691_v4 = vsel %vm4581_vm8, %v686_v41, %v690_v59  ;;  %v1047_v9 = vunpack.c.l.b16 %v681_v55  ;;  %v795_v7 = vor.u32 %v794_v48, %v791_v44  ;;  %1936 = vmatpush.bf16.msrb.mxu3 %v4331_v39  ;;  %1395 = vmatpush.bf16.msrb.mxu1 %v4307_v52  ;;  %v310_v48 = vld [vmem:[%s4524_s28 + $0xa0] sm:$0xf] }
  0x44   : > { %v4863_v10 = vsel %vm4508_vm2, %v298_v2, 0  ;;  %v1048_v17 = vunpack.c.l.b16 %v691_v4  ;;  %v805_v21 = vor.u32 %v804_v60, %v800_v51  ;;  %v4867_v49 = vsel %vm4529_vm7, %v299_v23, 0  ;;  %v311_v4 = vld [vmem:[%s4524_s28 + $0xa4] sm:$0x1] }
  0x45   : > { %6172 = vst [vmem:[#allocation15_spill] sm:$0xff] %v4867_v49  ;;  %v885_v26 = vshrl.u32 %v4857_v3, 16  ;;  %v796_v58 = vrot.slane %v795_v7, 4  ;;  %v888_v59 = vshll.u32 %v4857_v3, 16  ;;  %v894_v33 = vshll.u32 %v4863_v10, 16 }
  0x46   : > { %v898_v2 = vshrl.u32 %v4863_v10, 16  ;;  %v4874_v38 = vpack.c.b16 %v1048_v17, %v1047_v9  ;;  %v806_v41 = vrot.slane %v805_v21, 4  ;;  %v904_v23 = vshll.u32 %v4867_v49, 16 }
  0x47   : > { %v887_v44 = vrot.slane %v885_v26, 4  ;;  %v801_v39 = vsel %vm4581_vm8, %v796_v58, %v800_v51  ;;  %v890_v40 = vrot.slane %v888_v59, 5  ;;  %v896_v55 = vrot.slane %v894_v33, 5 }
  0x48   : > { %v900_v60 = vrot.slane %v898_v2, 4  ;;  %1170 = vmatmul.bf16.gmra.mxu0 %v4874_v38  ;;  %v811_v52 = vsel %vm4581_vm8, %v806_v41, %v810_v61  ;;  %v1057_v9 = vunpack.c.l.b16 %v801_v39  ;;  %v906_v7 = vrot.slane %v904_v23, 5 }
  0x49   : > { %v4886_v17 = vsel %vm4512_vm3, %v309_v36, 0  ;;  %v1058_v21 = vunpack.c.l.b16 %v811_v52  ;;  %v891_v26 = vor.u32 %v890_v40, %v887_v44  ;;  %v4890_v58 = vsel %vm4508_vm2, %v310_v48, 0  ;;  %v273_v36 = vld [vmem:[%s4524_s28 + $0xc] sm:$0xf]  ;;  %v274_v40 = vld [vmem:[%s4524_s28 + $0x10] sm:$0xf] }
  0x4a   : > { %6173 = vst [vmem:[#allocation16_spill] sm:$0xff] %v4886_v17  ;;  %v901_v51 = vor.u32 %v900_v60, %v896_v55  ;;  %v4894_v59 = vsel %vm4529_vm7, %v311_v4, 0  ;;  %v981_v61 = vshrl.u32 %v4886_v17, 16  ;;  %v984_v33 = vshll.u32 %v4886_v17, 16 }
  0x4b   : > { %6174 = vst [vmem:[#allocation17_spill] sm:$0xff] %v4890_v58  ;;  %v990_v2 = vshll.u32 %v4890_v58, 16  ;;  %v4900_v41 = vpack.c.b16 %v1058_v21, %v1057_v9  ;;  %v892_v44 = vrot.slane %v891_v26, 4  ;;  %v994_v39 = vshrl.u32 %v4890_v58, 16 }
  0x4c   : > { %6175 = vst [vmem:[#allocation18_spill] sm:$0xff] %v4894_v59  ;;  %v902_v23 = vrot.slane %v901_v51, 4  ;;  %v983_v48 = vrot.slane %v981_v61, 4  ;;  %v986_v60 = vrot.slane %v984_v33, 5  ;;  %v1000_v4 = vshll.u32 %v4894_v59, 16  ;;  %v4322_v59 = vld [vmem:[%s6078_s1 + $0x88] sm:$0xff] }
  0x4d   : > { %6176 = vst [vmem:[#allocation19_spill] sm:$0xff] %v4900_v41  ;;  %v992_v52 = vrot.slane %v990_v2, 5  ;;  %1195 = vmatmul.bf16.gmra.mxu1 %v4900_v41  ;;  %v897_v17 = vsel %vm4581_vm8, %v892_v44, %v896_v55  ;;  %v996_v21 = vrot.slane %v994_v39, 4  ;;  %v4913_v26 = vsel %vm4512_vm3, %v273_v36, 0  ;;  %1745 = vmatpush.bf16.msrb.mxu2 %v4322_v59 }
  0x4e   : > { %v907_v9 = vsel %vm4581_vm8, %v902_v23, %v906_v7  ;;  %v1065_v51 = vunpack.c.l.b16 %v897_v17  ;;  %v987_v33 = vor.u32 %v986_v60, %v983_v48  ;;  %v1002_v2 = vrot.slane %v1000_v4, 5  ;;  %v288_v17 = vld [vmem:[%s4524_s28 + $0x48] sm:$0xf]  ;;  %v289_v60 = vld [vmem:[%s4524_s28 + $0x4c] sm:$0xf] }
  0x4f   : > { %v1066_v61 = vunpack.c.l.b16 %v907_v9  ;;  %v997_v58 = vor.u32 %v996_v21, %v992_v52  ;;  %v4920_v55 = vsel %vm4508_vm2, %v274_v40, 0  ;;  %v4924_v7 = vsel %vm4529_vm7, %v275_v8, 0  ;;  %v290_v21 = vld [vmem:[%s4524_s28 + $0x50] sm:$0x1] }
  0x50   : > { %v693_v36 = vshrl.u32 %v4913_v26, 16  ;;  %v988_v23 = vrot.slane %v987_v33, 4  ;;  %v696_v39 = vshll.u32 %v4913_v26, 16  ;;  %v702_v48 = vshll.u32 %v4920_v55, 16 }
  0x51   : > { %v4928_v44 = vpack.c.b16 %v1066_v61, %v1065_v51  ;;  %v998_v4 = vrot.slane %v997_v58, 4  ;;  %v706_v9 = vshrl.u32 %v4920_v55, 16  ;;  %v712_v8 = vshll.u32 %v4924_v7, 16 }
  0x52   : > { %v695_v40 = vrot.slane %v693_v36, 4  ;;  %v993_v51 = vsel %vm4581_vm8, %v988_v23, %v992_v52  ;;  %v698_v61 = vrot.slane %v696_v39, 5  ;;  %v704_v33 = vrot.slane %v702_v48, 5  ;;  %v4339_v23 = vld [vmem:[%s6078_s1 + $0x110] sm:$0xff]  ;;  %v4306_v39 = vld [vmem:[%s6078_s1 + $0x8] sm:$0xff] }
  0x53   : > { %6177 = vst [vmem:[#allocation20_spill] sm:$0xff] %v4928_v44  ;;  %1215 = vmatmul.bf16.gmra.mxu2 %v4928_v44  ;;  %v4941_v30 = vsel %vm4512_vm3, %v288_v17, 0  ;;  %v1003_v58 = vsel %vm4581_vm8, %v998_v4, %v1002_v2  ;;  %v1073_v59 = vunpack.c.l.b16 %v993_v51  ;;  %v708_v36 = vrot.slane %v706_v9, 4  ;;  %v301_v17 = vld [vmem:[%s4524_s28 + $0x7c] sm:$0xf]  ;;  %v4330_v2 = vld [vmem:[%s6078_s1 + $0xc8] sm:$0xff]  ;;  %2150 = vmatpush.bf16.msrb.mxu0 %v4339_v23 }
  0x54   : > { %v714_v35 = vrot.slane %v712_v8, 5  ;;  %v1074_v27 = vunpack.c.l.b16 %v1003_v58  ;;  %v699_v19 = vor.u32 %v698_v61, %v695_v40  ;;  %v4948_v54 = vsel %vm4508_vm2, %v289_v60, 0  ;;  %v302_v9 = vld [vmem:[%s4524_s28 + $0x80] sm:$0x1]  ;;  %1937 = vmatpush.bf16.msrb.mxu3 %v4330_v2  ;;  %1396 = vmatpush.bf16.msrb.mxu1 %v4306_v39 }
  0x55   : > { %v4952_v52 = vsel %vm4529_vm7, %v290_v21, 0  ;;  %v709_v48 = vor.u32 %v708_v36, %v704_v33  ;;  %v813_v60 = vshrl.u32 %v4941_v30, 16  ;;  %v816_v4 = vshll.u32 %v4941_v30, 16  ;;  %v4321_v8 = vld [vmem:[%s6078_s1 + $0x80] sm:$0xff] }
  0x56   : > { %v822_v40 = vshll.u32 %v4948_v54, 16  ;;  %v4971_v21 = vpack.c.b16 %v1074_v27, %v1073_v59  ;;  %v700_v51 = vrot.slane %v699_v19, 4  ;;  %v826_v61 = vshrl.u32 %v4948_v54, 16  ;;  %v4329_v36 = vld [vmem:[%s6078_s1 + $0xc0] sm:$0xff]  ;;  %1746 = vmatpush.bf16.msrb.mxu2 %v4321_v8 }
  0x57   : > { %v832_v58 = vshll.u32 %v4952_v52, 16  ;;  %v710_v53 = vrot.slane %v709_v48, 4  ;;  %v815_v44 = vrot.slane %v813_v60, 4  ;;  %v818_v49 = vrot.slane %v816_v4, 5  ;;  %v4305_v19 = vld [vmem:[%s6078_s1] sm:$0xff]  ;;  %2151 = vmatpush.bf16.msrb.mxu0 %v4338_v46 }
  0x58   : > { %6178 = vst [vmem:[#allocation21_spill] sm:$0xff] %v4971_v21  ;;  %v824_v27 = vrot.slane %v822_v40, 5  ;;  %1235 = vmatmul.bf16.gmra.mxu3 %v4971_v21  ;;  %v705_v59 = vsel %vm4581_vm8, %v700_v51, %v704_v33  ;;  %v828_v2 = vrot.slane %v826_v61, 4  ;;  %v4989_v48 = vsel %vm4512_vm3, %v300_v20, 0  ;;  %v312_v20 = vld [vmem:[%s4524_s28 + $0xa8] sm:$0xf]  ;;  %1397 = vmatpush.bf16.msrb.mxu1 %v4305_v19 }
  0x59   : > { %v834_v23 = vrot.slane %v832_v58, 5  ;;  %6179 = vst [vmem:[#allocation22_spill] sm:$0xff] %v4989_v48  ;;  %v715_v39 = vsel %vm4581_vm8, %v710_v53, %v714_v35  ;;  %v1049_v60 = vunpack.c.l.b16 %v705_v59  ;;  %v819_v4 = vor.u32 %v818_v49, %v815_v44  ;;  %1938 = vmatpush.bf16.msrb.mxu3 %v4329_v36  ;;  %v313_v46 = vld [vmem:[%s4524_s28 + $0xac] sm:$0xf] }
  0x5a   : > { %v4995_v40 = vsel %vm4508_vm2, %v301_v17, 0  ;;  %v1050_v8 = vunpack.c.l.b16 %v715_v39  ;;  %v829_v21 = vor.u32 %v828_v2, %v824_v27  ;;  %v4999_v33 = vsel %vm4529_vm7, %v302_v9, 0  ;;  %v4337_v17 = vld [vmem:[%s6078_s1 + $0x100] sm:$0xff] }
  0x5b   : > { %6180 = vst [vmem:[#allocation23_spill] sm:$0xff] %v4995_v40  ;;  %v909_v51 = vshrl.u32 %v4989_v48, 16  ;;  %v820_v53 = vrot.slane %v819_v4, 4  ;;  %v912_v35 = vshll.u32 %v4989_v48, 16  ;;  %v918_v49 = vshll.u32 %v4995_v40, 16  ;;  %2152 = vmatpush.bf16.msrb.mxu0 %v4337_v17 }
  0x5c   : > { %6181 = vst [vmem:[#allocation24_spill] sm:$0xff] %v4999_v33  ;;  %v922_v44 = vshrl.u32 %v4995_v40, 16  ;;  %v5009_v9 = vpack.c.b16 %v1050_v8, %v1049_v60  ;;  %v830_v61 = vrot.slane %v829_v21, 4  ;;  %v928_v36 = vshll.u32 %v4999_v33, 16  ;;  %v314_v48 = vld [vmem:[%s4524_s28 + $0xb0] sm:$0x1] }
  0x5d   : > { %v911_v58 = vrot.slane %v909_v51, 4  ;;  %v825_v59 = vsel %vm4581_vm8, %v820_v53, %v824_v27  ;;  %v914_v2 = vrot.slane %v912_v35, 5  ;;  %v920_v39 = vrot.slane %v918_v49, 5  ;;  %v4360_v27 = vld [vmem:[%s6078_s1 + $0x1b8] sm:$0xff]  ;;  %v278_v40 = vld [vmem:[%s4524_s28 + $0x20] sm:$0x1] }
  0x5e   : > { %v924_v4 = vrot.slane %v922_v44, 4  ;;  %1175 = vmatmul.bf16.gmra.mxu0 %v5009_v9  ;;  %v835_v19 = vsel %vm4581_vm8, %v830_v61, %v834_v23  ;;  %v1059_v60 = vunpack.c.l.b16 %v825_v59  ;;  %v930_v8 = vrot.slane %v928_v36, 5  ;;  %v276_v36 = vld [vmem:[%s4524_s28 + $0x18] sm:$0xf]  ;;  %2535 = vmatpush.bf16.msra.mxu2 %v4360_v27  ;;  %v277_v17 = vld [vmem:[%s4524_s28 + $0x1c] sm:$0xf] }
  0x5f   : > { %v5021_v21 = vsel %vm4512_vm3, %v312_v20, 0  ;;  %v1060_v51 = vunpack.c.l.b16 %v835_v19  ;;  %v915_v53 = vor.u32 %v914_v2, %v911_v58  ;;  %v5028_v49 = vsel %vm4508_vm2, %v313_v46, 0 }
  0x60   : > { %6182 = vst [vmem:[#allocation25_spill] sm:$0xff] %v5021_v21  ;;  %v925_v35 = vor.u32 %v924_v4, %v920_v39  ;;  %v5032_v23 = vsel %vm4529_vm7, %v314_v48, 0  ;;  %v1005_v20 = vshrl.u32 %v5021_v21, 16  ;;  %v1008_v44 = vshll.u32 %v5021_v21, 16 }
  0x61   : > { %6183 = vst [vmem:[#allocation26_spill] sm:$0xff] %v5028_v49  ;;  %v1014_v61 = vshll.u32 %v5028_v49, 16  ;;  %v5038_v58 = vpack.c.b16 %v1060_v51, %v1059_v60  ;;  %v916_v59 = vrot.slane %v915_v53, 4  ;;  %v1018_v46 = vshrl.u32 %v5028_v49, 16 }
  0x62   : > { %6184 = vst [vmem:[#allocation27_spill] sm:$0xff] %v5032_v23  ;;  %v926_v2 = vrot.slane %v925_v35, 4  ;;  %v1007_v4 = vrot.slane %v1005_v20, 4  ;;  %v1010_v19 = vrot.slane %v1008_v44, 5  ;;  %v1024_v48 = vshll.u32 %v5032_v23, 16 }
  0x63   : > { %6185 = vst [vmem:[#allocation28_spill] sm:$0xff] %v5038_v58  ;;  %v1016_v33 = vrot.slane %v1014_v61, 5  ;;  %1200 = vmatmul.bf16.gmra.mxu1 %v5038_v58  ;;  %v921_v21 = vsel %vm4581_vm8, %v916_v59, %v920_v39  ;;  %v1020_v27 = vrot.slane %v1018_v46, 4  ;;  %v5051_v51 = vsel %vm4512_vm3, %v276_v36, 0  ;;  %v4368_v61 = vld [vmem:[%s6078_s1 + $0x1f8] sm:$0xff] }
  0x64   : > { %v931_v60 = vsel %vm4581_vm8, %v926_v2, %v930_v8  ;;  %v1067_v53 = vunpack.c.l.b16 %v921_v21  ;;  %v1011_v20 = vor.u32 %v1010_v19, %v1007_v4  ;;  %v1026_v44 = vrot.slane %v1024_v48, 5  ;;  %v4352_v39 = vld [vmem:[%s6078_s1 + $0x178] sm:$0xff]  ;;  %2749 = vmatpush.bf16.msra.mxu3 %v4368_v61 }
  0x65   : > { %v1068_v35 = vunpack.c.l.b16 %v931_v60  ;;  %v4376_v8 = vld [vmem:[%s6078_s1 + $0x238] sm:$0xff]  ;;  %v1021_v59 = vor.u32 %v1020_v27, %v1016_v33  ;;  %v5064_v36 = vsel %vm4508_vm2, %v277_v17, 0  ;;  %v5068_v21 = vsel %vm4529_vm7, %v278_v40, 0  ;;  %2343 = vmatpush.bf16.msra.mxu1 %v4352_v39 }
  0x66   : > { %v717_v2 = vshrl.u32 %v5051_v51, 16  ;;  %v1012_v4 = vrot.slane %v1011_v20, 4  ;;  %v720_v19 = vshll.u32 %v5051_v51, 16  ;;  %v726_v48 = vshll.u32 %v5064_v36, 16  ;;  %2947 = vmatpush.bf16.msra.mxu0 %v4376_v8 }
  0x67   : > { %v5071_v46 = vpack.c.b16 %v1068_v35, %v1067_v53  ;;  %v1022_v60 = vrot.slane %v1021_v59, 4  ;;  %v730_v17 = vshrl.u32 %v5064_v36, 16  ;;  %v736_v23 = vshll.u32 %v5068_v21, 16 }
  0x68   : > { %v719_v27 = vrot.slane %v717_v2, 4  ;;  %v1017_v40 = vsel %vm4581_vm8, %v1012_v4, %v1016_v33  ;;  %v722_v53 = vrot.slane %v720_v19, 5  ;;  %v728_v35 = vrot.slane %v726_v48, 5 }
  0x69   : > { %6186 = vst [vmem:[#allocation29_spill] sm:$0xff] %v5071_v46  ;;  %1220 = vmatmul.bf16.gmra.mxu2 %v5071_v46  ;;  %v1278_v20 = vunpack.c.l.b16 %v4627_v28  ;;  %v1027_v61 = vsel %vm4581_vm8, %v1022_v60, %v1026_v44  ;;  %v1075_v39 = vunpack.c.l.b16 %v1017_v40  ;;  %v732_v59 = vrot.slane %v730_v17, 4 }
  0x6a   : > { %v738_v2 = vrot.slane %v736_v23, 5  ;;  %v1076_v11 = vunpack.c.l.b16 %v1027_v61  ;;  %v723_v5 = vor.u32 %v722_v53, %v719_v27  ;;  %v1279_v6 = vunpack.c.l.b16 %v4631_v31 }
  0x6b   : > { %v733_v8 = vor.u32 %v732_v59, %v728_v35  ;;  %v3949_v49 = vrot.slane %v4627_v28, 9  ;;  %v1500_v33 = vrot.slane %v4631_v31, 5  ;;  %v1503_v23 = vrot.slane %v4635_v32, 5 }
  0x6c   : > { %v5086_v4 = vpack.c.b16 %v1076_v11, %v1075_v39  ;;  %v724_v19 = vrot.slane %v723_v5, 4  ;;  %v1310_v31 = vpack.c.b16 %v1279_v6, %v1278_v20  ;;  %v3950_v11 = vrot.slane %v4780_v1, 9 }
  0x6d   : > { %v734_v44 = vrot.slane %v733_v8, 4  ;;  %v1501_v60 = vsel %vm5088_vm13, %v3949_v49, %v1500_v33  ;;  %v1502_v27 = vrot.slane %v1500_v33, 4  ;;  %v1507_v40 = vrot.slane %v4787_v14, 5 }
  0x6e   : > { %1240 = vmatmul.bf16.gmra.mxu3 %v5086_v4  ;;  %v729_v28 = vsel %vm4581_vm8, %v724_v19, %v728_v35  ;;  %v1627_v49 = vunpack.c.l.b16 %v1501_v60  ;;  %v1510_v39 = vrot.slane %v4791_v15, 5  ;;  %v1280_v19 = vunpack.c.l.b16 %v4780_v1  ;;  %v4359_v60 = vld [vmem:[%s6078_s1 + $0x1b0] sm:$0xff] }
  0x6f   : > { %v739_v5 = vsel %vm4581_vm8, %v734_v44, %v738_v2  ;;  %v1051_v17 = vunpack.c.l.b16 %v729_v28  ;;  %v1504_v32 = vsel %vm5088_vm13, %v1502_v27, %v1503_v23  ;;  %v1508_v35 = vsel %vm5088_vm13, %v3950_v11, %v1507_v40  ;;  %2536 = vmatpush.bf16.msra.mxu2 %v4359_v60  ;;  %v4367_v27 = vld [vmem:[%s6078_s1 + $0x1f0] sm:$0xff]  ;;  %v4374_v60 = vld [vmem:[%s6078_s1 + $0x228] sm:$0xff] }
  0x70   : > { %v1052_v53 = vunpack.c.l.b16 %v739_v5  ;;  %v1628_v61 = vunpack.c.l.b16 %v1504_v32  ;;  %v1509_v6 = vrot.slane %v1507_v40, 4  ;;  %v1629_v59 = vunpack.c.l.b16 %v1508_v35  ;;  %v4351_v1 = vld [vmem:[%s6078_s1 + $0x170] sm:$0xff]  ;;  %2750 = vmatpush.bf16.msra.mxu3 %v4367_v27 }
  0x71   : > { %v1281_v23 = vunpack.c.l.b16 %v4787_v14  ;;  %v4375_v14 = vld [vmem:[%s6078_s1 + $0x230] sm:$0xff]  ;;  %v1514_v28 = vrot.slane %v4920_v55, 5  ;;  %v1283_v11 = vunpack.c.l.b16 %v4920_v55  ;;  %2344 = vmatpush.bf16.msra.mxu1 %v4351_v1  ;;  %v3952_v35 = vrot.slane %v5051_v51, 9 }
  0x72   : > { %v5107_v20 = vpack.c.b16 %v1052_v53, %v1051_v17  ;;  %v1511_v2 = vsel %vm5088_vm13, %v1509_v6, %v1510_v39  ;;  %v1659_v8 = vpack.c.b16 %v1628_v61, %v1627_v49  ;;  %2948 = vmatpush.bf16.msra.mxu0 %v4375_v14  ;;  %v1517_v17 = vrot.slane %v4924_v7, 5 }
  0x73   : > { %1398 = vmatmul.bf16.vlgmr.msrb.gmra.mxu1 %v1310_v31  ;;  %v1630_v33 = vunpack.c.l.b16 %v1511_v2  ;;  %v1311_v44 = vpack.c.b16 %v1281_v23, %v1280_v19  ;;  %v1282_v31 = vunpack.c.l.b16 %v4913_v26  ;;  %v1516_v5 = vrot.slane %v1514_v28, 4 }
  0x74   : > { %1180 = vmatmul.bf16.gmra.mxu0 %v5107_v20  ;;  %v1521_v7 = vrot.slane %v5064_v36, 5  ;;  %v1284_v61 = vunpack.c.l.b16 %v5051_v51  ;;  %v1285_v39 = vunpack.c.l.b16 %v5064_v36  ;;  %v4358_v36 = vld [vmem:[%s6078_s1 + $0x1a8] sm:$0xff]  ;;  %v1528_v27 = vrot.slane %v4539_v13, 5 }
  0x75   : > { %v5114_v15 = vpack.c.b16 %v1630_v33, %v1629_v59  ;;  %v5135_v32 = vpack.c.b16 %v1283_v11, %v1282_v31  ;;  %v1518_v53 = vsel %vm5088_vm13, %v1516_v5, %v1517_v17  ;;  %v1524_v59 = vrot.slane %v5068_v21, 5  ;;  %2537 = vmatpush.bf16.msra.mxu2 %v4358_v36  ;;  %v4366_v21 = vld [vmem:[%s6078_s1 + $0x1e8] sm:$0xff] }
  0x76   : > { %v1632_v49 = vunpack.c.l.b16 %v1518_v53  ;;  %v1523_v6 = vrot.slane %v1521_v7, 4  ;;  %v5152_v2 = vpack.c.b16 %v1285_v39, %v1284_v61  ;;  %v1286_v1 = vunpack.c.l.b16 %v4535_v12  ;;  %2751 = vmatpush.bf16.msra.mxu3 %v4366_v21  ;;  %2949 = vmatpush.bf16.msra.mxu0 %v4374_v60 }
  0x77   : > { %v1287_v14 = vunpack.c.l.b16 %v4539_v13  ;;  %v1530_v31 = vrot.slane %v1528_v27, 4  ;;  %v1531_v11 = vrot.slane %v4545_v16, 5  ;;  %v1535_v61 = vrot.slane %v4658_v57, 5 }
  0x78   : > { %v1525_v33 = vsel %vm5088_vm13, %v1523_v6, %v1524_v59  ;;  %v1288_v39 = vunpack.c.l.b16 %v4654_v56  ;;  %v3954_v59 = vrot.slane %v4654_v56, 9 }
  0x79   : > { %1747 = vmatmul.bf16.vlgmr.msrb.gmra.mxu2 %v1659_v8  ;;  %v1522_v8 = vsel %vm5088_vm13, %v3952_v35, %v1521_v7  ;;  %v1634_v23 = vunpack.c.l.b16 %v1525_v33  ;;  %v1532_v13 = vsel %vm5088_vm13, %v1530_v31, %v1531_v11  ;;  %v1289_v35 = vunpack.c.l.b16 %v4658_v57  ;;  %v4357_v57 = vld [vmem:[%s6078_s1 + $0x1a0] sm:$0xff] }
  0x7a   : > { %v1633_v19 = vunpack.c.l.b16 %v1522_v8  ;;  %v1636_v53 = vunpack.c.l.b16 %v1532_v13  ;;  %v1537_v8 = vrot.slane %v1535_v61, 4  ;;  %v1538_v33 = vrot.slane %v4670_v62, 5  ;;  %2538 = vmatpush.bf16.msra.mxu2 %v4357_v57  ;;  %v4349_v31 = vld [vmem:[%s6078_s1 + $0x160] sm:$0xff] }
  0x7b   : > { %v5210_v36 = vpack.c.b16 %v1289_v35, %v1288_v39  ;;  %v4373_v11 = vld [vmem:[%s6078_s1 + $0x220] sm:$0xff]  ;;  %v1290_v13 = vunpack.c.l.b16 %v4807_v50  ;;  %v3955_v39 = vrot.slane %v4807_v50, 9 }
  0x7c   : > { %v5164_v51 = vpack.c.b16 %v1634_v23, %v1633_v19  ;;  %v1536_v23 = vsel %vm5088_vm13, %v3954_v59, %v1535_v61  ;;  %v1539_v21 = vsel %vm5088_vm13, %v1537_v8, %v1538_v33  ;;  %2950 = vmatpush.bf16.msra.mxu0 %v4373_v11  ;;  %v1545_v59 = vrot.slane %v4820_v0, 5 }
  0x7d   : > { %v1637_v62 = vunpack.c.l.b16 %v1536_v23  ;;  %v1638_v60 = vunpack.c.l.b16 %v1539_v21  ;;  %v1293_v11 = vunpack.c.l.b16 %v4948_v54 }
  0x7e   : > { %1939 = vmatmul.bf16.vlgmr.msrb.gmra.mxu3 %v1311_v44 }
  0x83   : > { %1403 = vmatmul.bf16.gmra.mxu1 %v1311_v44  ;;  %v4350_v44 = vld [vmem:[%s6078_s1 + $0x168] sm:$0xff] }
  0x84   : > { %2153 = vmatmul.bf16.vlgmr.msrb.gmra.mxu0 %v4874_v38  ;;  %v3951_v38 = vrot.slane %v4913_v26, 9  ;;  %2345 = vmatpush.bf16.msra.mxu1 %v4350_v44 }
  0x86   : > { %v1515_v40 = vsel %vm5088_vm13, %v3951_v38, %v1514_v28  ;;  %v3953_v28 = vrot.slane %v4535_v12, 9  ;;  %v5181_v38 = vpack.c.b16 %v1287_v14, %v1286_v1  ;;  %v5232_v14 = vpack.c.b16 %v1638_v60, %v1637_v62 }
  0x87   : > { %v1631_v55 = vunpack.c.l.b16 %v1515_v40 }
  0x88   : > { %v1529_v17 = vsel %vm5088_vm13, %v3953_v28, %v1528_v27  ;;  %v4365_v28 = vld [vmem:[%s6078_s1 + $0x1e0] sm:$0xff]  ;;  %2346 = vmatpush.bf16.msra.mxu1 %v4349_v31  ;;  %v1292_v31 = vunpack.c.l.b16 %v4941_v30 }
  0x89   : > { %1752 = vmatmul.bf16.gmra.mxu2 %v5114_v15  ;;  %v5144_v26 = vpack.c.b16 %v1632_v49, %v1631_v55  ;;  %v1635_v40 = vunpack.c.l.b16 %v1529_v17  ;;  %v1542_v17 = vrot.slane %v4816_v63, 5  ;;  %2752 = vmatpush.bf16.msra.mxu3 %v4365_v28  ;;  %v1549_v28 = vrot.slane %v4948_v54, 5 }
  0x8b   : > { %v5196_v16 = vpack.c.b16 %v1636_v53, %v1635_v40  ;;  %v1291_v40 = vunpack.c.l.b16 %v4816_v63  ;;  %v1544_v35 = vrot.slane %v1542_v17, 4  ;;  %v1543_v63 = vsel %vm5088_vm13, %v3955_v39, %v1542_v17 }
  0x8c   : > { %v1639_v57 = vunpack.c.l.b16 %v1543_v63  ;;  %v1551_v39 = vrot.slane %v1549_v28, 4 }
  0x8d   : > { %v5253_v8 = vpack.c.b16 %v1291_v40, %v1290_v13  ;;  %v1546_v21 = vsel %vm5088_vm13, %v1544_v35, %v1545_v59  ;;  %v3956_v40 = vrot.slane %v4941_v30, 9  ;;  %v1552_v35 = vrot.slane %v4952_v52, 5  ;;  %v4356_v52 = vld [vmem:[%s6078_s1 + $0x198] sm:$0xff] }
  0x8e   : > { %1944 = vmatmul.bf16.gmra.mxu3 %v5135_v32  ;;  %v1640_v62 = vunpack.c.l.b16 %v1546_v21  ;;  %v5282_v59 = vpack.c.b16 %v1293_v11, %v1292_v31  ;;  %2539 = vmatpush.bf16.msra.mxu2 %v4356_v52  ;;  %v4364_v31 = vld [vmem:[%s6078_s1 + $0x1d8] sm:$0xff] }
  0x8f   : > { %v1550_v54 = vsel %vm5088_vm13, %v3956_v40, %v1549_v28  ;;  %v4348_v11 = vld [vmem:[%s6078_s1 + $0x158] sm:$0xff]  ;;  %v1556_v40 = vrot.slane %v4562_v25, 5  ;;  %2753 = vmatpush.bf16.msra.mxu3 %v4364_v31 }
  0x90   : > { %v5270_v0 = vpack.c.b16 %v1640_v62, %v1639_v57  ;;  %6193 = vst [vmem:[#allocation34_spill] sm:$0xff] %v5282_v59  ;;  %v1553_v57 = vsel %vm5088_vm13, %v1551_v39, %v1552_v35  ;;  %v1641_v30 = vunpack.c.l.b16 %v1550_v54  ;;  %v1294_v39 = vunpack.c.l.b16 %v4558_v24  ;;  %2347 = vmatpush.bf16.msra.mxu1 %v4348_v11 }
  0x91   : > { %v1295_v35 = vunpack.c.l.b16 %v4562_v25  ;;  %v1558_v52 = vrot.slane %v1556_v40, 4 }
  0x92   : > { %6192 = vst [vmem:[#allocation33_spill] sm:$0xff] %v5270_v0 }
  0x93   : > { %1408 = vmatmul.bf16.gmra.mxu1 %v5135_v32  ;;  %v5325_v25 = vpack.c.b16 %v1295_v35, %v1294_v39 }
  0x94   : > { %2158 = vmatmul.bf16.gmra.mxu0 %v5009_v9 }
  0x95   : > { %6197 = vst [vmem:[#allocation38_spill] sm:$0xff] %v5325_v25 }
  0x99   : > { %1757 = vmatmul.bf16.gmra.mxu2 %v5144_v26 }
  0x9e   : > { %1949 = vmatmul.bf16.gmra.mxu3 %v5152_v2 }
  0xa3   : > { %1413 = vmatmul.bf16.gmra.mxu1 %v5152_v2 }
  0xa4   : > { %2163 = vmatmul.bf16.gmra.mxu0 %v5107_v20 }
  0xa9   : > { %1762 = vmatmul.bf16.gmra.mxu2 %v5164_v51  ;;  %v5183_v5 = vpop.f32.mrf.mxu1 }
  0xae   : > { %1954 = vmatmul.bf16.gmra.mxu3 %v5181_v38 }
  0xaf   : > { %v5190_v55 = vpop.f32.mrf.mxu2  ;;  %v5198_v49 = vpop.f32.mrf.mxu0 }
  0xb0   : > { %v5200_v7 = vpop.f32.mrf.mxu3 }
  0xb1   : > { %v5192_v12 = vpop.f32.mrf.mxu1 }
  0xb3   : > { %1418 = vmatmul.bf16.gmra.mxu1 %v5181_v38 }
  0xb4   : > { %2168 = vmatmul.bf16.gmra.mxu0 %v4618_v18 }
  0xb7   : > { %v5206_v6 = vpop.f32.mrf.mxu2  ;;  %v5222_v56 = vpop.f32.mrf.mxu0 }
  0xb8   : > { %v5224_v44 = vpop.f32.mrf.mxu3 }
  0xb9   : > { %1767 = vmatmul.bf16.gmra.mxu2 %v5196_v16  ;;  %v5212_v19 = vpop.f32.mrf.mxu1  ;;  %6189 = vst [vmem:[#allocation30_spill] sm:$0xff] %v5224_v44 }
  0xbe   : > { %1959 = vmatmul.bf16.gmra.mxu3 %v5210_v36 }
  0xc1   : > { %v5226_v27 = vpop.f32.mrf.mxu1  ;;  %v5229_v1 = vpop.f32.mrf.mxu2 }
  0xc3   : > { %1423 = vmatmul.bf16.gmra.mxu1 %v5210_v36 }
  0xc4   : > { %2173 = vmatmul.bf16.gmra.mxu0 %v4766_v45 }
  0xc5   : > { %v5247_v53 = vpop.f32.mrf.mxu0  ;;  %v5249_v61 = vpop.f32.mrf.mxu3 }
  0xc6   : > { %6190 = vst [vmem:[#allocation31_spill] sm:$0xff] %v5249_v61 }
  0xc9   : > { %1772 = vmatmul.bf16.gmra.mxu2 %v5232_v14  ;;  %v5257_v23 = vpop.f32.mrf.mxu2 }
  0xca   : > { %v5255_v33 = vpop.f32.mrf.mxu1 }
  0xcd   : > { %v5264_v50 = vpop.f32.mrf.mxu0  ;;  %v5266_v60 = vpop.f32.mrf.mxu3 }
  0xce   : > { %1964 = vmatmul.bf16.gmra.mxu3 %v5253_v8  ;;  %6191 = vst [vmem:[#allocation32_spill] sm:$0xff] %v5266_v60  ;;  %v1642_v60 = vunpack.c.l.b16 %v1553_v57 }
  0xd0   : > { %v5302_v28 = vpack.c.b16 %v1642_v60, %v1641_v30  ;;  %v3957_v30 = vrot.slane %v4558_v24, 9 }
  0xd2   : > { %v5275_v17 = vpop.f32.mrf.mxu1  ;;  %6195 = vst [vmem:[#allocation36_spill] sm:$0xff] %v5302_v28  ;;  %v1557_v11 = vsel %vm5088_vm13, %v3957_v30, %v1556_v40  ;;  %v1296_v40 = vunpack.c.l.b16 %v4698_v37 }
  0xd3   : > { %1428 = vmatmul.bf16.gmra.mxu1 %v5253_v8 }
  0xd4   : > { %2178 = vmatmul.bf16.gmra.mxu0 %v4900_v41 }
  0xd6   : > { %v5277_v13 = vpop.f32.mrf.mxu2 }
  0xd9   : > { %1777 = vmatmul.bf16.gmra.mxu2 %v5270_v0 }
  0xdb   : > { %v5284_v63 = vpop.f32.mrf.mxu0  ;;  %v5286_v21 = vpop.f32.mrf.mxu3 }
  0xdc   : > { %6194 = vst [vmem:[#allocation35_spill] sm:$0xff] %v5286_v21  ;;  %v1559_v21 = vrot.slane %v4566_v29, 5 }
  0xde   : > { %1969 = vmatmul.bf16.gmra.mxu3 %v5282_v59  ;;  %v5295_v61 = vpop.f32.mrf.mxu2 }
  0xe0   : > { %v5293_v62 = vpop.f32.mrf.mxu1 }
  0xe3   : > { %1433 = vmatmul.bf16.gmra.mxu1 %v5282_v59  ;;  %v5313_v54 = vpop.f32.mrf.mxu0  ;;  %v5315_v60 = vpop.f32.mrf.mxu3 }
  0xe4   : > { %2183 = vmatmul.bf16.gmra.mxu0 %v5038_v58  ;;  %6196 = vst [vmem:[#allocation37_spill] sm:$0xff] %v5315_v60  ;;  %v4372_v58 = vld [vmem:[%s6078_s1 + $0x218] sm:$0xff]  ;;  %v1560_v60 = vsel %vm5088_vm13, %v1558_v52, %v1559_v21  ;;  %v1563_v21 = vrot.slane %v4709_v43, 5 }
  0xe5   : > { %2951 = vmatpush.bf16.msra.mxu0 %v4372_v58  ;;  %v1644_v29 = vunpack.c.l.b16 %v1560_v60  ;;  %v1297_v60 = vunpack.c.l.b16 %v4709_v43 }
  0xe8   : > { %v5318_v57 = vpop.f32.mrf.mxu1 }
  0xe9   : > { %1782 = vmatmul.bf16.gmra.mxu2 %v5302_v28  ;;  %v1643_v28 = vunpack.c.l.b16 %v1557_v11 }
  0xeb   : > { %v5343_v58 = vpack.c.b16 %v1644_v29, %v1643_v28  ;;  %v1566_v28 = vrot.slane %v4714_v47, 5  ;;  %v5356_v29 = vpack.c.b16 %v1297_v60, %v1296_v40  ;;  %v4355_v47 = vld [vmem:[%s6078_s1 + $0x190] sm:$0xff]  ;;  %v1298_v60 = vunpack.c.l.b16 %v4857_v3 }
  0xec   : > { %v5327_v31 = vpop.f32.mrf.mxu2  ;;  %2540 = vmatpush.bf16.msra.mxu2 %v4355_v47  ;;  %v4371_v47 = vld [vmem:[%s6078_s1 + $0x210] sm:$0xff] }
  0xed   : > { %6199 = vst [vmem:[#allocation40_spill] sm:$0xff] %v5343_v58  ;;  %2952 = vmatpush.bf16.msra.mxu0 %v4371_v47  ;;  %v6209_v47 = vld [vmem:[#allocation22_spill] sm:$0xff] }
  0xee   : > { %1974 = vmatmul.bf16.gmra.mxu3 %v5325_v25 }
  0xf0   : > { %v1399_v24 = vpop.f32.mrf.mxu1 }
  0xf1   : > { %v5334_v59 = vpop.f32.mrf.mxu0  ;;  %v5336_v0 = vpop.f32.mrf.mxu3  ;;  %v1400_v39 = vadd.f32 %v1399_v24, %v5198_v49  ;;  %v3958_v24 = vrot.slane %v4698_v37, 9 }
  0xf2   : > { %6198 = vst [vmem:[#allocation39_spill] sm:$0xff] %v5336_v0  ;;  %v1565_v0 = vrot.slane %v1563_v21, 4 }
  0xf3   : > { %1438 = vmatmul.bf16.gmra.mxu1 %v5325_v25  ;;  %v1564_v43 = vsel %vm5088_vm13, %v3958_v24, %v1563_v21 }
  0xf4   : > { %v5339_v35 = vpop.f32.mrf.mxu2  ;;  %2188 = vmatmul.bf16.gmra.mxu0 %v4638_v34  ;;  %v1645_v44 = vunpack.c.l.b16 %v1564_v43  ;;  %v3959_v43 = vrot.slane %v4857_v3, 9 }
  0xf8   : > { %v1401_v30 = vpop.f32.mrf.mxu1 }
  0xf9   : > { %1787 = vmatmul.bf16.gmra.mxu2 %v5343_v58  ;;  %v5349_v52 = vpop.f32.mrf.mxu0  ;;  %v5351_v49 = vpop.f32.mrf.mxu3  ;;  %v1402_v11 = vadd.f32 %v1401_v30, %v5222_v56  ;;  %v1567_v58 = vsel %vm5088_vm13, %v1565_v0, %v1566_v28 }
  0xfa   : > { %6200 = vst [vmem:[#allocation41_spill] sm:$0xff] %v5351_v49  ;;  %v1646_v56 = vunpack.c.l.b16 %v1567_v58  ;;  %v4363_v58 = vld [vmem:[%s6078_s1 + $0x1d0] sm:$0xff] }
  0xfb   : > { %2754 = vmatpush.bf16.msra.mxu3 %v4363_v58 }
  0xfc   : > { %v1748_v34 = vpop.f32.mrf.mxu2  ;;  %v5369_v21 = vpack.c.b16 %v1646_v56, %v1645_v44 }
  0xfd   : > { %v1828_v25 = vadd.f32 %v1748_v34, %v1400_v39 }
  0xfe   : > { %1979 = vmatmul.bf16.gmra.mxu3 %v5356_v29  ;;  %6201 = vst [vmem:[#allocation42_spill] sm:$0xff] %v5369_v21 }
 0x100   : > { %v1404_v49 = vpop.f32.mrf.mxu1 }
 0x101   : > { %v2154_v30 = vpop.f32.mrf.mxu0  ;;  %v1940_v37 = vpop.f32.mrf.mxu3  ;;  %v1405_v41 = vadd.f32 %v1404_v49, %v5247_v53  ;;  %v4347_v53 = vld [vmem:[%s6078_s1 + $0x150] sm:$0xff]  ;;  %v1299_v49 = vunpack.c.l.b16 %v4863_v10 }
 0x102   : > { %v2020_v34 = vadd.f32 %v1940_v37, %v1828_v25  ;;  %v1570_v25 = vrot.slane %v4863_v10, 5  ;;  %2348 = vmatpush.bf16.msra.mxu1 %v4347_v53 }
 0x103   : > { %1443 = vmatmul.bf16.gmra.mxu1 %v5356_v29  ;;  %v5389_v10 = vpack.c.b16 %v1299_v49, %v1298_v60 }
 0x104   : > { %v1750_v39 = vpop.f32.mrf.mxu2  ;;  %2193 = vmatmul.bf16.gmra.mxu0 %v4795_v22  ;;  %v5377_v40 = vadd.f32 %v2154_v30, %v2020_v34  ;;  %v1572_v56 = vrot.slane %v1570_v25, 4  ;;  %v6203_v30 = vld [vmem:[#allocation15_spill] sm:$0xff] }
 0x105   : > { %v1829_v0 = vadd.f32 %v1750_v39, %v1402_v11  ;;  %v1573_v37 = vrot.slane %v6203_v30, 5 }
 0x106   : > { %6202 = vst [vmem:[#allocation43_spill] sm:$0xff] %v5377_v40 }
 0x107   : > { %v1574_v3 = vsel %vm5088_vm13, %v1572_v56, %v1573_v37  ;;  %v6208_v56 = vld [vmem:[#allocation23_spill] sm:$0xff] }
 0x108   : > { %v1406_v44 = vpop.f32.mrf.mxu1  ;;  %v1648_v40 = vunpack.c.l.b16 %v1574_v3  ;;  %v1577_v37 = vrot.slane %v6208_v56, 5 }
 0x109   : > { %1792 = vmatmul.bf16.gmra.mxu2 %v5369_v21  ;;  %v2156_v11 = vpop.f32.mrf.mxu0  ;;  %v1942_v24 = vpop.f32.mrf.mxu3  ;;  %v1407_v28 = vadd.f32 %v1406_v44, %v5264_v50  ;;  %v1571_v50 = vsel %vm5088_vm13, %v3959_v43, %v1570_v25 }
 0x10a   : > { %v2021_v34 = vadd.f32 %v1942_v24, %v1829_v0  ;;  %v1647_v30 = vunpack.c.l.b16 %v1571_v50 }
 0x10c   : > { %v1753_v39 = vpop.f32.mrf.mxu2  ;;  %v5391_v53 = vadd.f32 %v2156_v11, %v2021_v34  ;;  %v5401_v25 = vpack.c.b16 %v1648_v40, %v1647_v30  ;;  %v1300_v34 = vunpack.c.l.b16 %v6209_v47  ;;  %v6210_v40 = vld [vmem:[#allocation24_spill] sm:$0xff] }
 0x10d   : > { %v1830_v58 = vadd.f32 %v1753_v39, %v1405_v41  ;;  %v6205_v41 = vld [vmem:[#allocation20_spill] sm:$0xff]  ;;  %v1301_v39 = vunpack.c.l.b16 %v6208_v56  ;;  %v1580_v30 = vrot.slane %v6210_v40, 5 }
 0x10e   : > { %6204 = vst [vmem:[#allocation15_spill] sm:$0xff] %v5391_v53  ;;  %1984 = vmatmul.bf16.gmra.mxu3 %v5389_v10 }
 0x10f   : > { %6206 = vst [vmem:[#allocation20_spill] sm:$0xff] %v5401_v25 }
 0x110   : > { %v1409_v44 = vpop.f32.mrf.mxu1 }
 0x111   : > { %v2159_v21 = vpop.f32.mrf.mxu0  ;;  %v1945_v0 = vpop.f32.mrf.mxu3  ;;  %v1410_v60 = vadd.f32 %v1409_v44, %v5284_v63  ;;  %v3960_v44 = vrot.slane %v6209_v47, 9 }
 0x112   : > { %v2022_v49 = vadd.f32 %v1945_v0, %v1830_v58  ;;  %v5412_v0 = vpack.c.b16 %v1301_v39, %v1300_v34 }
 0x113   : > { %1448 = vmatmul.bf16.gmra.mxu1 %v5389_v10  ;;  %v1578_v56 = vsel %vm5088_vm13, %v3960_v44, %v1577_v37  ;;  %v6215_v44 = vld [vmem:[#allocation6_spill] sm:$0xff] }
 0x114   : > { %v1755_v24 = vpop.f32.mrf.mxu2  ;;  %2198 = vmatmul.bf16.gmra.mxu0 %v6205_v41  ;;  %v5403_v43 = vadd.f32 %v2159_v21, %v2022_v49  ;;  %6211 = vst [vmem:[#allocation23_spill] sm:$0xff] %v5412_v0  ;;  %v1649_v47 = vunpack.c.l.b16 %v1578_v56 }
 0x115   : > { %v1831_v11 = vadd.f32 %v1755_v24, %v1407_v28  ;;  %v1579_v28 = vrot.slane %v1577_v37, 4 }
 0x116   : > { %6207 = vst [vmem:[#allocation44_spill] sm:$0xff] %v5403_v43 }
 0x117   : > { %v1581_v53 = vsel %vm5088_vm13, %v1579_v28, %v1580_v30  ;;  %v1584_v28 = vrot.slane %v6215_v44, 5  ;;  %v6216_v30 = vld [vmem:[#allocation5_spill] sm:$0xff] }
 0x118   : > { %v1411_v63 = vpop.f32.mrf.mxu1 }
 0x119   : > { %1797 = vmatmul.bf16.gmra.mxu2 %v5401_v25  ;;  %v2161_v58 = vpop.f32.mrf.mxu0  ;;  %v1947_v50 = vpop.f32.mrf.mxu3  ;;  %v1412_v3 = vadd.f32 %v1411_v63, %v5313_v54  ;;  %v1650_v63 = vunpack.c.l.b16 %v1581_v53  ;;  %v4362_v53 = vld [vmem:[%s6078_s1 + $0x1c8] sm:$0xff] }
 0x11a   : > { %v2023_v21 = vadd.f32 %v1947_v50, %v1831_v11  ;;  %2755 = vmatpush.bf16.msra.mxu3 %v4362_v53 }
 0x11c   : > { %v1758_v49 = vpop.f32.mrf.mxu2  ;;  %v5414_v43 = vadd.f32 %v2161_v58, %v2023_v21  ;;  %v5427_v58 = vpack.c.b16 %v1650_v63, %v1649_v47  ;;  %v1302_v21 = vunpack.c.l.b16 %v6216_v30  ;;  %v3961_v47 = vrot.slane %v6216_v30, 9 }
 0x11d   : > { %v1832_v24 = vadd.f32 %v1758_v49, %v1410_v60  ;;  %v4354_v60 = vld [vmem:[%s6078_s1 + $0x188] sm:$0xff]  ;;  %v1303_v49 = vunpack.c.l.b16 %v6215_v44  ;;  %v1586_v63 = vrot.slane %v1584_v28, 4 }
 0x11e   : > { %6212 = vst [vmem:[#allocation22_spill] sm:$0xff] %v5414_v43  ;;  %1989 = vmatmul.bf16.gmra.mxu3 %v5412_v0  ;;  %2541 = vmatpush.bf16.msra.mxu2 %v4354_v60  ;;  %v4370_v60 = vld [vmem:[%s6078_s1 + $0x208] sm:$0xff] }
 0x11f   : > { %6213 = vst [vmem:[#allocation24_spill] sm:$0xff] %v5427_v58  ;;  %2953 = vmatpush.bf16.msra.mxu0 %v4370_v60 }
 0x120   : > { %v1414_v54 = vpop.f32.mrf.mxu1 }
 0x121   : > { %v2164_v25 = vpop.f32.mrf.mxu0  ;;  %v1950_v40 = vpop.f32.mrf.mxu3  ;;  %v1415_v11 = vadd.f32 %v1414_v54, %v5334_v59  ;;  %v4346_v59 = vld [vmem:[%s6078_s1 + $0x148] sm:$0xff] }
 0x122   : > { %v2024_v34 = vadd.f32 %v1950_v40, %v1832_v24  ;;  %2349 = vmatpush.bf16.msra.mxu1 %v4346_v59 }
 0x123   : > { %1453 = vmatmul.bf16.gmra.mxu1 %v5412_v0 }
 0x124   : > { %v1760_v39 = vpop.f32.mrf.mxu2  ;;  %2203 = vmatmul.bf16.gmra.mxu0 %v5071_v46  ;;  %v5435_v50 = vadd.f32 %v2164_v25, %v2024_v34  ;;  %v6217_v25 = vld [vmem:[#allocation7_spill] sm:$0xff] }
 0x125   : > { %v1833_v37 = vadd.f32 %v1760_v39, %v1412_v3  ;;  %v1587_v40 = vrot.slane %v6217_v25, 5  ;;  %v5447_v39 = vpack.c.b16 %v1303_v49, %v1302_v21 }
 0x126   : > { %6214 = vst [vmem:[#allocation45_spill] sm:$0xff] %v5435_v50 }
 0x127   : > { %6218 = vst [vmem:[#allocation6_spill] sm:$0xff] %v5447_v39  ;;  %v1588_v30 = vsel %vm5088_vm13, %v1586_v63, %v1587_v40  ;;  %v6224_v40 = vld [vmem:[#allocation11_spill] sm:$0xff] }
 0x128   : > { %v1416_v3 = vpop.f32.mrf.mxu1  ;;  %v1652_v50 = vunpack.c.l.b16 %v1588_v30  ;;  %v1304_v60 = vunpack.c.l.b16 %v6224_v40  ;;  %v3962_v30 = vrot.slane %v6224_v40, 9 }
 0x129   : > { %1802 = vmatmul.bf16.gmra.mxu2 %v5427_v58  ;;  %v2166_v24 = vpop.f32.mrf.mxu0  ;;  %v1952_v56 = vpop.f32.mrf.mxu3  ;;  %v1417_v54 = vadd.f32 %v1416_v3, %v5349_v52  ;;  %v1585_v52 = vsel %vm5088_vm13, %v3961_v47, %v1584_v28  ;;  %v6223_v47 = vld [vmem:[#allocation12_spill] sm:$0xff] }
 0x12a   : > { %v2025_v34 = vadd.f32 %v1952_v56, %v1833_v37  ;;  %v1651_v25 = vunpack.c.l.b16 %v1585_v52  ;;  %v1591_v63 = vrot.slane %v6223_v47, 5 }
 0x12c   : > { %v1763_v53 = vpop.f32.mrf.mxu2  ;;  %v5449_v44 = vadd.f32 %v2166_v24, %v2025_v34  ;;  %v5458_v56 = vpack.c.b16 %v1652_v50, %v1651_v25  ;;  %v1305_v34 = vunpack.c.l.b16 %v6223_v47  ;;  %v1592_v47 = vsel %vm5088_vm13, %v3962_v30, %v1591_v63 }
 0x12d   : > { %v1834_v59 = vadd.f32 %v1763_v53, %v1415_v11  ;;  %v6220_v11 = vld [vmem:[#allocation10_spill] sm:$0xff] }
 0x12e   : > { %6219 = vst [vmem:[#allocation5_spill] sm:$0xff] %v5449_v44  ;;  %1994 = vmatmul.bf16.gmra.mxu3 %v5447_v39  ;;  %v6225_v44 = vld [vmem:[#allocation13_spill] sm:$0xff]  ;;  %v5469_v25 = vpack.c.b16 %v1305_v34, %v1304_v60 }
 0x12f   : > { %6221 = vst [vmem:[#allocation7_spill] sm:$0xff] %v5458_v56 }
 0x130   : > { %v1419_v3 = vpop.f32.mrf.mxu1  ;;  %6226 = vst [vmem:[#allocation12_spill] sm:$0xff] %v5469_v25 }
 0x131   : > { %v2169_v58 = vpop.f32.mrf.mxu0  ;;  %v1955_v37 = vpop.f32.mrf.mxu3 }
 0x132   : > { %v2026_v21 = vadd.f32 %v1955_v37, %v1834_v59  ;;  %v1593_v37 = vrot.slane %v1591_v63, 4  ;;  %v6228_v63 = vld [vmem:[#allocation14_spill] sm:$0xff] }
 0x133   : > { %1458 = vmatmul.bf16.gmra.mxu1 %v5447_v39 }
 0x134   : > { %v1765_v49 = vpop.f32.mrf.mxu2  ;;  %2208 = vmatmul.bf16.gmra.mxu0 %v6220_v11  ;;  %v5460_v28 = vadd.f32 %v2169_v58, %v2026_v21  ;;  %v1420_v58 = vadd.f32 %v1419_v3, %v5183_v5  ;;  %v1653_v11 = vunpack.c.l.b16 %v1592_v47  ;;  %v4353_v5 = vld [vmem:[%s6078_s1 + $0x180] sm:$0xff] }
 0x135   : > { %v1835_v24 = vadd.f32 %v1765_v49, %v1417_v54  ;;  %v1594_v54 = vrot.slane %v6225_v44, 5  ;;  %2542 = vmatpush.bf16.msra.mxu2 %v4353_v5  ;;  %v6233_v5 = vld [vmem:[#allocation18_spill] sm:$0xff] }
 0x136   : > { %6222 = vst [vmem:[#allocation46_spill] sm:$0xff] %v5460_v28 }
 0x138   : > { %v1421_v53 = vpop.f32.mrf.mxu1 }
 0x139   : > { %1807 = vmatmul.bf16.gmra.mxu2 %v5458_v56  ;;  %v2171_v59 = vpop.f32.mrf.mxu0  ;;  %v1957_v52 = vpop.f32.mrf.mxu3  ;;  %v1595_v56 = vsel %vm5088_vm13, %v1593_v37, %v1594_v54  ;;  %v1422_v60 = vadd.f32 %v1421_v53, %v5192_v12  ;;  %v4345_v37 = vld [vmem:[%s6078_s1 + $0x140] sm:$0xff]  ;;  %v6231_v12 = vld [vmem:[#allocation17_spill] sm:$0xff] }
 0x13a   : > { %v2027_v50 = vadd.f32 %v1957_v52, %v1835_v24  ;;  %v1654_v44 = vunpack.c.l.b16 %v1595_v56  ;;  %v4361_v56 = vld [vmem:[%s6078_s1 + $0x1c0] sm:$0xff]  ;;  %v1598_v53 = vrot.slane %v6231_v12, 5  ;;  %2350 = vmatpush.bf16.msra.mxu1 %v4345_v37 }
 0x13b   : > { %2756 = vmatpush.bf16.msra.mxu3 %v4361_v56 }
 0x13c   : > { %v1768_v21 = vpop.f32.mrf.mxu2  ;;  %v5471_v28 = vadd.f32 %v2171_v59, %v2027_v50  ;;  %v5484_v30 = vpack.c.b16 %v1654_v44, %v1653_v11  ;;  %v6232_v50 = vld [vmem:[#allocation16_spill] sm:$0xff] }
 0x13d   : > { %v1836_v49 = vadd.f32 %v1768_v21, %v1420_v58  ;;  %v1306_v58 = vunpack.c.l.b16 %v6232_v50  ;;  %v1307_v21 = vunpack.c.l.b16 %v6231_v12  ;;  %v3963_v44 = vrot.slane %v6232_v50, 9 }
 0x13e   : > { %6227 = vst [vmem:[#allocation11_spill] sm:$0xff] %v5471_v28  ;;  %1999 = vmatmul.bf16.gmra.mxu3 %v5469_v25  ;;  %v317_v28 = vld [vmem:[%s4524_s28 + $0xbc] sm:$0x1] }
 0x13f   : > { %6229 = vst [vmem:[#allocation13_spill] sm:$0xff] %v5484_v30  ;;  %v5504_v56 = vpack.c.b16 %v1307_v21, %v1306_v58  ;;  %v1599_v50 = vsel %vm5088_vm13, %v3963_v44, %v1598_v53 }
 0x140   : > { %v1424_v40 = vpop.f32.mrf.mxu1 }
 0x141   : > { %v2174_v24 = vpop.f32.mrf.mxu0  ;;  %v1960_v52 = vpop.f32.mrf.mxu3  ;;  %6234 = vst [vmem:[#allocation17_spill] sm:$0xff] %v5504_v56 }
 0x142   : > { %v2028_v3 = vadd.f32 %v1960_v52, %v1836_v49  ;;  %v1600_v52 = vrot.slane %v1598_v53, 4 }
 0x143   : > { %1463 = vmatmul.bf16.gmra.mxu1 %v5469_v25 }
 0x144   : > { %v1770_v34 = vpop.f32.mrf.mxu2  ;;  %2213 = vmatmul.bf16.gmra.mxu0 %v6228_v63  ;;  %v5492_v54 = vadd.f32 %v2174_v24, %v2028_v3  ;;  %v4369_v24 = vld [vmem:[%s6078_s1 + $0x200] sm:$0xff] }
 0x145   : > { %v1837_v59 = vadd.f32 %v1770_v34, %v1422_v60  ;;  %v1601_v60 = vrot.slane %v6233_v5, 5  ;;  %v1425_v34 = vadd.f32 %v1424_v40, %v5212_v19  ;;  %2954 = vmatpush.bf16.msra.mxu0 %v4369_v24  ;;  %v315_v24 = vld [vmem:[%s4524_s28 + $0xb4] sm:$0xf] }
 0x146   : > { %6230 = vst [vmem:[#allocation47_spill] sm:$0xff] %v5492_v54 }
 0x147   : > { %v1602_v5 = vsel %vm5088_vm13, %v1600_v52, %v1601_v60  ;;  %v6239_v60 = vld [vmem:[#allocation26_spill] sm:$0xff] }
 0x148   : > { %v1426_v11 = vpop.f32.mrf.mxu1  ;;  %v1656_v19 = vunpack.c.l.b16 %v1602_v5  ;;  %v5525_v5 = vsel %vm4512_vm3, %v315_v24, 0  ;;  %vm3478_vm3 = vcmask 1040384  }
 0x149   : > { %1812 = vmatmul.bf16.gmra.mxu2 %v5484_v30  ;;  %v2176_v49 = vpop.f32.mrf.mxu0  ;;  %v1962_v47 = vpop.f32.mrf.mxu3  ;;  %v1427_v30 = vadd.f32 %v1426_v11, %v5226_v27  ;;  %v6242_v11 = vld [vmem:[#allocation25_spill] sm:$0xff]  ;;  %vm5783_vm5 = vmand %vm3478_vm3, %vm3148_vm1 }
 0x14a   : > { %v2029_v3 = vadd.f32 %v1962_v47, %v1837_v59  ;;  %v1655_v47 = vunpack.c.l.b16 %v1599_v50  ;;  %v6243_v50 = vld [vmem:[#allocation27_spill] sm:$0xff] }
 0x14c   : > { %v1773_v37 = vpop.f32.mrf.mxu2  ;;  %v5506_v54 = vadd.f32 %v2176_v49, %v2029_v3  ;;  %v6236_v3 = vld [vmem:[#allocation21_spill] sm:$0xff]  ;;  %v5518_v44 = vpack.c.b16 %v1656_v19, %v1655_v47  ;;  %v2053_v47 = vshrl.u32 %v5525_v5, 16  ;;  %v2056_v19 = vshll.u32 %v5525_v5, 16 }
 0x14d   : > { %v1838_v12 = vadd.f32 %v1773_v37, %v1425_v34  ;;  %v316_v34 = vld [vmem:[%s4524_s28 + $0xb8] sm:$0xf]  ;;  %v1605_v37 = vrot.slane %v6239_v60, 5 }
 0x14e   : > { %6235 = vst [vmem:[#allocation16_spill] sm:$0xff] %v5506_v54  ;;  %2004 = vmatmul.bf16.gmra.mxu3 %v5504_v56  ;;  %v5529_v27 = vsel %vm4508_vm2, %v316_v34, 0  ;;  %v1309_v54 = vunpack.c.l.b16 %v6239_v60  ;;  %v2055_v25 = vrot.slane %v2053_v47, 4  ;;  %v2058_v39 = vrot.slane %v2056_v19, 5 }
 0x14f   : > { %6237 = vst [vmem:[#allocation18_spill] sm:$0xff] %v5518_v44  ;;  %v1607_v34 = vrot.slane %v1605_v37, 4  ;;  %vm3149_vm2 = vsmask.f32 4368 }
 0x150   : > { %v1429_v59 = vpop.f32.mrf.mxu1  ;;  %v2059_v47 = vor.u32 %v2058_v39, %v2055_v25  ;;  %v1880_v39 = vunpack.c.l.b16 %v5529_v27  ;;  %vm5776_vm4 = vmor %vm3148_vm1, %vm3149_vm2 }
 0x151   : > { %v2179_v40 = vpop.f32.mrf.mxu0  ;;  %v1965_v58 = vpop.f32.mrf.mxu3 }
 0x152   : > { %v2030_v21 = vadd.f32 %v1965_v58, %v1838_v12  ;;  %v1308_v58 = vunpack.c.l.b16 %v6242_v11  ;;  %v1608_v12 = vrot.slane %v6243_v50, 5 }
 0x153   : > { %1468 = vmatmul.bf16.gmra.mxu1 %v5504_v56 }
 0x154   : > { %v1775_v49 = vpop.f32.mrf.mxu2  ;;  %2218 = vmatmul.bf16.gmra.mxu0 %v6236_v3  ;;  %v5520_v52 = vadd.f32 %v2179_v40, %v2030_v21  ;;  %v2062_v40 = vshll.u32 %v5529_v27, 16  ;;  %v1430_v3 = vadd.f32 %v1429_v59, %v5255_v33  ;;  %v1609_v50 = vsel %vm5088_vm13, %v1607_v34, %v1608_v12 }
 0x155   : > { %v1839_v53 = vadd.f32 %v1775_v49, %v1427_v30  ;;  %v3964_v49 = vrot.slane %v6242_v11, 9  ;;  %v2060_v34 = vrot.slane %v2059_v47, 4 }
 0x156   : > { %6238 = vst [vmem:[#allocation48_spill] sm:$0xff] %v5520_v52  ;;  %v2066_v52 = vshrl.u32 %v5529_v27, 16  ;;  %v2064_v46 = vrot.slane %v2062_v40, 5 }
 0x157   : > { %v1606_v11 = vsel %vm5088_vm13, %v3964_v49, %v1605_v37 }
 0x158   : > { %v1431_v30 = vpop.f32.mrf.mxu1  ;;  %v2068_v0 = vrot.slane %v2066_v52, 4 }
 0x159   : > { %1817 = vmatmul.bf16.gmra.mxu2 %v5518_v44  ;;  %v2181_v21 = vpop.f32.mrf.mxu0  ;;  %v1967_v24 = vpop.f32.mrf.mxu3  ;;  %v5541_v44 = vpack.c.b16 %v1309_v54, %v1308_v58  ;;  %v5553_v54 = vsel %vm4529_vm7, %v317_v28, 0 }
 0x15a   : > { %v2031_v60 = vadd.f32 %v1967_v24, %v1839_v53  ;;  %v2069_v19 = vor.u32 %v2068_v0, %v2064_v46  ;;  %v2072_v37 = vshll.u32 %v5553_v54, 16  ;;  %v1432_v24 = vadd.f32 %v1431_v30, %v5275_v17 }
 0x15b   : > { %v1879_v0 = vunpack.c.l.b16 %v5525_v5  ;;  %v2065_v30 = vsel %vm4581_vm8, %v2060_v34, %v2064_v46 }
 0x15c   : > { %v1778_v56 = vpop.f32.mrf.mxu2  ;;  %v5544_v43 = vadd.f32 %v2181_v21, %v2031_v60  ;;  %v2070_v12 = vrot.slane %v2069_v19, 4  ;;  %v2074_v60 = vrot.slane %v2072_v37, 5 }
 0x15d   : > { %v1840_v63 = vadd.f32 %v1778_v56, %v1430_v3  ;;  %v1657_v56 = vunpack.c.l.b16 %v1606_v11  ;;  %v1658_v3 = vunpack.c.l.b16 %v1609_v50 }
 0x15e   : > { %2009 = vmatmul.bf16.gmra.mxu3 %v5541_v44  ;;  %v2075_v11 = vsel %vm4581_vm8, %v2070_v12, %v2074_v60 }
 0x15f   : > { %v5559_v28 = vpack.c.b16 %v1658_v3, %v1657_v56  ;;  %v5571_v56 = vpack.c.b16 %v1880_v39, %v1879_v0 }
 0x160   : > { %v1434_v59 = vpop.f32.mrf.mxu1 }
 0x161   : > { %v2184_v53 = vpop.f32.mrf.mxu0  ;;  %v1970_v58 = vpop.f32.mrf.mxu3  ;;  %v1435_v33 = vadd.f32 %v1434_v59, %v5293_v62 }
 0x162   : > { %v2032_v21 = vadd.f32 %v1970_v58, %v1840_v63  ;;  %v2094_v58 = vunpack.c.l.b16 %v2075_v11 }
 0x163   : > { %1473 = vmatmul.bf16.gmra.mxu1 %v5541_v44 }
 0x164   : > { %v1780_v40 = vpop.f32.mrf.mxu2  ;;  %2223 = vmatmul.bf16.gmra.mxu0 %v5086_v4  ;;  %v5561_v49 = vadd.f32 %v2184_v53, %v2032_v21  ;;  %v2093_v53 = vunpack.c.l.b16 %v2065_v30 }
 0x165   : > { %v1841_v52 = vadd.f32 %v1780_v40, %v1432_v24 }
 0x166   : > { %v5576_v37 = vpack.c.b16 %v2094_v58, %v2093_v53 }
 0x168   : > { %v1436_v17 = vpop.f32.mrf.mxu1 }
 0x169   : > { %1822 = vmatmul.bf16.gmra.mxu2 %v5559_v28  ;;  %v2186_v25 = vpop.f32.mrf.mxu0  ;;  %v1972_v63 = vpop.f32.mrf.mxu3 }
 0x16a   : > { %v2033_v50 = vadd.f32 %v1972_v63, %v1841_v52  ;;  %v1437_v52 = vadd.f32 %v1436_v17, %v5318_v57 }
 0x16c   : > { %v1783_v3 = vpop.f32.mrf.mxu2  ;;  %v5573_v19 = vadd.f32 %v2186_v25, %v2033_v50 }
 0x16d   : > { %v1842_v47 = vadd.f32 %v1783_v3, %v1435_v33 }
 0x16e   : > { %2014 = vmatmul.bf16.gmra.mxu3 %v5571_v56 }
 0x170   : > { %v1439_v21 = vpop.f32.mrf.mxu1 }
 0x171   : > { %v2189_v46 = vpop.f32.mrf.mxu0  ;;  %v1975_v24 = vpop.f32.mrf.mxu3  ;;  %v1440_v25 = vadd.f32 %v1439_v21, %v5190_v55 }
 0x172   : > { %v2034_v40 = vadd.f32 %v1975_v24, %v1842_v47 }
 0x173   : > { %2351 = vmatmul.bf16.vlgmr.msra.gmra.mxu1 %v5114_v15 }
 0x174   : > { %v1785_v34 = vpop.f32.mrf.mxu2  ;;  %2228 = vmatmul.bf16.gmra.mxu0 %v5576_v37  ;;  %v5581_v59 = vadd.f32 %v2189_v46, %v2034_v40 }
 0x175   : > { %v1843_v62 = vadd.f32 %v1785_v34, %v1437_v52 }
 0x178   : > { %v1441_v12 = vpop.f32.mrf.mxu1 }
 0x179   : > { %2543 = vmatmul.bf16.vlgmr.msra.gmra.mxu2 %v5135_v32  ;;  %v2191_v60 = vpop.f32.mrf.mxu0  ;;  %v1977_v0 = vpop.f32.mrf.mxu3  ;;  %v1442_v33 = vadd.f32 %v1441_v12, %v5206_v6 }
 0x17a   : > { %v2035_v39 = vadd.f32 %v1977_v0, %v1843_v62 }
 0x17c   : > { %v1788_v63 = vpop.f32.mrf.mxu2  ;;  %v5585_v11 = vadd.f32 %v2191_v60, %v2035_v39 }
 0x17d   : > { %v1844_v30 = vadd.f32 %v1788_v63, %v1440_v25 }
 0x17e   : > { %2757 = vmatmul.bf16.vlgmr.msra.gmra.mxu3 %v5009_v9 }
 0x180   : > { %v1444_v15 = vpop.f32.mrf.mxu1 }
 0x181   : > { %v2194_v57 = vpop.f32.mrf.mxu0  ;;  %v1980_v17 = vpop.f32.mrf.mxu3  ;;  %v1445_v21 = vadd.f32 %v1444_v15, %v5229_v1 }
 0x182   : > { %v2036_v50 = vadd.f32 %v1980_v17, %v1844_v30 }
 0x183   : > { %2356 = vmatmul.bf16.gmra.mxu1 %v5144_v26 }
 0x184   : > { %v1790_v3 = vpop.f32.mrf.mxu2  ;;  %2955 = vmatmul.bf16.vlgmr.msra.gmra.mxu0 %v5144_v26  ;;  %v5591_v53 = vadd.f32 %v2194_v57, %v2036_v50 }
 0x185   : > { %v1845_v32 = vadd.f32 %v1790_v3, %v1442_v33 }
 0x188   : > { %v1446_v55 = vpop.f32.mrf.mxu1 }
 0x189   : > { %2548 = vmatmul.bf16.gmra.mxu2 %v5152_v2  ;;  %v2196_v58 = vpop.f32.mrf.mxu0  ;;  %v1982_v47 = vpop.f32.mrf.mxu3  ;;  %v1447_v62 = vadd.f32 %v1446_v55, %v5257_v23 }
 0x18a   : > { %v2037_v9 = vadd.f32 %v1982_v47, %v1845_v32 }
 0x18c   : > { %v1793_v46 = vpop.f32.mrf.mxu2  ;;  %v5595_v40 = vadd.f32 %v2196_v58, %v2037_v9 }
 0x18d   : > { %v1846_v24 = vadd.f32 %v1793_v46, %v1445_v21 }
 0x18e   : > { %2762 = vmatmul.bf16.gmra.mxu3 %v5107_v20 }
 0x190   : > { %v1449_v6 = vpop.f32.mrf.mxu1 }
 0x191   : > { %v2199_v52 = vpop.f32.mrf.mxu0  ;;  %v1985_v26 = vpop.f32.mrf.mxu3  ;;  %v1450_v25 = vadd.f32 %v1449_v6, %v5277_v13 }
 0x192   : > { %v2038_v34 = vadd.f32 %v1985_v26, %v1846_v24 }
 0x193   : > { %2361 = vmatmul.bf16.gmra.mxu1 %v5164_v51 }
 0x194   : > { %v1795_v12 = vpop.f32.mrf.mxu2  ;;  %2960 = vmatmul.bf16.gmra.mxu0 %v5164_v51  ;;  %v5601_v60 = vadd.f32 %v2199_v52, %v2038_v34 }
 0x195   : > { %v1847_v2 = vadd.f32 %v1795_v12, %v1447_v62 }
 0x198   : > { %v1451_v1 = vpop.f32.mrf.mxu1 }
 0x199   : > { %2553 = vmatmul.bf16.gmra.mxu2 %v5181_v38  ;;  %v2201_v0 = vpop.f32.mrf.mxu0  ;;  %v1987_v39 = vpop.f32.mrf.mxu3  ;;  %v1452_v50 = vadd.f32 %v1451_v1, %v5295_v61 }
 0x19a   : > { %v2039_v20 = vadd.f32 %v1987_v39, %v1847_v2 }
 0x19c   : > { %v1798_v63 = vpop.f32.mrf.mxu2  ;;  %v5605_v15 = vadd.f32 %v2201_v0, %v2039_v20 }
 0x19d   : > { %v1848_v30 = vadd.f32 %v1798_v63, %v1450_v25  ;;  %v6246_v63 = vld [vmem:[#allocation30_spill] sm:$0xff] }
 0x19e   : > { %2767 = vmatmul.bf16.gmra.mxu3 %v4618_v18 }
 0x1a0   : > { %v1454_v23 = vpop.f32.mrf.mxu1 }
 0x1a1   : > { %v2204_v57 = vpop.f32.mrf.mxu0  ;;  %v1990_v51 = vpop.f32.mrf.mxu3  ;;  %v1455_v58 = vadd.f32 %v1454_v23, %v5327_v31 }
 0x1a2   : > { %v2040_v17 = vadd.f32 %v1990_v51, %v1848_v30 }
 0x1a3   : > { %2366 = vmatmul.bf16.gmra.mxu1 %v5196_v16 }
 0x1a4   : > { %v1800_v33 = vpop.f32.mrf.mxu2  ;;  %2965 = vmatmul.bf16.gmra.mxu0 %v5196_v16  ;;  %v5611_v3 = vadd.f32 %v2204_v57, %v2040_v17 }
 0x1a5   : > { %v1849_v38 = vadd.f32 %v1800_v33, %v1452_v50 }
 0x1a8   : > { %v1456_v13 = vpop.f32.mrf.mxu1 }
 0x1a9   : > { %2558 = vmatmul.bf16.gmra.mxu2 %v5210_v36  ;;  %v2206_v32 = vpop.f32.mrf.mxu0  ;;  %v1992_v55 = vpop.f32.mrf.mxu3  ;;  %v1457_v6 = vadd.f32 %v1456_v13, %v5339_v35  ;;  %v6245_v35 = vld [vmem:[#allocation19_spill] sm:$0xff] }
 0x1aa   : > { %v2041_v18 = vadd.f32 %v1992_v55, %v1849_v38  ;;  %v6249_v13 = vld [vmem:[#allocation31_spill] sm:$0xff] }
 0x1ac   : > { %v1803_v47 = vpop.f32.mrf.mxu2  ;;  %v5615_v21 = vadd.f32 %v2206_v32, %v2041_v18 }
 0x1ad   : > { %v1850_v9 = vadd.f32 %v1803_v47, %v1455_v58  ;;  %v6250_v47 = vld [vmem:[#allocation28_spill] sm:$0xff] }
 0x1ae   : > { %2772 = vmatmul.bf16.gmra.mxu3 %v4766_v45 }
 0x1b0   : > { %v1459_v61 = vpop.f32.mrf.mxu1 }
 0x1b1   : > { %v2209_v46 = vpop.f32.mrf.mxu0  ;;  %v1995_v16 = vpop.f32.mrf.mxu3  ;;  %v1460_v12 = vadd.f32 %v1459_v61, %v5200_v7  ;;  %v6248_v7 = vld [vmem:[#allocation34_spill] sm:$0xff] }
 0x1b2   : > { %v2042_v24 = vadd.f32 %v1995_v16, %v1850_v9 }
 0x1b3   : > { %2371 = vmatmul.bf16.gmra.mxu1 %v5232_v14 }
 0x1b4   : > { %v1805_v52 = vpop.f32.mrf.mxu2  ;;  %2970 = vmatmul.bf16.gmra.mxu0 %v5232_v14  ;;  %v5621_v26 = vadd.f32 %v2209_v46, %v2042_v24  ;;  %v6251_v24 = vld [vmem:[#allocation32_spill] sm:$0xff] }
 0x1b5   : > { %v1851_v36 = vadd.f32 %v1805_v52, %v1457_v6 }
 0x1b8   : > { %v1461_v31 = vpop.f32.mrf.mxu1 }
 0x1b9   : > { %2563 = vmatmul.bf16.gmra.mxu2 %v5253_v8  ;;  %v2211_v34 = vpop.f32.mrf.mxu0  ;;  %v1997_v62 = vpop.f32.mrf.mxu3  ;;  %v1462_v30 = vadd.f32 %v1461_v31, %v6246_v63  ;;  %v6247_v8 = vld [vmem:[#allocation33_spill] sm:$0xff] }
 0x1ba   : > { %v2043_v45 = vadd.f32 %v1997_v62, %v1851_v36  ;;  %v6252_v36 = vld [vmem:[#allocation36_spill] sm:$0xff]  ;;  %v6253_v62 = vld [vmem:[#allocation38_spill] sm:$0xff]  ;;  %v6255_v63 = vld [vmem:[#allocation9_spill] sm:$0xff] }
 0x1bc   : > { %v1808_v2 = vpop.f32.mrf.mxu2  ;;  %v5625_v0 = vadd.f32 %v2211_v34, %v2043_v45 }
 0x1bd   : > { %v1852_v1 = vadd.f32 %v1808_v2, %v1460_v12 }
 0x1be   : > { %2777 = vmatmul.bf16.gmra.mxu3 %v6245_v35  ;;  %v6254_v35 = vld [vmem:[#allocation35_spill] sm:$0xff] }
 0x1c0   : > { %v1464_v39 = vpop.f32.mrf.mxu1 }
 0x1c1   : > { %v2214_v20 = vpop.f32.mrf.mxu0  ;;  %v2000_v14 = vpop.f32.mrf.mxu3  ;;  %v1465_v32 = vadd.f32 %v1464_v39, %v6249_v13 }
 0x1c2   : > { %v2044_v25 = vadd.f32 %v2000_v14, %v1852_v1 }
 0x1c3   : > { %2376 = vmatmul.bf16.gmra.mxu1 %v6247_v8 }
 0x1c4   : > { %v1810_v23 = vpop.f32.mrf.mxu2  ;;  %2975 = vmatmul.bf16.gmra.mxu0 %v6247_v8  ;;  %v5631_v51 = vadd.f32 %v2214_v20, %v2044_v25 }
 0x1c5   : > { %v1853_v57 = vadd.f32 %v1810_v23, %v1462_v30 }
 0x1c8   : > { %v1466_v17 = vpop.f32.mrf.mxu1 }
 0x1c9   : > { %2568 = vmatmul.bf16.gmra.mxu2 %v6248_v7  ;;  %v2216_v50 = vpop.f32.mrf.mxu0  ;;  %v2002_v33 = vpop.f32.mrf.mxu3  ;;  %v1467_v6 = vadd.f32 %v1466_v17, %v6251_v24  ;;  %v6256_v7 = vld [vmem:[#allocation37_spill] sm:$0xff] }
 0x1ca   : > { %v2045_v38 = vadd.f32 %v2002_v33, %v1853_v57  ;;  %v6257_v33 = vld [vmem:[#allocation40_spill] sm:$0xff] }
 0x1cc   : > { %v1813_v55 = vpop.f32.mrf.mxu2  ;;  %v5635_v58 = vadd.f32 %v2216_v50, %v2045_v38 }
 0x1cd   : > { %v1854_v18 = vadd.f32 %v1813_v55, %v1465_v32  ;;  %v4455_v32 = vmov 0  }
 0x1ce   : > { %2782 = vmatmul.bf16.gmra.mxu3 %v6250_v47  ;;  %3100 = vst [vmem:[%s5655_s29] sm:$0xf] %v4455_v32 }
 0x1cf   : > { %3101 = vst [vmem:[%s5655_s29 + $0x4] sm:$0xf] %v4455_v32 }
 0x1d0   : > { %v1469_v9 = vpop.f32.mrf.mxu1  ;;  %3102 = vst [vmem:[%s5655_s29 + $0x8] sm:$0x1] %v4455_v32 }
 0x1d1   : > { %v2219_v61 = vpop.f32.mrf.mxu0  ;;  %v2005_v46 = vpop.f32.mrf.mxu3  ;;  %v1470_v39 = vadd.f32 %v1469_v9, %v6254_v35  ;;  %3103 = vst [vmem:[%s5655_s29 + $0xc] sm:$0xf] %v4455_v32 }
 0x1d2   : > { %v2046_v16 = vadd.f32 %v2005_v46, %v1854_v18  ;;  %3104 = vst [vmem:[%s5655_s29 + $0x10] sm:$0xf] %v4455_v32 }
 0x1d3   : > { %2381 = vmatmul.bf16.gmra.mxu1 %v6252_v36  ;;  %3105 = vst [vmem:[%s5655_s29 + $0x14] sm:$0x1] %v4455_v32 }
 0x1d4   : > { %v1815_v52 = vpop.f32.mrf.mxu2  ;;  %2980 = vmatmul.bf16.gmra.mxu0 %v6252_v36  ;;  %v5641_v34 = vadd.f32 %v2219_v61, %v2046_v16  ;;  %v6258_v61 = vld [vmem:[#allocation39_spill] sm:$0xff]  ;;  %3106 = vst [vmem:[%s5655_s29 + $0x18] sm:$0xf] %v4455_v32 }
 0x1d5   : > { %v1855_v31 = vadd.f32 %v1815_v52, %v1467_v6  ;;  %3107 = vst [vmem:[%s5655_s29 + $0x1c] sm:$0xf] %v4455_v32 }
 0x1d6   : > { %3108 = vst [vmem:[%s5655_s29 + $0x20] sm:$0x1] %v4455_v32 }
 0x1d7   : > { %3109 = vst [vmem:[%s5655_s29 + $0x24] sm:$0xf] %v4455_v32 }
 0x1d8   : > { %v1471_v45 = vpop.f32.mrf.mxu1  ;;  %3110 = vst [vmem:[%s5655_s29 + $0x28] sm:$0xf] %v4455_v32 }
 0x1d9   : > { %2573 = vmatmul.bf16.gmra.mxu2 %v6253_v62  ;;  %v2221_v12 = vpop.f32.mrf.mxu0  ;;  %v2007_v2 = vpop.f32.mrf.mxu3  ;;  %v1472_v17 = vadd.f32 %v1471_v45, %v6256_v7  ;;  %v6259_v62 = vld [vmem:[#allocation41_spill] sm:$0xff]  ;;  %3111 = vst [vmem:[%s5655_s29 + $0x2c] sm:$0x1] %v4455_v32 }
 0x1da   : > { %v2047_v1 = vadd.f32 %v2007_v2, %v1855_v31  ;;  %3112 = vst [vmem:[%s5655_s29 + $0x30] sm:$0xf] %v4455_v32 }
 0x1db   : > { %3113 = vst [vmem:[%s5655_s29 + $0x34] sm:$0xf] %v4455_v32 }
 0x1dc   : > { %v1818_v20 = vpop.f32.mrf.mxu2  ;;  %v5645_v25 = vadd.f32 %v2221_v12, %v2047_v1  ;;  %v6260_v12 = vld [vmem:[#allocation42_spill] sm:$0xff]  ;;  %3114 = vst [vmem:[%s5655_s29 + $0x38] sm:$0x1] %v4455_v32 }
 0x1dd   : > { %v1856_v14 = vadd.f32 %v1818_v20, %v1470_v39  ;;  %3115 = vst [vmem:[%s5655_s29 + $0x3c] sm:$0xf] %v4455_v32 }
 0x1de   : > { %2787 = vmatmul.bf16.gmra.mxu3 %v6255_v63  ;;  %3116 = vst [vmem:[%s5655_s29 + $0x40] sm:$0xf] %v4455_v32 }
 0x1df   : > { %3117 = vst [vmem:[%s5655_s29 + $0x44] sm:$0x1] %v4455_v32 }
 0x1e0   : > { %v1474_v30 = vpop.f32.mrf.mxu1  ;;  %3118 = vst [vmem:[%s5655_s29 + $0x48] sm:$0xf] %v4455_v32 }
 0x1e1   : > { %v2224_v23 = vpop.f32.mrf.mxu0  ;;  %v2010_v8 = vpop.f32.mrf.mxu3  ;;  %v1475_v46 = vadd.f32 %v1474_v30, %v6258_v61  ;;  %3119 = vst [vmem:[%s5655_s29 + $0x4c] sm:$0xf] %v4455_v32  ;;  %v6261_v30 = vld [vmem:[#allocation43_spill] sm:$0xff] }
 0x1e2   : > { %v2048_v57 = vadd.f32 %v2010_v8, %v1856_v14  ;;  %3120 = vst [vmem:[%s5655_s29 + $0x50] sm:$0x1] %v4455_v32 }
 0x1e3   : > { %2386 = vmatmul.bf16.gmra.mxu1 %v6257_v33  ;;  %3121 = vst [vmem:[%s5655_s29 + $0x54] sm:$0xf] %v4455_v32 }
 0x1e4   : > { %v1820_v50 = vpop.f32.mrf.mxu2  ;;  %2985 = vmatmul.bf16.gmra.mxu0 %v6257_v33  ;;  %v5658_v13 = vadd.f32 %v2224_v23, %v2048_v57  ;;  %3122 = vst [vmem:[%s5655_s29 + $0x58] sm:$0xf] %v4455_v32  ;;  %v6262_v33 = vld [vmem:[#allocation20_spill] sm:$0xff] }
 0x1e5   : > { %v1857_v38 = vadd.f32 %v1820_v50, %v1472_v17  ;;  %3123 = vst [vmem:[%s5655_s29 + $0x5c] sm:$0x1] %v4455_v32 }
 0x1e6   : > { %3124 = vst [vmem:[%s5655_s29 + $0x60] sm:$0xf] %v4455_v32 }
 0x1e7   : > { %3125 = vst [vmem:[%s5655_s29 + $0x64] sm:$0xf] %v4455_v32 }
 0x1e8   : > { %v1476_v55 = vpop.f32.mrf.mxu1  ;;  %3126 = vst [vmem:[%s5655_s29 + $0x68] sm:$0x1] %v4455_v32 }
 0x1e9   : > { %2578 = vmatmul.bf16.gmra.mxu2 %v5356_v29  ;;  %v2226_v18 = vpop.f32.mrf.mxu0  ;;  %v2012_v47 = vpop.f32.mrf.mxu3  ;;  %v1477_v45 = vadd.f32 %v1476_v55, %v6259_v62  ;;  %3127 = vst [vmem:[%s5655_s29 + $0x6c] sm:$0xf] %v4455_v32  ;;  %v6263_v55 = vld [vmem:[#allocation15_spill] sm:$0xff] }
 0x1ea   : > { %v2049_v9 = vadd.f32 %v2012_v47, %v1857_v38  ;;  %3128 = vst [vmem:[%s5655_s29 + $0x70] sm:$0xf] %v4455_v32 }
 0x1eb   : > { %3129 = vst [vmem:[%s5655_s29 + $0x74] sm:$0x1] %v4455_v32 }
 0x1ec   : > { %v1823_v16 = vpop.f32.mrf.mxu2  ;;  %v5674_v24 = vadd.f32 %v2226_v18, %v2049_v9  ;;  %3130 = vst [vmem:[%s5655_s29 + $0x78] sm:$0xf] %v4455_v32 }
 0x1ed   : > { %v1858_v29 = vadd.f32 %v1823_v16, %v1475_v46  ;;  %3131 = vst [vmem:[%s5655_s29 + $0x7c] sm:$0xf] %v4455_v32  ;;  %v6264_v46 = vld [vmem:[#allocation23_spill] sm:$0xff] }
 0x1ee   : > { %2792 = vmatmul.bf16.gmra.mxu3 %v4795_v22  ;;  %3132 = vst [vmem:[%s5655_s29 + $0x80] sm:$0x1] %v4455_v32 }
 0x1ef   : > { %3133 = vst [vmem:[%s5655_s29 + $0x84] sm:$0xf] %v4455_v32 }
 0x1f0   : > { %v2352_v6 = vpop.f32.mrf.mxu1  ;;  %3134 = vst [vmem:[%s5655_s29 + $0x88] sm:$0xf] %v4455_v32 }
 0x1f1   : > { %v2229_v52 = vpop.f32.mrf.mxu0  ;;  %v2015_v36 = vpop.f32.mrf.mxu3  ;;  %3135 = vst [vmem:[%s5655_s29 + $0x8c] sm:$0x1] %v4455_v32 }
 0x1f2   : > { %v2050_v31 = vadd.f32 %v2015_v36, %v1858_v29  ;;  %3136 = vst [vmem:[%s5655_s29 + $0x90] sm:$0xf] %v4455_v32 }
 0x1f3   : > { %2391 = vmatmul.bf16.gmra.mxu1 %v6260_v12  ;;  %3137 = vst [vmem:[%s5655_s29 + $0x94] sm:$0xf] %v4455_v32 }
 0x1f4   : > { %v1825_v22 = vpop.f32.mrf.mxu2  ;;  %2990 = vmatmul.bf16.gmra.mxu0 %v6260_v12  ;;  %v5696_v1 = vadd.f32 %v2229_v52, %v2050_v31  ;;  %3138 = vst [vmem:[%s5655_s29 + $0x98] sm:$0x1] %v4455_v32 }
 0x1f5   : > { %v1859_v2 = vadd.f32 %v1825_v22, %v1477_v45  ;;  %v3474_v45 = vld [vmem:[%s5655_s29] sm:$0xf]  ;;  %v6267_v22 = vld [vmem:[#allocation44_spill] sm:$0xff]  ;;  %3139 = vst [vmem:[%s5655_s29 + $0x9c] sm:$0xf] %v4455_v32 }
 0x1f6   : > { %3140 = vst [vmem:[%s5655_s29 + $0xa0] sm:$0xf] %v4455_v32 }
 0x1f7   : > { %3141 = vst [vmem:[%s5655_s29 + $0xa4] sm:$0x1] %v4455_v32 }
 0x1f8   : > { %v2354_v35 = vpop.f32.mrf.mxu1  ;;  %3142 = vst [vmem:[%s5655_s29 + $0xa8] sm:$0xf] %v4455_v32 }
 0x1f9   : > { %2583 = vmatmul.bf16.gmra.mxu2 %v5389_v10  ;;  %v2231_v39 = vpop.f32.mrf.mxu0  ;;  %v2017_v20 = vpop.f32.mrf.mxu3  ;;  %v2432_v10 = vadd.f32 %v2352_v6, %v6261_v30  ;;  %v2433_v18 = vadd.f32 %v2354_v35, %v6263_v55  ;;  %3143 = vst [vmem:[%s5655_s29 + $0xac] sm:$0xf] %v4455_v32 }
 0x1fa   : > { %v2051_v14 = vadd.f32 %v2017_v20, %v1859_v2  ;;  %3144 = vst [vmem:[%s5655_s29 + $0xb0] sm:$0x1] %v4455_v32 }
 0x1fb   : > { %3145 = vst [vmem:[%s5655_s29 + $0xb4] sm:$0xf] %v4455_v32 }
 0x1fc   : > { %v2544_v63 = vpop.f32.mrf.mxu2  ;;  %v5716_v23 = vadd.f32 %v2231_v39, %v2051_v14  ;;  %3146 = vst [vmem:[%s5655_s29 + $0xb8] sm:$0xf] %v4455_v32 }
 0x1fd   : > { %v2624_v8 = vadd.f32 %v2544_v63, %v2432_v10  ;;  %3147 = vst [vmem:[%s5655_s29 + $0xbc] sm:$0x1] %v4455_v32 }
 0x1fe   : > { %2797 = vmatmul.bf16.gmra.mxu3 %v6205_v41 }
 0x200   : > { %v2357_v57 = vpop.f32.mrf.mxu1 }
 0x201   : > { %v2956_v7 = vpop.f32.mrf.mxu0  ;;  %v2758_v17 = vpop.f32.mrf.mxu3  ;;  %v2434_v12 = vadd.f32 %v2357_v57, %v6267_v22  ;;  %v6268_v57 = vld [vmem:[#allocation29_spill] sm:$0xff] }
 0x202   : > { %v2838_v50 = vadd.f32 %v2758_v17, %v2624_v8 }
 0x203   : > { %2396 = vmatmul.bf16.gmra.mxu1 %v6262_v33 }
 0x204   : > { %v2546_v41 = vpop.f32.mrf.mxu2  ;;  %2995 = vmatmul.bf16.gmra.mxu0 %v6262_v33  ;;  %v3036_v38 = vadd.f32 %v2956_v7, %v2838_v50 }
 0x205   : > { %v2625_v9 = vadd.f32 %v2546_v41, %v2433_v18 }
 0x206   : > { %v3068_v47 = vpack.c.bf16 %v3036_v38, %v3036_v38  ;;  %v3626_v20 = vmul.f32 %v3036_v38, %v3036_v38 }
 0x208   : > { %v3152_v61 = vshrl.u32 %v3068_v47, 16  ;;  %v2359_v16 = vpop.f32.mrf.mxu1  ;;  %v3155_v36 = vshll.u32 %v3068_v47, 16 }
 0x209   : > { %2588 = vmatmul.bf16.gmra.mxu2 %v6264_v46  ;;  %v2958_v29 = vpop.f32.mrf.mxu0  ;;  %v2760_v6 = vpop.f32.mrf.mxu3  ;;  %v6273_v46 = vld [vmem:[#allocation22_spill] sm:$0xff] }
 0x20a   : > { %v3154_v52 = vrot.slane %v3152_v61, 7  ;;  %v2839_v31 = vadd.f32 %v2760_v6, %v2625_v9  ;;  %v3480_v61 = vld [vmem:[%s5655_s29 + $0x8] sm:$0x1] }
 0x20c   : > { %v2549_v2 = vpop.f32.mrf.mxu2  ;;  %v3157_v35 = vor.u32 %v3155_v36, %v3154_v52  ;;  %v3037_v39 = vadd.f32 %v2958_v29, %v2839_v31  ;;  %v2435_v29 = vadd.f32 %v2359_v16, %v6273_v46  ;;  %v6274_v36 = vld [vmem:[#allocation24_spill] sm:$0xff]  ;;  %v3158_v31 = vrot.slane %v3154_v52, 4 }
 0x20d   : > { %v2626_v14 = vadd.f32 %v2549_v2, %v2434_v12 }
 0x20e   : > { %v3475_v63 = vsel %vm5751_vm0, %v3157_v35, %v3474_v45  ;;  %v3069_v30 = vpack.c.bf16 %v3037_v39, %v3037_v39  ;;  %v3588_v10 = vadd.f32 %v3037_v39, %v3036_v38  ;;  %v3627_v8 = vmul.f32 %v3037_v39, %v3037_v39  ;;  %2802 = vmatmul.bf16.gmra.mxu3 %v6268_v57 }
 0x20f   : > { %3476 = vst [vmem:[%s5655_s29] sm:$0xf] %v3475_v63  ;;  %v6275_v63 = vld [vmem:[#allocation6_spill] sm:$0xff] }
 0x210   : > { %v3160_v7 = vshrl.u32 %v3069_v30, 16  ;;  %v3658_v17 = vadd.f32 %v3627_v8, %v3626_v20  ;;  %v2362_v50 = vpop.f32.mrf.mxu1  ;;  %v3163_v18 = vshll.u32 %v3069_v30, 16 }
 0x211   : > { %v2961_v41 = vpop.f32.mrf.mxu0  ;;  %v2763_v33 = vpop.f32.mrf.mxu3 }
 0x212   : > { %v3162_v55 = vrot.slane %v3160_v7, 7  ;;  %v2840_v47 = vadd.f32 %v2763_v33, %v2626_v14 }
 0x213   : > { %2401 = vmatmul.bf16.gmra.mxu1 %v6274_v36 }
 0x214   : > { %v2551_v6 = vpop.f32.mrf.mxu2  ;;  %v3165_v45 = vor.u32 %v3163_v18, %v3162_v55  ;;  %v3167_v22 = vrot.slane %v3162_v55, 4  ;;  %3000 = vmatmul.bf16.gmra.mxu0 %v6274_v36  ;;  %v3038_v12 = vadd.f32 %v2961_v41, %v2840_v47  ;;  %v3483_v18 = vld [vmem:[%s5655_s29 + $0xc] sm:$0xf]  ;;  %v6276_v47 = vld [vmem:[#allocation45_spill] sm:$0xff] }
 0x215   : > { %v2627_v2 = vadd.f32 %v2551_v6, %v2435_v29 }
 0x216   : > { %v3166_v16 = vsel %vm5776_vm4, %v3158_v31, %v3165_v45  ;;  %v3481_v35 = vsel %vm5783_vm5, %v3167_v22, %v3480_v61  ;;  %v3070_v52 = vpack.c.bf16 %v3038_v12, %v3038_v12  ;;  %v3589_v39 = vadd.f32 %v3588_v10, %v3038_v12  ;;  %v6277_v45 = vld [vmem:[#allocation10_spill] sm:$0xff] }
 0x217   : > { %v3628_v20 = vmul.f32 %v3038_v12, %v3038_v12  ;;  %3477 = vst [vmem:[%s5655_s29 + $0x4] sm:$0xf] %v3166_v16  ;;  %v2436_v61 = vadd.f32 %v2362_v50, %v6276_v47 }
 0x218   : > { %v3169_v14 = vshrl.u32 %v3070_v52, 16  ;;  %v2364_v30 = vpop.f32.mrf.mxu1  ;;  %3482 = vst [vmem:[%s5655_s29 + $0x8] sm:$0x1] %v3481_v35  ;;  %v3172_v33 = vshll.u32 %v3070_v52, 16 }
 0x219   : > { %2593 = vmatmul.bf16.gmra.mxu2 %v6275_v63  ;;  %v3659_v8 = vadd.f32 %v3658_v17, %v3628_v20  ;;  %v2963_v57 = vpop.f32.mrf.mxu0  ;;  %v2765_v7 = vpop.f32.mrf.mxu3  ;;  %v6278_v63 = vld [vmem:[#allocation5_spill] sm:$0xff] }
 0x21a   : > { %v3171_v41 = vrot.slane %v3169_v14, 7  ;;  %v2841_v55 = vadd.f32 %v2765_v7, %v2627_v2  ;;  %v3487_v14 = vld [vmem:[%s5655_s29 + $0x14] sm:$0x1] }
 0x21c   : > { %v2554_v10 = vpop.f32.mrf.mxu2  ;;  %v3174_v46 = vor.u32 %v3172_v33, %v3171_v41  ;;  %v3039_v32 = vadd.f32 %v2963_v57, %v2841_v55  ;;  %v2437_v57 = vadd.f32 %v2364_v30, %v6278_v63  ;;  %v6279_v33 = vld [vmem:[#allocation7_spill] sm:$0xff] }
 0x21d   : > { %v2628_v29 = vadd.f32 %v2554_v10, %v2436_v61 }
 0x21e   : > { %v3484_v6 = vsel %vm5751_vm0, %v3174_v46, %v3483_v18  ;;  %v3071_v36 = vpack.c.bf16 %v3039_v32, %v3039_v32  ;;  %v3590_v31 = vadd.f32 %v3589_v39, %v3039_v32  ;;  %v3629_v17 = vmul.f32 %v3039_v32, %v3039_v32  ;;  %2807 = vmatmul.bf16.gmra.mxu3 %v6277_v45 }
 0x21f   : > { %3485 = vst [vmem:[%s5655_s29 + $0xc] sm:$0xf] %v3484_v6  ;;  %v3175_v39 = vrot.slane %v3171_v41, 4  ;;  %v6280_v41 = vld [vmem:[#allocation12_spill] sm:$0xff] }
 0x220   : > { %v3177_v22 = vshrl.u32 %v3071_v36, 16  ;;  %v3660_v12 = vadd.f32 %v3659_v8, %v3629_v17  ;;  %v2367_v2 = vpop.f32.mrf.mxu1  ;;  %v3180_v52 = vshll.u32 %v3071_v36, 16 }
 0x221   : > { %v2966_v16 = vpop.f32.mrf.mxu0  ;;  %v2768_v35 = vpop.f32.mrf.mxu3 }
 0x222   : > { %v3179_v50 = vrot.slane %v3177_v22, 7  ;;  %v2842_v20 = vadd.f32 %v2768_v35, %v2628_v29 }
 0x223   : > { %2406 = vmatmul.bf16.gmra.mxu1 %v6279_v33 }
 0x224   : > { %v2556_v7 = vpop.f32.mrf.mxu2  ;;  %v3182_v55 = vor.u32 %v3180_v52, %v3179_v50  ;;  %v3184_v18 = vrot.slane %v3179_v50, 4  ;;  %3005 = vmatmul.bf16.gmra.mxu0 %v6279_v33  ;;  %v3040_v8 = vadd.f32 %v2966_v16, %v2842_v20  ;;  %v3490_v50 = vld [vmem:[%s5655_s29 + $0x18] sm:$0xf]  ;;  %v6281_v52 = vld [vmem:[#allocation46_spill] sm:$0xff] }
 0x225   : > { %v2629_v47 = vadd.f32 %v2556_v7, %v2437_v57  ;;  %v2438_v20 = vadd.f32 %v2367_v2, %v6281_v52 }
 0x226   : > { %v3183_v61 = vsel %vm5776_vm4, %v3175_v39, %v3182_v55  ;;  %v3488_v10 = vsel %vm5783_vm5, %v3184_v18, %v3487_v14  ;;  %v3072_v46 = vpack.c.bf16 %v3040_v8, %v3040_v8  ;;  %v3591_v32 = vadd.f32 %v3590_v31, %v3040_v8  ;;  %v6282_v55 = vld [vmem:[#allocation14_spill] sm:$0xff] }
 0x227   : > { %3486 = vst [vmem:[%s5655_s29 + $0x10] sm:$0xf] %v3183_v61  ;;  %v3630_v30 = vmul.f32 %v3040_v8, %v3040_v8 }
 0x228   : > { %3489 = vst [vmem:[%s5655_s29 + $0x14] sm:$0x1] %v3488_v10  ;;  %v3186_v29 = vshrl.u32 %v3072_v46, 16  ;;  %v2369_v6 = vpop.f32.mrf.mxu1  ;;  %v3189_v16 = vshll.u32 %v3072_v46, 16 }
 0x229   : > { %2598 = vmatmul.bf16.gmra.mxu2 %v6280_v41  ;;  %v3661_v36 = vadd.f32 %v3660_v12, %v3630_v30  ;;  %v2968_v17 = vpop.f32.mrf.mxu0  ;;  %v2770_v45 = vpop.f32.mrf.mxu3  ;;  %v6283_v41 = vld [vmem:[#allocation11_spill] sm:$0xff] }
 0x22a   : > { %v3188_v22 = vrot.slane %v3186_v29, 7  ;;  %v2843_v35 = vadd.f32 %v2770_v45, %v2629_v47  ;;  %v3494_v29 = vld [vmem:[%s5655_s29 + $0x20] sm:$0x1] }
 0x22c   : > { %v2559_v14 = vpop.f32.mrf.mxu2  ;;  %v3191_v63 = vor.u32 %v3189_v16, %v3188_v22  ;;  %v3041_v31 = vadd.f32 %v2968_v17, %v2843_v35  ;;  %v2439_v17 = vadd.f32 %v2369_v6, %v6283_v41  ;;  %v6284_v16 = vld [vmem:[#allocation13_spill] sm:$0xff] }
 0x22d   : > { %v2630_v57 = vadd.f32 %v2559_v14, %v2438_v20 }
 0x22e   : > { %v3491_v7 = vsel %vm5751_vm0, %v3191_v63, %v3490_v50  ;;  %v3073_v33 = vpack.c.bf16 %v3041_v31, %v3041_v31  ;;  %v3592_v39 = vadd.f32 %v3591_v32, %v3041_v31  ;;  %v3631_v12 = vmul.f32 %v3041_v31, %v3041_v31  ;;  %2812 = vmatmul.bf16.gmra.mxu3 %v6282_v55 }
 0x22f   : > { %3492 = vst [vmem:[%s5655_s29 + $0x18] sm:$0xf] %v3491_v7  ;;  %v3192_v32 = vrot.slane %v3188_v22, 4  ;;  %v6285_v22 = vld [vmem:[#allocation17_spill] sm:$0xff] }
 0x230   : > { %v3194_v18 = vshrl.u32 %v3073_v33, 16  ;;  %v3662_v8 = vadd.f32 %v3661_v36, %v3631_v12  ;;  %v2372_v47 = vpop.f32.mrf.mxu1  ;;  %v3197_v46 = vshll.u32 %v3073_v33, 16 }
 0x231   : > { %v2971_v61 = vpop.f32.mrf.mxu0  ;;  %v2773_v10 = vpop.f32.mrf.mxu3 }
 0x232   : > { %v3196_v2 = vrot.slane %v3194_v18, 7  ;;  %v2844_v30 = vadd.f32 %v2773_v10, %v2630_v57 }
 0x233   : > { %2411 = vmatmul.bf16.gmra.mxu1 %v6284_v16 }
 0x234   : > { %v2561_v45 = vpop.f32.mrf.mxu2  ;;  %v3199_v35 = vor.u32 %v3197_v46, %v3196_v2  ;;  %v3201_v50 = vrot.slane %v3196_v2, 4  ;;  %3010 = vmatmul.bf16.gmra.mxu0 %v6284_v16  ;;  %v3042_v36 = vadd.f32 %v2971_v61, %v2844_v30  ;;  %v3497_v2 = vld [vmem:[%s5655_s29 + $0x24] sm:$0xf]  ;;  %v6286_v46 = vld [vmem:[#allocation47_spill] sm:$0xff] }
 0x235   : > { %v2631_v52 = vadd.f32 %v2561_v45, %v2439_v17  ;;  %v2440_v30 = vadd.f32 %v2372_v47, %v6286_v46 }
 0x236   : > { %v3200_v20 = vsel %vm5776_vm4, %v3192_v32, %v3199_v35  ;;  %v3495_v14 = vsel %vm5783_vm5, %v3201_v50, %v3494_v29  ;;  %v3074_v63 = vpack.c.bf16 %v3042_v36, %v3042_v36  ;;  %v3593_v31 = vadd.f32 %v3592_v39, %v3042_v36  ;;  %v6287_v35 = vld [vmem:[#allocation21_spill] sm:$0xff] }
 0x237   : > { %3493 = vst [vmem:[%s5655_s29 + $0x1c] sm:$0xf] %v3200_v20  ;;  %v3632_v6 = vmul.f32 %v3042_v36, %v3042_v36 }
 0x238   : > { %3496 = vst [vmem:[%s5655_s29 + $0x20] sm:$0x1] %v3495_v14  ;;  %v3203_v57 = vshrl.u32 %v3074_v63, 16  ;;  %v2374_v7 = vpop.f32.mrf.mxu1  ;;  %v3206_v61 = vshll.u32 %v3074_v63, 16 }
 0x239   : > { %2603 = vmatmul.bf16.gmra.mxu2 %v6285_v22  ;;  %v3663_v33 = vadd.f32 %v3662_v8, %v3632_v6  ;;  %v2973_v12 = vpop.f32.mrf.mxu0  ;;  %v2775_v55 = vpop.f32.mrf.mxu3  ;;  %v6288_v22 = vld [vmem:[#allocation16_spill] sm:$0xff] }
 0x23a   : > { %v3205_v18 = vrot.slane %v3203_v57, 7  ;;  %v2845_v10 = vadd.f32 %v2775_v55, %v2631_v52  ;;  %v3501_v57 = vld [vmem:[%s5655_s29 + $0x2c] sm:$0x1] }
 0x23c   : > { %v2564_v29 = vpop.f32.mrf.mxu2  ;;  %v3208_v41 = vor.u32 %v3206_v61, %v3205_v18  ;;  %v3043_v39 = vadd.f32 %v2973_v12, %v2845_v10  ;;  %v2441_v12 = vadd.f32 %v2374_v7, %v6288_v22  ;;  %v6289_v61 = vld [vmem:[#allocation18_spill] sm:$0xff] }
 0x23d   : > { %v2632_v17 = vadd.f32 %v2564_v29, %v2440_v30 }
 0x23e   : > { %v3498_v45 = vsel %vm5751_vm0, %v3208_v41, %v3497_v2  ;;  %v3075_v16 = vpack.c.bf16 %v3043_v39, %v3043_v39  ;;  %v3594_v32 = vadd.f32 %v3593_v31, %v3043_v39  ;;  %v3633_v8 = vmul.f32 %v3043_v39, %v3043_v39  ;;  %2817 = vmatmul.bf16.gmra.mxu3 %v6287_v35 }
 0x23f   : > { %3499 = vst [vmem:[%s5655_s29 + $0x24] sm:$0xf] %v3498_v45  ;;  %v3209_v31 = vrot.slane %v3205_v18, 4 }
 0x240   : > { %v3211_v50 = vshrl.u32 %v3075_v16, 16  ;;  %v3664_v36 = vadd.f32 %v3663_v33, %v3633_v8  ;;  %v2377_v52 = vpop.f32.mrf.mxu1  ;;  %v3214_v63 = vshll.u32 %v3075_v16, 16 }
 0x241   : > { %v2976_v20 = vpop.f32.mrf.mxu0  ;;  %v2778_v14 = vpop.f32.mrf.mxu3 }
 0x242   : > { %v3213_v47 = vrot.slane %v3211_v50, 7  ;;  %v2846_v6 = vadd.f32 %v2778_v14, %v2632_v17  ;;  %v3866_v14 = vld [vmem:[%s4524_s28 + $0xb4] sm:$0xf] }
 0x243   : > { %2416 = vmatmul.bf16.gmra.mxu1 %v6289_v61 }
 0x244   : > { %v2566_v55 = vpop.f32.mrf.mxu2  ;;  %v3216_v10 = vor.u32 %v3214_v63, %v3213_v47  ;;  %v3218_v2 = vrot.slane %v3213_v47, 4  ;;  %3015 = vmatmul.bf16.gmra.mxu0 %v6289_v61  ;;  %v3044_v33 = vadd.f32 %v2976_v20, %v2846_v6  ;;  %v3504_v47 = vld [vmem:[%s5655_s29 + $0x30] sm:$0xf] }
 0x245   : > { %v2633_v46 = vadd.f32 %v2566_v55, %v2441_v12  ;;  %v6290_v63 = vld [vmem:[#allocation48_spill] sm:$0xff]  ;;  %v2269_v55 = vrot.slane %v5529_v27, 5 }
 0x246   : > { %v3217_v30 = vsel %vm5776_vm4, %v3209_v31, %v3216_v10  ;;  %v3502_v29 = vsel %vm5783_vm5, %v3218_v2, %v3501_v57  ;;  %v3076_v41 = vpack.c.bf16 %v3044_v33, %v3044_v33  ;;  %v3595_v7 = vadd.f32 %v3594_v32, %v3044_v33 }
 0x247   : > { %3500 = vst [vmem:[%s5655_s29 + $0x28] sm:$0xf] %v3217_v30  ;;  %v3634_v39 = vmul.f32 %v3044_v33, %v3044_v33  ;;  %v2442_v6 = vadd.f32 %v2377_v52, %v6290_v63 }
 0x248   : > { %3503 = vst [vmem:[%s5655_s29 + $0x2c] sm:$0x1] %v3502_v29  ;;  %v3220_v18 = vshrl.u32 %v3076_v41, 16  ;;  %v2379_v17 = vpop.f32.mrf.mxu1  ;;  %v3223_v50 = vshll.u32 %v3076_v41, 16 }
 0x249   : > { %2608 = vmatmul.bf16.gmra.mxu2 %v5541_v44  ;;  %v3665_v45 = vadd.f32 %v3664_v36, %v3634_v39  ;;  %v2978_v16 = vpop.f32.mrf.mxu0  ;;  %v2780_v8 = vpop.f32.mrf.mxu3  ;;  %v3867_v44 = vld [vmem:[%s4524_s28 + $0xb8] sm:$0xf]  ;;  %v5864_v36 = vsel %vm4609_vm10, %v3866_v14, 0  ;;  %v4109_v39 = vrot.slane %v5525_v5, 9 }
 0x24a   : > { %v3222_v35 = vrot.slane %v3220_v18, 7  ;;  %v2847_v20 = vadd.f32 %v2780_v8, %v2633_v46  ;;  %v5872_v27 = vsel %vm4609_vm10, %v3867_v44, 0  ;;  %v2657_v18 = vshrl.u32 %v5864_v36, 16  ;;  %v3508_v14 = vld [vmem:[%s5655_s29 + $0x38] sm:$0x1] }
 0x24b   : > { %v2666_v63 = vshll.u32 %v5872_v27, 16  ;;  %v2670_v5 = vshrl.u32 %v5872_v27, 16 }
 0x24c   : > { %v2569_v32 = vpop.f32.mrf.mxu2  ;;  %v3225_v57 = vor.u32 %v3223_v50, %v3222_v35  ;;  %v3045_v22 = vadd.f32 %v2978_v16, %v2847_v20  ;;  %v2271_v50 = vrot.slane %v2269_v55, 4  ;;  %v3868_v20 = vld [vmem:[%s4524_s28 + $0xbc] sm:$0x1]  ;;  %v2659_v44 = vrot.slane %v2657_v18, 4 }
 0x24d   : > { %v2634_v12 = vadd.f32 %v2569_v32, %v2442_v6  ;;  %v3226_v6 = vrot.slane %v3222_v35, 4 }
 0x24e   : > { %v3505_v31 = vsel %vm5751_vm0, %v3225_v57, %v3504_v47  ;;  %v3077_v10 = vpack.c.bf16 %v3045_v22, %v3045_v22  ;;  %v3596_v2 = vadd.f32 %v3595_v7, %v3045_v22  ;;  %v3635_v33 = vmul.f32 %v3045_v22, %v3045_v22  ;;  %2822 = vmatmul.bf16.gmra.mxu3 %v5086_v4 }
 0x24f   : > { %3506 = vst [vmem:[%s5655_s29 + $0x30] sm:$0xf] %v3505_v31  ;;  %v2443_v4 = vadd.f32 %v2379_v17, %v5544_v43  ;;  %v2660_v47 = vshll.u32 %v5864_v36, 16  ;;  %v2272_v43 = vrot.slane %v5553_v54, 5  ;;  %v5887_v17 = vsel %vm4609_vm10, %v3868_v20, 0 }
 0x250   : > { %v3228_v52 = vshrl.u32 %v3077_v10, 16  ;;  %v3666_v46 = vadd.f32 %v3665_v45, %v3635_v33  ;;  %v2382_v30 = vpop.f32.mrf.mxu1  ;;  %v3231_v16 = vshll.u32 %v3077_v10, 16  ;;  %v2672_v54 = vrot.slane %v2670_v5, 4 }
 0x251   : > { %v2981_v29 = vpop.f32.mrf.mxu0  ;;  %v2783_v41 = vpop.f32.mrf.mxu3  ;;  %v2676_v20 = vshll.u32 %v5887_v17, 16 }
 0x252   : > { %v3230_v7 = vrot.slane %v3228_v52, 7  ;;  %v2848_v8 = vadd.f32 %v2783_v41, %v2634_v12 }
 0x253   : > { %2421 = vmatmul.bf16.gmra.mxu1 %v5559_v28 }
 0x254   : > { %v2571_v45 = vpop.f32.mrf.mxu2  ;;  %v3233_v32 = vor.u32 %v3231_v16, %v3230_v7  ;;  %v3235_v57 = vrot.slane %v3230_v7, 4  ;;  %3020 = vmatmul.bf16.gmra.mxu0 %v5559_v28  ;;  %v3046_v22 = vadd.f32 %v2981_v29, %v2848_v8  ;;  %v2662_v28 = vrot.slane %v2660_v47, 5  ;;  %v3511_v47 = vld [vmem:[%s5655_s29 + $0x3c] sm:$0xf] }
 0x255   : > { %v2635_v12 = vadd.f32 %v2571_v45, %v2443_v4  ;;  %v5894_v29 = vrot.slane %v2666_v63, 5  ;;  %v2270_v8 = vsel %vm5088_vm13, %v4109_v39, %v2269_v55  ;;  %v2444_v63 = vadd.f32 %v2382_v30, %v5561_v49 }
 0x256   : > { %v3234_v31 = vsel %vm5776_vm4, %v3226_v6, %v3233_v32  ;;  %v3509_v35 = vsel %vm5783_vm5, %v3235_v57, %v3508_v14  ;;  %v3078_v10 = vpack.c.bf16 %v3046_v22, %v3046_v22  ;;  %v3597_v33 = vadd.f32 %v3596_v2, %v3046_v22 }
 0x257   : > { %3507 = vst [vmem:[%s5655_s29 + $0x34] sm:$0xf] %v3234_v31  ;;  %v3636_v52 = vmul.f32 %v3046_v22, %v3046_v22  ;;  %v2273_v2 = vsel %vm5088_vm13, %v2271_v50, %v2272_v43  ;;  %v2663_v5 = vor.u32 %v2662_v28, %v2659_v44  ;;  %v2291_v57 = vunpack.c.l.b16 %v2270_v8 }
 0x258   : > { %3510 = vst [vmem:[%s5655_s29 + $0x38] sm:$0x1] %v3509_v35  ;;  %v3237_v61 = vshrl.u32 %v3078_v10, 16  ;;  %v2384_v41 = vpop.f32.mrf.mxu1  ;;  %v3240_v4 = vshll.u32 %v3078_v10, 16  ;;  %v2292_v55 = vunpack.c.l.b16 %v2273_v2  ;;  %v2678_v22 = vrot.slane %v2676_v20, 5 }
 0x259   : > { %2613 = vmatmul.bf16.gmra.mxu2 %v5571_v56  ;;  %v3667_v18 = vadd.f32 %v3666_v46, %v3636_v52  ;;  %v2983_v7 = vpop.f32.mrf.mxu0  ;;  %v2785_v16 = vpop.f32.mrf.mxu3  ;;  %v2673_v46 = vor.u32 %v2672_v54, %v5894_v29  ;;  %v2483_v49 = vunpack.c.l.b16 %v5864_v36  ;;  %v2484_v30 = vunpack.c.l.b16 %v5872_v27  ;;  %v3515_v20 = vld [vmem:[%s5655_s29 + $0x44] sm:$0x1] }
 0x25a   : > { %v3239_v14 = vrot.slane %v3237_v61, 7  ;;  %v2849_v45 = vadd.f32 %v2785_v16, %v2635_v12  ;;  %v2664_v44 = vrot.slane %v2663_v5, 4  ;;  %v2293_v28 = vpack.c.b16 %v2292_v55, %v2291_v57 }
 0x25b   : > { %v2674_v35 = vrot.slane %v2673_v46, 4  ;;  %v2873_v16 = vrot.slane %v5872_v27, 5 }
 0x25c   : > { %v2574_v56 = vpop.f32.mrf.mxu2  ;;  %v3242_v6 = vor.u32 %v3240_v4, %v3239_v14  ;;  %v3047_v32 = vadd.f32 %v2983_v7, %v2849_v45  ;;  %v2485_v45 = vpack.c.b16 %v2484_v30, %v2483_v49 }
 0x25d   : > { %v2636_v39 = vadd.f32 %v2574_v56, %v2444_v63  ;;  %v3243_v63 = vrot.slane %v3239_v14, 4 }
 0x25e   : > { %v3512_v50 = vsel %vm5751_vm0, %v3242_v6, %v3511_v47  ;;  %v3079_v43 = vpack.c.bf16 %v3047_v32, %v3047_v32  ;;  %v3598_v31 = vadd.f32 %v3597_v33, %v3047_v32  ;;  %v3637_v12 = vmul.f32 %v3047_v32, %v3047_v32  ;;  %2827 = vmatmul.bf16.gmra.mxu3 %v5576_v37 }
 0x25f   : > { %3513 = vst [vmem:[%s5655_s29 + $0x3c] sm:$0xf] %v3512_v50  ;;  %v2445_v37 = vadd.f32 %v2384_v41, %v5573_v19  ;;  %v2679_v47 = vsel %vm4581_vm8, %v2674_v35, %v2678_v22  ;;  %v4254_v19 = vrot.slane %v5864_v36, 9  ;;  %v2875_v41 = vrot.slane %v2873_v16, 4  ;;  %v3518_v35 = vld [vmem:[%s5655_s29 + $0x48] sm:$0xf] }
 0x260   : > { %v3245_v10 = vshrl.u32 %v3079_v43, 16  ;;  %v3668_v52 = vadd.f32 %v3667_v18, %v3637_v12  ;;  %v2387_v54 = vpop.f32.mrf.mxu1  ;;  %v3248_v8 = vshll.u32 %v3079_v43, 16  ;;  %v2669_v18 = vsel %vm4581_vm8, %v2664_v44, %v5894_v29 }
 0x261   : > { %v2986_v61 = vpop.f32.mrf.mxu0  ;;  %v2788_v7 = vpop.f32.mrf.mxu3  ;;  %v2876_v6 = vrot.slane %v5887_v17, 5  ;;  %v2697_v55 = vunpack.c.l.b16 %v2669_v18  ;;  %v2874_v12 = vsel %vm5088_vm13, %v4254_v19, %v2873_v16 }
 0x262   : > { %v3247_v33 = vrot.slane %v3245_v10, 7  ;;  %v2850_v2 = vadd.f32 %v2788_v7, %v2636_v39  ;;  %v2698_v39 = vunpack.c.l.b16 %v2679_v47  ;;  %v2446_v10 = vadd.f32 %v2387_v54, %v5581_v59 }
 0x263   : > { %2426 = vmatmul.bf16.gmra.mxu1 %v2293_v28  ;;  %v2877_v49 = vsel %vm5088_vm13, %v2875_v41, %v2876_v6 }
 0x264   : > { %v2576_v4 = vpop.f32.mrf.mxu2  ;;  %v3250_v56 = vor.u32 %v3248_v8, %v3247_v33  ;;  %v3252_v27 = vrot.slane %v3247_v33, 4  ;;  %3025 = vmatmul.bf16.gmra.mxu0 %v2293_v28  ;;  %v3048_v5 = vadd.f32 %v2986_v61, %v2850_v2  ;;  %v2699_v28 = vpack.c.b16 %v2698_v39, %v2697_v55 }
 0x265   : > { %v2637_v46 = vadd.f32 %v2576_v4, %v2445_v37  ;;  %v2896_v8 = vunpack.c.l.b16 %v2877_v49 }
 0x266   : > { %v3251_v32 = vsel %vm5776_vm4, %v3243_v63, %v3250_v56  ;;  %v3516_v29 = vsel %vm5783_vm5, %v3252_v27, %v3515_v20  ;;  %v3080_v42 = vpack.c.bf16 %v3048_v5, %v3048_v5  ;;  %v3599_v57 = vadd.f32 %v3598_v31, %v3048_v5 }
 0x267   : > { %3514 = vst [vmem:[%s5655_s29 + $0x40] sm:$0xf] %v3251_v32  ;;  %v3638_v14 = vmul.f32 %v3048_v5, %v3048_v5  ;;  %v3522_v5 = vld [vmem:[%s5655_s29 + $0x50] sm:$0x1] }
 0x268   : > { %3517 = vst [vmem:[%s5655_s29 + $0x44] sm:$0x1] %v3516_v29  ;;  %v3254_v22 = vshrl.u32 %v3080_v42, 16  ;;  %v2389_v36 = vpop.f32.mrf.mxu1  ;;  %v3257_v31 = vshll.u32 %v3080_v42, 16 }
 0x269   : > { %2618 = vmatmul.bf16.gmra.mxu2 %v2485_v45  ;;  %v3669_v50 = vadd.f32 %v3668_v52, %v3638_v14  ;;  %v2988_v43 = vpop.f32.mrf.mxu0  ;;  %v2790_v17 = vpop.f32.mrf.mxu3  ;;  %v2895_v52 = vunpack.c.l.b16 %v2874_v12 }
 0x26a   : > { %v3256_v30 = vrot.slane %v3254_v22, 7  ;;  %v2851_v44 = vadd.f32 %v2790_v17, %v2637_v46  ;;  %v2447_v46 = vadd.f32 %v2389_v36, %v5585_v11 }
 0x26b   : > { %v2897_v18 = vpack.c.b16 %v2896_v8, %v2895_v52 }
 0x26c   : > { %v2579_v61 = vpop.f32.mrf.mxu2  ;;  %v3259_v7 = vor.u32 %v3257_v31, %v3256_v30  ;;  %v3049_v33 = vadd.f32 %v2988_v43, %v2851_v44  ;;  %v3260_v41 = vrot.slane %v3256_v30, 4  ;;  %v3525_v31 = vld [vmem:[%s5655_s29 + $0x54] sm:$0xf] }
 0x26d   : > { %v2638_v2 = vadd.f32 %v2579_v61, %v2446_v10 }
 0x26e   : > { %v3519_v16 = vsel %vm5751_vm0, %v3259_v7, %v3518_v35  ;;  %v3081_v48 = vpack.c.bf16 %v3049_v33, %v3049_v33  ;;  %v3600_v20 = vadd.f32 %v3599_v57, %v3049_v33  ;;  %v3639_v37 = vmul.f32 %v3049_v33, %v3049_v33  ;;  %2832 = vmatmul.bf16.gmra.mxu3 %v2699_v28 }
 0x26f   : > { %3520 = vst [vmem:[%s5655_s29 + $0x48] sm:$0xf] %v3519_v16 }
 0x270   : > { %v3262_v4 = vshrl.u32 %v3081_v48, 16  ;;  %v3670_v45 = vadd.f32 %v3669_v50, %v3639_v37  ;;  %v2392_v59 = vpop.f32.mrf.mxu1  ;;  %v3265_v56 = vshll.u32 %v3081_v48, 16 }
 0x271   : > { %v2991_v54 = vpop.f32.mrf.mxu0  ;;  %v2793_v47 = vpop.f32.mrf.mxu3  ;;  %v2448_v44 = vadd.f32 %v2392_v59, %v5591_v53 }
 0x272   : > { %v3264_v63 = vrot.slane %v3262_v4, 7  ;;  %v2852_v27 = vadd.f32 %v2793_v47, %v2638_v2 }
 0x274   : > { %v2581_v19 = vpop.f32.mrf.mxu2  ;;  %v3267_v6 = vor.u32 %v3265_v56, %v3264_v63  ;;  %v3269_v32 = vrot.slane %v3264_v63, 4  ;;  %3030 = vmatmul.bf16.gmra.mxu0 %v2897_v18  ;;  %v3050_v29 = vadd.f32 %v2991_v54, %v2852_v27  ;;  %v3529_v18 = vld [vmem:[%s5655_s29 + $0x5c] sm:$0x1] }
 0x275   : > { %v2639_v42 = vadd.f32 %v2581_v19, %v2447_v46 }
 0x276   : > { %v3268_v57 = vsel %vm5776_vm4, %v3260_v41, %v3267_v6  ;;  %v3523_v14 = vsel %vm5783_vm5, %v3269_v32, %v3522_v5  ;;  %v3082_v55 = vpack.c.bf16 %v3050_v29, %v3050_v29  ;;  %v3601_v39 = vadd.f32 %v3600_v20, %v3050_v29 }
 0x277   : > { %3521 = vst [vmem:[%s5655_s29 + $0x4c] sm:$0xf] %v3268_v57  ;;  %v3640_v22 = vmul.f32 %v3050_v29, %v3050_v29 }
 0x278   : > { %3524 = vst [vmem:[%s5655_s29 + $0x50] sm:$0x1] %v3523_v14  ;;  %v3271_v11 = vshrl.u32 %v3082_v55, 16  ;;  %v2394_v36 = vpop.f32.mrf.mxu1  ;;  %v3274_v49 = vshll.u32 %v3082_v55, 16 }
 0x279   : > { %v3671_v50 = vadd.f32 %v3670_v45, %v3640_v22  ;;  %v2993_v43 = vpop.f32.mrf.mxu0  ;;  %v2795_v17 = vpop.f32.mrf.mxu3  ;;  %v2449_v59 = vadd.f32 %v2394_v36, %v5595_v40 }
 0x27a   : > { %v3273_v12 = vrot.slane %v3271_v11, 7  ;;  %v2853_v30 = vadd.f32 %v2795_v17, %v2639_v42  ;;  %v3532_v11 = vld [vmem:[%s5655_s29 + $0x60] sm:$0xf] }
 0x27c   : > { %v2584_v35 = vpop.f32.mrf.mxu2  ;;  %v3276_v10 = vor.u32 %v3274_v49, %v3273_v12  ;;  %v3051_v28 = vadd.f32 %v2993_v43, %v2853_v30  ;;  %v3277_v47 = vrot.slane %v3273_v12, 4 }
 0x27d   : > { %v2640_v61 = vadd.f32 %v2584_v35, %v2448_v44 }
 0x27e   : > { %v3526_v7 = vsel %vm5751_vm0, %v3276_v10, %v3525_v31  ;;  %v3083_v33 = vpack.c.bf16 %v3051_v28, %v3051_v28  ;;  %v3602_v52 = vadd.f32 %v3601_v39, %v3051_v28  ;;  %v3641_v8 = vmul.f32 %v3051_v28, %v3051_v28 }
 0x27f   : > { %3527 = vst [vmem:[%s5655_s29 + $0x54] sm:$0xf] %v3526_v7 }
 0x280   : > { %v3279_v2 = vshrl.u32 %v3083_v33, 16  ;;  %v3672_v16 = vadd.f32 %v3671_v50, %v3641_v8  ;;  %v2397_v48 = vpop.f32.mrf.mxu1  ;;  %v3282_v53 = vshll.u32 %v3083_v33, 16  ;;  %v3536_v8 = vld [vmem:[%s5655_s29 + $0x68] sm:$0x1] }
 0x281   : > { %v2996_v20 = vpop.f32.mrf.mxu0  ;;  %v2798_v37 = vpop.f32.mrf.mxu3  ;;  %v2450_v17 = vadd.f32 %v2397_v48, %v5601_v60 }
 0x282   : > { %v3281_v4 = vrot.slane %v3279_v2, 7  ;;  %v2854_v45 = vadd.f32 %v2798_v37, %v2640_v61 }
 0x284   : > { %v2586_v54 = vpop.f32.mrf.mxu2  ;;  %v3284_v63 = vor.u32 %v3282_v53, %v3281_v4  ;;  %v3286_v56 = vrot.slane %v3281_v4, 4  ;;  %v3052_v27 = vadd.f32 %v2996_v20, %v2854_v45 }
 0x285   : > { %v2641_v5 = vadd.f32 %v2586_v54, %v2449_v59 }
 0x286   : > { %v3285_v46 = vsel %vm5776_vm4, %v3277_v47, %v3284_v63  ;;  %v3530_v19 = vsel %vm5783_vm5, %v3286_v56, %v3529_v18  ;;  %v3084_v41 = vpack.c.bf16 %v3052_v27, %v3052_v27  ;;  %v3603_v6 = vadd.f32 %v3602_v52, %v3052_v27 }
 0x287   : > { %3528 = vst [vmem:[%s5655_s29 + $0x58] sm:$0xf] %v3285_v46  ;;  %v3642_v32 = vmul.f32 %v3052_v27, %v3052_v27 }
 0x288   : > { %3531 = vst [vmem:[%s5655_s29 + $0x5c] sm:$0x1] %v3530_v19  ;;  %v3288_v29 = vshrl.u32 %v3084_v41, 16  ;;  %v2399_v40 = vpop.f32.mrf.mxu1  ;;  %v3291_v39 = vshll.u32 %v3084_v41, 16 }
 0x289   : > { %v3673_v42 = vadd.f32 %v3672_v16, %v3642_v32  ;;  %v2998_v57 = vpop.f32.mrf.mxu0  ;;  %v2800_v14 = vpop.f32.mrf.mxu3  ;;  %v2451_v4 = vadd.f32 %v2399_v40, %v5605_v15  ;;  %v3539_v32 = vld [vmem:[%s5655_s29 + $0x6c] sm:$0xf] }
 0x28a   : > { %v3290_v55 = vrot.slane %v3288_v29, 7  ;;  %v2855_v22 = vadd.f32 %v2800_v14, %v2641_v5 }
 0x28c   : > { %v2589_v36 = vpop.f32.mrf.mxu2  ;;  %v3293_v50 = vor.u32 %v3291_v39, %v3290_v55  ;;  %v3053_v43 = vadd.f32 %v2998_v57, %v2855_v22  ;;  %v3294_v16 = vrot.slane %v3290_v55, 4 }
 0x28d   : > { %v2642_v44 = vadd.f32 %v2589_v36, %v2450_v17 }
 0x28e   : > { %v3533_v12 = vsel %vm5751_vm0, %v3293_v50, %v3532_v11  ;;  %v3085_v49 = vpack.c.bf16 %v3053_v43, %v3053_v43  ;;  %v3604_v30 = vadd.f32 %v3603_v6, %v3053_v43  ;;  %v3643_v31 = vmul.f32 %v3053_v43, %v3053_v43 }
 0x28f   : > { %3534 = vst [vmem:[%s5655_s29 + $0x60] sm:$0xf] %v3533_v12 }
 0x290   : > { %v3296_v35 = vshrl.u32 %v3085_v49, 16  ;;  %v3674_v10 = vadd.f32 %v3673_v42, %v3643_v31  ;;  %v2402_v28 = vpop.f32.mrf.mxu1  ;;  %v3299_v33 = vshll.u32 %v3085_v49, 16  ;;  %v3543_v31 = vld [vmem:[%s5655_s29 + $0x74] sm:$0x1] }
 0x291   : > { %v3001_v61 = vpop.f32.mrf.mxu0  ;;  %v2803_v52 = vpop.f32.mrf.mxu3  ;;  %v2452_v29 = vadd.f32 %v2402_v28, %v5611_v3 }
 0x292   : > { %v3298_v7 = vrot.slane %v3296_v35, 7  ;;  %v2856_v2 = vadd.f32 %v2803_v52, %v2642_v44 }
 0x294   : > { %v2591_v60 = vpop.f32.mrf.mxu2  ;;  %v3301_v48 = vor.u32 %v3299_v33, %v3298_v7  ;;  %v3303_v20 = vrot.slane %v3298_v7, 4  ;;  %v3054_v37 = vadd.f32 %v3001_v61, %v2856_v2 }
 0x295   : > { %v2643_v47 = vadd.f32 %v2591_v60, %v2451_v4 }
 0x296   : > { %v3302_v53 = vsel %vm5776_vm4, %v3294_v16, %v3301_v48  ;;  %v3537_v45 = vsel %vm5783_vm5, %v3303_v20, %v3536_v8  ;;  %v3086_v18 = vpack.c.bf16 %v3054_v37, %v3054_v37  ;;  %v3605_v59 = vadd.f32 %v3604_v30, %v3054_v37 }
 0x297   : > { %3535 = vst [vmem:[%s5655_s29 + $0x64] sm:$0xf] %v3302_v53  ;;  %v3644_v54 = vmul.f32 %v3054_v37, %v3054_v37 }
 0x298   : > { %3538 = vst [vmem:[%s5655_s29 + $0x68] sm:$0x1] %v3537_v45  ;;  %v2404_v63 = vpop.f32.mrf.mxu1  ;;  %v3305_v56 = vshrl.u32 %v3086_v18, 16  ;;  %v3308_v19 = vshll.u32 %v3086_v18, 16 }
 0x299   : > { %v3675_v27 = vadd.f32 %v3674_v10, %v3644_v54  ;;  %v3003_v5 = vpop.f32.mrf.mxu0  ;;  %v2805_v46 = vpop.f32.mrf.mxu3  ;;  %v2453_v44 = vadd.f32 %v2404_v63, %v5615_v21 }
 0x29a   : > { %v3307_v15 = vrot.slane %v3305_v56, 7  ;;  %v2857_v41 = vadd.f32 %v2805_v46, %v2643_v47 }
 0x29c   : > { %v2594_v6 = vpop.f32.mrf.mxu2  ;;  %v3310_v40 = vor.u32 %v3308_v19, %v3307_v15  ;;  %v3055_v42 = vadd.f32 %v3003_v5, %v2857_v41  ;;  %v3311_v35 = vrot.slane %v3307_v15, 4 }
 0x29d   : > { %v2644_v57 = vadd.f32 %v2594_v6, %v2452_v29 }
 0x29e   : > { %v3540_v14 = vsel %vm5751_vm0, %v3310_v40, %v3539_v32  ;;  %v3087_v55 = vpack.c.bf16 %v3055_v42, %v3055_v42  ;;  %v3606_v39 = vadd.f32 %v3605_v59, %v3055_v42  ;;  %v3645_v22 = vmul.f32 %v3055_v42, %v3055_v42  ;;  %v3546_v59 = vld [vmem:[%s5655_s29 + $0x78] sm:$0xf] }
 0x29f   : > { %3541 = vst [vmem:[%s5655_s29 + $0x6c] sm:$0xf] %v3540_v14  ;;  %v3550_v14 = vld [vmem:[%s5655_s29 + $0x80] sm:$0x1] }
 0x2a0   : > { %v2407_v11 = vpop.f32.mrf.mxu1  ;;  %v3313_v36 = vshrl.u32 %v3087_v55, 16  ;;  %v3676_v50 = vadd.f32 %v3675_v27, %v3645_v22  ;;  %v3316_v49 = vshll.u32 %v3087_v55, 16 }
 0x2a1   : > { %v3006_v43 = vpop.f32.mrf.mxu0  ;;  %v2808_v17 = vpop.f32.mrf.mxu3  ;;  %v2454_v54 = vadd.f32 %v2407_v11, %v5621_v26 }
 0x2a2   : > { %v3315_v12 = vrot.slane %v3313_v36, 7  ;;  %v2858_v3 = vadd.f32 %v2808_v17, %v2644_v57 }
 0x2a4   : > { %v2596_v30 = vpop.f32.mrf.mxu2  ;;  %v3318_v10 = vor.u32 %v3316_v49, %v3315_v12  ;;  %v3320_v28 = vrot.slane %v3315_v12, 4  ;;  %v3056_v61 = vadd.f32 %v3006_v43, %v2858_v3 }
 0x2a5   : > { %v2645_v7 = vadd.f32 %v2596_v30, %v2453_v44 }
 0x2a6   : > { %v3319_v33 = vsel %vm5776_vm4, %v3311_v35, %v3318_v10  ;;  %v3544_v52 = vsel %vm5783_vm5, %v3320_v28, %v3543_v31  ;;  %v3088_v8 = vpack.c.bf16 %v3056_v61, %v3056_v61  ;;  %v3607_v2 = vadd.f32 %v3606_v39, %v3056_v61 }
 0x2a7   : > { %3542 = vst [vmem:[%s5655_s29 + $0x70] sm:$0xf] %v3319_v33  ;;  %v3646_v60 = vmul.f32 %v3056_v61, %v3056_v61  ;;  %v3553_v33 = vld [vmem:[%s5655_s29 + $0x84] sm:$0xf] }
 0x2a8   : > { %v2409_v16 = vpop.f32.mrf.mxu1  ;;  %3545 = vst [vmem:[%s5655_s29 + $0x74] sm:$0x1] %v3544_v52  ;;  %v3322_v48 = vshrl.u32 %v3088_v8, 16  ;;  %v3325_v53 = vshll.u32 %v3088_v8, 16 }
 0x2a9   : > { %v3008_v21 = vpop.f32.mrf.mxu0  ;;  %v3677_v20 = vadd.f32 %v3676_v50, %v3646_v60  ;;  %v2810_v37 = vpop.f32.mrf.mxu3  ;;  %v2455_v55 = vadd.f32 %v2409_v16, %v5625_v0 }
 0x2aa   : > { %v3324_v4 = vrot.slane %v3322_v48, 7  ;;  %v2859_v45 = vadd.f32 %v2810_v37, %v2645_v7 }
 0x2ac   : > { %v2599_v18 = vpop.f32.mrf.mxu2  ;;  %v3327_v47 = vor.u32 %v3325_v53, %v3324_v4  ;;  %v3057_v63 = vadd.f32 %v3008_v21, %v2859_v45  ;;  %v3328_v39 = vrot.slane %v3324_v4, 4 }
 0x2ad   : > { %v2646_v56 = vadd.f32 %v2599_v18, %v2454_v54 }
 0x2ae   : > { %v3547_v27 = vsel %vm5751_vm0, %v3327_v47, %v3546_v59  ;;  %v3089_v5 = vpack.c.bf16 %v3057_v63, %v3057_v63  ;;  %v3608_v46 = vadd.f32 %v3607_v2, %v3057_v63  ;;  %v3647_v15 = vmul.f32 %v3057_v63, %v3057_v63  ;;  %v3557_v63 = vld [vmem:[%s5655_s29 + $0x8c] sm:$0x1] }
 0x2af   : > { %3548 = vst [vmem:[%s5655_s29 + $0x78] sm:$0xf] %v3547_v27 }
 0x2b0   : > { %v2412_v19 = vpop.f32.mrf.mxu1  ;;  %v3330_v41 = vshrl.u32 %v3089_v5, 16  ;;  %v3678_v6 = vadd.f32 %v3677_v20, %v3647_v15  ;;  %v3333_v42 = vshll.u32 %v3089_v5, 16 }
 0x2b1   : > { %v3011_v32 = vpop.f32.mrf.mxu0  ;;  %v2813_v29 = vpop.f32.mrf.mxu3  ;;  %v2456_v52 = vadd.f32 %v2412_v19, %v5631_v51 }
 0x2b2   : > { %v3332_v40 = vrot.slane %v3330_v41, 7  ;;  %v2860_v26 = vadd.f32 %v2813_v29, %v2646_v56 }
 0x2b4   : > { %v2601_v57 = vpop.f32.mrf.mxu2  ;;  %v3335_v22 = vor.u32 %v3333_v42, %v3332_v40  ;;  %v3337_v11 = vrot.slane %v3332_v40, 4  ;;  %v3058_v36 = vadd.f32 %v3011_v32, %v2860_v26 }
 0x2b5   : > { %v2647_v50 = vadd.f32 %v2601_v57, %v2455_v55 }
 0x2b6   : > { %v3336_v43 = vsel %vm5776_vm4, %v3328_v39, %v3335_v22  ;;  %v3551_v17 = vsel %vm5783_vm5, %v3337_v11, %v3550_v14  ;;  %v3090_v12 = vpack.c.bf16 %v3058_v36, %v3058_v36  ;;  %v3609_v49 = vadd.f32 %v3608_v46, %v3058_v36 }
 0x2b7   : > { %3549 = vst [vmem:[%s5655_s29 + $0x7c] sm:$0xf] %v3336_v43  ;;  %v3648_v3 = vmul.f32 %v3058_v36, %v3058_v36  ;;  %v3560_v36 = vld [vmem:[%s5655_s29 + $0x90] sm:$0xf] }
 0x2b8   : > { %v2414_v30 = vpop.f32.mrf.mxu1  ;;  %3552 = vst [vmem:[%s5655_s29 + $0x80] sm:$0x1] %v3551_v17  ;;  %v3339_v31 = vshrl.u32 %v3090_v12, 16  ;;  %v3342_v28 = vshll.u32 %v3090_v12, 16 }
 0x2b9   : > { %v3013_v0 = vpop.f32.mrf.mxu0  ;;  %v3679_v44 = vadd.f32 %v3678_v6, %v3648_v3  ;;  %v2815_v35 = vpop.f32.mrf.mxu3  ;;  %v2457_v56 = vadd.f32 %v2414_v30, %v5635_v58 }
 0x2ba   : > { %v3341_v10 = vrot.slane %v3339_v31, 7  ;;  %v2861_v61 = vadd.f32 %v2815_v35, %v2647_v50 }
 0x2bc   : > { %v2604_v7 = vpop.f32.mrf.mxu2  ;;  %v3344_v8 = vor.u32 %v3342_v28, %v3341_v10  ;;  %v3059_v2 = vadd.f32 %v3013_v0, %v2861_v61  ;;  %v3345_v27 = vrot.slane %v3341_v10, 4 }
 0x2bd   : > { %v2648_v60 = vadd.f32 %v2604_v7, %v2456_v52  ;;  %v3564_v52 = vld [vmem:[%s5655_s29 + $0x98] sm:$0x1] }
 0x2be   : > { %v3554_v16 = vsel %vm5751_vm0, %v3344_v8, %v3553_v33  ;;  %v3091_v48 = vpack.c.bf16 %v3059_v2, %v3059_v2  ;;  %v3610_v21 = vadd.f32 %v3609_v49, %v3059_v2  ;;  %v3649_v20 = vmul.f32 %v3059_v2, %v3059_v2 }
 0x2bf   : > { %3555 = vst [vmem:[%s5655_s29 + $0x84] sm:$0xf] %v3554_v16 }
 0x2c0   : > { %v2417_v37 = vpop.f32.mrf.mxu1  ;;  %v3347_v4 = vshrl.u32 %v3091_v48, 16  ;;  %v3680_v53 = vadd.f32 %v3679_v44, %v3649_v20  ;;  %v3350_v54 = vshll.u32 %v3091_v48, 16 }
 0x2c1   : > { %v3016_v45 = vpop.f32.mrf.mxu0  ;;  %v2818_v18 = vpop.f32.mrf.mxu3  ;;  %v2458_v50 = vadd.f32 %v2417_v37, %v5641_v34 }
 0x2c2   : > { %v3349_v59 = vrot.slane %v3347_v4, 7  ;;  %v2862_v51 = vadd.f32 %v2818_v18, %v2648_v60 }
 0x2c4   : > { %v2606_v47 = vpop.f32.mrf.mxu2  ;;  %v3352_v5 = vor.u32 %v3350_v54, %v3349_v59  ;;  %v3354_v46 = vrot.slane %v3349_v59, 4  ;;  %v3060_v15 = vadd.f32 %v3016_v45, %v2862_v51 }
 0x2c5   : > { %v2649_v19 = vadd.f32 %v2606_v47, %v2457_v56 }
 0x2c6   : > { %v3353_v41 = vsel %vm5776_vm4, %v3345_v27, %v3352_v5  ;;  %v3558_v6 = vsel %vm5783_vm5, %v3354_v46, %v3557_v63  ;;  %v3092_v32 = vpack.c.bf16 %v3060_v15, %v3060_v15  ;;  %v3611_v29 = vadd.f32 %v3610_v21, %v3060_v15  ;;  %v3567_v27 = vld [vmem:[%s5655_s29 + $0x9c] sm:$0xf] }
 0x2c7   : > { %3556 = vst [vmem:[%s5655_s29 + $0x88] sm:$0xf] %v3353_v41  ;;  %v3650_v40 = vmul.f32 %v3060_v15, %v3060_v15 }
 0x2c8   : > { %3559 = vst [vmem:[%s5655_s29 + $0x8c] sm:$0x1] %v3558_v6  ;;  %v3356_v42 = vshrl.u32 %v3092_v32, 16  ;;  %v2419_v58 = vpop.f32.mrf.mxu1  ;;  %v3359_v39 = vshll.u32 %v3092_v32, 16 }
 0x2c9   : > { %v3018_v26 = vpop.f32.mrf.mxu0  ;;  %v3681_v57 = vadd.f32 %v3680_v53, %v3650_v40  ;;  %v2820_v14 = vpop.f32.mrf.mxu3  ;;  %v2459_v8 = vadd.f32 %v2419_v58, %v5645_v25 }
 0x2ca   : > { %v3358_v55 = vrot.slane %v3356_v42, 7  ;;  %v2863_v22 = vadd.f32 %v2820_v14, %v2649_v19 }
 0x2cc   : > { %v2609_v11 = vpop.f32.mrf.mxu2  ;;  %v3361_v43 = vor.u32 %v3359_v39, %v3358_v55  ;;  %v3061_v17 = vadd.f32 %v3018_v26, %v2863_v22  ;;  %v3362_v2 = vrot.slane %v3358_v55, 4  ;;  %v3571_v22 = vld [vmem:[%s5655_s29 + $0xa4] sm:$0x1] }
 0x2cd   : > { %v2650_v12 = vadd.f32 %v2609_v11, %v2458_v50 }
 0x2ce   : > { %v3561_v49 = vsel %vm5751_vm0, %v3361_v43, %v3560_v36  ;;  %v3093_v3 = vpack.c.bf16 %v3061_v17, %v3061_v17  ;;  %v3612_v30 = vadd.f32 %v3611_v29, %v3061_v17  ;;  %v3651_v31 = vmul.f32 %v3061_v17, %v3061_v17 }
 0x2cf   : > { %3562 = vst [vmem:[%s5655_s29 + $0x90] sm:$0xf] %v3561_v49 }
 0x2d0   : > { %v3364_v0 = vshrl.u32 %v3093_v3, 16  ;;  %v3682_v44 = vadd.f32 %v3681_v57, %v3651_v31  ;;  %v3367_v61 = vshll.u32 %v3093_v3, 16  ;;  %v2422_v33 = vpop.f32.mrf.mxu1 }
 0x2d1   : > { %v3021_v35 = vpop.f32.mrf.mxu0  ;;  %v2823_v10 = vpop.f32.mrf.mxu3  ;;  %v2460_v5 = vadd.f32 %v2422_v33, %v5658_v13 }
 0x2d2   : > { %v3366_v28 = vrot.slane %v3364_v0, 7  ;;  %v2864_v7 = vadd.f32 %v2823_v10, %v2650_v12 }
 0x2d4   : > { %v2611_v34 = vpop.f32.mrf.mxu2  ;;  %v3369_v60 = vor.u32 %v3367_v61, %v3366_v28  ;;  %v3371_v16 = vrot.slane %v3366_v28, 4  ;;  %v3062_v48 = vadd.f32 %v3021_v35, %v2864_v7 }
 0x2d5   : > { %v2651_v21 = vadd.f32 %v2611_v34, %v2459_v8 }
 0x2d6   : > { %v3370_v20 = vsel %vm5776_vm4, %v3362_v2, %v3369_v60  ;;  %v3565_v37 = vsel %vm5783_vm5, %v3371_v16, %v3564_v52  ;;  %v3094_v4 = vpack.c.bf16 %v3062_v48, %v3062_v48  ;;  %v3613_v53 = vadd.f32 %v3612_v30, %v3062_v48  ;;  %v3574_v52 = vld [vmem:[%s5655_s29 + $0xa8] sm:$0xf] }
 0x2d7   : > { %3563 = vst [vmem:[%s5655_s29 + $0x94] sm:$0xf] %v3370_v20  ;;  %v3652_v45 = vmul.f32 %v3062_v48, %v3062_v48 }
 0x2d8   : > { %3566 = vst [vmem:[%s5655_s29 + $0x98] sm:$0x1] %v3565_v37  ;;  %v3373_v18 = vshrl.u32 %v3094_v4, 16  ;;  %v3376_v47 = vshll.u32 %v3094_v4, 16  ;;  %v2424_v19 = vpop.f32.mrf.mxu1 }
 0x2d9   : > { %v3023_v59 = vpop.f32.mrf.mxu0  ;;  %v3683_v25 = vadd.f32 %v3682_v44, %v3652_v45  ;;  %v2825_v54 = vpop.f32.mrf.mxu3  ;;  %v2461_v11 = vadd.f32 %v2424_v19, %v5674_v24 }
 0x2da   : > { %v3375_v51 = vrot.slane %v3373_v18, 7  ;;  %v2865_v63 = vadd.f32 %v2825_v54, %v2651_v21 }
 0x2dc   : > { %v2614_v56 = vpop.f32.mrf.mxu2  ;;  %v3378_v46 = vor.u32 %v3376_v47, %v3375_v51  ;;  %v3063_v15 = vadd.f32 %v3023_v59, %v2865_v63  ;;  %v3379_v36 = vrot.slane %v3375_v51, 4  ;;  %v3578_v47 = vld [vmem:[%s5655_s29 + $0xb0] sm:$0x1] }
 0x2dd   : > { %v2652_v41 = vadd.f32 %v2614_v56, %v2460_v5 }
 0x2de   : > { %v3568_v6 = vsel %vm5751_vm0, %v3378_v46, %v3567_v27  ;;  %v3095_v32 = vpack.c.bf16 %v3063_v15, %v3063_v15  ;;  %v3614_v29 = vadd.f32 %v3613_v53, %v3063_v15  ;;  %v3653_v40 = vmul.f32 %v3063_v15, %v3063_v15 }
 0x2df   : > { %3569 = vst [vmem:[%s5655_s29 + $0x9c] sm:$0xf] %v3568_v6 }
 0x2e0   : > { %v3381_v42 = vshrl.u32 %v3095_v32, 16  ;;  %v3684_v26 = vadd.f32 %v3683_v25, %v3653_v40  ;;  %v3384_v55 = vshll.u32 %v3095_v32, 16  ;;  %v2427_v0 = vpop.f32.mrf.mxu1 }
 0x2e1   : > { %v3026_v58 = vpop.f32.mrf.mxu0  ;;  %v2828_v57 = vpop.f32.mrf.mxu3  ;;  %v2462_v8 = vadd.f32 %v2427_v0, %v5696_v1 }
 0x2e2   : > { %v3383_v14 = vrot.slane %v3381_v42, 7  ;;  %v2866_v13 = vadd.f32 %v2828_v57, %v2652_v41 }
 0x2e4   : > { %v2616_v39 = vpop.f32.mrf.mxu2  ;;  %v3386_v50 = vor.u32 %v3384_v55, %v3383_v14  ;;  %v3388_v43 = vrot.slane %v3383_v14, 4  ;;  %v3064_v17 = vadd.f32 %v3026_v58, %v2866_v13  ;;  %v3581_v14 = vld [vmem:[%s5655_s29 + $0xb4] sm:$0xf] }
 0x2e5   : > { %v2653_v12 = vadd.f32 %v2616_v39, %v2461_v11 }
 0x2e6   : > { %v3387_v49 = vsel %vm5776_vm4, %v3379_v36, %v3386_v50  ;;  %v3572_v3 = vsel %vm5783_vm5, %v3388_v43, %v3571_v22  ;;  %v3096_v30 = vpack.c.bf16 %v3064_v17, %v3064_v17  ;;  %v3615_v31 = vadd.f32 %v3614_v29, %v3064_v17 }
 0x2e7   : > { %3570 = vst [vmem:[%s5655_s29 + $0xa0] sm:$0xf] %v3387_v49  ;;  %v3654_v44 = vmul.f32 %v3064_v17, %v3064_v17 }
 0x2e8   : > { %3573 = vst [vmem:[%s5655_s29 + $0xa4] sm:$0x1] %v3572_v3  ;;  %v3390_v35 = vshrl.u32 %v3096_v30, 16  ;;  %v3393_v7 = vshll.u32 %v3096_v30, 16  ;;  %v2429_v45 = vpop.f32.mrf.mxu1 }
 0x2e9   : > { %v3028_v24 = vpop.f32.mrf.mxu0  ;;  %v3685_v10 = vadd.f32 %v3684_v26, %v3654_v44  ;;  %v2830_v28 = vpop.f32.mrf.mxu3  ;;  %v2463_v63 = vadd.f32 %v2429_v45, %v5716_v23  ;;  %v3585_v44 = vld [vmem:[%s5655_s29 + $0xbc] sm:$0x1] }
 0x2ea   : > { %v3392_v61 = vrot.slane %v3390_v35, 7  ;;  %v2867_v34 = vadd.f32 %v2830_v28, %v2653_v12 }
 0x2ec   : > { %v2619_v33 = vpop.f32.mrf.mxu2  ;;  %v3395_v2 = vor.u32 %v3393_v7, %v3392_v61  ;;  %v3065_v60 = vadd.f32 %v3028_v24, %v2867_v34  ;;  %v3396_v56 = vrot.slane %v3392_v61, 4 }
 0x2ed   : > { %v2654_v16 = vadd.f32 %v2619_v33, %v2462_v8 }
 0x2ee   : > { %v3575_v48 = vsel %vm5751_vm0, %v3395_v2, %v3574_v52  ;;  %v3097_v21 = vpack.c.bf16 %v3065_v60, %v3065_v60  ;;  %v3616_v20 = vadd.f32 %v3615_v31, %v3065_v60  ;;  %v3655_v37 = vmul.f32 %v3065_v60, %v3065_v60 }
 0x2ef   : > { %3576 = vst [vmem:[%s5655_s29 + $0xa8] sm:$0xf] %v3575_v48 }
 0x2f0   : > { %v3398_v4 = vshrl.u32 %v3097_v21, 16  ;;  %v3686_v53 = vadd.f32 %v3685_v10, %v3655_v37  ;;  %v3401_v54 = vshll.u32 %v3097_v21, 16 }
 0x2f1   : > { %v3031_v18 = vpop.f32.mrf.mxu0  ;;  %v2833_v59 = vpop.f32.mrf.mxu3 }
 0x2f2   : > { %v3400_v25 = vrot.slane %v3398_v4, 7  ;;  %v2868_v1 = vadd.f32 %v2833_v59, %v2654_v16 }
 0x2f4   : > { %v2621_v51 = vpop.f32.mrf.mxu2  ;;  %v3403_v27 = vor.u32 %v3401_v54, %v3400_v25  ;;  %v3405_v5 = vrot.slane %v3400_v25, 4  ;;  %v3066_v46 = vadd.f32 %v3031_v18, %v2868_v1 }
 0x2f5   : > { %v2655_v15 = vadd.f32 %v2621_v51, %v2463_v63 }
 0x2f6   : > { %v3404_v19 = vsel %vm5776_vm4, %v3396_v56, %v3403_v27  ;;  %v3579_v41 = vsel %vm5783_vm5, %v3405_v5, %v3578_v47  ;;  %v3098_v6 = vpack.c.bf16 %v3066_v46, %v3066_v46  ;;  %v3617_v32 = vadd.f32 %v3616_v20, %v3066_v46 }
 0x2f7   : > { %3577 = vst [vmem:[%s5655_s29 + $0xac] sm:$0xf] %v3404_v19  ;;  %v3656_v29 = vmul.f32 %v3066_v46, %v3066_v46 }
 0x2f8   : > { %3580 = vst [vmem:[%s5655_s29 + $0xb0] sm:$0x1] %v3579_v41  ;;  %v3407_v40 = vshrl.u32 %v3098_v6, 16  ;;  %v3410_v58 = vshll.u32 %v3098_v6, 16 }
 0x2f9   : > { %v3687_v23 = vadd.f32 %v3686_v53, %v3656_v29  ;;  %v2835_v42 = vpop.f32.mrf.mxu3  ;;  %v3033_v55 = vpop.f32.mrf.mxu0 }
 0x2fa   : > { %v3409_v26 = vrot.slane %v3407_v40, 7  ;;  %v2869_v57 = vadd.f32 %v2835_v42, %v2655_v15 }
 0x2fc   : > { %v3412_v13 = vor.u32 %v3410_v58, %v3409_v26  ;;  %v3067_v39 = vadd.f32 %v3033_v55, %v2869_v57  ;;  %v3413_v0 = vrot.slane %v3409_v26, 4 }
 0x2fe   : > { %v3582_v22 = vsel %vm5751_vm0, %v3412_v13, %v3581_v14  ;;  %v3099_v11 = vpack.c.bf16 %v3067_v39, %v3067_v39  ;;  %v3618_v36 = vadd.f32 %v3617_v32, %v3067_v39  ;;  %v3657_v50 = vmul.f32 %v3067_v39, %v3067_v39 }
 0x2ff   : > { %3583 = vst [vmem:[%s5655_s29 + $0xb4] sm:$0xf] %v3582_v22 }
 0x300   : > { %v3415_v43 = vshrl.u32 %v3099_v11, 16  ;;  %v3619_v17 = vrot.slane %v3618_v36, 4  ;;  %v3688_v12 = vadd.f32 %v3687_v23, %v3657_v50  ;;  %v3418_v3 = vshll.u32 %v3099_v11, 16 }
 0x302   : > { %v3417_v49 = vrot.slane %v3415_v43, 7  ;;  %v3620_v30 = vadd.f32 %v3619_v17, %v3618_v36  ;;  %v3689_v31 = vrot.slane %v3688_v12, 4 }
 0x304   : > { %v3420_v35 = vor.u32 %v3418_v3, %v3417_v49  ;;  %v3422_v62 = vrot.slane %v3417_v49, 4  ;;  %v3621_v24 = vrot.slane %v3620_v30, 2  ;;  %v3690_v10 = vadd.f32 %v3689_v31, %v3688_v12 }
 0x306   : > { %v3421_v28 = vsel %vm5776_vm4, %v3413_v0, %v3420_v35  ;;  %v3586_v61 = vsel %vm5783_vm5, %v3422_v62, %v3585_v44  ;;  %v3622_v7 = vadd.f32 %v3621_v24, %v3620_v30  ;;  %v3691_v34 = vrot.slane %v3690_v10, 2 }
 0x307   : > { %3584 = vst [vmem:[%s5655_s29 + $0xb8] sm:$0xf] %v3421_v28 }
 0x308   : > { %3587 = vst [vmem:[%s5655_s29 + $0xbc] sm:$0x1] %v3586_v61  ;;  %v3623_v33 = vrot.slane %v3622_v7, 1  ;;  %v3692_v52 = vadd.f32 %v3691_v34, %v3690_v10 }
 0x30a   : > { %v3624_v8 = vadd.f32 %v3623_v33, %v3622_v7  ;;  %v3693_v2 = vrot.slane %v3692_v52, 1 }
 0x30c   : > { %3625 = vst [vmem:[%s249_s30] sm:$0x1] %v3624_v8  ;;  %v3694_v38 = vadd.f32 %v3693_v2, %v3692_v52 }
 0x30e   : > { %3695 = vst [vmem:[%s255_s7] sm:$0x1] %v3694_v38 }
 0x30f PF: > { %s15_s17 = sadd.s32 1, %s4451_s17   ;;  %s6292_s15 = smov %s4447_s16 }
 0x310   : > { %p12_p5 = scmp.ge.s32.totalorder %s15_s17, 4   ;;  %s6293_s16 = smov %s6295_s18 }
 0x312   :  { %14 = sbr.rel (!%p12_p5) target bundleno = 2 (0x2), region = 93 }

// kernel: _basic_block_forward.4
= control target key start
LH: loop header
LB: loop body
LE: loop exit
PB: predicated region body
PF: predicated region fallthrough
CT: control target
= control target key end

     0   :  { %s5521_s17 = smov 0   ;;  %s5523_s18 = smov 0   ;;  %s7011_s0 = inlined_call_operand.vmem [shape: bf16[2,16,18,128], index: 0, kind: input, shape index: {}]   ;;  %s7012_s1 = inlined_call_operand.vmem [shape: f32[1,128], index: 1, kind: input, shape index: {}]   ;;  %s7013_s2 = inlined_call_operand.vmem [shape: f32[1,128], index: 2, kind: input, shape index: {}]   ;;  %s7014_s3 = inlined_call_operand.vmem [shape: bf16[9,128,128], index: 3, kind: input, shape index: {}]   ;;  %s7015_s4 = inlined_call_operand.vmem [shape: bf16[2,16,16,128], index: 4, kind: input, shape index: {}]   ;;  %s7016_s5 = inlined_call_operand.vmem [shape: bf16[128,128], index: 5, kind: input, shape index: {}]   ;;  %s7017_s6 = inlined_call_operand.vmem [shape: bf16[2,16,16,128], index: 6, kind: output, shape index: {0}]   ;;  %s7018_s7 = inlined_call_operand.vmem [shape: f32[2,1,1,128], index: 7, kind: output, shape index: {1}]   ;;  %s7019_s8 = inlined_call_operand.vmem [shape: f32[2,1,1,128], index: 8, kind: output, shape index: {2}]   ;;  %s7020_s9 = inlined_call_operand.vmem [shape: bf16[2,16,16,128], index: 9, kind: output, shape index: {3}]   ;;  %s7021_s10 = inlined_call_operand.vmem [shape: f32[2,1,1,128], index: 10, kind: output, shape index: {4}]   ;;  %s7022_s11 = inlined_call_operand.vmem [shape: f32[2,1,1,128], index: 11, kind: output, shape index: {5}]  }
   0x1   :  { %s5525_s19 = smov 0  }
   0x2 LB: > { %s34_s20 = sadd.s32 1, %s5453_s18  ;;  %p4515_p0 = scmp.ge.s32.totalorder %s5457_s19, 1  ;;  %s5457_s19 = sphi %s5525_s19, %s22_s19   ;;  %s5453_s18 = sphi %s5523_s18, %s7242_s18   ;;  %s5449_s17 = sphi %s5521_s17, %s7241_s17  }
   0x3   : > { %p36_p1 = scmp.ge.s32.totalorder %s34_s20, 2  ;;  %p390_p2 = scmp.lt.s32.totalorder %s5457_s19, 3 }
   0x5   : > { %s7244_s20 = smov (%p36_p1, %s34_s20), 0  ;;  %p391_p3 = pnand %p4515_p0, %p390_p2 }
   0x7   : > { %394 = sbr.rel (%p391_p3) target bundleno = 842 (0x34a), region = 44 }
   0xc   : > { %v5076_v0 = vld [vmem:[%s7014_s3 + $0x78] sm:$0xff]  ;;  %p479_p4 = scmp.lt.s32.totalorder %s5449_s17, 1  ;;  %v853_v2 = vlaneseq  ;;  %v5075_v3 = vld [vmem:[%s7014_s3 + $0x70] sm:$0xff]  ;;  %vm1149_vm0 = vsmask.f32 3328  ;;  %v5074_v6 = vld [vmem:[%s7014_s3 + $0x68] sm:$0xff] }
   0xd   : > { %v5068_v1 = vld [vmem:[%s7014_s3 + $0x38] sm:$0xff]  ;;  %5386 = vmatpush.bf16.msra.mxu2 %v5076_v0  ;;  %v5067_v4 = vld [vmem:[%s7014_s3 + $0x30] sm:$0xff]  ;;  %1665 = vmatpush.bf16.msra.mxu0 %v5076_v0  ;;  %v7023_v8 = vmov 0.0|0.0   ;;  %v5460_v10 = vmov 0   ;;  %v5066_v12 = vld [vmem:[%s7014_s3 + $0x28] sm:$0xff]  ;;  %vm2003_vm5 = vcmask 1042432  }
   0xe   : > { %1898 = vmatpush.bf16.msra.mxu1 %v5068_v1  ;;  %s7246_s17 = smov (!%p479_p4, %s5449_s17), 1  ;;  %5394 = vmatpush.bf16.msra.mxu3 %v5068_v1  ;;  %v5553_v5 = vshrl.u32 %v853_v2, 7  ;;  %v1786_v9 = vunpack.c.l.b16 %v7023_v8  ;;  %v1155_v11 = vrot.slane %v5460_v10, 4  ;;  %v5574_v13 = vld [vmem:[%s7012_s1] ss:$0 sm:$0xff]  ;;  %v1158_v14 = vrot.slane %v5460_v10, 5 }
   0xf   : > { %s5402_s29 = smul.u32 192, %s7246_s17  ;;  %vm1150_vm1 = vsmask.f32 7440  ;;  %v5581_v20 = vld [vmem:[%s7013_s2] ss:$0 sm:$0xff]  ;;  %v5072_v46 = vld [vmem:[%s7014_s3 + $0x58] sm:$0xff]  ;;  %s534_s24 = scalar_lea.vmem %s7021_s10, %s7246_s17 }
  0x10   : > { %7089 = vst [vmem:[#allocation2_spill] sm:$0xff] %v5553_v5  ;;  %v5560_v7 = vadd.s32 16, %v5553_v5  ;;  %v1159_v21 = vor.u32 %v1158_v14, %v1155_v11  ;;  %vm911_vm2 = vcmp.ge.s32.totalorder %v5553_v5, 1  ;;  %v5585_v22 = vpack.c.b16 %v1786_v9, %v1786_v9  ;;  %v5073_v26 = vld [vmem:[%s7014_s3 + $0x60] sm:$0xff]  ;;  %vm5603_vm4 = vmor %vm1149_vm0, %vm1150_vm1  ;;  %v5064_v47 = vld [vmem:[%s7014_s3 + $0x18] sm:$0xff]  ;;  %s6737_s27 = sshll.u32 %s7246_s17, 7 }
  0x11   : > { %5387 = vmatpush.bf16.msra.mxu2 %v5075_v3  ;;  %s5569_s21 = scalar_lea.vmem %s7011_s0, %s5402_s29  ;;  %1666 = vmatpush.bf16.msra.mxu0 %v5075_v3  ;;  %v5065_v27 = vld [vmem:[%s7014_s3 + $0x20] sm:$0xff]  ;;  %v5071_v0 = vld [vmem:[%s7014_s3 + $0x50] sm:$0xff]  ;;  %vm2004_vm6 = vcmask 1046532   ;;  %s6748_s30 = scalar_lea.vmem %s7015_s4, %s6737_s27 }
  0x12   : > { %1899 = vmatpush.bf16.msra.mxu1 %v5067_v4  ;;  %5395 = vmatpush.bf16.msra.mxu3 %v5067_v4  ;;  %v575_v15 = vld [vmem:[%s5569_s21 + $0x54] sm:$0xff]   ;;  %v577_v16 = vld [vmem:[%s5569_s21 + $0x5c] sm:$0x1]  ;;  %vm970_vm3 = vcmp.le.s32.totalorder %v5560_v7, 16  ;;  %7090 = vst [vmem:[#allocation3_spill] sm:$0xff] %v5585_v22  ;;  %v5352_v23 = vld [vmem:[%s5569_s21 + $0x60] sm:$0xff]   ;;  %s6841_s14 = scalar_lea.vmem %s7020_s9, %s6737_s27  ;;  %s6856_s16 = scalar_lea.vmem %s7017_s6, %s6737_s27 }
  0x13   : > { %v635_v17 = vunpack.c.l.bf16 %v575_v15  ;;  %v636_v18 = vunpack.c.h.bf16 %v575_v15  ;;  %v637_v19 = vunpack.c.l.bf16 %v577_v16  ;;  %v580_v24 = vld [vmem:[%s5569_s21 + $0x68] sm:$0x1]  ;;  %v5590_v25 = vld [vmem:[%s5569_s21] sm:$0xff]   ;;  %v1160_v31 = vrot.slane %v1159_v21, 4  ;;  %v5063_v1 = vld [vmem:[%s7014_s3 + $0x10] sm:$0xff]  ;;  %s540_s27 = scalar_lea.vmem %s7022_s11, %s7246_s17 }
  0x14   : > { %v5175_v33 = vunpack.c.l.bf16 %v5352_v23  ;;  %v5176_v34 = vunpack.c.h.bf16 %v5352_v23  ;;  %v640_v35 = vunpack.c.l.bf16 %v580_v24  ;;  %v5159_v36 = vunpack.c.l.bf16 %v5590_v25  ;;  %v5614_v41 = vld [vmem:[%s5569_s21 + $0x8] sm:$0x1]  ;;  %vm6298_vm7 = vmor %vm2003_vm5, %vm2004_vm6 }
  0x15   : > { %5388 = vmatpush.bf16.msra.mxu2 %v5074_v6  ;;  %v693_v28 = vmul.f32 %v5574_v13, %v635_v17  ;;  %v694_v29 = vmul.f32 %v5574_v13, %v636_v18  ;;  %v695_v30 = vmul.f32 %v5574_v13, %v637_v19  ;;  %1667 = vmatpush.bf16.msra.mxu0 %v5074_v6  ;;  %v5160_v51 = vunpack.c.h.bf16 %v5590_v25  ;;  %v5069_v25 = vld [vmem:[%s7014_s3 + $0x40] sm:$0xff] }
  0x16   : > { %1900 = vmatpush.bf16.msra.mxu1 %v5066_v12  ;;  %5396 = vmatpush.bf16.msra.mxu3 %v5066_v12  ;;  %v1165_v40 = vsel %vm5603_vm4, %v1160_v31, %v1158_v14  ;;  %v696_v43 = vmul.f32 %v5574_v13, %v5175_v33  ;;  %v697_v44 = vmul.f32 %v5574_v13, %v5176_v34  ;;  %v616_v55 = vunpack.c.l.bf16 %v5614_v41  ;;  %v5656_v14 = vld [vmem:[%s5569_s21 + $0x6c] sm:$0xff]   ;;  %v563_v8 = vld [vmem:[%s5569_s21 + $0x24] sm:$0xff]  }
  0x17   : > { %v751_v37 = vadd.f32 %v5581_v20, %v693_v28  ;;  %v752_v38 = vadd.f32 %v5581_v20, %v694_v29  ;;  %v753_v39 = vadd.f32 %v5581_v20, %v695_v30  ;;  %v1553_v42 = vunpack.c.l.b16 %v1165_v40 }
  0x18   : > { %v698_v45 = vmul.f32 %v5574_v13, %v640_v35  ;;  %v754_v53 = vadd.f32 %v5581_v20, %v696_v43  ;;  %v755_v54 = vadd.f32 %v5581_v20, %v697_v44  ;;  %v641_v31 = vunpack.c.l.bf16 %v5656_v14 }
  0x19   : > { %5389 = vmatpush.bf16.msra.mxu2 %v5073_v26  ;;  %v805_v48 = vmax.f32 %v751_v37, 0.0  ;;  %v806_v49 = vmax.f32 %v752_v38, 0.0  ;;  %v807_v50 = vmax.f32 %v753_v39, 0.0  ;;  %1668 = vmatpush.bf16.msra.mxu0 %v5073_v26  ;;  %v5626_v52 = vpack.c.b16 %v1553_v42, %v1553_v42  ;;  %v5070_v26 = vld [vmem:[%s7014_s3 + $0x48] sm:$0xff] }
  0x1a   : > { %1901 = vmatpush.bf16.msra.mxu1 %v5065_v27  ;;  %5397 = vmatpush.bf16.msra.mxu3 %v5065_v27  ;;  %v756_v59 = vadd.f32 %v5581_v20, %v698_v45  ;;  %v808_v62 = vmax.f32 %v754_v53, 0.0  ;;  %v809_v63 = vmax.f32 %v755_v54, 0.0  ;;  %v5062_v27 = vld [vmem:[%s7014_s3 + $0x8] sm:$0xff]  ;;  %v672_v35 = vmul.f32 %v5574_v13, %v5159_v36  ;;  %v5061_v36 = vld [vmem:[%s7014_s3] sm:$0xff] }
  0x1b   : > { %7093 = vst [vmem:[#allocation4_spill] sm:$0xff] %v5626_v52  ;;  %v1049_v56 = vsel %vm911_vm2, %v805_v48, 0.0  ;;  %v1051_v57 = vsel %vm970_vm3, %v807_v50, 0.0  ;;  %v5635_v58 = vpack.c.bf16 %v806_v49, %v806_v49  ;;  %v642_v37 = vunpack.c.h.bf16 %v5656_v14  ;;  %v5098_v14 = vld [vmem:[%s7014_s3 + $0x128] sm:$0xff] }
  0x1c   : > { %v5638_v60 = vpack.c.bf16 %v1049_v56, %v1049_v56  ;;  %v5640_v61 = vpack.c.bf16 %v1051_v57, %v1051_v57  ;;  %v810_v6 = vmax.f32 %v756_v59, 0.0  ;;  %v1052_v17 = vsel %vm911_vm2, %v808_v62, 0.0  ;;  %v5084_v59 = vld [vmem:[%s7014_s3 + $0xb8] sm:$0xff] }
  0x1d   : > { %5390 = vmatpush.bf16.msra.mxu2 %v5072_v46  ;;  %v1354_v2 = vshll.u32 %v5635_v58, 16  ;;  %v1358_v3 = vshrl.u32 %v5635_v58, 16  ;;  %v1803_v4 = vunpack.c.l.b16 %v5635_v58  ;;  %1669 = vmatpush.bf16.msra.mxu0 %v5072_v46  ;;  %v5670_v29 = vpack.c.bf16 %v1052_v17, %v1052_v17  ;;  %v5092_v62 = vld [vmem:[%s7014_s3 + $0xf8] sm:$0xff] }
  0x1e   : > { %1902 = vmatpush.bf16.msra.mxu1 %v5064_v47  ;;  %5398 = vmatpush.bf16.msra.mxu3 %v5064_v47  ;;  %v1345_v9 = vshrl.u32 %v5638_v60, 16  ;;  %v1348_v10 = vshll.u32 %v5638_v60, 16  ;;  %v1364_v11 = vshll.u32 %v5640_v61, 16  ;;  %v1802_v12 = vunpack.c.l.b16 %v5638_v60  ;;  %v5108_v17 = vld [vmem:[%s7014_s3 + $0x178] sm:$0xff] }
  0x1f   : > { %v1356_v15 = vrot.slane %v1354_v2, 5  ;;  %v1360_v16 = vrot.slane %v1358_v3, 4  ;;  %v1054_v18 = vsel %vm970_vm3, %v810_v6, 0.0  ;;  %7095 = vst [vmem:[#allocation6_spill] sm:$0xff] %v5670_v29  ;;  %v5672_v30 = vpack.c.bf16 %v809_v63, %v809_v63  ;;  %v5706_v2 = vld [vmem:[%s5569_s21 + $0x74] sm:$0x1] }
  0x20   : > { %v1347_v19 = vrot.slane %v1345_v9, 4  ;;  %v1350_v21 = vrot.slane %v1348_v10, 5  ;;  %v1366_v23 = vrot.slane %v1364_v11, 5  ;;  %v5662_v24 = vpack.c.b16 %v1803_v4, %v1802_v12 }
  0x21   : > { %5391 = vmatpush.bf16.msra.mxu2 %v5071_v0  ;;  %v1361_v28 = vor.u32 %v1360_v16, %v1356_v15  ;;  %1670 = vmatpush.bf16.msra.mxu0 %v5071_v0  ;;  %v5675_v34 = vpack.c.bf16 %v1054_v18, %v1054_v18  ;;  %v1369_v39 = vshrl.u32 %v5670_v29, 16  ;;  %v1372_v40 = vshll.u32 %v5670_v29, 16  ;;  %v5100_v16 = vld [vmem:[%s7014_s3 + $0x138] sm:$0xff] }
  0x22   : > { %7094 = vst [vmem:[#allocation5_spill] sm:$0xff] %v5662_v24  ;;  %1903 = vmatpush.bf16.msra.mxu1 %v5063_v1  ;;  %5399 = vmatpush.bf16.msra.mxu3 %v5063_v1  ;;  %v1351_v33 = vor.u32 %v1350_v21, %v1347_v19  ;;  %v1378_v42 = vshll.u32 %v5672_v30, 16  ;;  %v1382_v44 = vshrl.u32 %v5672_v30, 16  ;;  %v673_v46 = vmul.f32 %v5574_v13, %v5160_v51 }
  0x23   : > { %7096 = vst [vmem:[#allocation7_spill] sm:$0xff] %v5675_v34  ;;  %v1362_v38 = vrot.slane %v1361_v28, 4  ;;  %v1388_v45 = vshll.u32 %v5675_v34, 16  ;;  %v1371_v48 = vrot.slane %v1369_v39, 4  ;;  %v1374_v49 = vrot.slane %v1372_v40, 5  ;;  %v5091_v28 = vld [vmem:[%s7014_s3 + $0xf0] sm:$0xff] }
  0x24   : > { %v1352_v43 = vrot.slane %v1351_v33, 4  ;;  %v1380_v50 = vrot.slane %v1378_v42, 5  ;;  %v1384_v54 = vrot.slane %v1382_v44, 4  ;;  %v730_v0 = vadd.f32 %v5581_v20, %v672_v35 }
  0x25   : > { %5392 = vmatpush.bf16.msra.mxu2 %v5070_v26  ;;  %v1367_v47 = vsel %vm5603_vm4, %v1362_v38, %v1366_v23  ;;  %1671 = vmatpush.bf16.msra.mxu0 %v5070_v26  ;;  %v1390_v56 = vrot.slane %v1388_v45, 5  ;;  %v1375_v63 = vor.u32 %v1374_v49, %v1371_v48  ;;  %v731_v1 = vadd.f32 %v5581_v20, %v673_v46  ;;  %v5107_v48 = vld [vmem:[%s7014_s3 + $0x170] sm:$0xff] }
  0x26   : > { %1904 = vmatpush.bf16.msra.mxu1 %v5062_v27  ;;  %5400 = vmatpush.bf16.msra.mxu3 %v5062_v27  ;;  %v1357_v51 = vsel %vm5603_vm4, %v1352_v43, %v1356_v15  ;;  %v1570_v53 = vunpack.c.l.b16 %v1367_v47  ;;  %v1385_v3 = vor.u32 %v1384_v54, %v1380_v50  ;;  %v1804_v4 = vunpack.c.l.b16 %v5670_v29  ;;  %v5083_v27 = vld [vmem:[%s7014_s3 + $0xb0] sm:$0xff] }
  0x27   : > { %v1569_v57 = vunpack.c.l.b16 %v1357_v51  ;;  %v1805_v6 = vunpack.c.l.b16 %v5672_v30  ;;  %v674_v9 = vmul.f32 %v5574_v13, %v616_v55  ;;  %v1376_v11 = vrot.slane %v1375_v63, 4  ;;  %v5099_v47 = vld [vmem:[%s7014_s3 + $0x130] sm:$0xff] }
  0x28   : > { %v784_v12 = vmax.f32 %v730_v0, 0.0  ;;  %v785_v15 = vmax.f32 %v731_v1, 0.0  ;;  %v1386_v41 = vrot.slane %v1385_v3, 4  ;;  %v643_v19 = vunpack.c.l.bf16 %v5706_v2  ;;  %v557_v54 = vld [vmem:[%s5569_s21 + $0xc] sm:$0xff]  }
  0x29   : > { %5393 = vmatpush.bf16.msra.mxu2 %v5069_v25  ;;  %v5713_v10 = vpack.c.b16 %v1570_v53, %v1569_v57  ;;  %1672 = vmatpush.bf16.msra.mxu0 %v5069_v25  ;;  %v5721_v18 = vpack.c.b16 %v1805_v6, %v1804_v4  ;;  %v732_v55 = vadd.f32 %v5581_v20, %v674_v9  ;;  %v5090_v57 = vld [vmem:[%s7014_s3 + $0xe8] sm:$0xff] }
  0x2a   : > { %1905 = vmatpush.bf16.msra.mxu1 %v5061_v36  ;;  %5401 = vmatpush.bf16.msra.mxu3 %v5061_v36  ;;  %v1381_v21 = vsel %vm5603_vm4, %v1376_v11, %v1380_v50  ;;  %v1028_v23 = vsel %vm911_vm2, %v784_v12, 0.0  ;;  %v5729_v26 = vpack.c.bf16 %v785_v15, %v785_v15  ;;  %v699_v33 = vmul.f32 %v5574_v13, %v641_v31  ;;  %v559_v15 = vld [vmem:[%s5569_s21 + $0x14] sm:$0x1] }
  0x2b   : > { %7097 = vst [vmem:[#allocation8_spill] sm:$0xff] %v5713_v10  ;;  %v1391_v35 = vsel %vm5603_vm4, %v1386_v41, %v1390_v56  ;;  %v1571_v38 = vunpack.c.l.b16 %v1381_v21  ;;  %v5742_v39 = vpack.c.bf16 %v1028_v23, %v1028_v23  ;;  %v786_v40 = vmax.f32 %v732_v55, 0.0  ;;  %v5082_v56 = vld [vmem:[%s7014_s3 + $0xa8] sm:$0xff] }
  0x2c   : > { %7098 = vst [vmem:[#allocation9_spill] sm:$0xff] %v5721_v18  ;;  %1713 = vmatmul.bf16.vlgmr.msra.gmra.mxu2 %v5713_v10  ;;  %1673 = vmatmul.bf16.vlgmr.msra.gmra.mxu0 %v5626_v52  ;;  %v1572_v42 = vunpack.c.l.b16 %v1391_v35  ;;  %v1789_v43 = vunpack.c.l.b16 %v5729_v26  ;;  %v1186_v31 = vshll.u32 %v5729_v26, 16  ;;  %v1190_v44 = vshrl.u32 %v5729_v26, 16 }
  0x2d   : > { %2247 = vmatpush.bf16.msrb.mxu2 %v5084_v59  ;;  %1906 = vmatmul.bf16.vlgmr.msra.gmra.mxu1 %v5585_v22  ;;  %v1788_v45 = vunpack.c.l.b16 %v5742_v39  ;;  %v1030_v46 = vsel %vm970_vm3, %v786_v40, 0.0  ;;  %v1177_v25 = vshrl.u32 %v5742_v39, 16  ;;  %v1180_v36 = vshll.u32 %v5742_v39, 16 }
  0x2e   : > { %2439 = vmatpush.bf16.msrb.mxu3 %v5092_v62  ;;  %2653 = vmatpush.bf16.msrb.mxu0 %v5100_v16  ;;  %v5760_v49 = vpack.c.b16 %v1572_v42, %v1571_v38  ;;  %v5762_v50 = vpack.c.bf16 %v1030_v46, %v1030_v46  ;;  %v1188_v51 = vrot.slane %v1186_v31, 5  ;;  %v1192_v53 = vrot.slane %v1190_v44, 4 }
  0x2f   : > { %1946 = vmatmul.bf16.vlgmr.msra.gmra.mxu3 %v5662_v24  ;;  %2851 = vmatpush.bf16.msrb.mxu1 %v5108_v17  ;;  %v5771_v59 = vpack.c.b16 %v1789_v43, %v1788_v45  ;;  %v1179_v62 = vrot.slane %v1177_v25, 4  ;;  %v1182_v63 = vrot.slane %v1180_v36, 5  ;;  %v700_v0 = vmul.f32 %v5574_v13, %v642_v37  ;;  %v5106_v37 = vld [vmem:[%s7014_s3 + $0x168] sm:$0xff] }
  0x30   : > { %7099 = vst [vmem:[#allocation10_spill] sm:$0xff] %v5760_v49  ;;  %v1193_v1 = vor.u32 %v1192_v53, %v1188_v51  ;;  %v1196_v2 = vshll.u32 %v5762_v50, 16  ;;  %v701_v3 = vmul.f32 %v5574_v13, %v643_v19  ;;  %v757_v4 = vadd.f32 %v5581_v20, %v699_v33 }
  0x31   : > { %2248 = vmatpush.bf16.msrb.mxu2 %v5083_v27  ;;  %v1183_v6 = vor.u32 %v1182_v63, %v1179_v62  ;;  %v758_v9 = vadd.f32 %v5581_v20, %v700_v0  ;;  %v617_v11 = vunpack.c.l.bf16 %v557_v54  ;;  %v618_v12 = vunpack.c.h.bf16 %v557_v54 }
  0x32   : > { %2440 = vmatpush.bf16.msrb.mxu3 %v5091_v28  ;;  %2654 = vmatpush.bf16.msrb.mxu0 %v5099_v47  ;;  %v1194_v16 = vrot.slane %v1193_v1, 4  ;;  %v1198_v17 = vrot.slane %v1196_v2, 5  ;;  %v759_v41 = vadd.f32 %v5581_v20, %v701_v3  ;;  %v811_v55 = vmax.f32 %v757_v4, 0.0 }
  0x33   : > { %2852 = vmatpush.bf16.msrb.mxu1 %v5107_v48  ;;  %v1184_v19 = vrot.slane %v1183_v6, 4  ;;  %v812_v21 = vmax.f32 %v758_v9, 0.0  ;;  %v675_v23 = vmul.f32 %v5574_v13, %v617_v11  ;;  %v676_v27 = vmul.f32 %v5574_v13, %v618_v12 }
  0x34   : > { %v1199_v28 = vsel %vm5603_vm4, %v1194_v16, %v1198_v17  ;;  %v813_v33 = vmax.f32 %v759_v41, 0.0  ;;  %v1055_v35 = vsel %vm911_vm2, %v811_v55, 0.0  ;;  %v619_v38 = vunpack.c.l.bf16 %v559_v15  ;;  %v5081_v41 = vld [vmem:[%s7014_s3 + $0xa0] sm:$0xff] }
  0x35   : > { %2249 = vmatpush.bf16.msrb.mxu2 %v5082_v56  ;;  %v1189_v40 = vsel %vm5603_vm4, %v1184_v19, %v1188_v51  ;;  %v1556_v42 = vunpack.c.l.b16 %v1199_v28  ;;  %v5796_v43 = vpack.c.bf16 %v1055_v35, %v1055_v35  ;;  %v5798_v31 = vpack.c.bf16 %v812_v21, %v812_v21 }
  0x36   : > { %2441 = vmatpush.bf16.msrb.mxu3 %v5090_v57  ;;  %2655 = vmatpush.bf16.msrb.mxu0 %v5098_v14  ;;  %v1555_v44 = vunpack.c.l.b16 %v1189_v40  ;;  %v1057_v45 = vsel %vm970_vm3, %v813_v33, 0.0  ;;  %v733_v46 = vadd.f32 %v5581_v20, %v675_v23  ;;  %v734_v25 = vadd.f32 %v5581_v20, %v676_v27 }
  0x37   : > { %7100 = vst [vmem:[#allocation11_spill] sm:$0xff] %v5796_v43  ;;  %2853 = vmatpush.bf16.msrb.mxu1 %v5106_v37  ;;  %v5804_v36 = vpack.c.bf16 %v1057_v45, %v1057_v45  ;;  %v1393_v47 = vshrl.u32 %v5796_v43, 16  ;;  %v1396_v48 = vshll.u32 %v5796_v43, 16  ;;  %v1402_v51 = vshll.u32 %v5798_v31, 16 }
  0x38   : > { %7101 = vst [vmem:[#allocation12_spill] sm:$0xff] %v5798_v31  ;;  %v5809_v53 = vpack.c.b16 %v1556_v42, %v1555_v44  ;;  %v1406_v54 = vshrl.u32 %v5798_v31, 16  ;;  %v787_v56 = vmax.f32 %v733_v46, 0.0  ;;  %v788_v57 = vmax.f32 %v734_v25, 0.0  ;;  %v586_v46 = vld [vmem:[%s5569_s21 + $0x80] sm:$0x1] }
  0x39   : > { %7102 = vst [vmem:[#allocation13_spill] sm:$0xff] %v5804_v36  ;;  %v1395_v62 = vrot.slane %v1393_v47, 4  ;;  %v1398_v63 = vrot.slane %v1396_v48, 5  ;;  %v1404_v0 = vrot.slane %v1402_v51, 5  ;;  %v1412_v1 = vshll.u32 %v5804_v36, 16  ;;  %2250 = vmatpush.bf16.msrb.mxu2 %v5081_v41  ;;  %v5349_v25 = vld [vmem:[%s5569_s21 + $0x18] sm:$0xff]  }
  0x3a   : > { %v1408_v2 = vrot.slane %v1406_v54, 4  ;;  %v1031_v3 = vsel %vm911_vm2, %v787_v56, 0.0  ;;  %v5815_v4 = vpack.c.bf16 %v788_v57, %v788_v57  ;;  %v1806_v6 = vunpack.c.l.b16 %v5796_v43 }
  0x3b   : > { %v1399_v9 = vor.u32 %v1398_v63, %v1395_v62  ;;  %v1414_v11 = vrot.slane %v1412_v1, 5  ;;  %v5820_v12 = vpack.c.bf16 %v1031_v3, %v1031_v3  ;;  %v1807_v15 = vunpack.c.l.b16 %v5798_v31  ;;  %v5097_v1 = vld [vmem:[%s7014_s3 + $0x120] sm:$0xff] }
  0x3c   : > { %1718 = vmatmul.bf16.gmra.mxu2 %v5760_v49  ;;  %1678 = vmatmul.bf16.gmra.mxu0 %v5809_v53  ;;  %v1409_v14 = vor.u32 %v1408_v2, %v1404_v0  ;;  %v1791_v37 = vunpack.c.l.b16 %v5815_v4  ;;  %v677_v16 = vmul.f32 %v5574_v13, %v619_v38  ;;  %v1210_v17 = vshll.u32 %v5815_v4, 16  ;;  %v5353_v38 = vld [vmem:[%s5569_s21 + $0x78] sm:$0xff]   ;;  %v5105_v2 = vld [vmem:[%s7014_s3 + $0x160] sm:$0xff] }
  0x3d   : > { %1911 = vmatmul.bf16.gmra.mxu1 %v5771_v59  ;;  %v1400_v55 = vrot.slane %v1399_v9, 4  ;;  %v1790_v19 = vunpack.c.l.b16 %v5820_v12  ;;  %v5832_v21 = vpack.c.b16 %v1807_v15, %v1806_v6  ;;  %v1201_v23 = vshrl.u32 %v5820_v12, 16  ;;  %2656 = vmatpush.bf16.msrb.mxu0 %v5097_v1  ;;  %v569_v49 = vld [vmem:[%s5569_s21 + $0x3c] sm:$0xff]  }
  0x3e   : > { %v1410_v27 = vrot.slane %v1409_v14, 4  ;;  %v735_v28 = vadd.f32 %v5581_v20, %v677_v16  ;;  %v1204_v33 = vshll.u32 %v5820_v12, 16  ;;  %v1212_v35 = vrot.slane %v1210_v17, 5  ;;  %2854 = vmatpush.bf16.msrb.mxu1 %v5105_v2 }
  0x3f   : > { %1951 = vmatmul.bf16.gmra.mxu3 %v5721_v18  ;;  %7103 = vst [vmem:[#allocation14_spill] sm:$0xff] %v5832_v21  ;;  %v1405_v40 = vsel %vm5603_vm4, %v1400_v55, %v1404_v0  ;;  %v5840_v42 = vpack.c.b16 %v1791_v37, %v1790_v19  ;;  %v1203_v44 = vrot.slane %v1201_v23, 4  ;;  %v1214_v45 = vshrl.u32 %v5815_v4, 16  ;;  %v5089_v0 = vld [vmem:[%s7014_s3 + $0xe0] sm:$0xff] }
  0x40   : > { %v1415_v47 = vsel %vm5603_vm4, %v1410_v27, %v1414_v11  ;;  %v1573_v48 = vunpack.c.l.b16 %v1405_v40  ;;  %v789_v51 = vmax.f32 %v735_v28, 0.0  ;;  %v1206_v54 = vrot.slane %v1204_v33, 5  ;;  %2442 = vmatpush.bf16.msrb.mxu3 %v5089_v0 }
  0x41   : > { %v1574_v56 = vunpack.c.l.b16 %v1415_v47  ;;  %v1216_v57 = vrot.slane %v1214_v45, 4  ;;  %v5179_v62 = vunpack.c.l.bf16 %v5353_v38  ;;  %v5180_v63 = vunpack.c.h.bf16 %v5353_v38  ;;  %v562_v38 = vld [vmem:[%s5569_s21 + $0x20] sm:$0x1] }
  0x42   : > { %v1033_v3 = vsel %vm970_vm3, %v789_v51, 0.0  ;;  %v1207_v6 = vor.u32 %v1206_v54, %v1203_v44  ;;  %v646_v9 = vunpack.c.l.bf16 %v586_v46  ;;  %v5163_v11 = vunpack.c.l.bf16 %v5349_v25 }
  0x43   : > { %v5858_v15 = vpack.c.b16 %v1574_v56, %v1573_v48  ;;  %v5860_v14 = vpack.c.bf16 %v1033_v3, %v1033_v3  ;;  %v1217_v37 = vor.u32 %v1216_v57, %v1212_v35  ;;  %v702_v16 = vmul.f32 %v5574_v13, %v5179_v62 }
  0x44   : > { %v1208_v17 = vrot.slane %v1207_v6, 4  ;;  %v703_v41 = vmul.f32 %v5574_v13, %v5180_v63  ;;  %v704_v55 = vmul.f32 %v5574_v13, %v646_v9  ;;  %v5164_v19 = vunpack.c.h.bf16 %v5349_v25  ;;  %v5875_v25 = vld [vmem:[%s5569_s21 + $0x84] sm:$0xff]  }
  0x45   : > { %7104 = vst [vmem:[#allocation15_spill] sm:$0xff] %v5858_v15  ;;  %v1218_v23 = vrot.slane %v1217_v37, 4  ;;  %v1220_v27 = vshll.u32 %v5860_v14, 16  ;;  %v760_v28 = vadd.f32 %v5581_v20, %v702_v16  ;;  %v678_v33 = vmul.f32 %v5574_v13, %v5163_v11 }
  0x46   : > { %v1213_v40 = vsel %vm5603_vm4, %v1208_v17, %v1212_v35  ;;  %v761_v44 = vadd.f32 %v5581_v20, %v703_v41  ;;  %v762_v45 = vadd.f32 %v5581_v20, %v704_v55  ;;  %v679_v46 = vmul.f32 %v5574_v13, %v5164_v19 }
  0x47   : > { %v1222_v47 = vrot.slane %v1220_v27, 5  ;;  %v1557_v48 = vunpack.c.l.b16 %v1213_v40  ;;  %v814_v51 = vmax.f32 %v760_v28, 0.0  ;;  %v736_v54 = vadd.f32 %v5581_v20, %v678_v33  ;;  %v5080_v28 = vld [vmem:[%s7014_s3 + $0x98] sm:$0xff] }
  0x48   : > { %v815_v56 = vmax.f32 %v761_v44, 0.0  ;;  %v816_v57 = vmax.f32 %v762_v45, 0.0  ;;  %v737_v62 = vadd.f32 %v5581_v20, %v679_v46  ;;  %v622_v63 = vunpack.c.l.bf16 %v562_v38  ;;  %2251 = vmatpush.bf16.msrb.mxu2 %v5080_v28 }
  0x49   : > { %v1223_v35 = vsel %vm5603_vm4, %v1218_v23, %v1222_v47  ;;  %v1058_v0 = vsel %vm911_vm2, %v814_v51, 0.0  ;;  %v790_v1 = vmax.f32 %v736_v54, 0.0  ;;  %v647_v2 = vunpack.c.l.bf16 %v5875_v25 }
  0x4a   : > { %v1558_v3 = vunpack.c.l.b16 %v1223_v35  ;;  %v1060_v6 = vsel %vm970_vm3, %v816_v57, 0.0  ;;  %v5886_v9 = vpack.c.bf16 %v1058_v0, %v1058_v0  ;;  %v5888_v11 = vpack.c.bf16 %v815_v56, %v815_v56 }
  0x4b   : > { %v5892_v37 = vpack.c.bf16 %v1060_v6, %v1060_v6  ;;  %v791_v16 = vmax.f32 %v737_v62, 0.0  ;;  %v1034_v17 = vsel %vm911_vm2, %v790_v1, 0.0  ;;  %v680_v41 = vmul.f32 %v5574_v13, %v622_v63 }
  0x4c   : > { %7105 = vst [vmem:[#allocation16_spill] sm:$0xff] %v5886_v9  ;;  %1723 = vmatmul.bf16.gmra.mxu2 %v5858_v15  ;;  %v5898_v55 = vpack.c.b16 %v1558_v3, %v1557_v48  ;;  %v1417_v19 = vshrl.u32 %v5886_v9, 16  ;;  %v1420_v23 = vshll.u32 %v5886_v9, 16  ;;  %v1426_v27 = vshll.u32 %v5888_v11, 16 }
  0x4d   : > { %7106 = vst [vmem:[#allocation17_spill] sm:$0xff] %v5888_v11  ;;  %1916 = vmatmul.bf16.gmra.mxu1 %v5840_v42  ;;  %v1430_v33 = vshrl.u32 %v5888_v11, 16  ;;  %v1436_v38 = vshll.u32 %v5892_v37, 16  ;;  %v5908_v40 = vpack.c.bf16 %v1034_v17, %v1034_v17  ;;  %v5910_v44 = vpack.c.bf16 %v791_v16, %v791_v16  ;;  %v589_v17 = vld [vmem:[%s5569_s21 + $0x8c] sm:$0x1] }
  0x4e   : > { %7107 = vst [vmem:[#allocation18_spill] sm:$0xff] %v5892_v37  ;;  %1683 = vmatmul.bf16.gmra.mxu0 %v5898_v55  ;;  %v1419_v45 = vrot.slane %v1417_v19, 4  ;;  %v1422_v46 = vrot.slane %v1420_v23, 5  ;;  %v1428_v47 = vrot.slane %v1426_v27, 5  ;;  %v1808_v48 = vunpack.c.l.b16 %v5886_v9  ;;  %v5350_v37 = vld [vmem:[%s5569_s21 + $0x30] sm:$0xff]  }
  0x4f   : > { %1956 = vmatmul.bf16.gmra.mxu3 %v5832_v21  ;;  %v1432_v51 = vrot.slane %v1430_v33, 4  ;;  %v1438_v54 = vrot.slane %v1436_v38, 5  ;;  %v1792_v56 = vunpack.c.l.b16 %v5908_v40  ;;  %v1793_v57 = vunpack.c.l.b16 %v5910_v44 }
  0x50   : > { %v1423_v62 = vor.u32 %v1422_v46, %v1419_v45  ;;  %v1809_v63 = vunpack.c.l.b16 %v5888_v11  ;;  %v738_v35 = vadd.f32 %v5581_v20, %v680_v41  ;;  %v1225_v0 = vshrl.u32 %v5908_v40, 16 }
  0x51   : > { %v1433_v1 = vor.u32 %v1432_v51, %v1428_v47  ;;  %v5919_v3 = vpack.c.b16 %v1793_v57, %v1792_v56  ;;  %v1228_v6 = vshll.u32 %v5908_v40, 16  ;;  %v1234_v16 = vshll.u32 %v5910_v44, 16 }
  0x52   : > { %v1424_v19 = vrot.slane %v1423_v62, 4  ;;  %v5924_v23 = vpack.c.b16 %v1809_v63, %v1808_v48  ;;  %v792_v27 = vmax.f32 %v738_v35, 0.0  ;;  %v1227_v28 = vrot.slane %v1225_v0, 4  ;;  %v5088_v0 = vld [vmem:[%s7014_s3 + $0xd8] sm:$0xff] }
  0x53   : > { %v1434_v33 = vrot.slane %v1433_v1, 4  ;;  %v1230_v38 = vrot.slane %v1228_v6, 5  ;;  %v1236_v45 = vrot.slane %v1234_v16, 5  ;;  %v1238_v41 = vshrl.u32 %v5910_v44, 16  ;;  %2443 = vmatpush.bf16.msrb.mxu3 %v5088_v0 }
  0x54   : > { %7108 = vst [vmem:[#allocation19_spill] sm:$0xff] %v5924_v23  ;;  %v1429_v46 = vsel %vm5603_vm4, %v1424_v19, %v1428_v47  ;;  %v1036_v51 = vsel %vm970_vm3, %v792_v27, 0.0  ;;  %v648_v56 = vunpack.c.h.bf16 %v5875_v25  ;;  %v649_v57 = vunpack.c.l.bf16 %v589_v17  ;;  %v5096_v47 = vld [vmem:[%s7014_s3 + $0x118] sm:$0xff] }
  0x55   : > { %v1439_v48 = vsel %vm5603_vm4, %v1434_v33, %v1438_v54  ;;  %v1575_v62 = vunpack.c.l.b16 %v1429_v46  ;;  %v5935_v63 = vpack.c.bf16 %v1036_v51, %v1036_v51  ;;  %v1231_v35 = vor.u32 %v1230_v38, %v1227_v28  ;;  %v5104_v25 = vld [vmem:[%s7014_s3 + $0x158] sm:$0xff]  ;;  %2657 = vmatpush.bf16.msrb.mxu0 %v5096_v47  ;;  %v565_v51 = vld [vmem:[%s5569_s21 + $0x2c] sm:$0x1] }
  0x56   : > { %v1576_v1 = vunpack.c.l.b16 %v1439_v48  ;;  %v1240_v6 = vrot.slane %v1238_v41, 4  ;;  %v705_v54 = vmul.f32 %v5574_v13, %v647_v2  ;;  %v706_v16 = vmul.f32 %v5574_v13, %v648_v56  ;;  %2855 = vmatpush.bf16.msrb.mxu1 %v5104_v25 }
  0x57   : > { %v1232_v17 = vrot.slane %v1231_v35, 4  ;;  %v1244_v19 = vshll.u32 %v5935_v63, 16  ;;  %v707_v27 = vmul.f32 %v5574_v13, %v649_v57  ;;  %v623_v28 = vunpack.c.l.bf16 %v563_v8  ;;  %v5959_v57 = vld [vmem:[%s5569_s21 + $0x90] sm:$0xff]  }
  0x58   : > { %v5950_v33 = vpack.c.b16 %v1576_v1, %v1575_v62  ;;  %v1241_v38 = vor.u32 %v1240_v6, %v1236_v45  ;;  %v763_v46 = vadd.f32 %v5581_v20, %v705_v54  ;;  %v764_v41 = vadd.f32 %v5581_v20, %v706_v16 }
  0x59   : > { %v1237_v2 = vsel %vm5603_vm4, %v1232_v17, %v1236_v45  ;;  %v1246_v56 = vrot.slane %v1244_v19, 5  ;;  %v765_v48 = vadd.f32 %v5581_v20, %v707_v27  ;;  %v624_v35 = vunpack.c.h.bf16 %v563_v8 }
  0x5a   : > { %7109 = vst [vmem:[#allocation20_spill] sm:$0xff] %v5950_v33  ;;  %v1242_v0 = vrot.slane %v1241_v38, 4  ;;  %v1559_v47 = vunpack.c.l.b16 %v1237_v2  ;;  %v817_v62 = vmax.f32 %v763_v46, 0.0  ;;  %v818_v1 = vmax.f32 %v764_v41, 0.0 }
  0x5b   : > { %v819_v6 = vmax.f32 %v765_v48, 0.0  ;;  %v681_v25 = vmul.f32 %v5574_v13, %v623_v28  ;;  %v682_v54 = vmul.f32 %v5574_v13, %v624_v35  ;;  %v625_v45 = vunpack.c.l.bf16 %v565_v51 }
  0x5c   : > { %1728 = vmatmul.bf16.gmra.mxu2 %v5950_v33  ;;  %v1247_v8 = vsel %vm5603_vm4, %v1242_v0, %v1246_v56  ;;  %v1061_v16 = vsel %vm911_vm2, %v817_v62, 0.0  ;;  %v5970_v17 = vpack.c.bf16 %v818_v1, %v818_v1  ;;  %v5183_v19 = vunpack.c.l.bf16 %v5959_v57  ;;  %v5079_v1 = vld [vmem:[%s7014_s3 + $0x90] sm:$0xff] }
  0x5d   : > { %1921 = vmatmul.bf16.gmra.mxu1 %v5919_v3  ;;  %v1560_v27 = vunpack.c.l.b16 %v1247_v8  ;;  %v1063_v38 = vsel %vm970_vm3, %v819_v6, 0.0  ;;  %v5975_v28 = vpack.c.bf16 %v1061_v16, %v1061_v16  ;;  %v739_v46 = vadd.f32 %v5581_v20, %v681_v25  ;;  %2252 = vmatpush.bf16.msrb.mxu2 %v5079_v1 }
  0x5e   : > { %7110 = vst [vmem:[#allocation21_spill] sm:$0xff] %v5970_v17  ;;  %v5978_v41 = vpack.c.bf16 %v1063_v38, %v1063_v38  ;;  %v1450_v51 = vshll.u32 %v5970_v17, 16  ;;  %v1454_v2 = vshrl.u32 %v5970_v17, 16  ;;  %v740_v56 = vadd.f32 %v5581_v20, %v682_v54 }
  0x5f   : > { %1961 = vmatmul.bf16.gmra.mxu3 %v5924_v23  ;;  %7111 = vst [vmem:[#allocation22_spill] sm:$0xff] %v5975_v28  ;;  %v5983_v48 = vpack.c.b16 %v1560_v27, %v1559_v47  ;;  %v1441_v35 = vshrl.u32 %v5975_v28, 16  ;;  %v1444_v0 = vshll.u32 %v5975_v28, 16  ;;  %v793_v62 = vmax.f32 %v739_v46, 0.0 }
  0x60   : > { %7112 = vst [vmem:[#allocation23_spill] sm:$0xff] %v5978_v41  ;;  %v1452_v6 = vrot.slane %v1450_v51, 5  ;;  %v1456_v25 = vrot.slane %v1454_v2, 4  ;;  %v1460_v8 = vshll.u32 %v5978_v41, 16  ;;  %v794_v16 = vmax.f32 %v740_v56, 0.0 }
  0x61   : > { %1688 = vmatmul.bf16.gmra.mxu0 %v5983_v48  ;;  %v1443_v38 = vrot.slane %v1441_v35, 4  ;;  %v1446_v54 = vrot.slane %v1444_v0, 5  ;;  %v1037_v47 = vsel %vm911_vm2, %v793_v62, 0.0  ;;  %v1810_v27 = vunpack.c.l.b16 %v5975_v28 }
  0x62   : > { %v1457_v46 = vor.u32 %v1456_v25, %v1452_v6  ;;  %v1462_v22 = vrot.slane %v1460_v8, 5  ;;  %v5995_v52 = vpack.c.bf16 %v1037_v47, %v1037_v47  ;;  %v5997_v51 = vpack.c.bf16 %v794_v16, %v794_v16 }
  0x63   : > { %v1447_v2 = vor.u32 %v1446_v54, %v1443_v38  ;;  %v1811_v56 = vunpack.c.l.b16 %v5970_v17  ;;  %v683_v33 = vmul.f32 %v5574_v13, %v625_v45  ;;  %v5184_v35 = vunpack.c.h.bf16 %v5959_v57  ;;  %v592_v54 = vld [vmem:[%s5569_s21 + $0x98] sm:$0x1] }
  0x64   : > { %v1458_v0 = vrot.slane %v1457_v46, 4  ;;  %v1794_v62 = vunpack.c.l.b16 %v5995_v52  ;;  %v1795_v41 = vunpack.c.l.b16 %v5997_v51  ;;  %v1249_v1 = vshrl.u32 %v5995_v52, 16 }
  0x65   : > { %v1448_v25 = vrot.slane %v1447_v2, 4  ;;  %v6005_v8 = vpack.c.b16 %v1811_v56, %v1810_v27  ;;  %v741_v16 = vadd.f32 %v5581_v20, %v683_v33  ;;  %v1252_v38 = vshll.u32 %v5995_v52, 16 }
  0x66   : > { %v1463_v45 = vsel %vm5603_vm4, %v1458_v0, %v1462_v22  ;;  %v6012_v57 = vpack.c.b16 %v1795_v41, %v1794_v62  ;;  %v1251_v47 = vrot.slane %v1249_v1, 4  ;;  %v1258_v46 = vshll.u32 %v5997_v51, 16  ;;  %v5087_v22 = vld [vmem:[%s7014_s3 + $0xd0] sm:$0xff] }
  0x67   : > { %7113 = vst [vmem:[#allocation24_spill] sm:$0xff] %v6005_v8  ;;  %v1453_v28 = vsel %vm5603_vm4, %v1448_v25, %v1452_v6  ;;  %v1578_v2 = vunpack.c.l.b16 %v1463_v45  ;;  %v795_v27 = vmax.f32 %v741_v16, 0.0  ;;  %v1254_v56 = vrot.slane %v1252_v38, 5  ;;  %v5095_v41 = vld [vmem:[%s7014_s3 + $0x110] sm:$0xff]  ;;  %2444 = vmatpush.bf16.msrb.mxu3 %v5087_v22 }
  0x68   : > { %7114 = vst [vmem:[#allocation25_spill] sm:$0xff] %v6012_v57  ;;  %v1577_v23 = vunpack.c.l.b16 %v1453_v28  ;;  %v1260_v17 = vrot.slane %v1258_v46, 5  ;;  %v1262_v33 = vshrl.u32 %v5997_v51, 16  ;;  %v652_v15 = vunpack.c.l.bf16 %v592_v54  ;;  %v5103_v1 = vld [vmem:[%s7014_s3 + $0x150] sm:$0xff]  ;;  %2658 = vmatpush.bf16.msrb.mxu0 %v5095_v41  ;;  %v568_v41 = vld [vmem:[%s5569_s21 + $0x38] sm:$0x1] }
  0x69   : > { %v1039_v6 = vsel %vm970_vm3, %v795_v27, 0.0  ;;  %v1255_v0 = vor.u32 %v1254_v56, %v1251_v47  ;;  %v708_v62 = vmul.f32 %v5574_v13, %v5183_v19  ;;  %v709_v28 = vmul.f32 %v5574_v13, %v5184_v35  ;;  %2856 = vmatpush.bf16.msrb.mxu1 %v5103_v1 }
  0x6a   : > { %v6032_v25 = vpack.c.b16 %v1578_v2, %v1577_v23  ;;  %v6034_v16 = vpack.c.bf16 %v1039_v6, %v1039_v6  ;;  %v1264_v38 = vrot.slane %v1262_v33, 4  ;;  %v710_v54 = vmul.f32 %v5574_v13, %v652_v15 }
  0x6b   : > { %v1256_v45 = vrot.slane %v1255_v0, 4  ;;  %v766_v19 = vadd.f32 %v5581_v20, %v708_v62  ;;  %v767_v35 = vadd.f32 %v5581_v20, %v709_v28  ;;  %v5167_v47 = vunpack.c.l.bf16 %v5350_v37 }
  0x6c   : > { %7115 = vst [vmem:[#allocation26_spill] sm:$0xff] %v6032_v25  ;;  %1733 = vmatmul.bf16.gmra.mxu2 %v6032_v25  ;;  %v1265_v23 = vor.u32 %v1264_v38, %v1260_v17  ;;  %v1268_v46 = vshll.u32 %v6034_v16, 16  ;;  %v768_v15 = vadd.f32 %v5581_v20, %v710_v54  ;;  %v5168_v2 = vunpack.c.h.bf16 %v5350_v37 }
  0x6d   : > { %1926 = vmatmul.bf16.gmra.mxu1 %v6012_v57  ;;  %v1261_v27 = vsel %vm5603_vm4, %v1256_v45, %v1260_v17  ;;  %v820_v56 = vmax.f32 %v766_v19, 0.0  ;;  %v821_v33 = vmax.f32 %v767_v35, 0.0  ;;  %v684_v22 = vmul.f32 %v5574_v13, %v5167_v47 }
  0x6e   : > { %v1266_v6 = vrot.slane %v1265_v23, 4  ;;  %v1270_v0 = vrot.slane %v1268_v46, 5  ;;  %v1561_v62 = vunpack.c.l.b16 %v1261_v27  ;;  %v822_v28 = vmax.f32 %v768_v15, 0.0 }
  0x6f   : > { %1966 = vmatmul.bf16.gmra.mxu3 %v6005_v8  ;;  %v1064_v38 = vsel %vm911_vm2, %v820_v56, 0.0  ;;  %v6050_v25 = vpack.c.bf16 %v821_v33, %v821_v33  ;;  %v685_v37 = vmul.f32 %v5574_v13, %v5168_v2  ;;  %v742_v54 = vadd.f32 %v5581_v20, %v684_v22 }
  0x70   : > { %v1271_v17 = vsel %vm5603_vm4, %v1266_v6, %v1270_v0  ;;  %v1066_v45 = vsel %vm970_vm3, %v822_v28, 0.0  ;;  %v6058_v1 = vpack.c.bf16 %v1064_v38, %v1064_v38  ;;  %v628_v19 = vunpack.c.l.bf16 %v568_v41 }
  0x71   : > { %7116 = vst [vmem:[#allocation27_spill] sm:$0xff] %v6050_v25  ;;  %v1562_v35 = vunpack.c.l.b16 %v1271_v17  ;;  %v6060_v47 = vpack.c.bf16 %v1066_v45, %v1066_v45  ;;  %v1474_v23 = vshll.u32 %v6050_v25, 16  ;;  %v1478_v46 = vshrl.u32 %v6050_v25, 16  ;;  %v5078_v17 = vld [vmem:[%s7014_s3 + $0x88] sm:$0xff] }
  0x72   : > { %7117 = vst [vmem:[#allocation28_spill] sm:$0xff] %v6058_v1  ;;  %v1465_v13 = vshrl.u32 %v6058_v1, 16  ;;  %v1468_v15 = vshll.u32 %v6058_v1, 16  ;;  %v743_v2 = vadd.f32 %v5581_v20, %v685_v37  ;;  %v796_v27 = vmax.f32 %v742_v54, 0.0  ;;  %2253 = vmatpush.bf16.msrb.mxu2 %v5078_v17 }
  0x73   : > { %7118 = vst [vmem:[#allocation29_spill] sm:$0xff] %v6060_v47  ;;  %v6067_v56 = vpack.c.b16 %v1562_v35, %v1561_v62  ;;  %v1476_v33 = vrot.slane %v1474_v23, 5  ;;  %v1480_v22 = vrot.slane %v1478_v46, 4  ;;  %v1484_v41 = vshll.u32 %v6060_v47, 16  ;;  %v6085_v46 = vld [vmem:[%s7012_s1] ss:$0 sm:$0xff] }
  0x74   : > { %v1467_v6 = vrot.slane %v1465_v13, 4  ;;  %v1470_v0 = vrot.slane %v1468_v15, 5  ;;  %v797_v28 = vmax.f32 %v743_v2, 0.0  ;;  %v1040_v38 = vsel %vm911_vm2, %v796_v27, 0.0 }
  0x75   : > { %1693 = vmatmul.bf16.gmra.mxu0 %v6067_v56  ;;  %v1481_v20 = vor.u32 %v1480_v22, %v1476_v33  ;;  %v1486_v37 = vrot.slane %v1484_v41, 5  ;;  %v6076_v62 = vpack.c.bf16 %v1040_v38, %v1040_v38  ;;  %v1812_v54 = vunpack.c.l.b16 %v6058_v1  ;;  %v595_v1 = vld [vmem:[%s5569_s21 + $0xa4] sm:$0x1] }
  0x76   : > { %v1471_v45 = vor.u32 %v1470_v0, %v1467_v6  ;;  %v6079_v35 = vpack.c.bf16 %v797_v28, %v797_v28  ;;  %v1813_v23 = vunpack.c.l.b16 %v6050_v25  ;;  %v686_v13 = vmul.f32 %v6085_v46, %v628_v19  ;;  %v6097_v28 = vld [vmem:[%s7013_s2] ss:$0 sm:$0xff] }
  0x77   : > { %v1482_v15 = vrot.slane %v1481_v20, 4  ;;  %v1796_v2 = vunpack.c.l.b16 %v6076_v62  ;;  %v1273_v27 = vshrl.u32 %v6076_v62, 16  ;;  %v1276_v22 = vshll.u32 %v6076_v62, 16 }
  0x78   : > { %v1472_v41 = vrot.slane %v1471_v45, 4  ;;  %v1797_v6 = vunpack.c.l.b16 %v6079_v35  ;;  %v6092_v0 = vpack.c.b16 %v1813_v23, %v1812_v54  ;;  %v744_v19 = vadd.f32 %v6097_v28, %v686_v13  ;;  %v593_v45 = vld [vmem:[%s5569_s21 + $0x9c] sm:$0xff]  }
  0x79   : > { %v1487_v38 = vsel %vm5603_vm4, %v1482_v15, %v1486_v37  ;;  %v1275_v17 = vrot.slane %v1273_v27, 4  ;;  %v1278_v20 = vrot.slane %v1276_v22, 5  ;;  %v1282_v47 = vshll.u32 %v6079_v35, 16  ;;  %v5102_v22 = vld [vmem:[%s7014_s3 + $0x148] sm:$0xff] }
  0x7a   : > { %7119 = vst [vmem:[#allocation30_spill] sm:$0xff] %v6092_v0  ;;  %v1477_v54 = vsel %vm5603_vm4, %v1472_v41, %v1476_v33  ;;  %v1580_v23 = vunpack.c.l.b16 %v1487_v38  ;;  %v6107_v8 = vpack.c.b16 %v1797_v6, %v1796_v2  ;;  %v798_v25 = vmax.f32 %v744_v19, 0.0  ;;  %v5086_v2 = vld [vmem:[%s7014_s3 + $0xc8] sm:$0xff]  ;;  %2857 = vmatpush.bf16.msrb.mxu1 %v5102_v22 }
  0x7b   : > { %v1579_v9 = vunpack.c.l.b16 %v1477_v54  ;;  %v1279_v21 = vor.u32 %v1278_v20, %v1275_v17  ;;  %v1284_v11 = vrot.slane %v1282_v47, 5  ;;  %v1286_v13 = vshrl.u32 %v6079_v35, 16  ;;  %v5094_v47 = vld [vmem:[%s7014_s3 + $0x108] sm:$0xff]  ;;  %2445 = vmatpush.bf16.msrb.mxu3 %v5086_v2 }
  0x7c   : > { %v1042_v37 = vsel %vm970_vm3, %v798_v25, 0.0  ;;  %v653_v15 = vunpack.c.l.bf16 %v593_v45  ;;  %v654_v27 = vunpack.c.h.bf16 %v593_v45  ;;  %v655_v33 = vunpack.c.l.bf16 %v595_v1  ;;  %2659 = vmatpush.bf16.msrb.mxu0 %v5094_v47 }
  0x7d   : > { %1931 = vmatmul.bf16.gmra.mxu1 %v6107_v8  ;;  %v6124_v41 = vpack.c.b16 %v1580_v23, %v1579_v9  ;;  %v6126_v6 = vpack.c.bf16 %v1042_v37, %v1042_v37  ;;  %v1280_v25 = vrot.slane %v1279_v21, 4  ;;  %v1288_v19 = vrot.slane %v1286_v13, 4  ;;  %v571_v23 = vld [vmem:[%s5569_s21 + $0x44] sm:$0x1] }
  0x7e   : > { %v711_v1 = vmul.f32 %v6085_v46, %v653_v15  ;;  %v712_v38 = vmul.f32 %v6085_v46, %v654_v27  ;;  %v713_v17 = vmul.f32 %v6085_v46, %v655_v33  ;;  %v629_v20 = vunpack.c.l.bf16 %v569_v49  ;;  %v6140_v33 = vld [vmem:[%s5569_s21 + $0xa8] sm:$0xff]  }
  0x7f   : > { %1971 = vmatmul.bf16.gmra.mxu3 %v6092_v0  ;;  %7120 = vst [vmem:[#allocation31_spill] sm:$0xff] %v6124_v41  ;;  %1738 = vmatmul.bf16.gmra.mxu2 %v6124_v41  ;;  %v1285_v9 = vsel %vm5603_vm4, %v1280_v25, %v1284_v11  ;;  %v1289_v45 = vor.u32 %v1288_v19, %v1284_v11  ;;  %v1292_v54 = vshll.u32 %v6126_v6, 16  ;;  %v630_v21 = vunpack.c.h.bf16 %v569_v49 }
  0x80   : > { %v1563_v13 = vunpack.c.l.b16 %v1285_v9  ;;  %v769_v37 = vadd.f32 %v6097_v28, %v711_v1  ;;  %v770_v15 = vadd.f32 %v6097_v28, %v712_v38  ;;  %v771_v27 = vadd.f32 %v6097_v28, %v713_v17 }
  0x81   : > { %v1290_v2 = vrot.slane %v1289_v45, 4  ;;  %v1294_v47 = vrot.slane %v1292_v54, 5  ;;  %v687_v41 = vmul.f32 %v6085_v46, %v629_v20  ;;  %v688_v11 = vmul.f32 %v6085_v46, %v630_v21 }
  0x82   : > { %v823_v25 = vmax.f32 %v769_v37, 0.0  ;;  %v824_v19 = vmax.f32 %v770_v15, 0.0  ;;  %v825_v49 = vmax.f32 %v771_v27, 0.0  ;;  %v631_v0 = vunpack.c.l.bf16 %v571_v23 }
  0x83   : > { %v1295_v22 = vsel %vm5603_vm4, %v1290_v2, %v1294_v47  ;;  %v745_v1 = vadd.f32 %v6097_v28, %v687_v41  ;;  %v746_v38 = vadd.f32 %v6097_v28, %v688_v11  ;;  %v5187_v17 = vunpack.c.l.bf16 %v6140_v33 }
  0x84   : > { %v1564_v9 = vunpack.c.l.b16 %v1295_v22  ;;  %v1067_v45 = vsel %vm911_vm2, %v823_v25, 0.0  ;;  %v1069_v20 = vsel %vm970_vm3, %v825_v49, 0.0  ;;  %v6153_v54 = vpack.c.bf16 %v824_v19, %v824_v19 }
  0x85   : > { %v6155_v21 = vpack.c.bf16 %v1067_v45, %v1067_v45  ;;  %v6157_v23 = vpack.c.bf16 %v1069_v20, %v1069_v20  ;;  %v799_v37 = vmax.f32 %v745_v1, 0.0  ;;  %v800_v15 = vmax.f32 %v746_v38, 0.0 }
  0x86   : > { %7121 = vst [vmem:[#allocation32_spill] sm:$0xff] %v6153_v54  ;;  %v6159_v41 = vpack.c.b16 %v1564_v9, %v1563_v13  ;;  %v1498_v27 = vshll.u32 %v6153_v54, 16  ;;  %v1502_v2 = vshrl.u32 %v6153_v54, 16  ;;  %v1815_v47 = vunpack.c.l.b16 %v6153_v54  ;;  %v5077_v13 = vld [vmem:[%s7014_s3 + $0x80] sm:$0xff] }
  0x87   : > { %7122 = vst [vmem:[#allocation33_spill] sm:$0xff] %v6155_v21  ;;  %v1489_v11 = vshrl.u32 %v6155_v21, 16  ;;  %v1492_v25 = vshll.u32 %v6155_v21, 16  ;;  %v1508_v19 = vshll.u32 %v6157_v23, 16  ;;  %v1043_v49 = vsel %vm911_vm2, %v799_v37, 0.0  ;;  %2254 = vmatpush.bf16.msrb.mxu2 %v5077_v13 }
  0x88   : > { %7123 = vst [vmem:[#allocation34_spill] sm:$0xff] %v6157_v23  ;;  %1698 = vmatmul.bf16.gmra.mxu0 %v6159_v41  ;;  %v1500_v22 = vrot.slane %v1498_v27, 5  ;;  %v1504_v1 = vrot.slane %v1502_v2, 4  ;;  %v6173_v38 = vpack.c.bf16 %v1043_v49, %v1043_v49  ;;  %v6175_v9 = vpack.c.bf16 %v800_v15, %v800_v15 }
  0x89   : > { %v1491_v45 = vrot.slane %v1489_v11, 4  ;;  %v1494_v20 = vrot.slane %v1492_v25, 5  ;;  %v1510_v54 = vrot.slane %v1508_v19, 5  ;;  %v1814_v23 = vunpack.c.l.b16 %v6155_v21 }
  0x8a   : > { %v1505_v36 = vor.u32 %v1504_v1, %v1500_v22  ;;  %v1798_v37 = vunpack.c.l.b16 %v6173_v38  ;;  %v1799_v43 = vunpack.c.l.b16 %v6175_v9  ;;  %v689_v18 = vmul.f32 %v6085_v46, %v631_v0 }
  0x8b   : > { %v1495_v27 = vor.u32 %v1494_v20, %v1491_v45  ;;  %v6181_v2 = vpack.c.b16 %v1815_v47, %v1814_v23  ;;  %v1297_v15 = vshrl.u32 %v6173_v38, 16  ;;  %v1300_v11 = vshll.u32 %v6173_v38, 16  ;;  %v598_v47 = vld [vmem:[%s5569_s21 + $0xb0] sm:$0x1]  ;;  %v5085_v20 = vld [vmem:[%s7014_s3 + $0xc0] sm:$0xff] }
  0x8c   : > { %v1506_v25 = vrot.slane %v1505_v36, 4  ;;  %v6185_v19 = vpack.c.b16 %v1799_v43, %v1798_v37  ;;  %v747_v49 = vadd.f32 %v6097_v28, %v689_v18  ;;  %v1306_v13 = vshll.u32 %v6175_v9, 16  ;;  %v5093_v37 = vld [vmem:[%s7014_s3 + $0x100] sm:$0xff]  ;;  %2446 = vmatpush.bf16.msrb.mxu3 %v5085_v20 }
  0x8d   : > { %7124 = vst [vmem:[#allocation35_spill] sm:$0xff] %v6181_v2  ;;  %v1496_v1 = vrot.slane %v1495_v27, 4  ;;  %v1299_v21 = vrot.slane %v1297_v15, 4  ;;  %v1302_v0 = vrot.slane %v1300_v11, 5  ;;  %v1310_v23 = vshrl.u32 %v6175_v9, 16  ;;  %v5101_v27 = vld [vmem:[%s7014_s3 + $0x140] sm:$0xff]  ;;  %2660 = vmatpush.bf16.msrb.mxu0 %v5093_v37 }
  0x8e   : > { %7125 = vst [vmem:[#allocation36_spill] sm:$0xff] %v6185_v19  ;;  %v1511_v45 = vsel %vm5603_vm4, %v1506_v25, %v1510_v54  ;;  %1936 = vmatmul.bf16.gmra.mxu1 %v6185_v19  ;;  %v801_v43 = vmax.f32 %v747_v49, 0.0  ;;  %v1308_v36 = vrot.slane %v1306_v13, 5  ;;  %v5188_v18 = vunpack.c.h.bf16 %v6140_v33  ;;  %v5351_v49 = vld [vmem:[%s5569_s21 + $0x48] sm:$0xff]  }
  0x8f   : > { %1976 = vmatmul.bf16.gmra.mxu3 %v6181_v2  ;;  %v1501_v54 = vsel %vm5603_vm4, %v1496_v1, %v1500_v22  ;;  %v1582_v15 = vunpack.c.l.b16 %v1511_v45  ;;  %v1303_v11 = vor.u32 %v1302_v0, %v1299_v21  ;;  %v1312_v25 = vrot.slane %v1310_v23, 4  ;;  %2858 = vmatpush.bf16.msrb.mxu1 %v5101_v27  ;;  %v574_v45 = vld [vmem:[%s5569_s21 + $0x50] sm:$0x1] }
  0x90   : > { %v1581_v33 = vunpack.c.l.b16 %v1501_v54  ;;  %v1045_v13 = vsel %vm970_vm3, %v801_v43, 0.0  ;;  %v658_v2 = vunpack.c.l.bf16 %v598_v47  ;;  %v714_v31 = vmul.f32 %v6085_v46, %v5187_v17 }
  0x91   : > { %v6211_v10 = vpack.c.bf16 %v1045_v13, %v1045_v13  ;;  %v1304_v34 = vrot.slane %v1303_v11, 4  ;;  %v1313_v29 = vor.u32 %v1312_v25, %v1308_v36  ;;  %v715_v22 = vmul.f32 %v6085_v46, %v5188_v18 }
  0x92   : > { %v6214_v21 = vpack.c.b16 %v1582_v15, %v1581_v33  ;;  %v716_v1 = vmul.f32 %v6085_v46, %v658_v2  ;;  %v772_v0 = vadd.f32 %v6097_v28, %v714_v31  ;;  %v5171_v23 = vunpack.c.l.bf16 %v5351_v49 }
  0x93   : > { %v1309_v17 = vsel %vm5603_vm4, %v1304_v34, %v1308_v36  ;;  %v1314_v47 = vrot.slane %v1313_v29, 4  ;;  %v1316_v43 = vshll.u32 %v6211_v10, 16  ;;  %v773_v20 = vadd.f32 %v6097_v28, %v715_v22  ;;  %v5116_v22 = vld [vmem:[%s7014_s3 + $0x1b8] sm:$0xff] }
  0x94   : > { %7126 = vst [vmem:[#allocation37_spill] sm:$0xff] %v6214_v21  ;;  %1743 = vmatmul.bf16.gmra.mxu2 %v6214_v21  ;;  %v774_v18 = vadd.f32 %v6097_v28, %v716_v1  ;;  %v826_v37 = vmax.f32 %v772_v0, 0.0  ;;  %v5172_v27 = vunpack.c.h.bf16 %v5351_v49  ;;  %v690_v31 = vmul.f32 %v6085_v46, %v5171_v23 }
  0x95   : > { %v1318_v54 = vrot.slane %v1316_v43, 5  ;;  %v827_v2 = vmax.f32 %v773_v20, 0.0  ;;  %v634_v15 = vunpack.c.l.bf16 %v574_v45  ;;  %v1565_v11 = vunpack.c.l.b16 %v1309_v17  ;;  %3043 = vmatpush.bf16.msra.mxu2 %v5116_v22 }
  0x96   : > { %v828_v25 = vmax.f32 %v774_v18, 0.0  ;;  %v1070_v29 = vsel %vm911_vm2, %v826_v37, 0.0  ;;  %v691_v34 = vmul.f32 %v6085_v46, %v5172_v27  ;;  %v748_v49 = vadd.f32 %v6097_v28, %v690_v31 }
  0x97   : > { %v1319_v36 = vsel %vm5603_vm4, %v1314_v47, %v1318_v54  ;;  %v6231_v33 = vpack.c.bf16 %v1070_v29, %v1070_v29  ;;  %v6233_v13 = vpack.c.bf16 %v827_v2, %v827_v2  ;;  %v692_v45 = vmul.f32 %v6085_v46, %v634_v15 }
  0x98   : > { %v1566_v1 = vunpack.c.l.b16 %v1319_v36  ;;  %v1072_v0 = vsel %vm970_vm3, %v828_v25, 0.0  ;;  %v749_v23 = vadd.f32 %v6097_v28, %v691_v34  ;;  %v802_v27 = vmax.f32 %v748_v49, 0.0 }
  0x99   : > { %v6243_v17 = vpack.c.bf16 %v1072_v0, %v1072_v0  ;;  %v1513_v47 = vshrl.u32 %v6231_v33, 16  ;;  %v1516_v43 = vshll.u32 %v6231_v33, 16  ;;  %v1522_v20 = vshll.u32 %v6233_v13, 16 }
  0x9a   : > { %v6248_v18 = vpack.c.b16 %v1566_v1, %v1565_v11  ;;  %v1526_v37 = vshrl.u32 %v6233_v13, 16  ;;  %v803_v54 = vmax.f32 %v749_v23, 0.0  ;;  %v1046_v29 = vsel %vm911_vm2, %v802_v27, 0.0  ;;  %v5156_v27 = vld [vmem:[%s7016_s5 + $0x38] sm:$0xff] }
  0x9b   : > { %v1515_v2 = vrot.slane %v1513_v47, 4  ;;  %v1518_v31 = vrot.slane %v1516_v43, 5  ;;  %v1524_v25 = vrot.slane %v1522_v20, 5  ;;  %v1532_v46 = vshll.u32 %v6243_v17, 16  ;;  %v5124_v20 = vld [vmem:[%s7014_s3 + $0x1f8] sm:$0xff]  ;;  %3940 = vmatpush.bf16.msra.mxu1 %v5156_v27 }
  0x9c   : > { %7127 = vst [vmem:[#allocation38_spill] sm:$0xff] %v6248_v18  ;;  %1703 = vmatmul.bf16.gmra.mxu0 %v6248_v18  ;;  %v1528_v15 = vrot.slane %v1526_v37, 4  ;;  %v6255_v34 = vpack.c.bf16 %v803_v54, %v803_v54  ;;  %v1816_v11 = vunpack.c.l.b16 %v6231_v33  ;;  %v6258_v49 = vpack.c.bf16 %v1046_v29, %v1046_v29  ;;  %v5132_v37 = vld [vmem:[%s7014_s3 + $0x238] sm:$0xff]  ;;  %3257 = vmatpush.bf16.msra.mxu3 %v5124_v20 }
  0x9d   : > { %v1519_v36 = vor.u32 %v1518_v31, %v1515_v2  ;;  %v1534_v22 = vrot.slane %v1532_v46, 5  ;;  %v1817_v1 = vunpack.c.l.b16 %v6233_v13  ;;  %v750_v47 = vadd.f32 %v6097_v28, %v692_v45  ;;  %3455 = vmatpush.bf16.msra.mxu0 %v5132_v37 }
  0x9e   : > { %v1529_v0 = vor.u32 %v1528_v15, %v1524_v25  ;;  %v1801_v23 = vunpack.c.l.b16 %v6255_v34  ;;  %v1330_v43 = vshll.u32 %v6255_v34, 16  ;;  %v1800_v2 = vunpack.c.l.b16 %v6258_v49 }
  0x9f   : > { %v1520_v54 = vrot.slane %v1519_v36, 4  ;;  %v6274_v31 = vpack.c.b16 %v1817_v1, %v1816_v11  ;;  %v1321_v28 = vshrl.u32 %v6258_v49, 16  ;;  %v804_v46 = vmax.f32 %v750_v47, 0.0 }
  0xa0   : > { %v1530_v45 = vrot.slane %v1529_v0, 4  ;;  %v1324_v15 = vshll.u32 %v6258_v49, 16  ;;  %v1332_v29 = vrot.slane %v1330_v43, 5  ;;  %v6280_v5 = vpack.c.b16 %v1801_v23, %v1800_v2 }
  0xa1   : > { %7128 = vst [vmem:[#allocation39_spill] sm:$0xff] %v6274_v31  ;;  %v1525_v21 = vsel %vm5603_vm4, %v1520_v54, %v1524_v25  ;;  %1981 = vmatmul.bf16.gmra.mxu3 %v6274_v31  ;;  %v1323_v36 = vrot.slane %v1321_v28, 4  ;;  %v1334_v11 = vshrl.u32 %v6255_v34, 16  ;;  %v1048_v47 = vsel %vm970_vm3, %v804_v46, 0.0 }
  0xa2   : > { %7129 = vst [vmem:[#allocation40_spill] sm:$0xff] %v6280_v5  ;;  %v1535_v1 = vsel %vm5603_vm4, %v1530_v45, %v1534_v22  ;;  %v1583_v0 = vunpack.c.l.b16 %v1525_v21  ;;  %v1326_v43 = vrot.slane %v1324_v15, 5  ;;  %1941 = vmatmul.bf16.gmra.mxu1 %v6280_v5  ;;  %v6289_v25 = vpack.c.bf16 %v1048_v47, %v1048_v47 }
  0xa3   : > { %v1584_v20 = vunpack.c.l.b16 %v1535_v1  ;;  %v1336_v23 = vrot.slane %v1334_v11, 4  ;;  %v7130_v37 = vmov 0.0|0.0   ;;  %v4607_v27 = vrot.slane %v5742_v39, 9 }
  0xa4   : > { %v2008_v54 = vrot.slane %v7130_v37, 5  ;;  %v1327_v2 = vor.u32 %v1326_v43, %v1323_v36  ;;  %v2015_v28 = vrot.slane %v5729_v26, 5  ;;  %v1340_v45 = vshll.u32 %v6289_v25, 16 }
  0xa5   : > { %v6294_v22 = vpack.c.b16 %v1584_v20, %v1583_v0  ;;  %v1337_v21 = vor.u32 %v1336_v23, %v1332_v29  ;;  %v4606_v11 = vrot.slane %v7130_v37, 9  ;;  %v2018_v20 = vrot.slane %v5762_v50, 5 }
  0xa6   : > { %v1328_v15 = vrot.slane %v1327_v2, 4  ;;  %v1342_v1 = vrot.slane %v1340_v45, 5  ;;  %v2017_v39 = vrot.slane %v2015_v28, 4  ;;  %v2010_v47 = vrot.slane %v2008_v54, 4 }
  0xa7   : > { %7131 = vst [vmem:[#allocation41_spill] sm:$0xff] %v6294_v22  ;;  %1748 = vmatmul.bf16.gmra.mxu2 %v6294_v22  ;;  %v1338_v36 = vrot.slane %v1337_v21, 4  ;;  %v2016_v43 = vsel %vm6298_vm7, %v4607_v27, %v2015_v28  ;;  %v2009_v27 = vsel %vm6298_vm7, %v4606_v11, %v2008_v54 }
  0xa8   : > { %v1333_v26 = vsel %vm5603_vm4, %v1328_v15, %v1332_v29  ;;  %v2019_v21 = vsel %vm6298_vm7, %v2017_v39, %v2018_v20  ;;  %v2137_v45 = vunpack.c.l.b16 %v2016_v43  ;;  %v2012_v50 = vsel %vm6298_vm7, %v2010_v47, %v2008_v54 }
  0xa9   : > { %v1343_v23 = vsel %vm5603_vm4, %v1338_v36, %v1342_v1  ;;  %v1567_v2 = vunpack.c.l.b16 %v1333_v26  ;;  %v1674_v37 = vpop.f32.mrf.mxu0  ;;  %v2138_v29 = vunpack.c.l.b16 %v2019_v21  ;;  %v2135_v36 = vunpack.c.l.b16 %v2009_v27 }
  0xaa   : > { %v1907_v0 = vpop.f32.mrf.mxu1  ;;  %v1568_v31 = vunpack.c.l.b16 %v1343_v23  ;;  %v2136_v1 = vunpack.c.l.b16 %v2012_v50  ;;  %v4608_v54 = vrot.slane %v5820_v12, 9  ;;  %v2025_v20 = vrot.slane %v5860_v14, 5 }
  0xab   : > { %v6311_v22 = vadd.f32 %v1907_v0, %v1674_v37  ;;  %v2168_v26 = vpack.c.b16 %v2138_v29, %v2137_v45 }
  0xac   : > { %v6315_v15 = vpack.c.b16 %v1568_v31, %v1567_v2  ;;  %v2022_v31 = vrot.slane %v5815_v4, 5  ;;  %v6330_v11 = vpack.c.b16 %v2136_v1, %v2135_v36  ;;  %v5115_v4 = vld [vmem:[%s7014_s3 + $0x1b0] sm:$0xff] }
  0xad   : > { %3044 = vmatpush.bf16.msra.mxu2 %v5115_v4  ;;  %v5123_v36 = vld [vmem:[%s7014_s3 + $0x1f0] sm:$0xff] }
  0xae   : > { %7134 = vst [vmem:[#allocation42_spill] sm:$0xff] %v6315_v15  ;;  %1708 = vmatmul.bf16.gmra.mxu0 %v6315_v15  ;;  %v2024_v47 = vrot.slane %v2022_v31, 4  ;;  %v2023_v45 = vsel %vm6298_vm7, %v4608_v54, %v2022_v31  ;;  %v5131_v1 = vld [vmem:[%s7014_s3 + $0x230] sm:$0xff]  ;;  %3258 = vmatpush.bf16.msra.mxu3 %v5123_v36 }
  0xaf   : > { %v1714_v28 = vpop.f32.mrf.mxu2  ;;  %7135 = vst [vmem:[#allocation43_spill] sm:$0xff] %v6330_v11  ;;  %v2139_v27 = vunpack.c.l.b16 %v2023_v45  ;;  %3456 = vmatpush.bf16.msra.mxu0 %v5131_v1 }
  0xb0   : > { %v2026_v12 = vsel %vm6298_vm7, %v2024_v47, %v2025_v20 }
  0xb1   : > { %2447 = vmatmul.bf16.vlgmr.msrb.gmra.mxu3 %v5771_v59  ;;  %v6328_v43 = vpop.f32.mrf.mxu0  ;;  %v2140_v50 = vunpack.c.l.b16 %v2026_v12 }
  0xb2   : > { %v1947_v0 = vpop.f32.mrf.mxu3  ;;  %v6324_v39 = vpop.f32.mrf.mxu1  ;;  %2859 = vmatmul.bf16.vlgmr.msrb.gmra.mxu1 %v2168_v26 }
  0xb3   : > { %v6322_v23 = vadd.f32 %v1947_v0, %v1714_v28  ;;  %v5155_v0 = vld [vmem:[%s7016_s5 + $0x30] sm:$0xff]  ;;  %v6356_v31 = vpack.c.b16 %v2140_v50, %v2139_v27 }
  0xb4   : > { %3941 = vmatpush.bf16.msra.mxu1 %v5155_v0 }
  0xb7   : > { %v1716_v2 = vpop.f32.mrf.mxu2  ;;  %2255 = vmatmul.bf16.vlgmr.msrb.gmra.mxu2 %v6330_v11  ;;  %v5122_v11 = vld [vmem:[%s7014_s3 + $0x1e8] sm:$0xff] }
  0xb8   : > { %3259 = vmatpush.bf16.msra.mxu3 %v5122_v11 }
  0xb9   : > { %v1679_v29 = vpop.f32.mrf.mxu0 }
  0xba   : > { %v1949_v37 = vpop.f32.mrf.mxu3  ;;  %v1912_v59 = vpop.f32.mrf.mxu1 }
  0xbb   : > { %v6338_v21 = vadd.f32 %v1949_v37, %v1716_v2  ;;  %v6344_v14 = vadd.f32 %v1912_v59, %v1679_v29  ;;  %v4609_v37 = vrot.slane %v5908_v40, 9  ;;  %v2032_v59 = vrot.slane %v5935_v63, 5 }
  0xbe   : > { %2661 = vmatmul.bf16.vlgmr.msrb.gmra.mxu0 %v5809_v53  ;;  %v2029_v53 = vrot.slane %v5910_v44, 5 }
  0xbf   : > { %v1719_v28 = vpop.f32.mrf.mxu2 }
  0xc0   : > { %v2031_v4 = vrot.slane %v2029_v53, 4  ;;  %v2030_v27 = vsel %vm6298_vm7, %v4609_v37, %v2029_v53  ;;  %v2036_v53 = vrot.slane %v5997_v51, 5 }
  0xc1   : > { %2452 = vmatmul.bf16.gmra.mxu3 %v5840_v42  ;;  %v6364_v2 = vpop.f32.mrf.mxu0  ;;  %v2141_v36 = vunpack.c.l.b16 %v2030_v27 }
  0xc2   : > { %v1952_v54 = vpop.f32.mrf.mxu3  ;;  %v6360_v20 = vpop.f32.mrf.mxu1  ;;  %2864 = vmatmul.bf16.gmra.mxu1 %v6356_v31  ;;  %v2033_v50 = vsel %vm6298_vm7, %v2031_v4, %v2032_v59  ;;  %v4610_v4 = vrot.slane %v5995_v52, 9  ;;  %v2038_v59 = vrot.slane %v2036_v53, 4 }
  0xc3   : > { %v6358_v47 = vadd.f32 %v1952_v54, %v1719_v28  ;;  %v2142_v1 = vunpack.c.l.b16 %v2033_v50  ;;  %v5114_v50 = vld [vmem:[%s7014_s3 + $0x1a8] sm:$0xff] }
  0xc4   : > { %3045 = vmatpush.bf16.msra.mxu2 %v5114_v50 }
  0xc5   : > { %v6378_v63 = vpack.c.b16 %v2142_v1, %v2141_v36  ;;  %v2037_v36 = vsel %vm6298_vm7, %v4610_v4, %v2036_v53  ;;  %v5154_v53 = vld [vmem:[%s7016_s5 + $0x28] sm:$0xff] }
  0xc6   : > { %v2143_v1 = vunpack.c.l.b16 %v2037_v36  ;;  %v2043_v36 = vrot.slane %v6079_v35, 5  ;;  %3942 = vmatpush.bf16.msra.mxu1 %v5154_v53 }
  0xc7   : > { %v1721_v45 = vpop.f32.mrf.mxu2  ;;  %2260 = vmatmul.bf16.gmra.mxu2 %v2168_v26 }
  0xca   : > { %v1954_v12 = vpop.f32.mrf.mxu3  ;;  %v1917_v44 = vpop.f32.mrf.mxu1 }
  0xcb   : > { %v6369_v29 = vadd.f32 %v1954_v12, %v1721_v45  ;;  %v1684_v28 = vpop.f32.mrf.mxu0  ;;  %v2039_v12 = vrot.slane %v6034_v16, 5 }
  0xcc   : > { %v6375_v0 = vadd.f32 %v1917_v44, %v1684_v28 }
  0xcd   : > { %v2040_v52 = vsel %vm6298_vm7, %v2038_v59, %v2039_v12 }
  0xce   : > { %2666 = vmatmul.bf16.gmra.mxu0 %v5898_v55  ;;  %v2144_v16 = vunpack.c.l.b16 %v2040_v52  ;;  %v4611_v52 = vrot.slane %v6076_v62, 9 }
  0xcf   : > { %v1724_v40 = vpop.f32.mrf.mxu2 }
  0xd0   : > { %v6413_v59 = vpack.c.b16 %v2144_v16, %v2143_v1  ;;  %v2046_v1 = vrot.slane %v6126_v6, 5  ;;  %v2044_v11 = vsel %vm6298_vm7, %v4611_v52, %v2043_v36 }
  0xd1   : > { %2457 = vmatmul.bf16.gmra.mxu3 %v5919_v3  ;;  %v2145_v53 = vunpack.c.l.b16 %v2044_v11 }
  0xd2   : > { %v1957_v26 = vpop.f32.mrf.mxu3  ;;  %v6382_v45 = vpop.f32.mrf.mxu1  ;;  %2869 = vmatmul.bf16.gmra.mxu1 %v6378_v63 }
  0xd3   : > { %v6380_v54 = vadd.f32 %v1957_v26, %v1724_v40  ;;  %v6387_v37 = vpop.f32.mrf.mxu0 }
  0xd5   : > { %7136 = vst [vmem:[#allocation44_spill] sm:$0xff] %v6380_v54 }
  0xd7   : > { %v1726_v44 = vpop.f32.mrf.mxu2  ;;  %2265 = vmatmul.bf16.gmra.mxu2 %v6356_v31 }
  0xda   : > { %v1959_v27 = vpop.f32.mrf.mxu3  ;;  %v1922_v28 = vpop.f32.mrf.mxu1 }
  0xdb   : > { %v6395_v51 = vadd.f32 %v1959_v27, %v1726_v44  ;;  %v5130_v44 = vld [vmem:[%s7014_s3 + $0x228] sm:$0xff] }
  0xdc   : > { %3457 = vmatpush.bf16.msra.mxu0 %v5130_v44 }
  0xdd   : > { %7137 = vst [vmem:[#allocation45_spill] sm:$0xff] %v6395_v51 }
  0xde   : > { %2671 = vmatmul.bf16.gmra.mxu0 %v5983_v48  ;;  %v1689_v40 = vpop.f32.mrf.mxu0 }
  0xdf   : > { %v1729_v26 = vpop.f32.mrf.mxu2  ;;  %v6411_v4 = vadd.f32 %v1922_v28, %v1689_v40  ;;  %v2045_v28 = vrot.slane %v2043_v36, 4 }
  0xe1   : > { %2462 = vmatmul.bf16.gmra.mxu3 %v6012_v57  ;;  %v2047_v44 = vsel %vm6298_vm7, %v2045_v28, %v2046_v1  ;;  %v4612_v28 = vrot.slane %v6173_v38, 9  ;;  %v5113_v38 = vld [vmem:[%s7014_s3 + $0x1a0] sm:$0xff] }
  0xe2   : > { %v1962_v12 = vpop.f32.mrf.mxu3  ;;  %v6417_v50 = vpop.f32.mrf.mxu1  ;;  %2874 = vmatmul.bf16.gmra.mxu1 %v6413_v59  ;;  %v2146_v62 = vunpack.c.l.b16 %v2047_v44  ;;  %3046 = vmatpush.bf16.msra.mxu2 %v5113_v38  ;;  %v4613_v38 = vrot.slane %v6258_v49, 9 }
  0xe3   : > { %v6415_v27 = vadd.f32 %v1962_v12, %v1729_v26 }
  0xe4   : > { %v6434_v6 = vpack.c.b16 %v2146_v62, %v2145_v53 }
  0xe5   : > { %7138 = vst [vmem:[#allocation46_spill] sm:$0xff] %v6415_v27 }
  0xe6   : > { %v6425_v26 = vpop.f32.mrf.mxu0 }
  0xe7   : > { %v1731_v16 = vpop.f32.mrf.mxu2  ;;  %2270 = vmatmul.bf16.gmra.mxu2 %v6378_v63 }
  0xea   : > { %v1964_v40 = vpop.f32.mrf.mxu3  ;;  %v1927_v35 = vpop.f32.mrf.mxu1 }
  0xeb   : > { %v6427_v12 = vadd.f32 %v1964_v40, %v1731_v16  ;;  %v2050_v16 = vrot.slane %v6175_v9, 5  ;;  %v2053_v40 = vrot.slane %v6211_v10, 5 }
  0xed   : > { %7139 = vst [vmem:[#allocation47_spill] sm:$0xff] %v6427_v12  ;;  %v2052_v1 = vrot.slane %v2050_v16, 4  ;;  %v2051_v9 = vsel %vm6298_vm7, %v4612_v28, %v2050_v16  ;;  %v2064_v12 = vrot.slane %v5635_v58, 5 }
  0xee   : > { %2676 = vmatmul.bf16.gmra.mxu0 %v6067_v56  ;;  %v2147_v10 = vunpack.c.l.b16 %v2051_v9  ;;  %v5153_v9 = vld [vmem:[%s7016_s5 + $0x20] sm:$0xff] }
  0xef   : > { %v1734_v27 = vpop.f32.mrf.mxu2  ;;  %3943 = vmatpush.bf16.msra.mxu1 %v5153_v9 }
  0xf1   : > { %2467 = vmatmul.bf16.gmra.mxu3 %v6107_v8 }
  0xf2   : > { %v1967_v51 = vpop.f32.mrf.mxu3  ;;  %v6438_v57 = vpop.f32.mrf.mxu1  ;;  %2879 = vmatmul.bf16.gmra.mxu1 %v6434_v6 }
  0xf3   : > { %v6436_v54 = vadd.f32 %v1967_v51, %v1734_v27  ;;  %v1694_v36 = vpop.f32.mrf.mxu0 }
  0xf4   : > { %v6442_v52 = vadd.f32 %v1927_v35, %v1694_v36  ;;  %v2054_v35 = vsel %vm6298_vm7, %v2052_v1, %v2053_v40  ;;  %v5121_v36 = vld [vmem:[%s7014_s3 + $0x1e0] sm:$0xff]  ;;  %v2057_v1 = vrot.slane %v6255_v34, 5 }
  0xf5   : > { %7140 = vst [vmem:[#allocation48_spill] sm:$0xff] %v6436_v54  ;;  %v2148_v62 = vunpack.c.l.b16 %v2054_v35  ;;  %3260 = vmatpush.bf16.msra.mxu3 %v5121_v36 }
  0xf6   : > { %v2059_v34 = vrot.slane %v2057_v1, 4  ;;  %v2058_v54 = vsel %vm6298_vm7, %v4613_v38, %v2057_v1  ;;  %v2066_v1 = vrot.slane %v2064_v12, 4 }
  0xf7   : > { %2275 = vmatmul.bf16.gmra.mxu2 %v6413_v59  ;;  %v1736_v51 = vpop.f32.mrf.mxu2  ;;  %v6463_v16 = vpack.c.b16 %v2148_v62, %v2147_v10  ;;  %v2060_v10 = vrot.slane %v6289_v25, 5  ;;  %v2149_v49 = vunpack.c.l.b16 %v2058_v54  ;;  %v2067_v54 = vrot.slane %v5640_v61, 5  ;;  %v5112_v61 = vld [vmem:[%s7014_s3 + $0x198] sm:$0xff] }
  0xf8   : > { %3047 = vmatpush.bf16.msra.mxu2 %v5112_v61 }
  0xf9   : > { %7142 = vst [vmem:[#allocation50_spill] sm:$0xff] %v6463_v16  ;;  %v2068_v58 = vsel %vm6298_vm7, %v2066_v1, %v2067_v54  ;;  %v2071_v1 = vrot.slane %v5672_v30, 5  ;;  %v5152_v30 = vld [vmem:[%s7016_s5 + $0x18] sm:$0xff] }
  0xfa   : > { %v1969_v27 = vpop.f32.mrf.mxu3  ;;  %v1932_v44 = vpop.f32.mrf.mxu1  ;;  %3944 = vmatpush.bf16.msra.mxu1 %v5152_v30 }
  0xfb   : > { %v6448_v11 = vadd.f32 %v1969_v27, %v1736_v51  ;;  %v6457_v53 = vpop.f32.mrf.mxu0  ;;  %v5129_v27 = vld [vmem:[%s7014_s3 + $0x220] sm:$0xff] }
  0xfc   : > { %3458 = vmatpush.bf16.msra.mxu0 %v5129_v27 }
  0xfd   : > { %7141 = vst [vmem:[#allocation49_spill] sm:$0xff] %v6448_v11 }
  0xfe   : > { %2681 = vmatmul.bf16.gmra.mxu0 %v6159_v41 }
 0x101   : > { %2472 = vmatmul.bf16.gmra.mxu3 %v6185_v19 }
 0x102   : > { %v1972_v28 = vpop.f32.mrf.mxu3  ;;  %v1739_v40 = vpop.f32.mrf.mxu2  ;;  %2884 = vmatmul.bf16.gmra.mxu1 %v6463_v16 }
 0x103   : > { %v1934_v51 = vpop.f32.mrf.mxu1  ;;  %v6474_v35 = vadd.f32 %v1972_v28, %v1739_v40  ;;  %v2061_v28 = vsel %vm6298_vm7, %v2059_v34, %v2060_v10 }
 0x104   : > { %v2150_v19 = vunpack.c.l.b16 %v2061_v28 }
 0x105   : > { %7143 = vst [vmem:[#allocation51_spill] sm:$0xff] %v6474_v35  ;;  %v1699_v62 = vpop.f32.mrf.mxu0 }
 0x106   : > { %v6478_v36 = vadd.f32 %v1932_v44, %v1699_v62  ;;  %v6490_v9 = vpack.c.b16 %v2150_v19, %v2149_v49  ;;  %v2152_v49 = vunpack.c.l.b16 %v2068_v58 }
 0x107   : > { %2280 = vmatmul.bf16.gmra.mxu2 %v6434_v6 }
 0x108   : > { %7145 = vst [vmem:[#allocation53_spill] sm:$0xff] %v6490_v9 }
 0x10a   : > { %v1974_v11 = vpop.f32.mrf.mxu3  ;;  %v1741_v40 = vpop.f32.mrf.mxu2 }
 0x10b   : > { %v6485_v35 = vadd.f32 %v1974_v11, %v1741_v40  ;;  %v1937_v25 = vpop.f32.mrf.mxu1  ;;  %v4614_v11 = vrot.slane %v5638_v60, 9 }
 0x10d   : > { %7144 = vst [vmem:[#allocation52_spill] sm:$0xff] %v6485_v35  ;;  %v1701_v27 = vpop.f32.mrf.mxu0  ;;  %v2065_v19 = vsel %vm6298_vm7, %v4614_v11, %v2064_v12  ;;  %v5120_v12 = vld [vmem:[%s7014_s3 + $0x1d8] sm:$0xff]  ;;  %v7152_v35 = vld [vmem:[#allocation8_spill] sm:$0xff] }
 0x10e   : > { %2686 = vmatmul.bf16.gmra.mxu0 %v6248_v18  ;;  %v6488_v44 = vadd.f32 %v1934_v51, %v1701_v27  ;;  %v2151_v60 = vunpack.c.l.b16 %v2065_v19  ;;  %3261 = vmatpush.bf16.msra.mxu3 %v5120_v12  ;;  %v5128_v19 = vld [vmem:[%s7014_s3 + $0x218] sm:$0xff] }
 0x10f   : > { %3459 = vmatpush.bf16.msra.mxu0 %v5128_v19 }
 0x111   : > { %2477 = vmatmul.bf16.gmra.mxu3 %v6280_v5 }
 0x112   : > { %v1977_v62 = vpop.f32.mrf.mxu3  ;;  %2889 = vmatmul.bf16.gmra.mxu1 %v6490_v9 }
 0x113   : > { %v1939_v38 = vpop.f32.mrf.mxu1 }
 0x117   : > { %2285 = vmatmul.bf16.gmra.mxu2 %v6463_v16  ;;  %v1744_v34 = vpop.f32.mrf.mxu2 }
 0x118   : > { %v6498_v51 = vadd.f32 %v1977_v62, %v1744_v34  ;;  %v6513_v62 = vpack.c.b16 %v2152_v49, %v2151_v60  ;;  %v7150_v49 = vld [vmem:[#allocation7_spill] sm:$0xff] }
 0x119   : > { %v1704_v10 = vpop.f32.mrf.mxu0  ;;  %v2074_v61 = vrot.slane %v7150_v49, 5 }
 0x11a   : > { %7146 = vst [vmem:[#allocation54_spill] sm:$0xff] %v6498_v51  ;;  %v6504_v28 = vadd.f32 %v1937_v25, %v1704_v10  ;;  %v1979_v40 = vpop.f32.mrf.mxu3  ;;  %v7149_v10 = vld [vmem:[#allocation6_spill] sm:$0xff] }
 0x11b   : > { %7147 = vst [vmem:[#allocation55_spill] sm:$0xff] %v6513_v62  ;;  %v4615_v60 = vrot.slane %v7149_v10, 9 }
 0x11d   : > { %v2072_v12 = vsel %vm6298_vm7, %v4615_v60, %v2071_v1  ;;  %v7155_v60 = vld [vmem:[#allocation9_spill] sm:$0xff] }
 0x11e   : > { %2691 = vmatmul.bf16.gmra.mxu0 %v6315_v15  ;;  %v2153_v49 = vunpack.c.l.b16 %v2072_v12  ;;  %v7154_v15 = vld [vmem:[#allocation12_spill] sm:$0xff]  ;;  %v7157_v12 = vld [vmem:[#allocation11_spill] sm:$0xff] }
 0x11f   : > { %v1746_v27 = vpop.f32.mrf.mxu2  ;;  %v1942_v25 = vpop.f32.mrf.mxu1 }
 0x120   : > { %v6515_v11 = vadd.f32 %v1979_v40, %v1746_v27  ;;  %v2073_v40 = vrot.slane %v2071_v1, 4  ;;  %v2078_v1 = vrot.slane %v7154_v15, 5 }
 0x121   : > { %v1706_v54 = vpop.f32.mrf.mxu0  ;;  %2482 = vmatmul.bf16.gmra.mxu3 %v5662_v24 }
 0x122   : > { %7148 = vst [vmem:[#allocation56_spill] sm:$0xff] %v6515_v11  ;;  %v6519_v34 = vadd.f32 %v1939_v38, %v1706_v54  ;;  %2894 = vmatmul.bf16.gmra.mxu1 %v6513_v62  ;;  %v2075_v27 = vsel %vm6298_vm7, %v2073_v40, %v2074_v61 }
 0x123   : > { %v2154_v19 = vunpack.c.l.b16 %v2075_v27  ;;  %v4616_v27 = vrot.slane %v7157_v12, 9  ;;  %v5111_v12 = vld [vmem:[%s7014_s3 + $0x190] sm:$0xff] }
 0x124   : > { %v1982_v58 = vpop.f32.mrf.mxu3  ;;  %3048 = vmatpush.bf16.msra.mxu2 %v5111_v12 }
 0x125   : > { %v2079_v15 = vsel %vm6298_vm7, %v4616_v27, %v2078_v1 }
 0x127   : > { %2290 = vmatmul.bf16.gmra.mxu2 %v6490_v9  ;;  %v1944_v38 = vpop.f32.mrf.mxu1  ;;  %v6540_v9 = vpack.c.b16 %v2154_v19, %v2153_v49 }
 0x129   : > { %7153 = vst [vmem:[#allocation7_spill] sm:$0xff] %v6540_v9 }
 0x12a   : > { %v1749_v54 = vpop.f32.mrf.mxu2 }
 0x12b   : > { %v1709_v10 = vpop.f32.mrf.mxu0  ;;  %v6535_v11 = vadd.f32 %v1982_v58, %v1749_v54  ;;  %v2080_v54 = vrot.slane %v2078_v1, 4  ;;  %v5119_v1 = vld [vmem:[%s7014_s3 + $0x1d0] sm:$0xff] }
 0x12c   : > { %v6537_v51 = vadd.f32 %v1942_v25, %v1709_v10  ;;  %v1984_v24 = vpop.f32.mrf.mxu3  ;;  %v7158_v10 = vld [vmem:[#allocation13_spill] sm:$0xff]  ;;  %3262 = vmatpush.bf16.msra.mxu3 %v5119_v1 }
 0x12d   : > { %7151 = vst [vmem:[#allocation6_spill] sm:$0xff] %v6535_v11  ;;  %v2081_v49 = vrot.slane %v7158_v10, 5 }
 0x12e   : > { %2696 = vmatmul.bf16.gmra.mxu0 %v7152_v35 }
 0x12f   : > { %v2860_v5 = vpop.f32.mrf.mxu1 }
 0x131   : > { %2487 = vmatmul.bf16.gmra.mxu3 %v7155_v60 }
 0x132   : > { %v1751_v40 = vpop.f32.mrf.mxu2  ;;  %2899 = vmatmul.bf16.gmra.mxu1 %v6540_v9 }
 0x133   : > { %v1711_v61 = vpop.f32.mrf.mxu0  ;;  %v6544_v30 = vadd.f32 %v1984_v24, %v1751_v40  ;;  %v2082_v24 = vsel %vm6298_vm7, %v2080_v54, %v2081_v49 }
 0x134   : > { %v6547_v58 = vadd.f32 %v1944_v38, %v1711_v61  ;;  %v2448_v25 = vpop.f32.mrf.mxu3  ;;  %v2155_v61 = vunpack.c.l.b16 %v2079_v15  ;;  %v2156_v11 = vunpack.c.l.b16 %v2082_v24  ;;  %v1910_v24 = vadd.f32 %v6324_v39, %v6328_v43 }
 0x135   : > { %7156 = vst [vmem:[#allocation12_spill] sm:$0xff] %v6544_v30 }
 0x136   : > { %v6564_v54 = vpack.c.b16 %v2156_v11, %v2155_v61  ;;  %v5127_v11 = vld [vmem:[%s7014_s3 + $0x210] sm:$0xff] }
 0x137   : > { %2295 = vmatmul.bf16.gmra.mxu2 %v6513_v62  ;;  %v2862_v19 = vpop.f32.mrf.mxu1  ;;  %v7159_v62 = vld [vmem:[#allocation10_spill] sm:$0xff]  ;;  %3460 = vmatpush.bf16.msra.mxu0 %v5127_v11 }
 0x13a   : > { %v2256_v40 = vpop.f32.mrf.mxu2 }
 0x13b   : > { %v2662_v30 = vpop.f32.mrf.mxu0  ;;  %v2336_v38 = vadd.f32 %v2256_v40, %v6311_v22  ;;  %v7160_v22 = vld [vmem:[#allocation17_spill] sm:$0xff]  ;;  %v7161_v40 = vld [vmem:[#allocation14_spill] sm:$0xff] }
 0x13c   : > { %v2450_v10 = vpop.f32.mrf.mxu3  ;;  %v2085_v15 = vrot.slane %v7160_v22, 5  ;;  %v7164_v22 = vld [vmem:[#allocation18_spill] sm:$0xff] }
 0x13d   : > { %v2528_v60 = vadd.f32 %v2448_v25, %v2336_v38  ;;  %v2088_v35 = vrot.slane %v7164_v22, 5 }
 0x13e   : > { %2701 = vmatmul.bf16.gmra.mxu0 %v7159_v62  ;;  %v2087_v1 = vrot.slane %v2085_v15, 4 }
 0x13f   : > { %v2742_v27 = vadd.f32 %v2662_v30, %v2528_v60  ;;  %v2865_v49 = vpop.f32.mrf.mxu1  ;;  %v7163_v30 = vld [vmem:[#allocation16_spill] sm:$0xff] }
 0x140   : > { %v4617_v61 = vrot.slane %v7163_v30, 9 }
 0x141   : > { %2492 = vmatmul.bf16.gmra.mxu3 %v7161_v40  ;;  %v6570_v25 = vadd.f32 %v2860_v5, %v2742_v27  ;;  %v5151_v5 = vld [vmem:[%s7016_s5 + $0x10] sm:$0xff]  ;;  %v7165_v40 = vld [vmem:[#allocation15_spill] sm:$0xff] }
 0x142   : > { %v2258_v38 = vpop.f32.mrf.mxu2  ;;  %2904 = vmatmul.bf16.gmra.mxu1 %v6564_v54 }
 0x143   : > { %7162 = vst [vmem:[#allocation11_spill] sm:$0xff] %v6570_v25  ;;  %v2664_v12 = vpop.f32.mrf.mxu0  ;;  %v2337_v62 = vadd.f32 %v2258_v38, %v1910_v24  ;;  %v2086_v24 = vsel %vm6298_vm7, %v4617_v61, %v2085_v15  ;;  %v2089_v38 = vsel %vm6298_vm7, %v2087_v1, %v2088_v35  ;;  %3945 = vmatpush.bf16.msra.mxu1 %v5151_v5  ;;  %v7167_v61 = vld [vmem:[#allocation21_spill] sm:$0xff] }
 0x144   : > { %v2453_v60 = vpop.f32.mrf.mxu3  ;;  %v2158_v11 = vunpack.c.l.b16 %v2089_v38  ;;  %v2092_v18 = vrot.slane %v7167_v61, 5  ;;  %v1915_v35 = vadd.f32 %v6360_v20, %v6364_v2 }
 0x145   : > { %v2529_v39 = vadd.f32 %v2450_v10, %v2337_v62 }
 0x146   : > { %v2094_v38 = vrot.slane %v2092_v18, 4 }
 0x147   : > { %v2743_v43 = vadd.f32 %v2664_v12, %v2529_v39  ;;  %2300 = vmatmul.bf16.gmra.mxu2 %v6540_v9  ;;  %v2867_v27 = vpop.f32.mrf.mxu1  ;;  %v2157_v12 = vunpack.c.l.b16 %v2086_v24  ;;  %v7169_v24 = vld [vmem:[#allocation22_spill] sm:$0xff] }
 0x149   : > { %v6586_v30 = vadd.f32 %v2862_v19, %v2743_v43  ;;  %v6590_v16 = vpack.c.b16 %v2158_v11, %v2157_v12  ;;  %v7168_v19 = vld [vmem:[#allocation19_spill] sm:$0xff] }
 0x14a   : > { %v2261_v22 = vpop.f32.mrf.mxu2 }
 0x14b   : > { %v2667_v62 = vpop.f32.mrf.mxu0  ;;  %v2338_v10 = vadd.f32 %v2261_v22, %v6344_v14  ;;  %7166 = vst [vmem:[#allocation13_spill] sm:$0xff] %v6590_v16  ;;  %v7170_v22 = vld [vmem:[#allocation23_spill] sm:$0xff] }
 0x14c   : > { %v2455_v39 = vpop.f32.mrf.mxu3 }
 0x14d   : > { %v2530_v25 = vadd.f32 %v2453_v60, %v2338_v10 }
 0x14e   : > { %2706 = vmatmul.bf16.gmra.mxu0 %v7165_v40 }
 0x14f   : > { %v2744_v9 = vadd.f32 %v2667_v62, %v2530_v25  ;;  %v2870_v15 = vpop.f32.mrf.mxu1  ;;  %v4618_v25 = vrot.slane %v7169_v24, 9  ;;  %v2095_v62 = vrot.slane %v7170_v22, 5  ;;  %v7172_v22 = vld [vmem:[#allocation20_spill] sm:$0xff] }
 0x151   : > { %2497 = vmatmul.bf16.gmra.mxu3 %v7168_v19  ;;  %v6596_v1 = vadd.f32 %v2865_v49, %v2744_v9  ;;  %v2093_v2 = vsel %vm6298_vm7, %v4618_v25, %v2092_v18  ;;  %v2096_v9 = vsel %vm6298_vm7, %v2094_v38, %v2095_v62  ;;  %v5118_v18 = vld [vmem:[%s7014_s3 + $0x1c8] sm:$0xff] }
 0x152   : > { %v2263_v14 = vpop.f32.mrf.mxu2  ;;  %2909 = vmatmul.bf16.gmra.mxu1 %v6590_v16  ;;  %v2160_v24 = vunpack.c.l.b16 %v2096_v9  ;;  %3263 = vmatpush.bf16.msra.mxu3 %v5118_v18 }
 0x153   : > { %v2669_v43 = vpop.f32.mrf.mxu0  ;;  %v2339_v5 = vadd.f32 %v2263_v14, %v1915_v35  ;;  %v2159_v14 = vunpack.c.l.b16 %v2093_v2 }
 0x154   : > { %v2458_v60 = vpop.f32.mrf.mxu3 }
 0x155   : > { %v2531_v10 = vadd.f32 %v2455_v39, %v2339_v5  ;;  %v5110_v39 = vld [vmem:[%s7014_s3 + $0x188] sm:$0xff]  ;;  %v6616_v25 = vpack.c.b16 %v2160_v24, %v2159_v14  ;;  %v7176_v14 = vld [vmem:[#allocation28_spill] sm:$0xff] }
 0x156   : > { %3049 = vmatpush.bf16.msra.mxu2 %v5110_v39  ;;  %v4619_v24 = vrot.slane %v7176_v14, 9 }
 0x157   : > { %v2745_v12 = vadd.f32 %v2669_v43, %v2531_v10  ;;  %2305 = vmatmul.bf16.gmra.mxu2 %v6564_v54  ;;  %v2872_v20 = vpop.f32.mrf.mxu1  ;;  %v1920_v10 = vadd.f32 %v6382_v45, %v6387_v37 }
 0x159   : > { %v6606_v49 = vadd.f32 %v2867_v27, %v2745_v12  ;;  %v7174_v12 = vld [vmem:[#allocation24_spill] sm:$0xff] }
 0x15a   : > { %v2266_v11 = vpop.f32.mrf.mxu2 }
 0x15b   : > { %7171 = vst [vmem:[#allocation17_spill] sm:$0xff] %v6606_v49  ;;  %v2672_v61 = vpop.f32.mrf.mxu0  ;;  %v2340_v35 = vadd.f32 %v2266_v11, %v6375_v0  ;;  %v7173_v0 = vld [vmem:[#allocation27_spill] sm:$0xff] }
 0x15c   : > { %v2460_v43 = vpop.f32.mrf.mxu3  ;;  %v2099_v62 = vrot.slane %v7173_v0, 5 }
 0x15d   : > { %v2532_v5 = vadd.f32 %v2458_v60, %v2340_v35 }
 0x15e   : > { %2711 = vmatmul.bf16.gmra.mxu0 %v7172_v22  ;;  %v2101_v39 = vrot.slane %v2099_v62, 4  ;;  %v2100_v0 = vsel %vm6298_vm7, %v4619_v24, %v2099_v62  ;;  %v7180_v24 = vld [vmem:[#allocation32_spill] sm:$0xff] }
 0x15f   : > { %v2746_v27 = vadd.f32 %v2672_v61, %v2532_v5  ;;  %v2875_v38 = vpop.f32.mrf.mxu1  ;;  %v5126_v61 = vld [vmem:[%s7014_s3 + $0x208] sm:$0xff]  ;;  %v7177_v5 = vld [vmem:[#allocation29_spill] sm:$0xff] }
 0x160   : > { %v2102_v18 = vrot.slane %v7177_v5, 5  ;;  %3461 = vmatpush.bf16.msra.mxu0 %v5126_v61 }
 0x161   : > { %2502 = vmatmul.bf16.gmra.mxu3 %v7174_v12  ;;  %v6622_v60 = vadd.f32 %v2870_v15, %v2746_v27  ;;  %v5150_v15 = vld [vmem:[%s7016_s5 + $0x8] sm:$0xff] }
 0x162   : > { %v2268_v2 = vpop.f32.mrf.mxu2  ;;  %2914 = vmatmul.bf16.gmra.mxu1 %v6616_v25 }
 0x163   : > { %7175 = vst [vmem:[#allocation16_spill] sm:$0xff] %v6622_v60  ;;  %v2674_v9 = vpop.f32.mrf.mxu0  ;;  %v2341_v11 = vadd.f32 %v2268_v2, %v1920_v10  ;;  %v2103_v10 = vsel %vm6298_vm7, %v2101_v39, %v2102_v18  ;;  %3946 = vmatpush.bf16.msra.mxu1 %v5150_v15  ;;  %v7178_v60 = vld [vmem:[#allocation26_spill] sm:$0xff] }
 0x164   : > { %v2463_v35 = vpop.f32.mrf.mxu3  ;;  %v2162_v61 = vunpack.c.l.b16 %v2103_v10  ;;  %v7181_v39 = vld [vmem:[#allocation30_spill] sm:$0xff] }
 0x165   : > { %v2533_v45 = vadd.f32 %v2460_v43, %v2341_v11  ;;  %v2161_v11 = vunpack.c.l.b16 %v2100_v0  ;;  %v7183_v0 = vld [vmem:[#allocation33_spill] sm:$0xff] }
 0x166   : > { %v4620_v10 = vrot.slane %v7183_v0, 9 }
 0x167   : > { %v2747_v37 = vadd.f32 %v2674_v9, %v2533_v45  ;;  %2310 = vmatmul.bf16.gmra.mxu2 %v6590_v16  ;;  %v2877_v27 = vpop.f32.mrf.mxu1  ;;  %v6642_v49 = vpack.c.b16 %v2162_v61, %v2161_v11  ;;  %v2106_v16 = vrot.slane %v7180_v24, 5 }
 0x169   : > { %v6638_v2 = vadd.f32 %v2872_v20, %v2747_v37  ;;  %7179 = vst [vmem:[#allocation18_spill] sm:$0xff] %v6642_v49  ;;  %v1925_v20 = vadd.f32 %v6417_v50, %v6425_v26  ;;  %v2107_v26 = vsel %vm6298_vm7, %v4620_v10, %v2106_v16 }
 0x16a   : > { %v2271_v14 = vpop.f32.mrf.mxu2 }
 0x16b   : > { %v2677_v43 = vpop.f32.mrf.mxu0  ;;  %v2342_v9 = vadd.f32 %v2271_v14, %v6411_v4  ;;  %v2108_v14 = vrot.slane %v2106_v16, 4 }
 0x16c   : > { %v2465_v5 = vpop.f32.mrf.mxu3 }
 0x16d   : > { %v2534_v45 = vadd.f32 %v2463_v35, %v2342_v9 }
 0x16e   : > { %2716 = vmatmul.bf16.gmra.mxu0 %v7178_v60 }
 0x16f   : > { %v2748_v12 = vadd.f32 %v2677_v43, %v2534_v45  ;;  %v2880_v62 = vpop.f32.mrf.mxu1  ;;  %v7184_v43 = vld [vmem:[#allocation34_spill] sm:$0xff] }
 0x170   : > { %v2109_v9 = vrot.slane %v7184_v43, 5  ;;  %v2163_v43 = vunpack.c.l.b16 %v2107_v26  ;;  %v5433_v26 = vld [vmem:[%s7012_s1] ss:$0 sm:$0xff] }
 0x171   : > { %2507 = vmatmul.bf16.gmra.mxu3 %v7181_v39  ;;  %v6648_v18 = vadd.f32 %v2875_v38, %v2748_v12  ;;  %v599_v12 = vld [vmem:[%s5569_s21 + $0xb4] sm:$0xff]  }
 0x172   : > { %v2273_v4 = vpop.f32.mrf.mxu2  ;;  %2919 = vmatmul.bf16.gmra.mxu1 %v6642_v49  ;;  %v2110_v38 = vsel %vm6298_vm7, %v2108_v14, %v2109_v9  ;;  %v7186_v14 = vld [vmem:[#allocation31_spill] sm:$0xff]  ;;  %v660_v9 = vunpack.c.h.bf16 %v599_v12 }
 0x173   : > { %7182 = vst [vmem:[#allocation15_spill] sm:$0xff] %v6648_v18  ;;  %v2679_v37 = vpop.f32.mrf.mxu0  ;;  %v2343_v35 = vadd.f32 %v2273_v4, %v1925_v20  ;;  %v601_v20 = vld [vmem:[%s5569_s21 + $0xbc] sm:$0x1] }
 0x174   : > { %v2468_v15 = vpop.f32.mrf.mxu3  ;;  %v661_v10 = vunpack.c.l.bf16 %v601_v20  ;;  %v1930_v20 = vadd.f32 %v6438_v57, %v6457_v53 }
 0x175   : > { %v2535_v11 = vadd.f32 %v2465_v5, %v2343_v35  ;;  %v2164_v5 = vunpack.c.l.b16 %v2110_v38  ;;  %v659_v35 = vunpack.c.l.bf16 %v599_v12  ;;  %v718_v12 = vmul.f32 %v5433_v26, %v660_v9 }
 0x177   : > { %v2749_v61 = vadd.f32 %v2679_v37, %v2535_v11  ;;  %2315 = vmatmul.bf16.gmra.mxu2 %v6616_v25  ;;  %v2882_v50 = vpop.f32.mrf.mxu1  ;;  %v5109_v37 = vld [vmem:[%s7014_s3 + $0x180] sm:$0xff]  ;;  %v717_v38 = vmul.f32 %v5433_v26, %v659_v35 }
 0x178   : > { %3050 = vmatpush.bf16.msra.mxu2 %v5109_v37  ;;  %v719_v37 = vmul.f32 %v5433_v26, %v661_v10  ;;  %v5125_v35 = vld [vmem:[%s7014_s3 + $0x200] sm:$0xff] }
 0x179   : > { %v6659_v45 = vadd.f32 %v2877_v27, %v2749_v61  ;;  %v5117_v27 = vld [vmem:[%s7014_s3 + $0x1c0] sm:$0xff]  ;;  %3462 = vmatpush.bf16.msra.mxu0 %v5125_v35 }
 0x17a   : > { %v2276_v24 = vpop.f32.mrf.mxu2  ;;  %3264 = vmatpush.bf16.msra.mxu3 %v5117_v27  ;;  %v5149_v26 = vld [vmem:[%s7016_s5] sm:$0xff] }
 0x17b   : > { %7185 = vst [vmem:[#allocation21_spill] sm:$0xff] %v6659_v45  ;;  %v2682_v4 = vpop.f32.mrf.mxu0  ;;  %v2344_v0 = vadd.f32 %v2276_v24, %v6442_v52  ;;  %v6670_v52 = vpack.c.b16 %v2164_v5, %v2163_v43  ;;  %3947 = vmatpush.bf16.msra.mxu1 %v5149_v26  ;;  %v7193_v26 = vld [vmem:[#allocation39_spill] sm:$0xff] }
 0x17c   : > { %v2470_v11 = vpop.f32.mrf.mxu3 }
 0x17d   : > { %v2536_v16 = vadd.f32 %v2468_v15, %v2344_v0  ;;  %7187 = vst [vmem:[#allocation19_spill] sm:$0xff] %v6670_v52  ;;  %v2113_v15 = vrot.slane %v6233_v13, 5  ;;  %v7188_v0 = vld [vmem:[#allocation35_spill] sm:$0xff]  ;;  %v5434_v13 = vld [vmem:[%s7013_s2] ss:$0 sm:$0xff] }
 0x17e   : > { %2721 = vmatmul.bf16.gmra.mxu0 %v7186_v14  ;;  %v775_v57 = vadd.f32 %v5434_v13, %v717_v38  ;;  %v776_v9 = vadd.f32 %v5434_v13, %v718_v12 }
 0x17f   : > { %v2750_v61 = vadd.f32 %v2682_v4, %v2536_v16  ;;  %v2885_v24 = vpop.f32.mrf.mxu1  ;;  %v4621_v16 = vrot.slane %v6231_v33, 9  ;;  %v2115_v10 = vrot.slane %v2113_v15, 4 }
 0x180   : > { %v830_v12 = vmax.f32 %v776_v9, 0.0 }
 0x181   : > { %2512 = vmatmul.bf16.gmra.mxu3 %v7188_v0  ;;  %v6679_v4 = vadd.f32 %v2880_v62, %v2750_v61  ;;  %v2116_v62 = vrot.slane %v6243_v17, 5  ;;  %v2114_v38 = vsel %vm6298_vm7, %v4621_v16, %v2113_v15  ;;  %v7192_v16 = vld [vmem:[#allocation37_spill] sm:$0xff] }
 0x182   : > { %v2278_v45 = vpop.f32.mrf.mxu2  ;;  %2924 = vmatmul.bf16.gmra.mxu1 %v6670_v52  ;;  %v2165_v35 = vunpack.c.l.b16 %v2114_v38 }
 0x183   : > { %7189 = vst [vmem:[#allocation22_spill] sm:$0xff] %v6679_v4  ;;  %v2684_v43 = vpop.f32.mrf.mxu0  ;;  %v2345_v5 = vadd.f32 %v2278_v45, %v1930_v20  ;;  %v777_v45 = vadd.f32 %v5434_v13, %v719_v37  ;;  %v829_v20 = vmax.f32 %v775_v57, 0.0  ;;  %v2117_v33 = vsel %vm6298_vm7, %v2115_v10, %v2116_v62 }
 0x184   : > { %v2473_v53 = vpop.f32.mrf.mxu3  ;;  %v2166_v13 = vunpack.c.l.b16 %v2117_v33 }
 0x185   : > { %v2537_v27 = vadd.f32 %v2470_v11, %v2345_v5  ;;  %v831_v17 = vmax.f32 %v777_v45, 0.0  ;;  %v1073_v57 = vsel %vm911_vm2, %v829_v20, 0.0 }
 0x186   : > { %v1127_v10 = vpack.c.bf16 %v1073_v57, %v1073_v57  ;;  %v6706_v45 = vpack.c.b16 %v2166_v13, %v2165_v35 }
 0x187   : > { %v2751_v61 = vadd.f32 %v2684_v43, %v2537_v27  ;;  %2320 = vmatmul.bf16.gmra.mxu2 %v6642_v49  ;;  %v2887_v4 = vpop.f32.mrf.mxu1  ;;  %v1075_v15 = vsel %vm970_vm3, %v831_v17, 0.0 }
 0x188   : > { %v2561_v33 = vshrl.u32 %v1127_v10, 16 }
 0x189   : > { %v6698_v11 = vadd.f32 %v2882_v50, %v2751_v61  ;;  %v1128_v50 = vpack.c.bf16 %v830_v12, %v830_v12  ;;  %v1129_v61 = vpack.c.bf16 %v1075_v15, %v1075_v15  ;;  %v4766_v12 = vrot.slane %v1127_v10, 9 }
 0x18a   : > { %v2281_v37 = vpop.f32.mrf.mxu2  ;;  %v2563_v27 = vrot.slane %v2561_v33, 4 }
 0x18b   : > { %7190 = vst [vmem:[#allocation23_spill] sm:$0xff] %v6698_v11  ;;  %v2687_v43 = vpop.f32.mrf.mxu0  ;;  %v2346_v5 = vadd.f32 %v2281_v37, %v6478_v36  ;;  %v2777_v36 = vrot.slane %v1128_v50, 5  ;;  %v2570_v37 = vshll.u32 %v1128_v50, 16  ;;  %v2574_v7 = vshrl.u32 %v1128_v50, 16 }
 0x18c   : > { %v2475_v0 = vpop.f32.mrf.mxu3  ;;  %v2780_v35 = vrot.slane %v1129_v61, 5  ;;  %v2388_v11 = vunpack.c.l.b16 %v1128_v50 }
 0x18d   : > { %v2538_v49 = vadd.f32 %v2473_v53, %v2346_v5  ;;  %v2564_v53 = vshll.u32 %v1127_v10, 16  ;;  %v2572_v15 = vrot.slane %v2570_v37, 5 }
 0x18e   : > { %2726 = vmatmul.bf16.gmra.mxu0 %v7192_v16 }
 0x18f   : > { %v2752_v62 = vadd.f32 %v2687_v43, %v2538_v49  ;;  %v2890_v9 = vpop.f32.mrf.mxu1  ;;  %v2779_v43 = vrot.slane %v2777_v36, 4  ;;  %v2566_v57 = vrot.slane %v2564_v53, 5 }
 0x191   : > { %2517 = vmatmul.bf16.gmra.mxu3 %v7193_v26  ;;  %v6709_v38 = vadd.f32 %v2885_v24, %v2752_v62  ;;  %v2576_v24 = vrot.slane %v2574_v7, 4  ;;  %v2778_v26 = vsel %vm6298_vm7, %v4766_v12, %v2777_v36  ;;  %v7195_v36 = vld [vmem:[#allocation41_spill] sm:$0xff] }
 0x192   : > { %v2283_v20 = vpop.f32.mrf.mxu2  ;;  %2929 = vmatmul.bf16.gmra.mxu1 %v6706_v45  ;;  %v2799_v7 = vunpack.c.l.b16 %v2778_v26 }
 0x193   : > { %7194 = vst [vmem:[#allocation20_spill] sm:$0xff] %v6709_v38  ;;  %v2689_v17 = vpop.f32.mrf.mxu0  ;;  %v2347_v5 = vadd.f32 %v2283_v20, %v6488_v44  ;;  %v2781_v44 = vsel %vm6298_vm7, %v2779_v43, %v2780_v35  ;;  %v2387_v20 = vunpack.c.l.b16 %v1127_v10  ;;  %v2577_v33 = vor.u32 %v2576_v24, %v2572_v15 }
 0x194   : > { %v2478_v49 = vpop.f32.mrf.mxu3 }
 0x195   : > { %v2539_v13 = vadd.f32 %v2475_v0, %v2347_v5  ;;  %v2567_v0 = vor.u32 %v2566_v57, %v2563_v27  ;;  %v2580_v5 = vshll.u32 %v1129_v61, 16  ;;  %v6721_v39 = vpack.c.b16 %v2388_v11, %v2387_v20 }
 0x197   : > { %v2753_v62 = vadd.f32 %v2689_v17, %v2539_v13  ;;  %2325 = vmatmul.bf16.gmra.mxu2 %v6670_v52  ;;  %v2892_v38 = vpop.f32.mrf.mxu1  ;;  %v2800_v17 = vunpack.c.l.b16 %v2781_v44  ;;  %v2568_v46 = vrot.slane %v2567_v0, 4  ;;  %v2582_v12 = vrot.slane %v2580_v5, 5 }
 0x199   : > { %v6718_v16 = vadd.f32 %v2887_v4, %v2753_v62  ;;  %v6724_v50 = vpack.c.b16 %v2800_v17, %v2799_v7  ;;  %v2578_v4 = vrot.slane %v2577_v33, 4  ;;  %v2573_v11 = vsel %vm5603_vm4, %v2568_v46, %v2572_v15 }
 0x19a   : > { %v2286_v18 = vpop.f32.mrf.mxu2  ;;  %v2601_v27 = vunpack.c.l.b16 %v2573_v11  ;;  %v5134_v11 = vld [vmem:[%s6748_s30 + $0x8] sm:$0xff] }
 0x19b   : > { %v2692_v53 = vpop.f32.mrf.mxu0  ;;  %v2348_v37 = vadd.f32 %v2286_v18, %v6504_v28 }
 0x19c   : > { %v2480_v13 = vpop.f32.mrf.mxu3 }
 0x19d   : > { %v2540_v52 = vadd.f32 %v2478_v49, %v2348_v37 }
 0x19e   : > { %2731 = vmatmul.bf16.gmra.mxu0 %v7195_v36 }
 0x19f   : > { %v2754_v10 = vadd.f32 %v2692_v53, %v2540_v52  ;;  %v2895_v43 = vpop.f32.mrf.mxu1  ;;  %v2583_v52 = vsel %vm5603_vm4, %v2578_v4, %v2582_v12  ;;  %v5133_v53 = vld [vmem:[%s6748_s30] sm:$0xff] }
 0x1a0   : > { %v2602_v57 = vunpack.c.l.b16 %v2583_v52 }
 0x1a1   : > { %2522 = vmatmul.bf16.gmra.mxu3 %v6721_v39  ;;  %v6727_v28 = vadd.f32 %v2890_v9, %v2754_v10 }
 0x1a2   : > { %v2288_v18 = vpop.f32.mrf.mxu2  ;;  %2934 = vmatmul.bf16.gmra.mxu1 %v6724_v50  ;;  %v6741_v62 = vpack.c.b16 %v2602_v57, %v2601_v27 }
 0x1a3   : > { %v2694_v61 = vpop.f32.mrf.mxu0  ;;  %v2349_v26 = vadd.f32 %v2288_v18, %v6519_v34 }
 0x1a4   : > { %v2483_v49 = vpop.f32.mrf.mxu3 }
 0x1a5   : > { %v2541_v35 = vadd.f32 %v2480_v13, %v2349_v26 }
 0x1a7   : > { %v2755_v24 = vadd.f32 %v2694_v61, %v2541_v35  ;;  %2330 = vmatmul.bf16.gmra.mxu2 %v6706_v45  ;;  %v2897_v9 = vpop.f32.mrf.mxu1 }
 0x1a9   : > { %v6739_v34 = vadd.f32 %v2892_v38, %v2755_v24 }
 0x1aa   : > { %v2291_v44 = vpop.f32.mrf.mxu2 }
 0x1ab   : > { %v2697_v15 = vpop.f32.mrf.mxu0  ;;  %v2350_v32 = vadd.f32 %v2291_v44, %v6537_v51 }
 0x1ac   : > { %v2485_v20 = vpop.f32.mrf.mxu3 }
 0x1ad   : > { %v2542_v0 = vadd.f32 %v2483_v49, %v2350_v32 }
 0x1ae   : > { %2736 = vmatmul.bf16.gmra.mxu0 %v6741_v62 }
 0x1af   : > { %v2756_v33 = vadd.f32 %v2697_v15, %v2542_v0  ;;  %v2900_v38 = vpop.f32.mrf.mxu1  ;;  %v5135_v0 = vld [vmem:[%s6748_s30 + $0x10] sm:$0xff] }
 0x1b1   : > { %3265 = vmatmul.bf16.vlgmr.msra.gmra.mxu3 %v5898_v55  ;;  %v6753_v37 = vadd.f32 %v2895_v43, %v2756_v33 }
 0x1b2   : > { %v2293_v7 = vpop.f32.mrf.mxu2  ;;  %3948 = vmatmul.bf16.vlgmr.msra.gmra.mxu1 %v5133_v53 }
 0x1b3   : > { %v2699_v17 = vpop.f32.mrf.mxu0  ;;  %v2351_v51 = vadd.f32 %v2293_v7, %v6547_v58 }
 0x1b4   : > { %v2488_v5 = vpop.f32.mrf.mxu3 }
 0x1b5   : > { %v2543_v13 = vadd.f32 %v2485_v20, %v2351_v51  ;;  %v7196_v51 = vld [vmem:[#allocation25_spill] sm:$0xff] }
 0x1b7   : > { %v2757_v46 = vadd.f32 %v2699_v17, %v2543_v13  ;;  %3051 = vmatmul.bf16.vlgmr.msra.gmra.mxu2 %v5840_v42  ;;  %v2902_v10 = vpop.f32.mrf.mxu1 }
 0x1b9   : > { %v6757_v4 = vadd.f32 %v2897_v9, %v2757_v46 }
 0x1ba   : > { %v2296_v12 = vpop.f32.mrf.mxu2 }
 0x1bb   : > { %v2702_v18 = vpop.f32.mrf.mxu0  ;;  %v2352_v55 = vadd.f32 %v2296_v12, %v6322_v23 }
 0x1bc   : > { %v2490_v43 = vpop.f32.mrf.mxu3 }
 0x1bd   : > { %v2544_v61 = vadd.f32 %v2488_v5, %v2352_v55 }
 0x1be   : > { %3463 = vmatmul.bf16.vlgmr.msra.gmra.mxu0 %v6356_v31 }
 0x1bf   : > { %v2758_v26 = vadd.f32 %v2702_v18, %v2544_v61  ;;  %v2905_v58 = vpop.f32.mrf.mxu1 }
 0x1c1   : > { %3270 = vmatmul.bf16.gmra.mxu3 %v5983_v48  ;;  %v6763_v52 = vadd.f32 %v2900_v38, %v2758_v26 }
 0x1c2   : > { %v2298_v49 = vpop.f32.mrf.mxu2  ;;  %3953 = vmatmul.bf16.gmra.mxu1 %v5134_v11 }
 0x1c3   : > { %v2704_v42 = vpop.f32.mrf.mxu0  ;;  %v2353_v35 = vadd.f32 %v2298_v49, %v6338_v21 }
 0x1c4   : > { %v2493_v27 = vpop.f32.mrf.mxu3 }
 0x1c5   : > { %v2545_v57 = vadd.f32 %v2490_v43, %v2353_v35  ;;  %v5136_v43 = vld [vmem:[%s6748_s30 + $0x18] sm:$0xff] }
 0x1c7   : > { %v2759_v23 = vadd.f32 %v2704_v42, %v2545_v57  ;;  %3056 = vmatmul.bf16.gmra.mxu2 %v5919_v3  ;;  %v2907_v24 = vpop.f32.mrf.mxu1 }
 0x1c9   : > { %v6767_v31 = vadd.f32 %v2902_v10, %v2759_v23  ;;  %v7197_v10 = vld [vmem:[#allocation44_spill] sm:$0xff] }
 0x1ca   : > { %v2301_v9 = vpop.f32.mrf.mxu2 }
 0x1cb   : > { %v2707_v44 = vpop.f32.mrf.mxu0  ;;  %v2354_v48 = vadd.f32 %v2301_v9, %v6358_v47  ;;  %v7199_v9 = vld [vmem:[#allocation46_spill] sm:$0xff] }
 0x1cc   : > { %v2495_v15 = vpop.f32.mrf.mxu3 }
 0x1cd   : > { %v2546_v32 = vadd.f32 %v2493_v27, %v2354_v48 }
 0x1ce   : > { %3468 = vmatmul.bf16.gmra.mxu0 %v6378_v63 }
 0x1cf   : > { %v2760_v20 = vadd.f32 %v2707_v44, %v2546_v32  ;;  %v2910_v21 = vpop.f32.mrf.mxu1  ;;  %v5137_v32 = vld [vmem:[%s6748_s30 + $0x20] sm:$0xff] }
 0x1d1   : > { %3275 = vmatmul.bf16.gmra.mxu3 %v6067_v56  ;;  %v6773_v33 = vadd.f32 %v2905_v58, %v2760_v20  ;;  %v7198_v58 = vld [vmem:[#allocation45_spill] sm:$0xff] }
 0x1d2   : > { %v2303_v53 = vpop.f32.mrf.mxu2  ;;  %3958 = vmatmul.bf16.gmra.mxu1 %v5135_v0  ;;  %v7200_v0 = vld [vmem:[#allocation38_spill] sm:$0xff] }
 0x1d3   : > { %v2709_v3 = vpop.f32.mrf.mxu0  ;;  %v2355_v38 = vadd.f32 %v2303_v53, %v6369_v29 }
 0x1d4   : > { %v2498_v7 = vpop.f32.mrf.mxu3 }
 0x1d5   : > { %v2547_v17 = vadd.f32 %v2495_v15, %v2355_v38 }
 0x1d7   : > { %v2761_v47 = vadd.f32 %v2709_v3, %v2547_v17  ;;  %3061 = vmatmul.bf16.gmra.mxu2 %v7196_v51  ;;  %v2912_v5 = vpop.f32.mrf.mxu1  ;;  %v7201_v3 = vld [vmem:[#allocation47_spill] sm:$0xff]  ;;  %v7202_v51 = vld [vmem:[#allocation36_spill] sm:$0xff] }
 0x1d9   : > { %v6777_v63 = vadd.f32 %v2907_v24, %v2761_v47 }
 0x1da   : > { %v2306_v13 = vpop.f32.mrf.mxu2 }
 0x1db   : > { %v2712_v46 = vpop.f32.mrf.mxu0  ;;  %v2356_v56 = vadd.f32 %v2306_v13, %v7197_v10  ;;  %v7203_v10 = vld [vmem:[#allocation48_spill] sm:$0xff] }
 0x1dc   : > { %v2500_v12 = vpop.f32.mrf.mxu3 }
 0x1dd   : > { %v2548_v18 = vadd.f32 %v2498_v7, %v2356_v56 }
 0x1de   : > { %3473 = vmatmul.bf16.gmra.mxu0 %v6413_v59 }
 0x1df   : > { %v2762_v55 = vadd.f32 %v2712_v46, %v2548_v18  ;;  %v2915_v29 = vpop.f32.mrf.mxu1 }
 0x1e1   : > { %3280 = vmatmul.bf16.gmra.mxu3 %v6159_v41  ;;  %v6783_v61 = vadd.f32 %v2910_v21, %v2762_v55  ;;  %v7204_v55 = vld [vmem:[#allocation50_spill] sm:$0xff] }
 0x1e2   : > { %v2308_v26 = vpop.f32.mrf.mxu2  ;;  %3963 = vmatmul.bf16.gmra.mxu1 %v5136_v43 }
 0x1e3   : > { %v2714_v11 = vpop.f32.mrf.mxu0  ;;  %v2357_v49 = vadd.f32 %v2308_v26, %v7198_v58 }
 0x1e4   : > { %v2503_v42 = vpop.f32.mrf.mxu3 }
 0x1e5   : > { %v2549_v35 = vadd.f32 %v2500_v12, %v2357_v49 }
 0x1e7   : > { %v2763_v27 = vadd.f32 %v2714_v11, %v2549_v35  ;;  %3066 = vmatmul.bf16.gmra.mxu2 %v6107_v8  ;;  %v2917_v57 = vpop.f32.mrf.mxu1  ;;  %v7205_v11 = vld [vmem:[#allocation42_spill] sm:$0xff]  ;;  %v7206_v35 = vld [vmem:[#allocation49_spill] sm:$0xff] }
 0x1e9   : > { %v6787_v59 = vadd.f32 %v2912_v5, %v2763_v27 }
 0x1ea   : > { %v2311_v23 = vpop.f32.mrf.mxu2 }
 0x1eb   : > { %v2717_v24 = vpop.f32.mrf.mxu0  ;;  %v2358_v41 = vadd.f32 %v2311_v23, %v7199_v9  ;;  %v7207_v9 = vld [vmem:[#allocation40_spill] sm:$0xff] }
 0x1ec   : > { %v2505_v44 = vpop.f32.mrf.mxu3 }
 0x1ed   : > { %v2550_v48 = vadd.f32 %v2503_v42, %v2358_v41 }
 0x1ee   : > { %3478 = vmatmul.bf16.gmra.mxu0 %v6434_v6 }
 0x1ef   : > { %v2764_v15 = vadd.f32 %v2717_v24, %v2550_v48  ;;  %v2920_v20 = vpop.f32.mrf.mxu1 }
 0x1f1   : > { %3285 = vmatmul.bf16.gmra.mxu3 %v7200_v0  ;;  %v6793_v21 = vadd.f32 %v2915_v29, %v2764_v15  ;;  %v5138_v29 = vld [vmem:[%s6748_s30 + $0x28] sm:$0xff] }
 0x1f2   : > { %v2313_v53 = vpop.f32.mrf.mxu2  ;;  %3968 = vmatmul.bf16.gmra.mxu1 %v5137_v32  ;;  %v7208_v32 = vld [vmem:[#allocation51_spill] sm:$0xff] }
 0x1f3   : > { %v2719_v8 = vpop.f32.mrf.mxu0  ;;  %v2359_v38 = vadd.f32 %v2313_v53, %v7201_v3 }
 0x1f4   : > { %v2508_v7 = vpop.f32.mrf.mxu3 }
 0x1f5   : > { %v2551_v17 = vadd.f32 %v2505_v44, %v2359_v38  ;;  %v5139_v38 = vld [vmem:[%s6748_s30 + $0x30] sm:$0xff] }
 0x1f7   : > { %v2765_v47 = vadd.f32 %v2719_v8, %v2551_v17  ;;  %3071 = vmatmul.bf16.gmra.mxu2 %v7202_v51  ;;  %v2922_v5 = vpop.f32.mrf.mxu1  ;;  %v7209_v8 = vld [vmem:[#allocation53_spill] sm:$0xff]  ;;  %v7210_v17 = vld [vmem:[#allocation8_spill] sm:$0xff] }
 0x1f9   : > { %v6797_v6 = vadd.f32 %v2917_v57, %v2765_v47 }
 0x1fa   : > { %v2316_v13 = vpop.f32.mrf.mxu2 }
 0x1fb   : > { %v2722_v46 = vpop.f32.mrf.mxu0  ;;  %v2360_v56 = vadd.f32 %v2316_v13, %v7203_v10 }
 0x1fc   : > { %v2510_v12 = vpop.f32.mrf.mxu3 }
 0x1fd   : > { %v2552_v18 = vadd.f32 %v2508_v7, %v2360_v56 }
 0x1fe   : > { %3483 = vmatmul.bf16.gmra.mxu0 %v7204_v55 }
 0x1ff   : > { %v2766_v43 = vadd.f32 %v2722_v46, %v2552_v18  ;;  %v2925_v26 = vpop.f32.mrf.mxu1  ;;  %v7211_v46 = vld [vmem:[#allocation52_spill] sm:$0xff]  ;;  %v7212_v18 = vld [vmem:[#allocation5_spill] sm:$0xff] }
 0x201   : > { %3290 = vmatmul.bf16.gmra.mxu3 %v7205_v11  ;;  %v6803_v58 = vadd.f32 %v2920_v20, %v2766_v43 }
 0x202   : > { %v2318_v49 = vpop.f32.mrf.mxu2  ;;  %3973 = vmatmul.bf16.gmra.mxu1 %v5138_v29 }
 0x203   : > { %v2724_v42 = vpop.f32.mrf.mxu0  ;;  %v2361_v27 = vadd.f32 %v2318_v49, %v7206_v35  ;;  %v7213_v49 = vld [vmem:[#allocation54_spill] sm:$0xff] }
 0x204   : > { %v2513_v57 = vpop.f32.mrf.mxu3 }
 0x205   : > { %v2553_v23 = vadd.f32 %v2510_v12, %v2361_v27  ;;  %v7214_v27 = vld [vmem:[#allocation55_spill] sm:$0xff] }
 0x207   : > { %v2767_v24 = vadd.f32 %v2724_v42, %v2553_v23  ;;  %3076 = vmatmul.bf16.gmra.mxu2 %v7207_v9  ;;  %v2927_v41 = vpop.f32.mrf.mxu1  ;;  %v5140_v23 = vld [vmem:[%s6748_s30 + $0x38] sm:$0xff]  ;;  %v7215_v9 = vld [vmem:[#allocation10_spill] sm:$0xff] }
 0x209   : > { %v6807_v44 = vadd.f32 %v2922_v5, %v2767_v24 }
 0x20a   : > { %v2321_v48 = vpop.f32.mrf.mxu2 }
 0x20b   : > { %v2727_v15 = vpop.f32.mrf.mxu0  ;;  %v2362_v0 = vadd.f32 %v2321_v48, %v7208_v32 }
 0x20c   : > { %v2515_v20 = vpop.f32.mrf.mxu3 }
 0x20d   : > { %v2554_v53 = vadd.f32 %v2513_v57, %v2362_v0  ;;  %v7216_v0 = vld [vmem:[#allocation56_spill] sm:$0xff] }
 0x20e   : > { %3488 = vmatmul.bf16.gmra.mxu0 %v7209_v8 }
 0x20f   : > { %v2768_v3 = vadd.f32 %v2727_v15, %v2554_v53  ;;  %v2930_v7 = vpop.f32.mrf.mxu1 }
 0x211   : > { %3295 = vmatmul.bf16.gmra.mxu3 %v7210_v17  ;;  %v6813_v47 = vadd.f32 %v2925_v26, %v2768_v3  ;;  %v7217_v3 = vld [vmem:[#allocation9_spill] sm:$0xff] }
 0x212   : > { %v2323_v51 = vpop.f32.mrf.mxu2  ;;  %3978 = vmatmul.bf16.gmra.mxu1 %v5139_v38 }
 0x213   : > { %v2729_v13 = vpop.f32.mrf.mxu0  ;;  %v2363_v5 = vadd.f32 %v2323_v51, %v7211_v46  ;;  %v7218_v46 = vld [vmem:[#allocation6_spill] sm:$0xff] }
 0x214   : > { %v2518_v10 = vpop.f32.mrf.mxu3 }
 0x215   : > { %v2555_v56 = vadd.f32 %v2515_v20, %v2363_v5 }
 0x217   : > { %v2769_v12 = vadd.f32 %v2729_v13, %v2555_v56  ;;  %3081 = vmatmul.bf16.gmra.mxu2 %v7212_v18  ;;  %v2932_v55 = vpop.f32.mrf.mxu1  ;;  %v7219_v56 = vld [vmem:[#allocation7_spill] sm:$0xff]  ;;  %v5141_v18 = vld [vmem:[%s6748_s30 + $0x40] sm:$0xff] }
 0x219   : > { %v6817_v43 = vadd.f32 %v2927_v41, %v2769_v12 }
 0x21a   : > { %v2326_v29 = vpop.f32.mrf.mxu2 }
 0x21b   : > { %v2732_v11 = vpop.f32.mrf.mxu0  ;;  %v2364_v42 = vadd.f32 %v2326_v29, %v7213_v49 }
 0x21c   : > { %v2520_v26 = vpop.f32.mrf.mxu3 }
 0x21d   : > { %v2556_v35 = vadd.f32 %v2518_v10, %v2364_v42 }
 0x21e   : > { %3493 = vmatmul.bf16.gmra.mxu0 %v7214_v27 }
 0x21f   : > { %v2770_v57 = vadd.f32 %v2732_v11, %v2556_v35  ;;  %v2935_v24 = vpop.f32.mrf.mxu1 }
 0x221   : > { %3300 = vmatmul.bf16.gmra.mxu3 %v7215_v9  ;;  %v6823_v48 = vadd.f32 %v2930_v7, %v2770_v57  ;;  %v7221_v9 = vld [vmem:[#allocation14_spill] sm:$0xff] }
 0x222   : > { %v2328_v15 = vpop.f32.mrf.mxu2  ;;  %3983 = vmatmul.bf16.gmra.mxu1 %v5140_v23 }
 0x223   : > { %v2734_v32 = vpop.f32.mrf.mxu0  ;;  %v2365_v41 = vadd.f32 %v2328_v15, %v7216_v0 }
 0x224   : > { %v2523_v20 = vpop.f32.mrf.mxu3 }
 0x225   : > { %v2557_v53 = vadd.f32 %v2520_v26, %v2365_v41 }
 0x227   : > { %v2771_v8 = vadd.f32 %v2734_v32, %v2557_v53  ;;  %3086 = vmatmul.bf16.gmra.mxu2 %v7217_v3  ;;  %v2937_v38 = vpop.f32.mrf.mxu1 }
 0x229   : > { %v6827_v17 = vadd.f32 %v2932_v55, %v2771_v8  ;;  %v7220_v55 = vld [vmem:[#allocation12_spill] sm:$0xff]  ;;  %v7222_v8 = vld [vmem:[#allocation11_spill] sm:$0xff] }
 0x22a   : > { %v2331_v51 = vpop.f32.mrf.mxu2 }
 0x22b   : > { %v2737_v13 = vpop.f32.mrf.mxu0  ;;  %v2366_v5 = vadd.f32 %v2331_v51, %v7218_v46 }
 0x22c   : > { %v2525_v7 = vpop.f32.mrf.mxu3 }
 0x22d   : > { %v2558_v10 = vadd.f32 %v2523_v20, %v2366_v5 }
 0x22e   : > { %3498 = vmatmul.bf16.gmra.mxu0 %v7219_v56 }
 0x22f   : > { %v2772_v12 = vadd.f32 %v2737_v13, %v2558_v10  ;;  %v3949_v29 = vpop.f32.mrf.mxu1  ;;  %v5142_v13 = vld [vmem:[%s6748_s30 + $0x48] sm:$0xff] }
 0x230   : > { %v4131_v23 = vmul.f32 %v3949_v29, %v3949_v29 }
 0x231   : > { %3305 = vmatmul.bf16.gmra.mxu3 %v7165_v40  ;;  %v6833_v11 = vadd.f32 %v2935_v24, %v2772_v12 }
 0x232   : > { %v2333_v49 = vpop.f32.mrf.mxu2  ;;  %3988 = vmatmul.bf16.gmra.mxu1 %v5141_v18 }
 0x233   : > { %v2739_v42 = vpop.f32.mrf.mxu0  ;;  %v2367_v26 = vadd.f32 %v2333_v49, %v7220_v55 }
 0x234   : > { %v3266_v35 = vpop.f32.mrf.mxu3 }
 0x235   : > { %v2559_v27 = vadd.f32 %v2525_v7, %v2367_v26 }
 0x237   : > { %v2773_v57 = vadd.f32 %v2739_v42, %v2559_v27  ;;  %3091 = vmatmul.bf16.gmra.mxu2 %v7221_v9  ;;  %v3951_v40 = vpop.f32.mrf.mxu1 }
 0x238   : > { %v5272_v24 = vpack.c.bf16 %v3951_v40, %v3949_v29  ;;  %v4132_v15 = vmul.f32 %v3951_v40, %v3951_v40  ;;  %v4093_v32 = vadd.f32 %v3951_v40, %v3949_v29 }
 0x239   : > { %v6843_v0 = vadd.f32 %v2937_v38, %v2773_v57 }
 0x23a   : > { %v3052_v41 = vpop.f32.mrf.mxu2  ;;  %5273 = vst [vmem:[%s6841_s14] sm:$0xff] %v5272_v24   ;;  %v4163_v53 = vadd.f32 %v4132_v15, %v4131_v23 }
 0x23b   : > { %v3464_v20 = vpop.f32.mrf.mxu0  ;;  %v3132_v3 = vadd.f32 %v3052_v41, %v7222_v8  ;;  %v5143_v8 = vld [vmem:[%s6748_s30 + $0x50] sm:$0xff] }
 0x23c   : > { %v3268_v51 = vpop.f32.mrf.mxu3 }
 0x23d   : > { %v3346_v46 = vadd.f32 %v3266_v35, %v3132_v3 }
 0x23e   : > { %3503 = vmatmul.bf16.gmra.mxu0 %v6564_v54 }
 0x23f   : > { %v3954_v5 = vpop.f32.mrf.mxu1  ;;  %v3544_v29 = vadd.f32 %v3464_v20, %v3346_v46  ;;  %v7223_v20 = vld [vmem:[#allocation13_spill] sm:$0xff] }
 0x240   : > { %v4094_v7 = vadd.f32 %v4093_v32, %v3954_v5  ;;  %v4133_v10 = vmul.f32 %v3954_v5, %v3954_v5 }
 0x241   : > { %3310 = vmatmul.bf16.gmra.mxu3 %v7172_v22  ;;  %v3678_v54 = vmul.f32 %v3544_v29, %v3544_v29 }
 0x242   : > { %v3054_v56 = vpop.f32.mrf.mxu2  ;;  %v4164_v18 = vadd.f32 %v4163_v53, %v4133_v10  ;;  %3993 = vmatmul.bf16.gmra.mxu1 %v5142_v13 }
 0x243   : > { %v3466_v38 = vpop.f32.mrf.mxu0  ;;  %v3133_v12 = vadd.f32 %v3054_v56, %v6586_v30 }
 0x244   : > { %v3271_v49 = vpop.f32.mrf.mxu3 }
 0x245   : > { %v3347_v42 = vadd.f32 %v3268_v51, %v3133_v12 }
 0x247   : > { %v3545_v55 = vadd.f32 %v3466_v38, %v3347_v42  ;;  %3096 = vmatmul.bf16.gmra.mxu2 %v7168_v19  ;;  %v3956_v22 = vpop.f32.mrf.mxu1  ;;  %v7224_v38 = vld [vmem:[#allocation17_spill] sm:$0xff]  ;;  %v7225_v42 = vld [vmem:[#allocation24_spill] sm:$0xff] }
 0x248   : > { %v5277_v27 = vpack.c.bf16 %v3956_v22, %v3954_v5  ;;  %v4134_v23 = vmul.f32 %v3956_v22, %v3956_v22  ;;  %v4095_v9 = vadd.f32 %v4094_v7, %v3956_v22 }
 0x249   : > { %v5192_v26 = vpack.c.bf16 %v3545_v55, %v3544_v29  ;;  %v3640_v35 = vadd.f32 %v3545_v55, %v3544_v29  ;;  %v3679_v30 = vmul.f32 %v3545_v55, %v3545_v55 }
 0x24a   : > { %v3057_v57 = vpop.f32.mrf.mxu2  ;;  %5371 = vst [vmem:[%s6841_s14 + $0x8] sm:$0xff] %v5277_v27   ;;  %v4165_v32 = vadd.f32 %v4164_v18, %v4134_v23 }
 0x24b   : > { %5193 = vst [vmem:[%s6856_s16] sm:$0xff] %v5192_v26   ;;  %v3710_v40 = vadd.f32 %v3679_v30, %v3678_v54  ;;  %v3469_v24 = vpop.f32.mrf.mxu0  ;;  %v3134_v19 = vadd.f32 %v3057_v57, %v6596_v1 }
 0x24c   : > { %v3273_v15 = vpop.f32.mrf.mxu3 }
 0x24d   : > { %v3348_v41 = vadd.f32 %v3271_v49, %v3134_v19 }
 0x24e   : > { %3508 = vmatmul.bf16.gmra.mxu0 %v7223_v20 }
 0x24f   : > { %v3546_v53 = vadd.f32 %v3469_v24, %v3348_v41  ;;  %v3959_v3 = vpop.f32.mrf.mxu1  ;;  %v5144_v41 = vld [vmem:[%s6748_s30 + $0x58] sm:$0xff] }
 0x250   : > { %v4096_v46 = vadd.f32 %v4095_v9, %v3959_v3  ;;  %v4135_v5 = vmul.f32 %v3959_v3, %v3959_v3  ;;  %v7226_v9 = vld [vmem:[#allocation16_spill] sm:$0xff] }
 0x251   : > { %v3641_v51 = vadd.f32 %v3640_v35, %v3546_v53  ;;  %v3680_v13 = vmul.f32 %v3546_v53, %v3546_v53  ;;  %3315 = vmatmul.bf16.gmra.mxu3 %v7178_v60 }
 0x252   : > { %v3059_v7 = vpop.f32.mrf.mxu2  ;;  %v4166_v12 = vadd.f32 %v4165_v32, %v4135_v5  ;;  %3998 = vmatmul.bf16.gmra.mxu1 %v5143_v8 }
 0x253   : > { %v3711_v10 = vadd.f32 %v3710_v40, %v3680_v13  ;;  %v3471_v56 = vpop.f32.mrf.mxu0  ;;  %v3135_v1 = vadd.f32 %v3059_v7, %v7224_v38 }
 0x254   : > { %v3276_v18 = vpop.f32.mrf.mxu3 }
 0x255   : > { %v3349_v29 = vadd.f32 %v3273_v15, %v3135_v1  ;;  %v7227_v1 = vld [vmem:[#allocation30_spill] sm:$0xff] }
 0x257   : > { %v3547_v49 = vadd.f32 %v3471_v56, %v3349_v29  ;;  %3101 = vmatmul.bf16.gmra.mxu2 %v7225_v42  ;;  %v3961_v55 = vpop.f32.mrf.mxu1 }
 0x258   : > { %v5282_v60 = vpack.c.bf16 %v3961_v55, %v3959_v3  ;;  %v4136_v30 = vmul.f32 %v3961_v55, %v3961_v55  ;;  %v4097_v27 = vadd.f32 %v4096_v46, %v3961_v55 }
 0x259   : > { %v5197_v54 = vpack.c.bf16 %v3547_v49, %v3546_v53  ;;  %v3642_v22 = vadd.f32 %v3641_v51, %v3547_v49  ;;  %v3681_v26 = vmul.f32 %v3547_v49, %v3547_v49 }
 0x25a   : > { %v3062_v35 = vpop.f32.mrf.mxu2  ;;  %5372 = vst [vmem:[%s6841_s14 + $0x10] sm:$0xff] %v5282_v60   ;;  %v4167_v19 = vadd.f32 %v4166_v12, %v4136_v30 }
 0x25b   : > { %5356 = vst [vmem:[%s6856_s16 + $0x8] sm:$0xff] %v5197_v54   ;;  %v3712_v57 = vadd.f32 %v3711_v10, %v3681_v26  ;;  %v3474_v23 = vpop.f32.mrf.mxu0  ;;  %v3136_v40 = vadd.f32 %v3062_v35, %v7226_v9  ;;  %v7228_v26 = vld [vmem:[#allocation15_spill] sm:$0xff]  ;;  %v5145_v9 = vld [vmem:[%s6748_s30 + $0x60] sm:$0xff] }
 0x25c   : > { %v3278_v24 = vpop.f32.mrf.mxu3 }
 0x25d   : > { %v3350_v15 = vadd.f32 %v3276_v18, %v3136_v40 }
 0x25e   : > { %3513 = vmatmul.bf16.gmra.mxu0 %v6616_v25 }
 0x25f   : > { %v3548_v32 = vadd.f32 %v3474_v23, %v3350_v15  ;;  %v3964_v20 = vpop.f32.mrf.mxu1 }
 0x260   : > { %v4098_v3 = vadd.f32 %v4097_v27, %v3964_v20  ;;  %v4137_v51 = vmul.f32 %v3964_v20, %v3964_v20 }
 0x261   : > { %v3643_v53 = vadd.f32 %v3642_v22, %v3548_v32  ;;  %v3682_v8 = vmul.f32 %v3548_v32, %v3548_v32  ;;  %3320 = vmatmul.bf16.gmra.mxu3 %v7186_v14 }
 0x262   : > { %v3064_v13 = vpop.f32.mrf.mxu2  ;;  %v4168_v10 = vadd.f32 %v4167_v19, %v4137_v51  ;;  %4003 = vmatmul.bf16.gmra.mxu1 %v5144_v41  ;;  %v7230_v41 = vld [vmem:[#allocation37_spill] sm:$0xff] }
 0x263   : > { %v3713_v46 = vadd.f32 %v3712_v57, %v3682_v8  ;;  %v3476_v5 = vpop.f32.mrf.mxu0  ;;  %v3137_v7 = vadd.f32 %v3064_v13, %v6638_v2  ;;  %v7229_v57 = vld [vmem:[#allocation18_spill] sm:$0xff] }
 0x264   : > { %v3281_v56 = vpop.f32.mrf.mxu3 }
 0x265   : > { %v3351_v25 = vadd.f32 %v3278_v24, %v3137_v7 }
 0x267   : > { %v3549_v38 = vadd.f32 %v3476_v5, %v3351_v25  ;;  %3106 = vmatmul.bf16.gmra.mxu2 %v7227_v1  ;;  %v3966_v12 = vpop.f32.mrf.mxu1 }
 0x268   : > { %v5287_v14 = vpack.c.bf16 %v3966_v12, %v3964_v20  ;;  %v4138_v55 = vmul.f32 %v3966_v12, %v3966_v12  ;;  %v4099_v54 = vadd.f32 %v4098_v3, %v3966_v12  ;;  %v7231_v3 = vld [vmem:[#allocation21_spill] sm:$0xff] }
 0x269   : > { %v5202_v18 = vpack.c.bf16 %v3549_v38, %v3548_v32  ;;  %v3644_v29 = vadd.f32 %v3643_v53, %v3549_v38  ;;  %v3683_v49 = vmul.f32 %v3549_v38, %v3549_v38 }
 0x26a   : > { %v3067_v42 = vpop.f32.mrf.mxu2  ;;  %5373 = vst [vmem:[%s6841_s14 + $0x18] sm:$0xff] %v5287_v14   ;;  %v4169_v30 = vadd.f32 %v4168_v10, %v4138_v55  ;;  %v7232_v10 = vld [vmem:[#allocation35_spill] sm:$0xff]  ;;  %v7233_v55 = vld [vmem:[#allocation22_spill] sm:$0xff] }
 0x26b   : > { %5357 = vst [vmem:[%s6856_s16 + $0x10] sm:$0xff] %v5202_v18   ;;  %v3714_v22 = vadd.f32 %v3713_v46, %v3683_v49  ;;  %v3479_v2 = vpop.f32.mrf.mxu0  ;;  %v3138_v60 = vadd.f32 %v3067_v42, %v7228_v26 }
 0x26c   : > { %v3283_v35 = vpop.f32.mrf.mxu3 }
 0x26d   : > { %v3352_v27 = vadd.f32 %v3281_v56, %v3138_v60  ;;  %v7234_v60 = vld [vmem:[#allocation19_spill] sm:$0xff] }
 0x26e   : > { %3518 = vmatmul.bf16.gmra.mxu0 %v7229_v57 }
 0x26f   : > { %v3550_v23 = vadd.f32 %v3479_v2, %v3352_v27  ;;  %v3969_v40 = vpop.f32.mrf.mxu1 }
 0x270   : > { %v4100_v15 = vadd.f32 %v4099_v54, %v3969_v40  ;;  %v4139_v32 = vmul.f32 %v3969_v40, %v3969_v40 }
 0x271   : > { %v3645_v24 = vadd.f32 %v3644_v29, %v3550_v23  ;;  %v3684_v19 = vmul.f32 %v3550_v23, %v3550_v23  ;;  %3325 = vmatmul.bf16.gmra.mxu3 %v7230_v41 }
 0x272   : > { %v3069_v20 = vpop.f32.mrf.mxu2  ;;  %v4170_v13 = vadd.f32 %v4169_v30, %v4139_v32  ;;  %4008 = vmatmul.bf16.gmra.mxu1 %v5145_v9  ;;  %v5146_v30 = vld [vmem:[%s6748_s30 + $0x68] sm:$0xff] }
 0x273   : > { %v3715_v53 = vadd.f32 %v3714_v22, %v3684_v19  ;;  %v3481_v8 = vpop.f32.mrf.mxu0  ;;  %v3139_v51 = vadd.f32 %v3069_v20, %v7231_v3  ;;  %v7235_v32 = vld [vmem:[#allocation23_spill] sm:$0xff] }
 0x274   : > { %v3286_v46 = vpop.f32.mrf.mxu3 }
 0x275   : > { %v3353_v5 = vadd.f32 %v3283_v35, %v3139_v51  ;;  %v7236_v51 = vld [vmem:[#allocation39_spill] sm:$0xff] }
 0x277   : > { %v3551_v7 = vadd.f32 %v3481_v8, %v3353_v5  ;;  %3111 = vmatmul.bf16.gmra.mxu2 %v7232_v10  ;;  %v3971_v56 = vpop.f32.mrf.mxu1 }
 0x278   : > { %v5292_v12 = vpack.c.bf16 %v3971_v56, %v3969_v40  ;;  %v4101_v29 = vadd.f32 %v4100_v15, %v3971_v56  ;;  %v4140_v49 = vmul.f32 %v3971_v56, %v3971_v56 }
 0x279   : > { %v5207_v25 = vpack.c.bf16 %v3551_v7, %v3550_v23  ;;  %v3646_v38 = vadd.f32 %v3645_v24, %v3551_v7  ;;  %v3685_v1 = vmul.f32 %v3551_v7, %v3551_v7 }
 0x27a   : > { %v3072_v18 = vpop.f32.mrf.mxu2  ;;  %5374 = vst [vmem:[%s6841_s14 + $0x20] sm:$0xff] %v5292_v12   ;;  %v4171_v22 = vadd.f32 %v4170_v13, %v4140_v49  ;;  %v7237_v12 = vld [vmem:[#allocation20_spill] sm:$0xff] }
 0x27b   : > { %5358 = vst [vmem:[%s6856_s16 + $0x18] sm:$0xff] %v5207_v25   ;;  %v3716_v14 = vadd.f32 %v3715_v53, %v3685_v1  ;;  %v3484_v42 = vpop.f32.mrf.mxu0  ;;  %v3140_v54 = vadd.f32 %v3072_v18, %v7233_v55  ;;  %v5147_v55 = vld [vmem:[%s6748_s30 + $0x70] sm:$0xff] }
 0x27c   : > { %v3288_v2 = vpop.f32.mrf.mxu3 }
 0x27d   : > { %v3354_v26 = vadd.f32 %v3286_v46, %v3140_v54 }
 0x27e   : > { %3523 = vmatmul.bf16.gmra.mxu0 %v7234_v60 }
 0x27f   : > { %v3552_v35 = vadd.f32 %v3484_v42, %v3354_v26  ;;  %v3974_v27 = vpop.f32.mrf.mxu1 }
 0x280   : > { %v4102_v9 = vadd.f32 %v4101_v29, %v3974_v27  ;;  %v4141_v40 = vmul.f32 %v3974_v27, %v3974_v27 }
 0x281   : > { %v3647_v57 = vadd.f32 %v3646_v38, %v3552_v35  ;;  %v3686_v23 = vmul.f32 %v3552_v35, %v3552_v35  ;;  %3330 = vmatmul.bf16.gmra.mxu3 %v7195_v36 }
 0x282   : > { %v3074_v24 = vpop.f32.mrf.mxu2  ;;  %v4172_v20 = vadd.f32 %v4171_v22, %v4141_v40  ;;  %4013 = vmatmul.bf16.gmra.mxu1 %v5146_v30 }
 0x283   : > { %v3717_v19 = vadd.f32 %v3716_v14, %v3686_v23  ;;  %v3486_v15 = vpop.f32.mrf.mxu0  ;;  %v3141_v41 = vadd.f32 %v3074_v24, %v7235_v32 }
 0x284   : > { %v3291_v53 = vpop.f32.mrf.mxu3 }
 0x285   : > { %v3355_v8 = vadd.f32 %v3288_v2, %v3141_v41 }
 0x287   : > { %v3553_v3 = vadd.f32 %v3486_v15, %v3355_v8  ;;  %3116 = vmatmul.bf16.gmra.mxu2 %v7236_v51  ;;  %v3976_v13 = vpop.f32.mrf.mxu1 }
 0x288   : > { %v5297_v36 = vpack.c.bf16 %v3976_v13, %v3974_v27  ;;  %v4103_v56 = vadd.f32 %v4102_v9, %v3976_v13  ;;  %v4142_v25 = vmul.f32 %v3976_v13, %v3976_v13 }
 0x289   : > { %v5212_v46 = vpack.c.bf16 %v3553_v3, %v3552_v35  ;;  %v3648_v5 = vadd.f32 %v3647_v57, %v3553_v3  ;;  %v3687_v7 = vmul.f32 %v3553_v3, %v3553_v3 }
 0x28a   : > { %v3077_v10 = vpop.f32.mrf.mxu2  ;;  %5375 = vst [vmem:[%s6841_s14 + $0x28] sm:$0xff] %v5297_v36   ;;  %v4173_v29 = vadd.f32 %v4172_v20, %v4142_v25 }
 0x28b   : > { %5359 = vst [vmem:[%s6856_s16 + $0x20] sm:$0xff] %v5212_v46   ;;  %v3718_v38 = vadd.f32 %v3717_v19, %v3687_v7  ;;  %v3489_v1 = vpop.f32.mrf.mxu0  ;;  %v3142_v18 = vadd.f32 %v3077_v10, %v7237_v12 }
 0x28c   : > { %v3293_v49 = vpop.f32.mrf.mxu3 }
 0x28d   : > { %v3356_v14 = vadd.f32 %v3291_v53, %v3142_v18 }
 0x28e   : > { %3528 = vmatmul.bf16.gmra.mxu0 %v6706_v45 }
 0x28f   : > { %v3554_v42 = vadd.f32 %v3489_v1, %v3356_v14  ;;  %v3979_v54 = vpop.f32.mrf.mxu1 }
 0x290   : > { %v4104_v26 = vadd.f32 %v4103_v56, %v3979_v54  ;;  %v4143_v60 = vmul.f32 %v3979_v54, %v3979_v54 }
 0x291   : > { %v3649_v22 = vadd.f32 %v3648_v5, %v3554_v42  ;;  %v3688_v2 = vmul.f32 %v3554_v42, %v3554_v42  ;;  %3335 = vmatmul.bf16.gmra.mxu3 %v6741_v62  ;;  %v5148_v5 = vld [vmem:[%s6748_s30 + $0x78] sm:$0xff]  ;;  %s511_s30 = scalar_lea.vmem %s7018_s7, %s7246_s17 }
 0x292   : > { %v3079_v35 = vpop.f32.mrf.mxu2  ;;  %v4174_v23 = vadd.f32 %v4173_v29, %v4143_v60  ;;  %4018 = vmatmul.bf16.gmra.mxu1 %v5147_v55 }
 0x293   : > { %v3719_v30 = vadd.f32 %v3718_v38, %v3688_v2  ;;  %v3491_v27 = vpop.f32.mrf.mxu0  ;;  %v3143_v57 = vadd.f32 %v3079_v35, %v6718_v16  ;;  %v7238_v38 = vld [vmem:[#allocation4_spill] sm:$0xff] }
 0x294   : > { %v3296_v9 = vpop.f32.mrf.mxu3 }
 0x295   : > { %v3357_v45 = vadd.f32 %v3293_v49, %v3143_v57 }
 0x297   : > { %v3555_v40 = vadd.f32 %v3491_v27, %v3357_v45  ;;  %3121 = vmatmul.bf16.gmra.mxu2 %v6721_v39  ;;  %v3981_v24 = vpop.f32.mrf.mxu1 }
 0x298   : > { %v5302_v62 = vpack.c.bf16 %v3981_v24, %v3979_v54  ;;  %v4105_v20 = vadd.f32 %v4104_v26, %v3981_v24  ;;  %v4144_v53 = vmul.f32 %v3981_v24, %v3981_v24 }
 0x299   : > { %v5217_v19 = vpack.c.bf16 %v3555_v40, %v3554_v42  ;;  %v3650_v15 = vadd.f32 %v3649_v22, %v3555_v40  ;;  %v3689_v32 = vmul.f32 %v3555_v40, %v3555_v40  ;;  %v7239_v42 = vld [vmem:[#allocation3_spill] sm:$0xff] }
 0x29a   : > { %v3082_v41 = vpop.f32.mrf.mxu2  ;;  %5376 = vst [vmem:[%s6841_s14 + $0x30] sm:$0xff] %v5302_v62   ;;  %v4175_v51 = vadd.f32 %v4174_v23, %v4144_v53  ;;  %v7240_v40 = vld [vmem:[#allocation43_spill] sm:$0xff] }
 0x29b   : > { %5360 = vst [vmem:[%s6856_s16 + $0x28] sm:$0xff] %v5217_v19   ;;  %v3720_v8 = vadd.f32 %v3719_v30, %v3689_v32  ;;  %v3494_v16 = vpop.f32.mrf.mxu0  ;;  %v3144_v3 = vadd.f32 %v3082_v41, %v6727_v28 }
 0x29c   : > { %v3298_v13 = vpop.f32.mrf.mxu3 }
 0x29d   : > { %v3358_v46 = vadd.f32 %v3296_v9, %v3144_v3 }
 0x29e   : > { %3533 = vmatmul.bf16.gmra.mxu0 %v6724_v50 }
 0x29f   : > { %v3556_v39 = vadd.f32 %v3494_v16, %v3358_v46  ;;  %v3984_v7 = vpop.f32.mrf.mxu1 }
 0x2a0   : > { %v4106_v56 = vadd.f32 %v4105_v20, %v3984_v7  ;;  %v4145_v25 = vmul.f32 %v3984_v7, %v3984_v7 }
 0x2a1   : > { %v3651_v36 = vadd.f32 %v3650_v15, %v3556_v39  ;;  %v3690_v10 = vmul.f32 %v3556_v39, %v3556_v39  ;;  %3340 = vmatmul.bf16.gmra.mxu3 %v7238_v38 }
 0x2a2   : > { %v3084_v1 = vpop.f32.mrf.mxu2  ;;  %v4176_v29 = vadd.f32 %v4175_v51, %v4145_v25  ;;  %4023 = vmatmul.bf16.gmra.mxu1 %v5148_v5 }
 0x2a3   : > { %v3721_v12 = vadd.f32 %v3720_v8, %v3690_v10  ;;  %v3496_v18 = vpop.f32.mrf.mxu0  ;;  %v3145_v28 = vadd.f32 %v3084_v1, %v6739_v34 }
 0x2a4   : > { %v3301_v49 = vpop.f32.mrf.mxu3 }
 0x2a5   : > { %v3359_v50 = vadd.f32 %v3298_v13, %v3145_v28 }
 0x2a7   : > { %v3557_v14 = vadd.f32 %v3496_v18, %v3359_v50  ;;  %3126 = vmatmul.bf16.gmra.mxu2 %v7239_v42  ;;  %v3986_v55 = vpop.f32.mrf.mxu1 }
 0x2a8   : > { %v5307_v26 = vpack.c.bf16 %v3986_v55, %v3984_v7  ;;  %v4107_v35 = vadd.f32 %v4106_v56, %v3986_v55  ;;  %v4146_v30 = vmul.f32 %v3986_v55, %v3986_v55 }
 0x2a9   : > { %v5222_v54 = vpack.c.bf16 %v3557_v14, %v3556_v39  ;;  %v3652_v22 = vadd.f32 %v3651_v36, %v3557_v14  ;;  %v3691_v2 = vmul.f32 %v3557_v14, %v3557_v14 }
 0x2aa   : > { %v3087_v60 = vpop.f32.mrf.mxu2  ;;  %5377 = vst [vmem:[%s6841_s14 + $0x38] sm:$0xff] %v5307_v26   ;;  %v4177_v23 = vadd.f32 %v4176_v29, %v4146_v30 }
 0x2ab   : > { %5361 = vst [vmem:[%s6856_s16 + $0x30] sm:$0xff] %v5222_v54   ;;  %v3722_v27 = vadd.f32 %v3721_v12, %v3691_v2  ;;  %v3499_v57 = vpop.f32.mrf.mxu0  ;;  %v3146_v34 = vadd.f32 %v3087_v60, %v6753_v37 }
 0x2ac   : > { %v3303_v9 = vpop.f32.mrf.mxu3 }
 0x2ad   : > { %v3360_v45 = vadd.f32 %v3301_v49, %v3146_v34 }
 0x2ae   : > { %3538 = vmatmul.bf16.gmra.mxu0 %v7240_v40 }
 0x2af   : > { %v3558_v24 = vadd.f32 %v3499_v57, %v3360_v45  ;;  %v3989_v19 = vpop.f32.mrf.mxu1 }
 0x2b0   : > { %v4108_v62 = vadd.f32 %v4107_v35, %v3989_v19  ;;  %v4147_v41 = vmul.f32 %v3989_v19, %v3989_v19 }
 0x2b1   : > { %v3653_v15 = vadd.f32 %v3652_v22, %v3558_v24  ;;  %v3692_v32 = vmul.f32 %v3558_v24, %v3558_v24 }
 0x2b2   : > { %v3089_v20 = vpop.f32.mrf.mxu2  ;;  %v4178_v3 = vadd.f32 %v4177_v23, %v4147_v41 }
 0x2b3   : > { %v3723_v53 = vadd.f32 %v3722_v27, %v3692_v32  ;;  %v3501_v8 = vpop.f32.mrf.mxu0  ;;  %v3147_v16 = vadd.f32 %v3089_v20, %v6757_v4 }
 0x2b4   : > { %v3306_v37 = vpop.f32.mrf.mxu3 }
 0x2b5   : > { %v3361_v51 = vadd.f32 %v3303_v9, %v3147_v16 }
 0x2b7   : > { %v3559_v13 = vadd.f32 %v3501_v8, %v3361_v51  ;;  %v3991_v46 = vpop.f32.mrf.mxu1 }
 0x2b8   : > { %v5312_v36 = vpack.c.bf16 %v3991_v46, %v3989_v19  ;;  %v4109_v56 = vadd.f32 %v4108_v62, %v3991_v46  ;;  %v4148_v25 = vmul.f32 %v3991_v46, %v3991_v46 }
 0x2b9   : > { %v5227_v39 = vpack.c.bf16 %v3559_v13, %v3558_v24  ;;  %v3654_v5 = vadd.f32 %v3653_v15, %v3559_v13  ;;  %v3693_v7 = vmul.f32 %v3559_v13, %v3559_v13 }
 0x2ba   : > { %v3092_v10 = vpop.f32.mrf.mxu2  ;;  %5378 = vst [vmem:[%s6841_s14 + $0x40] sm:$0xff] %v5312_v36   ;;  %v4179_v4 = vadd.f32 %v4178_v3, %v4148_v25 }
 0x2bb   : > { %5362 = vst [vmem:[%s6856_s16 + $0x38] sm:$0xff] %v5227_v39   ;;  %v3724_v38 = vadd.f32 %v3723_v53, %v3693_v7  ;;  %v3504_v1 = vpop.f32.mrf.mxu0  ;;  %v3148_v12 = vadd.f32 %v3092_v10, %v6763_v52 }
 0x2bc   : > { %v3308_v18 = vpop.f32.mrf.mxu3 }
 0x2bd   : > { %v3362_v28 = vadd.f32 %v3306_v37, %v3148_v12 }
 0x2bf   : > { %v3560_v29 = vadd.f32 %v3504_v1, %v3362_v28  ;;  %v3994_v49 = vpop.f32.mrf.mxu1 }
 0x2c0   : > { %v4110_v42 = vadd.f32 %v4109_v56, %v3994_v49  ;;  %v4149_v55 = vmul.f32 %v3994_v49, %v3994_v49 }
 0x2c1   : > { %v3655_v50 = vadd.f32 %v3654_v5, %v3560_v29  ;;  %v3694_v14 = vmul.f32 %v3560_v29, %v3560_v29 }
 0x2c2   : > { %v3094_v54 = vpop.f32.mrf.mxu2  ;;  %v4180_v60 = vadd.f32 %v4179_v4, %v4149_v55 }
 0x2c3   : > { %v3725_v22 = vadd.f32 %v3724_v38, %v3694_v14  ;;  %v3506_v2 = vpop.f32.mrf.mxu0  ;;  %v3149_v26 = vadd.f32 %v3094_v54, %v6767_v31 }
 0x2c4   : > { %v3311_v35 = vpop.f32.mrf.mxu3 }
 0x2c5   : > { %v3363_v52 = vadd.f32 %v3308_v18, %v3149_v26 }
 0x2c7   : > { %v3561_v30 = vadd.f32 %v3506_v2, %v3363_v52  ;;  %v3996_v27 = vpop.f32.mrf.mxu1 }
 0x2c8   : > { %v5317_v9 = vpack.c.bf16 %v3996_v27, %v3994_v49  ;;  %v4111_v40 = vadd.f32 %v4110_v42, %v3996_v27  ;;  %v4150_v24 = vmul.f32 %v3996_v27, %v3996_v27 }
 0x2c9   : > { %v5232_v57 = vpack.c.bf16 %v3561_v30, %v3560_v29  ;;  %v3656_v34 = vadd.f32 %v3655_v50, %v3561_v30  ;;  %v3695_v23 = vmul.f32 %v3561_v30, %v3561_v30 }
 0x2ca   : > { %v3097_v45 = vpop.f32.mrf.mxu2  ;;  %5379 = vst [vmem:[%s6841_s14 + $0x48] sm:$0xff] %v5317_v9   ;;  %v4181_v31 = vadd.f32 %v4180_v60, %v4150_v24 }
 0x2cb   : > { %5363 = vst [vmem:[%s6856_s16 + $0x40] sm:$0xff] %v5232_v57   ;;  %v3726_v19 = vadd.f32 %v3725_v22, %v3695_v23  ;;  %v3509_v15 = vpop.f32.mrf.mxu0  ;;  %v3150_v32 = vadd.f32 %v3097_v45, %v6773_v33 }
 0x2cc   : > { %v3313_v62 = vpop.f32.mrf.mxu3 }
 0x2cd   : > { %v3364_v41 = vadd.f32 %v3311_v35, %v3150_v32 }
 0x2cf   : > { %v3562_v20 = vadd.f32 %v3509_v15, %v3364_v41  ;;  %v3999_v53 = vpop.f32.mrf.mxu1 }
 0x2d0   : > { %v6918_v3 = vadd.f32 %v4111_v40, %v3999_v53  ;;  %v4151_v37 = vmul.f32 %v3999_v53, %v3999_v53 }
 0x2d1   : > { %v3657_v8 = vadd.f32 %v3656_v34, %v3562_v20  ;;  %v3696_v16 = vmul.f32 %v3562_v20, %v3562_v20 }
 0x2d2   : > { %v3099_v51 = vpop.f32.mrf.mxu2  ;;  %v6921_v5 = vadd.f32 %v4181_v31, %v4151_v37 }
 0x2d3   : > { %v3727_v13 = vadd.f32 %v3726_v19, %v3696_v16  ;;  %v3511_v46 = vpop.f32.mrf.mxu0  ;;  %v3151_v39 = vadd.f32 %v3099_v51, %v6777_v63 }
 0x2d4   : > { %v3316_v33 = vpop.f32.mrf.mxu3 }
 0x2d5   : > { %v3365_v7 = vadd.f32 %v3313_v62, %v3151_v39 }
 0x2d7   : > { %v3563_v36 = vadd.f32 %v3511_v46, %v3365_v7  ;;  %v6923_v10 = vpop.f32.mrf.mxu1 }
 0x2d8   : > { %v5322_v1 = vpack.c.bf16 %v6923_v10, %v3999_v53 }
 0x2d9   : > { %v5237_v56 = vpack.c.bf16 %v3563_v36, %v3562_v20  ;;  %v3658_v25 = vadd.f32 %v3657_v8, %v3563_v36  ;;  %v3697_v38 = vmul.f32 %v3563_v36, %v3563_v36 }
 0x2da   : > { %v3102_v12 = vpop.f32.mrf.mxu2  ;;  %5380 = vst [vmem:[%s6841_s14 + $0x50] sm:$0xff] %v5322_v1  }
 0x2db   : > { %5364 = vst [vmem:[%s6856_s16 + $0x48] sm:$0xff] %v5237_v56   ;;  %v3728_v4 = vadd.f32 %v3727_v13, %v3697_v38  ;;  %v3514_v18 = vpop.f32.mrf.mxu0  ;;  %v3152_v28 = vadd.f32 %v3102_v12, %v6783_v61 }
 0x2dc   : > { %v3318_v63 = vpop.f32.mrf.mxu3 }
 0x2dd   : > { %v3366_v29 = vadd.f32 %v3316_v33, %v3152_v28 }
 0x2df   : > { %v3564_v49 = vadd.f32 %v3514_v18, %v3366_v29  ;;  %v6929_v50 = vpop.f32.mrf.mxu1 }
 0x2e1   : > { %v3659_v14 = vadd.f32 %v3658_v25, %v3564_v49  ;;  %v3698_v42 = vmul.f32 %v3564_v49, %v3564_v49 }
 0x2e2   : > { %v3104_v55 = vpop.f32.mrf.mxu2 }
 0x2e3   : > { %v3729_v54 = vadd.f32 %v3728_v4, %v3698_v42  ;;  %v3516_v22 = vpop.f32.mrf.mxu0  ;;  %v3153_v2 = vadd.f32 %v3104_v55, %v6787_v59 }
 0x2e4   : > { %v3321_v26 = vpop.f32.mrf.mxu3 }
 0x2e5   : > { %v3367_v60 = vadd.f32 %v3318_v63, %v3153_v2 }
 0x2e7   : > { %v3565_v35 = vadd.f32 %v3516_v22, %v3367_v60  ;;  %v6932_v52 = vpop.f32.mrf.mxu1 }
 0x2e8   : > { %v5327_v57 = vpack.c.bf16 %v6932_v52, %v6929_v50 }
 0x2e9   : > { %v5242_v61 = vpack.c.bf16 %v3565_v35, %v3564_v49  ;;  %v3660_v30 = vadd.f32 %v3659_v14, %v3565_v35  ;;  %v3699_v27 = vmul.f32 %v3565_v35, %v3565_v35 }
 0x2ea   : > { %v3107_v34 = vpop.f32.mrf.mxu2  ;;  %5381 = vst [vmem:[%s6841_s14 + $0x58] sm:$0xff] %v5327_v57  }
 0x2eb   : > { %5365 = vst [vmem:[%s6856_s16 + $0x50] sm:$0xff] %v5242_v61   ;;  %v3730_v23 = vadd.f32 %v3729_v54, %v3699_v27  ;;  %v3519_v9 = vpop.f32.mrf.mxu0  ;;  %v3154_v45 = vadd.f32 %v3107_v34, %v6793_v21 }
 0x2ec   : > { %v3323_v40 = vpop.f32.mrf.mxu3 }
 0x2ed   : > { %v3368_v59 = vadd.f32 %v3321_v26, %v3154_v45 }
 0x2ef   : > { %v3566_v24 = vadd.f32 %v3519_v9, %v3368_v59  ;;  %v6939_v19 = vpop.f32.mrf.mxu1  ;;  %v4152_v59 = vmul.f32 %v6923_v10, %v6923_v10 }
 0x2f1   : > { %v3661_v15 = vadd.f32 %v3660_v30, %v3566_v24  ;;  %v3700_v32 = vmul.f32 %v3566_v24, %v3566_v24 }
 0x2f2   : > { %v3109_v31 = vpop.f32.mrf.mxu2 }
 0x2f3   : > { %v3731_v62 = vadd.f32 %v3730_v23, %v3700_v32  ;;  %v3521_v41 = vpop.f32.mrf.mxu0  ;;  %v3155_v20 = vadd.f32 %v3109_v31, %v6797_v6 }
 0x2f4   : > { %v3326_v53 = vpop.f32.mrf.mxu3 }
 0x2f5   : > { %v3369_v8 = vadd.f32 %v3323_v40, %v3155_v20 }
 0x2f7   : > { %v3567_v16 = vadd.f32 %v3521_v41, %v3369_v8  ;;  %v6942_v37 = vpop.f32.mrf.mxu1 }
 0x2f8   : > { %v5332_v46 = vpack.c.bf16 %v6942_v37, %v6939_v19 }
 0x2f9   : > { %v5247_v21 = vpack.c.bf16 %v3567_v16, %v3566_v24  ;;  %v3662_v51 = vadd.f32 %v3661_v15, %v3567_v16  ;;  %v3701_v13 = vmul.f32 %v3567_v16, %v3567_v16  ;;  %v4113_v15 = vadd.f32 %v6918_v3, %v6923_v10 }
 0x2fa   : > { %v3112_v39 = vpop.f32.mrf.mxu2  ;;  %5382 = vst [vmem:[%s6841_s14 + $0x60] sm:$0xff] %v5332_v46  }
 0x2fb   : > { %5366 = vst [vmem:[%s6856_s16 + $0x58] sm:$0xff] %v5247_v21   ;;  %v3732_v33 = vadd.f32 %v3731_v62, %v3701_v13  ;;  %v3524_v7 = vpop.f32.mrf.mxu0  ;;  %v3156_v36 = vadd.f32 %v3112_v39, %v6803_v58  ;;  %v4183_v62 = vadd.f32 %v6921_v5, %v4152_v59  ;;  %v4114_v41 = vadd.f32 %v4113_v15, %v6929_v50 }
 0x2fc   : > { %v3328_v56 = vpop.f32.mrf.mxu3 }
 0x2fd   : > { %v3370_v6 = vadd.f32 %v3326_v53, %v3156_v36  ;;  %v4115_v10 = vadd.f32 %v4114_v41, %v6932_v52 }
 0x2ff   : > { %v3568_v25 = vadd.f32 %v3524_v7, %v3370_v6  ;;  %v6949_v38 = vpop.f32.mrf.mxu1  ;;  %v4156_v7 = vmul.f32 %v6942_v37, %v6942_v37 }
 0x300   : > { %v4157_v6 = vmul.f32 %v6949_v38, %v6949_v38 }
 0x301   : > { %v3663_v1 = vadd.f32 %v3662_v51, %v3568_v25  ;;  %v3702_v12 = vmul.f32 %v3568_v25, %v3568_v25  ;;  %v4155_v51 = vmul.f32 %v6939_v19, %v6939_v19 }
 0x302   : > { %v3114_v4 = vpop.f32.mrf.mxu2 }
 0x303   : > { %v3733_v18 = vadd.f32 %v3732_v33, %v3702_v12  ;;  %v3526_v28 = vpop.f32.mrf.mxu0  ;;  %v3157_v63 = vadd.f32 %v3114_v4, %v6807_v44  ;;  %v4116_v33 = vadd.f32 %v4115_v10, %v6939_v19 }
 0x304   : > { %v3331_v29 = vpop.f32.mrf.mxu3 }
 0x305   : > { %v3371_v49 = vadd.f32 %v3328_v56, %v3157_v63 }
 0x307   : > { %v3569_v14 = vadd.f32 %v3526_v28, %v3371_v49  ;;  %v4016_v42 = vpop.f32.mrf.mxu1 }
 0x308   : > { %v5337_v22 = vpack.c.bf16 %v4016_v42, %v6949_v38  ;;  %v4158_v4 = vmul.f32 %v4016_v42, %v4016_v42 }
 0x309   : > { %v5252_v58 = vpack.c.bf16 %v3569_v14, %v3568_v25  ;;  %v3664_v55 = vadd.f32 %v3663_v1, %v3569_v14  ;;  %v3703_v54 = vmul.f32 %v3569_v14, %v3569_v14 }
 0x30a   : > { %v3117_v2 = vpop.f32.mrf.mxu2  ;;  %5383 = vst [vmem:[%s6841_s14 + $0x68] sm:$0xff] %v5337_v22  }
 0x30b   : > { %5367 = vst [vmem:[%s6856_s16 + $0x60] sm:$0xff] %v5252_v58   ;;  %v3734_v26 = vadd.f32 %v3733_v18, %v3703_v54  ;;  %v3529_v60 = vpop.f32.mrf.mxu0  ;;  %v3158_v35 = vadd.f32 %v3117_v2, %v6813_v47  ;;  %v4153_v47 = vmul.f32 %v6929_v50, %v6929_v50 }
 0x30c   : > { %v3333_v61 = vpop.f32.mrf.mxu3 }
 0x30d   : > { %v3372_v30 = vadd.f32 %v3331_v29, %v3158_v35  ;;  %v4184_v3 = vadd.f32 %v4183_v62, %v4153_v47 }
 0x30f   : > { %v3570_v27 = vadd.f32 %v3529_v60, %v3372_v30  ;;  %v4019_v44 = vpop.f32.mrf.mxu1 }
 0x310   : > { %v4159_v49 = vmul.f32 %v4019_v44, %v4019_v44 }
 0x311   : > { %v3665_v57 = vadd.f32 %v3664_v55, %v3570_v27  ;;  %v3704_v34 = vmul.f32 %v3570_v27, %v3570_v27 }
 0x312   : > { %v3119_v23 = vpop.f32.mrf.mxu2 }
 0x313   : > { %v3735_v9 = vadd.f32 %v3734_v26, %v3704_v34  ;;  %v3531_v45 = vpop.f32.mrf.mxu0  ;;  %v3159_v40 = vadd.f32 %v3119_v23, %v6817_v43  ;;  %v4154_v43 = vmul.f32 %v6932_v52, %v6932_v52  ;;  %v4117_v52 = vadd.f32 %v4116_v33, %v6942_v37 }
 0x314   : > { %v3336_v32 = vpop.f32.mrf.mxu3 }
 0x315   : > { %v3373_v24 = vadd.f32 %v3333_v61, %v3159_v40  ;;  %v4185_v39 = vadd.f32 %v4184_v3, %v4154_v43  ;;  %v4118_v12 = vadd.f32 %v4117_v52, %v6949_v38 }
 0x317   : > { %v3571_v31 = vadd.f32 %v3531_v45, %v3373_v24  ;;  %v4021_v20 = vpop.f32.mrf.mxu1  ;;  %v4186_v56 = vadd.f32 %v4185_v39, %v4155_v51  ;;  %v4119_v29 = vadd.f32 %v4118_v12, %v4016_v42 }
 0x318   : > { %v5342_v21 = vpack.c.bf16 %v4021_v20, %v4019_v44  ;;  %v4160_v2 = vmul.f32 %v4021_v20, %v4021_v20 }
 0x319   : > { %v5257_v53 = vpack.c.bf16 %v3571_v31, %v3570_v27  ;;  %v3666_v8 = vadd.f32 %v3665_v57, %v3571_v31  ;;  %v3705_v16 = vmul.f32 %v3571_v31, %v3571_v31  ;;  %v4187_v1 = vadd.f32 %v4186_v56, %v4156_v7 }
 0x31a   : > { %v3122_v13 = vpop.f32.mrf.mxu2  ;;  %5384 = vst [vmem:[%s6841_s14 + $0x70] sm:$0xff] %v5342_v21   ;;  %v4120_v22 = vadd.f32 %v4119_v29, %v4019_v44 }
 0x31b   : > { %5368 = vst [vmem:[%s6856_s16 + $0x68] sm:$0xff] %v5257_v53   ;;  %v3736_v5 = vadd.f32 %v3735_v9, %v3705_v16  ;;  %v3534_v46 = vpop.f32.mrf.mxu0  ;;  %v3160_v50 = vadd.f32 %v3122_v13, %v6823_v48  ;;  %v4188_v63 = vadd.f32 %v4187_v1, %v4157_v6 }
 0x31c   : > { %v3338_v48 = vpop.f32.mrf.mxu3  ;;  %v4121_v38 = vadd.f32 %v4120_v22, %v4021_v20 }
 0x31d   : > { %v3374_v36 = vadd.f32 %v3336_v32, %v3160_v50  ;;  %v4189_v54 = vadd.f32 %v4188_v63, %v4158_v4 }
 0x31f   : > { %v3572_v25 = vadd.f32 %v3534_v46, %v3374_v36  ;;  %v4024_v18 = vpop.f32.mrf.mxu1  ;;  %v4190_v60 = vadd.f32 %v4189_v54, %v4159_v49 }
 0x320   : > { %v4161_v35 = vmul.f32 %v4024_v18, %v4024_v18  ;;  %v4122_v27 = vadd.f32 %v4121_v38, %v4024_v18 }
 0x321   : > { %v3667_v28 = vadd.f32 %v3666_v8, %v3572_v25  ;;  %v3706_v19 = vmul.f32 %v3572_v25, %v3572_v25  ;;  %v4191_v30 = vadd.f32 %v4190_v60, %v4160_v2 }
 0x322   : > { %v3124_v14 = vpop.f32.mrf.mxu2 }
 0x323   : > { %v3737_v58 = vadd.f32 %v3736_v5, %v3706_v19  ;;  %v3536_v55 = vpop.f32.mrf.mxu0  ;;  %v3161_v37 = vadd.f32 %v3124_v14, %v6827_v17  ;;  %v4192_v45 = vadd.f32 %v4191_v30, %v4161_v35 }
 0x324   : > { %v3341_v17 = vpop.f32.mrf.mxu3 }
 0x325   : > { %v3375_v26 = vadd.f32 %v3338_v48, %v3161_v37 }
 0x327   : > { %v3573_v61 = vadd.f32 %v3536_v55, %v3375_v26  ;;  %v4026_v57 = vpop.f32.mrf.mxu1 }
 0x328   : > { %v5347_v9 = vpack.c.bf16 %v4026_v57, %v4024_v18  ;;  %v4123_v59 = vadd.f32 %v4122_v27, %v4026_v57  ;;  %v4162_v44 = vmul.f32 %v4026_v57, %v4026_v57 }
 0x329   : > { %v5262_v42 = vpack.c.bf16 %v3573_v61, %v3572_v25  ;;  %v3668_v34 = vadd.f32 %v3667_v28, %v3573_v61  ;;  %v3707_v23 = vmul.f32 %v3573_v61, %v3573_v61 }
 0x32a   : > { %v3127_v40 = vpop.f32.mrf.mxu2  ;;  %5385 = vst [vmem:[%s6841_s14 + $0x78] sm:$0xff] %v5347_v9   ;;  %v4124_v32 = vrot.slane %v4123_v59, 4  ;;  %v4193_v31 = vadd.f32 %v4192_v45, %v4162_v44  ;;  %s517_s14 = scalar_lea.vmem %s7019_s8, %s7246_s17 }
 0x32b   : > { %5369 = vst [vmem:[%s6856_s16 + $0x70] sm:$0xff] %v5262_v42   ;;  %v3738_v24 = vadd.f32 %v3737_v58, %v3707_v23  ;;  %v3162_v15 = vadd.f32 %v3127_v40, %v6833_v11  ;;  %v3539_v47 = vpop.f32.mrf.mxu0 }
 0x32c   : > { %v4125_v41 = vadd.f32 %v4124_v32, %v4123_v59  ;;  %v4194_v43 = vrot.slane %v4193_v31, 4  ;;  %v3343_v50 = vpop.f32.mrf.mxu3 }
 0x32d   : > { %v3376_v62 = vadd.f32 %v3341_v17, %v3162_v15 }
 0x32e   : > { %v4126_v53 = vrot.slane %v4125_v41, 2  ;;  %v4195_v8 = vadd.f32 %v4194_v43, %v4193_v31 }
 0x32f   : > { %v3574_v20 = vadd.f32 %v3539_v47, %v3376_v62 }
 0x330   : > { %v4127_v3 = vadd.f32 %v4126_v53, %v4125_v41  ;;  %v4196_v10 = vrot.slane %v4195_v8, 2 }
 0x331   : > { %v3669_v16 = vadd.f32 %v3668_v34, %v3574_v20  ;;  %v3708_v21 = vmul.f32 %v3574_v20, %v3574_v20 }
 0x332   : > { %v3129_v51 = vpop.f32.mrf.mxu2  ;;  %v4128_v5 = vrot.slane %v4127_v3, 1  ;;  %v4197_v46 = vadd.f32 %v4196_v10, %v4195_v8 }
 0x333   : > { %v3739_v13 = vadd.f32 %v3738_v24, %v3708_v21  ;;  %v3163_v11 = vadd.f32 %v3129_v51, %v6843_v0  ;;  %v3541_v36 = vpop.f32.mrf.mxu0 }
 0x334   : > { %v4129_v33 = vadd.f32 %v4128_v5, %v4127_v3  ;;  %v4198_v7 = vrot.slane %v4197_v46, 1 }
 0x335   : > { %v3377_v39 = vadd.f32 %v3343_v50, %v3163_v11 }
 0x336   : > { %4130 = vst [vmem:[%s534_s24] sm:$0x1] %v4129_v33  ;;  %v4199_v52 = vadd.f32 %v4198_v7, %v4197_v46 }
 0x337   : > { %v3575_v56 = vadd.f32 %v3541_v36, %v3377_v39 }
 0x338   : > { %4200 = vst [vmem:[%s540_s27] sm:$0x1] %v4199_v52 }
 0x339   : > { %v5267_v0 = vpack.c.bf16 %v3575_v56, %v3574_v20  ;;  %v3670_v6 = vadd.f32 %v3669_v16, %v3575_v56  ;;  %v3709_v25 = vmul.f32 %v3575_v56, %v3575_v56 }
 0x33b   : > { %5370 = vst [vmem:[%s6856_s16 + $0x78] sm:$0xff] %v5267_v0   ;;  %v3671_v1 = vrot.slane %v3670_v6, 4  ;;  %v3740_v12 = vadd.f32 %v3739_v13, %v3709_v25 }
 0x33d   : > { %v3672_v4 = vadd.f32 %v3671_v1, %v3670_v6  ;;  %v3741_v48 = vrot.slane %v3740_v12, 4 }
 0x33f   : > { %v3673_v18 = vrot.slane %v3672_v4, 2  ;;  %v3742_v28 = vadd.f32 %v3741_v48, %v3740_v12 }
 0x341   : > { %v3674_v19 = vadd.f32 %v3673_v18, %v3672_v4  ;;  %v3743_v63 = vrot.slane %v3742_v28, 2 }
 0x343   : > { %v3675_v29 = vrot.slane %v3674_v19, 1  ;;  %v3744_v49 = vadd.f32 %v3743_v63, %v3742_v28 }
 0x345   : > { %v3676_v14 = vadd.f32 %v3675_v29, %v3674_v19  ;;  %v3745_v58 = vrot.slane %v3744_v49, 1 }
 0x347   : > { %3677 = vst [vmem:[%s511_s30] sm:$0x1] %v3676_v14  ;;  %v3746_v55 = vadd.f32 %v3745_v58, %v3744_v49 }
 0x349   : > { %3747 = vst [vmem:[%s517_s14] sm:$0x1] %v3746_v55 }
 0x34a PF: > { %s22_s19 = sadd.s32 1, %s5457_s19   ;;  %s7241_s17 = smov %s5453_s18 }
 0x34b   : > { %p19_p5 = scmp.ge.s32.totalorder %s22_s19, 4   ;;  %s7242_s18 = smov %s7244_s20 }
 0x34d   :  { %21 = sbr.rel (!%p19_p5) target bundleno = 2 (0x2), region = 148 }

</bundles_post_ra>
